<compile_context>
chip_gen: v7x
topology: tpu7x:2x2x1
jax: 0.10.0
libtpu: 0.0.40
codegen_flags: <defaults>
</compile_context>

<pallas_src>
import functools

import jax
import jax.numpy as jnp
from jax.experimental import pallas as pl
from jax.experimental.pallas import tpu as pltpu


# ----------------------------- fused Pallas kernel ---------------------------

def _mbconv_fused_kernel(
    x_ref,                           # (B, Cin, HW)  channel-first input, HW lane-dense
    w_exp_ref,                       # (Cin, Ce)     expand 1x1 weight
    exp_scale_ref, exp_bias_ref,     # (1, Ce)       folded BN
    w_dw_ref,                        # (K*K, Ce)     depthwise weight (taps flattened)
    dw_scale_ref, dw_bias_ref,       # (1, Ce)       folded BN
    w_se1_ref, b_se1_ref,            # (Ce, Csq), (1, Csq)
    w_se2_ref, b_se2_ref,            # (Csq, Ce), (1, Ce)
    w_projT_ref,                     # (Cout, Ce)    project weight^T, proj BN scale folded
    proj_bias_ref,                   # (Cout, 1)     folded BN bias (channel-first)
    o_ref,                           # (B, Cout, HW) channel-first output, lane-dense
    hsh_ref,                         # VMEM scratch (K, H+2p, W, Ce): column-pre-shifted,
                                     #   H-padded copies of the expanded activation
    hdw_ref,                         # VMEM scratch (H, W, Ce): depthwise+SiLU output
    *, B, H, W, K, band,
):
    Ce = w_exp_ref.shape[1]
    HW = H * W
    pad = (K - 1) // 2

    # Zero only the H-pad border rows (2*pad rows per shifted buffer).  Done
    # every grid step (cheap) so it is also correct when the "parallel" grid is
    # megacore-sharded and each core has its own scratch.  Interior rows are
    # fully overwritten per image; the border rows are never written elsewhere.
    zrow = jnp.zeros((pad, W, Ce), jnp.float32)
    for kw in range(K):
        hsh_ref[kw, 0:pad, :, :] = zrow
        hsh_ref[kw, pad + H:pad + 2 * pad + H, :, :] = zrow

    # Column-validity masks for the pre-shifted copies (image-invariant).
    col_w = jax.lax.broadcasted_iota(jnp.int32, (W, Ce), 0)          # (W, Ce)
    col_masks = []
    for kw in range(K):
        dc = kw - pad
        if dc == 0:
            col_masks.append(None)
        else:
            col_masks.append((col_w >= -dc) & (col_w < W - dc))      # valid 0 <= c+dc < W

    # Hoisted weight / BN loads (shared across the B images of this step).
    w_exp = w_exp_ref[...]
    exp_scale = exp_scale_ref[...]
    exp_bias = exp_bias_ref[...]
    w_dw = w_dw_ref[...]                                             # (K*K, Ce)
    dw_scale = dw_scale_ref[...]
    dw_bias = dw_bias_ref[...]
    w_se1 = w_se1_ref[...]
    b_se1 = b_se1_ref[...]
    w_se2 = w_se2_ref[...]
    b_se2 = b_se2_ref[...]
    w_projT = w_projT_ref[...]                                       # (Cout, Ce)
    proj_bias = proj_bias_ref[...]                                   # (Cout, 1)

    for b in range(B):                       # images processed sequentially; scratch reused
        x_cf = x_ref[b]                      # (Cin, HW), stays in VMEM

        # ---- stage 1: expand 1x1 conv + folded BN + SiLU ----------------------
        # Contract Cin (dim 0 of both operands) -> (HW, Ce); keeps the wrapper
        # free of HBM transposes (NCHW handled via matmul dimension numbers).
        h = jax.lax.dot_general(
            x_cf, w_exp, (((0,), (0,)), ((), ())),
            preferred_element_type=jnp.float32)
        h = h * exp_scale + exp_bias
        h = h * jax.nn.sigmoid(h)                                    # SiLU, (HW, Ce)
        h3 = h.reshape(H, W, Ce)

        # ---- stage 2 prep: K column-pre-shifted, H-padded copies --------------
        # Roll along the flattened spatial (sublane) axis; entries that crossed a
        # row border (or wrapped) are exactly the out-of-range columns and are
        # zeroed by the mask.  All scratch stores are sublane-aligned (the pad
        # lives only on the untiled H axis), and every tap load below is aligned.
        for kw in range(K):
            dc = kw - pad
            if dc == 0:
                hk = h3
            else:
                rolled = pltpu.roll(h, (-dc) % HW, axis=0).reshape(H, W, Ce)
                hk = jnp.where(col_masks[kw], rolled, 0.0)
            hsh_ref[kw, pad:pad + H, :, :] = hk

        # ---- stage 2: depthwise KxK conv + BN + SiLU, in row bands ------------
        # ---- stage 3a: accumulate SE average pool on the fly ------------------
        pool_part = jnp.zeros((W, Ce), jnp.float32)
        for r0 in range(0, H, band):                                 # static bands
            acc = jnp.zeros((band, W, Ce), jnp.float32)
            for kh in range(K):                                      # static KxK taps
                for kw in range(K):
                    acc = acc + (hsh_ref[kw, r0 + kh:r0 + kh + band, :, :]
                                 * w_dw[kh * K + kw])
            yb = acc * dw_scale + dw_bias
            yb = yb * jax.nn.sigmoid(yb)                             # SiLU
            hdw_ref[r0:r0 + band, :, :] = yb
            pool_part = pool_part + jnp.sum(yb, axis=0)              # leading-dim sum (VALU)

        # ---- stage 3b: squeeze-excitation gate --------------------------------
        pooled = jnp.sum(pool_part, axis=0, keepdims=True) * (1.0 / float(HW))  # (1, Ce)
        s = jnp.dot(pooled, w_se1, preferred_element_type=jnp.float32) + b_se1
        s = s * jax.nn.sigmoid(s)                                    # SiLU
        s = jnp.dot(s, w_se2, preferred_element_type=jnp.float32) + b_se2
        gate = jax.nn.sigmoid(s)                                     # (1, Ce)

        # ---- stage 4: project 1x1 conv (+ gate & BN scale folded into weight) -
        w_eff = w_projT * gate                                       # (Cout, Ce), 4 vregs
        # Contract Ce -> (Cout, HW): result directly channel-first, lane-dense.
        y = jax.lax.dot_general(
            w_eff, hdw_ref[...].reshape(HW, Ce), (((1,), (1,)), ((), ())),
            preferred_element_type=jnp.float32)
        # TODO(synk): StochasticDepth('row') training-mode random row dropping not
        #             modeled; eval-mode (identity) semantics before the residual.
        o_ref[b] = y + proj_bias + x_cf                              # residual (Cin == Cout)


# --------------------------------- wrapper -----------------------------------

def _pick_band(H):
    for d in (8, 4, 2, 1):
        if H % d == 0:
            return d
    return 1


def _pick_batch_block(N, Cin, Cout, HW, vmem_budget_bytes=8 << 20, cap=16):
    """Largest B dividing N, keeping >=2 grid steps (v7x megacore) and the
    double-buffered in+out blocks under a conservative VMEM budget."""
    io_bytes_per_image = (Cin + Cout) * HW * 4
    best = 1
    for b in range(1, min(N, cap) + 1):
        if N % b:
            continue
        if N >= 2 and N // b < 2:
            continue
        if 2 * 2 * b * io_bytes_per_image <= vmem_budget_bytes:
            best = b
    return best


def mbconv_forward(x_nchw, p, *, batch_block=None):
    """MBConv forward. x_nchw: (N, Cin, H, W) float32 -> (N, Cout, H, W) float32."""
    x_nchw = x_nchw.astype(jnp.float32)
    N, Cin, H, W = x_nchw.shape
    Ce = p["w_exp"].shape[1]
    Csq = p["w_se1"].shape[1]
    Cout = p["w_proj"].shape[1]
    K = p["w_dw"].shape[0]
    pad = (K - 1) // 2
    HW = H * W

    # TODO(synk): only the stride=1, Cin==Cout residual variant (the configured
    #             block) is implemented; stride=2 / non-residual needs another path.
    assert Cin == Cout, "residual MBConv block requires Cin == Cout"

    band = _pick_band(H)
    B = batch_block if batch_block is not None else _pick_batch_block(N, Cin, Cout, HW)
    assert N % B == 0

    x_flat = x_nchw.reshape(N, Cin, HW)                   # free reshape, no transpose
    # Tiny weight prep in the wrapper: transpose proj weight and fold its BN scale.
    w_projT = jnp.transpose(p["w_proj"]) * p["proj_scale"].reshape(Cout, 1)   # (Cout, Ce)
    proj_bias = p["proj_bias"].reshape(Cout, 1)
    w_dw_flat = p["w_dw"].reshape(K * K, Ce)

    kernel = functools.partial(_mbconv_fused_kernel, B=B, H=H, W=W, K=K, band=band)

    y_flat = pl.pallas_call(
        kernel,
        out_shape=jax.ShapeDtypeStruct((N, Cout, HW), jnp.float32),
        grid=(N // B,),
        in_specs=[
            pl.BlockSpec((B, Cin, HW), lambda n: (n, 0, 0)),     # x (NCHW, flat HW)
            pl.BlockSpec((Cin, Ce), lambda n: (0, 0)),           # w_exp
            pl.BlockSpec((1, Ce), lambda n: (0, 0)),             # exp_scale
            pl.BlockSpec((1, Ce), lambda n: (0, 0)),             # exp_bias
            pl.BlockSpec((K * K, Ce), lambda n: (0, 0)),         # w_dw (taps flattened)
            pl.BlockSpec((1, Ce), lambda n: (0, 0)),             # dw_scale
            pl.BlockSpec((1, Ce), lambda n: (0, 0)),             # dw_bias
            pl.BlockSpec((Ce, Csq), lambda n: (0, 0)),           # w_se1
            pl.BlockSpec((1, Csq), lambda n: (0, 0)),            # b_se1
            pl.BlockSpec((Csq, Ce), lambda n: (0, 0)),           # w_se2
            pl.BlockSpec((1, Ce), lambda n: (0, 0)),             # b_se2
            pl.BlockSpec((Cout, Ce), lambda n: (0, 0)),          # w_proj^T (scale folded)
            pl.BlockSpec((Cout, 1), lambda n: (0, 0)),           # proj_bias
        ],
        out_specs=pl.BlockSpec((B, Cout, HW), lambda n: (n, 0, 0)),
        scratch_shapes=[
            pltpu.VMEM((K, H + 2 * pad, W, Ce), jnp.float32),    # K shifted, H-padded copies
            pltpu.VMEM((H, W, Ce), jnp.float32),                 # depthwise output
        ],
        compiler_params=pltpu.CompilerParams(
            dimension_semantics=("parallel",)),
    )(x_flat, p["w_exp"], p["exp_scale"], p["exp_bias"],
      w_dw_flat, p["dw_scale"], p["dw_bias"],
      p["w_se1"], p["b_se1"], p["w_se2"], p["b_se2"],
      w_projT, proj_bias)

    return y_flat.reshape(N, Cout, H, W)                  # free reshape, no transpose


# --------------------------- parameter init ----------------------------------

def _fold_bn(key, C, eps=1e-3):
    k1, k2, k3, k4 = jax.random.split(key, 4)
    gamma = jax.random.uniform(k1, (C,), minval=0.5, maxval=1.5)
    beta = 0.1 * jax.random.normal(k2, (C,))
    mean = 0.1 * jax.random.normal(k3, (C,))
    var = jax.random.uniform(k4, (C,), minval=0.5, maxval=1.5)
    scale = gamma / jnp.sqrt(var + eps)
    bias = beta - mean * scale
    return (scale.reshape(1, C).astype(jnp.float32),
            bias.reshape(1, C).astype(jnp.float32))


def init_params(key, Cin, Ce, Csq, Cout, K):
    ks = jax.random.split(key, 10)
    p = {}
    p["w_exp"] = (jax.random.normal(ks[0], (Cin, Ce)) / jnp.sqrt(Cin)).astype(jnp.float32)
    p["exp_scale"], p["exp_bias"] = _fold_bn(ks[1], Ce)
    p["w_dw"] = (jax.random.normal(ks[2], (K, K, Ce)) / K).astype(jnp.float32)
    p["dw_scale"], p["dw_bias"] = _fold_bn(ks[3], Ce)
    p["w_se1"] = (jax.random.normal(ks[4], (Ce, Csq)) / jnp.sqrt(Ce)).astype(jnp.float32)
    p["b_se1"] = (0.1 * jax.random.normal(ks[5], (1, Csq))).astype(jnp.float32)
    p["w_se2"] = (jax.random.normal(ks[6], (Csq, Ce)) / jnp.sqrt(Csq)).astype(jnp.float32)
    p["b_se2"] = (0.1 * jax.random.normal(ks[7], (1, Ce))).astype(jnp.float32)
    p["w_proj"] = (jax.random.normal(ks[8], (Ce, Cout)) / jnp.sqrt(Ce)).astype(jnp.float32)
    p["proj_scale"], p["proj_bias"] = _fold_bn(ks[9], Cout)
    return p


# ----------------------------- pure-JAX reference ----------------------------

def reference_forward(x_nchw, p):
    x = jnp.transpose(x_nchw, (0, 2, 3, 1)).astype(jnp.float32)  # NHWC
    N, H, W, Cin = x.shape
    Ce = p["w_exp"].shape[1]
    Cout = p["w_proj"].shape[1]
    K = p["w_dw"].shape[0]
    dn = ("NHWC", "HWIO", "NHWC")

    h = jax.lax.conv_general_dilated(x, p["w_exp"].reshape(1, 1, Cin, Ce),
                                     (1, 1), "SAME", dimension_numbers=dn)
    h = jax.nn.silu(h * p["exp_scale"] + p["exp_bias"])

    h = jax.lax.conv_general_dilated(h, p["w_dw"].reshape(K, K, 1, Ce),
                                     (1, 1), "SAME", dimension_numbers=dn,
                                     feature_group_count=Ce)
    h = jax.nn.silu(h * p["dw_scale"] + p["dw_bias"])

    pooled = jnp.mean(h, axis=(1, 2))                                  # (N, Ce)
    s = jax.nn.silu(pooled @ p["w_se1"] + p["b_se1"])
    gate = jax.nn.sigmoid(s @ p["w_se2"] + p["b_se2"])
    h = h * gate[:, None, None, :]

    y = jax.lax.conv_general_dilated(h, p["w_proj"].reshape(1, 1, Ce, Cout),
                                     (1, 1), "SAME", dimension_numbers=dn)
    y = y * p["proj_scale"] + p["proj_bias"]
    y = y + x                                                          # residual (eval)
    return jnp.transpose(y, (0, 3, 1, 2))


# ----------------------------------- main -------------------------------------

if __name__ == "__main__":
    # MBConvConfig(expand_ratio=4, kernel=3, stride=1, in=32, out=32, w_mult=1, d_mult=1)
    N, Cin, H, W = 4, 32, 16, 16       # N=4 exercises batch-blocking (B=2, grid=(2,))
    expand_ratio, K = 4, 3
    Ce = Cin * expand_ratio            # adjust_channels(32, 4.0) = 128
    Csq = max(1, Cin // 4)             # 8
    Cout = Cin                         # stride=1, in==out -> residual connection

    key = jax.random.PRNGKey(0)
    kx, kp = jax.random.split(key)
    x = jax.random.normal(kx, (N, Cin, H, W), jnp.float32)
    params = init_params(kp, Cin, Ce, Csq, Cout, K)

    out = jax.block_until_ready(mbconv_forward(x, params))
    ref = jax.block_until_ready(reference_forward(x, params))

    assert out.shape == (N, Cout, H, W)
    assert jnp.allclose(out, ref, rtol=2e-3, atol=2e-3), \
        f"max abs err = {jnp.max(jnp.abs(out - ref))}"

    print("KERNEL_OK")
</pallas_src>

<mosaic_0001>
module attributes {stable_mosaic.version = 11 : i64} {
  func.func @_mbconv_fused_kernel(%arg0: i32, %arg1: memref<2x32x256xf32, #tpu.memory_space<vmem>>, %arg2: memref<32x128xf32, #tpu.memory_space<vmem>>, %arg3: memref<1x128xf32, #tpu.memory_space<vmem>>, %arg4: memref<1x128xf32, #tpu.memory_space<vmem>>, %arg5: memref<9x128xf32, #tpu.memory_space<vmem>>, %arg6: memref<1x128xf32, #tpu.memory_space<vmem>>, %arg7: memref<1x128xf32, #tpu.memory_space<vmem>>, %arg8: memref<128x8xf32, #tpu.memory_space<vmem>>, %arg9: memref<1x8xf32, #tpu.memory_space<vmem>>, %arg10: memref<8x128xf32, #tpu.memory_space<vmem>>, %arg11: memref<1x128xf32, #tpu.memory_space<vmem>>, %arg12: memref<32x128xf32, #tpu.memory_space<vmem>>, %arg13: memref<32x1xf32, #tpu.memory_space<vmem>>, %arg14: memref<2x32x256xf32, #tpu.memory_space<vmem>>, %arg15: memref<3x18x16x128xf32, #tpu.memory_space<vmem>>, %arg16: memref<16x16x128xf32, #tpu.memory_space<vmem>>) attributes {dimension_semantics = [#tpu.dimension_semantics<parallel>], iteration_bounds = array<i64: 2>, scalar_prefetch = 0 : i64, scratch_operands = 2 : i64, tpu.core_type = #tpu.core_type<tc>, window_params = [{transform_indices = @transform_0, window_bounds = array<i64: 2, 32, 256>}, {pipeline_mode = #tpu.pipeline_mode<synchronous>, transform_indices = @transform_1, window_bounds = array<i64: 32, 128>}, {pipeline_mode = #tpu.pipeline_mode<synchronous>, transform_indices = @transform_2, window_bounds = array<i64: 1, 128>}, {pipeline_mode = #tpu.pipeline_mode<synchronous>, transform_indices = @transform_3, window_bounds = array<i64: 1, 128>}, {pipeline_mode = #tpu.pipeline_mode<synchronous>, transform_indices = @transform_4, window_bounds = array<i64: 9, 128>}, {pipeline_mode = #tpu.pipeline_mode<synchronous>, transform_indices = @transform_5, window_bounds = array<i64: 1, 128>}, {pipeline_mode = #tpu.pipeline_mode<synchronous>, transform_indices = @transform_6, window_bounds = array<i64: 1, 128>}, {pipeline_mode = #tpu.pipeline_mode<synchronous>, transform_indices = @transform_7, window_bounds = array<i64: 128, 8>}, {pipeline_mode = #tpu.pipeline_mode<synchronous>, transform_indices = @transform_8, window_bounds = array<i64: 1, 8>}, {pipeline_mode = #tpu.pipeline_mode<synchronous>, transform_indices = @transform_9, window_bounds = array<i64: 8, 128>}, {pipeline_mode = #tpu.pipeline_mode<synchronous>, transform_indices = @transform_10, window_bounds = array<i64: 1, 128>}, {pipeline_mode = #tpu.pipeline_mode<synchronous>, transform_indices = @transform_11, window_bounds = array<i64: 32, 128>}, {pipeline_mode = #tpu.pipeline_mode<synchronous>, transform_indices = @transform_12, window_bounds = array<i64: 32, 1>}, {transform_indices = @transform_13, window_bounds = array<i64: 2, 32, 256>}]} {
    %cst = arith.constant 0.000000e+00 : f32
    %0 = vector.broadcast %cst : f32 to vector<1x16x128xf32>
    %c0 = arith.constant 0 : index
    %c0_0 = arith.constant 0 : index
    %c0_1 = arith.constant 0 : index
    %c0_2 = arith.constant 0 : index
    %1 = vector.load %arg15[%c0, %c0_0, %c0_1, %c0_2] : memref<3x18x16x128xf32, #tpu.memory_space<vmem>>, vector<1x1x16x128xf32>
    %2 = vector.shape_cast %1 : vector<1x1x16x128xf32> to vector<1x16x128xf32>
    %3 = vector.shape_cast %0 : vector<1x16x128xf32> to vector<1x1x16x128xf32>
    tpu.vector_store %arg15[%c0, %c0_0, %c0_1, %c0_2], %3 {strides = array<i32>} : memref<3x18x16x128xf32, #tpu.memory_space<vmem>>, vector<1x1x16x128xf32>,
    %c0_3 = arith.constant 0 : index
    %c17 = arith.constant 17 : index
    %c0_4 = arith.constant 0 : index
    %c0_5 = arith.constant 0 : index
    %4 = vector.load %arg15[%c0_3, %c17, %c0_4, %c0_5] : memref<3x18x16x128xf32, #tpu.memory_space<vmem>>, vector<1x1x16x128xf32>
    %5 = vector.shape_cast %4 : vector<1x1x16x128xf32> to vector<1x16x128xf32>
    %6 = vector.shape_cast %0 : vector<1x16x128xf32> to vector<1x1x16x128xf32>
    tpu.vector_store %arg15[%c0_3, %c17, %c0_4, %c0_5], %6 {strides = array<i32>} : memref<3x18x16x128xf32, #tpu.memory_space<vmem>>, vector<1x1x16x128xf32>,
    %c1 = arith.constant 1 : index
    %c0_6 = arith.constant 0 : index
    %c0_7 = arith.constant 0 : index
    %c0_8 = arith.constant 0 : index
    %7 = vector.load %arg15[%c1, %c0_6, %c0_7, %c0_8] : memref<3x18x16x128xf32, #tpu.memory_space<vmem>>, vector<1x1x16x128xf32>
    %8 = vector.shape_cast %7 : vector<1x1x16x128xf32> to vector<1x16x128xf32>
    %9 = vector.shape_cast %0 : vector<1x16x128xf32> to vector<1x1x16x128xf32>
    tpu.vector_store %arg15[%c1, %c0_6, %c0_7, %c0_8], %9 {strides = array<i32>} : memref<3x18x16x128xf32, #tpu.memory_space<vmem>>, vector<1x1x16x128xf32>,
    %c1_9 = arith.constant 1 : index
    %c17_10 = arith.constant 17 : index
    %c0_11 = arith.constant 0 : index
    %c0_12 = arith.constant 0 : index
    %10 = vector.load %arg15[%c1_9, %c17_10, %c0_11, %c0_12] : memref<3x18x16x128xf32, #tpu.memory_space<vmem>>, vector<1x1x16x128xf32>
    %11 = vector.shape_cast %10 : vector<1x1x16x128xf32> to vector<1x16x128xf32>
    %12 = vector.shape_cast %0 : vector<1x16x128xf32> to vector<1x1x16x128xf32>
    tpu.vector_store %arg15[%c1_9, %c17_10, %c0_11, %c0_12], %12 {strides = array<i32>} : memref<3x18x16x128xf32, #tpu.memory_space<vmem>>, vector<1x1x16x128xf32>,
    %c2 = arith.constant 2 : index
    %c0_13 = arith.constant 0 : index
    %c0_14 = arith.constant 0 : index
    %c0_15 = arith.constant 0 : index
    %13 = vector.load %arg15[%c2, %c0_13, %c0_14, %c0_15] : memref<3x18x16x128xf32, #tpu.memory_space<vmem>>, vector<1x1x16x128xf32>
    %14 = vector.shape_cast %13 : vector<1x1x16x128xf32> to vector<1x16x128xf32>
    %15 = vector.shape_cast %0 : vector<1x16x128xf32> to vector<1x1x16x128xf32>
    tpu.vector_store %arg15[%c2, %c0_13, %c0_14, %c0_15], %15 {strides = array<i32>} : memref<3x18x16x128xf32, #tpu.memory_space<vmem>>, vector<1x1x16x128xf32>,
    %c2_16 = arith.constant 2 : index
    %c17_17 = arith.constant 17 : index
    %c0_18 = arith.constant 0 : index
    %c0_19 = arith.constant 0 : index
    %16 = vector.load %arg15[%c2_16, %c17_17, %c0_18, %c0_19] : memref<3x18x16x128xf32, #tpu.memory_space<vmem>>, vector<1x1x16x128xf32>
    %17 = vector.shape_cast %16 : vector<1x1x16x128xf32> to vector<1x16x128xf32>
    %18 = vector.shape_cast %0 : vector<1x16x128xf32> to vector<1x1x16x128xf32>
    tpu.vector_store %arg15[%c2_16, %c17_17, %c0_18, %c0_19], %18 {strides = array<i32>} : memref<3x18x16x128xf32, #tpu.memory_space<vmem>>, vector<1x1x16x128xf32>,
    %19 = tpu.iota {dimensions = array<i32: 0>} : vector<16x128xi32>
    %c1_i32 = arith.constant 1 : i32
    %20 = vector.broadcast %c1_i32 : i32 to vector<16x128xi32>
    %21 = arith.cmpi sge, %19, %20 : vector<16x128xi32>
    %c17_i32 = arith.constant 17 : i32
    %22 = vector.broadcast %c17_i32 : i32 to vector<16x128xi32>
    %23 = arith.cmpi slt, %19, %22 : vector<16x128xi32>
    %24 = arith.andi %21, %23 : vector<16x128xi1>
    %c-1_i32 = arith.constant -1 : i32
    %25 = vector.broadcast %c-1_i32 : i32 to vector<16x128xi32>
    %26 = arith.cmpi sge, %19, %25 : vector<16x128xi32>
    %c15_i32 = arith.constant 15 : i32
    %27 = vector.broadcast %c15_i32 : i32 to vector<16x128xi32>
    %28 = arith.cmpi slt, %19, %27 : vector<16x128xi32>
    %29 = arith.andi %26, %28 : vector<16x128xi1>
    %c0_20 = arith.constant 0 : index
    %c0_21 = arith.constant 0 : index
    %30 = vector.load %arg2[%c0_20, %c0_21] : memref<32x128xf32, #tpu.memory_space<vmem>>, vector<32x128xf32>
    %c0_22 = arith.constant 0 : index
    %c0_23 = arith.constant 0 : index
    %31 = vector.load %arg3[%c0_22, %c0_23] : memref<1x128xf32, #tpu.memory_space<vmem>>, vector<1x128xf32>
    %c0_24 = arith.constant 0 : index
    %c0_25 = arith.constant 0 : index
    %32 = vector.load %arg4[%c0_24, %c0_25] : memref<1x128xf32, #tpu.memory_space<vmem>>, vector<1x128xf32>
    %c0_26 = arith.constant 0 : index
    %c0_27 = arith.constant 0 : index
    %33 = vector.load %arg5[%c0_26, %c0_27] : memref<9x128xf32, #tpu.memory_space<vmem>>, vector<9x128xf32>
    %c0_28 = arith.constant 0 : index
    %c0_29 = arith.constant 0 : index
    %34 = vector.load %arg6[%c0_28, %c0_29] : memref<1x128xf32, #tpu.memory_space<vmem>>, vector<1x128xf32>
    %c0_30 = arith.constant 0 : index
    %c0_31 = arith.constant 0 : index
    %35 = vector.load %arg7[%c0_30, %c0_31] : memref<1x128xf32, #tpu.memory_space<vmem>>, vector<1x128xf32>
    %c0_32 = arith.constant 0 : index
    %c0_33 = arith.constant 0 : index
    %36 = vector.load %arg8[%c0_32, %c0_33] : memref<128x8xf32, #tpu.memory_space<vmem>>, vector<128x8xf32>
    %c0_34 = arith.constant 0 : index
    %c0_35 = arith.constant 0 : index
    %37 = vector.load %arg9[%c0_34, %c0_35] : memref<1x8xf32, #tpu.memory_space<vmem>>, vector<1x8xf32>
    %c0_36 = arith.constant 0 : index
    %c0_37 = arith.constant 0 : index
    %38 = vector.load %arg10[%c0_36, %c0_37] : memref<8x128xf32, #tpu.memory_space<vmem>>, vector<8x128xf32>
    %c0_38 = arith.constant 0 : index
    %c0_39 = arith.constant 0 : index
    %39 = vector.load %arg11[%c0_38, %c0_39] : memref<1x128xf32, #tpu.memory_space<vmem>>, vector<1x128xf32>
    %c0_40 = arith.constant 0 : index
    %c0_41 = arith.constant 0 : index
    %40 = vector.load %arg12[%c0_40, %c0_41] : memref<32x128xf32, #tpu.memory_space<vmem>>, vector<32x128xf32>
    %c0_42 = arith.constant 0 : index
    %c0_43 = arith.constant 0 : index
    %41 = vector.load %arg13[%c0_42, %c0_43] : memref<32x1xf32, #tpu.memory_space<vmem>>, vector<32x1xf32>
    %c0_44 = arith.constant 0 : index
    %c0_45 = arith.constant 0 : index
    %c0_46 = arith.constant 0 : index
    %42 = vector.load %arg1[%c0_44, %c0_45, %c0_46] : memref<2x32x256xf32, #tpu.memory_space<vmem>>, vector<1x32x256xf32>
    %43 = vector.shape_cast %42 : vector<1x32x256xf32> to vector<32x256xf32>
    %cst_47 = arith.constant dense<0.000000e+00> : vector<256x128xf32>
    %44 = tpu.matmul %43, %30, %cst_47 {dimension_numbers = #tpu.dot_dimension_numbers<[0], [0], [1], [1], [0, 1, 1, 1], [], []>} : vector<32x256xf32>, vector<32x128xf32>, vector<256x128xf32> -> vector<256x128xf32>
    %45 = vector.broadcast %31 : vector<1x128xf32> to vector<256x128xf32>
    %46 = arith.mulf %44, %45 : vector<256x128xf32>
    %47 = vector.broadcast %32 : vector<1x128xf32> to vector<256x128xf32>
    %48 = arith.addf %46, %47 : vector<256x128xf32>
    %49 = arith.negf %48 : vector<256x128xf32>
    %50 = math.exp %49 : vector<256x128xf32>
    %cst_48 = arith.constant 1.000000e+00 : f32
    %51 = vector.broadcast %cst_48 : f32 to vector<256x128xf32>
    %52 = arith.addf %51, %50 : vector<256x128xf32>
    %53 = arith.divf %51, %52 : vector<256x128xf32>
    %54 = arith.mulf %48, %53 : vector<256x128xf32>
    %55 = vector.shape_cast %54 : vector<256x128xf32> to vector<16x16x128xf32>
    %c1_i32_49 = arith.constant 1 : i32
    %56 = tpu.dynamic_rotate %54 by %c1_i32_49 dim 0 : vector<256x128xf32>, i32 -> vector<256x128xf32>
    %57 = vector.shape_cast %56 : vector<256x128xf32> to vector<16x16x128xf32>
    %cst_50 = arith.constant 0.000000e+00 : f32
    %58 = vector.shape_cast %24 : vector<16x128xi1> to vector<1x16x128xi1>
    %59 = vector.broadcast %58 : vector<1x16x128xi1> to vector<16x16x128xi1>
    %60 = vector.broadcast %cst_50 : f32 to vector<16x16x128xf32>
    %61 = arith.select %59, %57, %60 : vector<16x16x128xi1>, vector<16x16x128xf32>
    %c0_51 = arith.constant 0 : index
    %c1_52 = arith.constant 1 : index
    %c0_53 = arith.constant 0 : index
    %c0_54 = arith.constant 0 : index
    %62 = vector.load %arg15[%c0_51, %c1_52, %c0_53, %c0_54] : memref<3x18x16x128xf32, #tpu.memory_space<vmem>>, vector<1x16x16x128xf32>
    %63 = vector.shape_cast %62 : vector<1x16x16x128xf32> to vector<16x16x128xf32>
    %64 = vector.shape_cast %61 : vector<16x16x128xf32> to vector<1x16x16x128xf32>
    tpu.vector_store %arg15[%c0_51, %c1_52, %c0_53, %c0_54], %64 {strides = array<i32>} : memref<3x18x16x128xf32, #tpu.memory_space<vmem>>, vector<1x16x16x128xf32>,
    %c1_55 = arith.constant 1 : index
    %c1_56 = arith.constant 1 : index
    %c0_57 = arith.constant 0 : index
    %c0_58 = arith.constant 0 : index
    %65 = vector.load %arg15[%c1_55, %c1_56, %c0_57, %c0_58] : memref<3x18x16x128xf32, #tpu.memory_space<vmem>>, vector<1x16x16x128xf32>
    %66 = vector.shape_cast %65 : vector<1x16x16x128xf32> to vector<16x16x128xf32>
    %67 = vector.shape_cast %55 : vector<16x16x128xf32> to vector<1x16x16x128xf32>
    tpu.vector_store %arg15[%c1_55, %c1_56, %c0_57, %c0_58], %67 {strides = array<i32>} : memref<3x18x16x128xf32, #tpu.memory_space<vmem>>, vector<1x16x16x128xf32>,
    %c255_i32 = arith.constant 255 : i32
    %68 = tpu.dynamic_rotate %54 by %c255_i32 dim 0 : vector<256x128xf32>, i32 -> vector<256x128xf32>
    %69 = vector.shape_cast %68 : vector<256x128xf32> to vector<16x16x128xf32>
    %cst_59 = arith.constant 0.000000e+00 : f32
    %70 = vector.shape_cast %29 : vector<16x128xi1> to vector<1x16x128xi1>
    %71 = vector.broadcast %70 : vector<1x16x128xi1> to vector<16x16x128xi1>
    %72 = vector.broadcast %cst_59 : f32 to vector<16x16x128xf32>
    %73 = arith.select %71, %69, %72 : vector<16x16x128xi1>, vector<16x16x128xf32>
    %c2_60 = arith.constant 2 : index
    %c1_61 = arith.constant 1 : index
    %c0_62 = arith.constant 0 : index
    %c0_63 = arith.constant 0 : index
    %74 = vector.load %arg15[%c2_60, %c1_61, %c0_62, %c0_63] : memref<3x18x16x128xf32, #tpu.memory_space<vmem>>, vector<1x16x16x128xf32>
    %75 = vector.shape_cast %74 : vector<1x16x16x128xf32> to vector<16x16x128xf32>
    %76 = vector.shape_cast %73 : vector<16x16x128xf32> to vector<1x16x16x128xf32>
    tpu.vector_store %arg15[%c2_60, %c1_61, %c0_62, %c0_63], %76 {strides = array<i32>} : memref<3x18x16x128xf32, #tpu.memory_space<vmem>>, vector<1x16x16x128xf32>,
    %cst_64 = arith.constant 0.000000e+00 : f32
    %77 = vector.broadcast %cst_64 : f32 to vector<16x128xf32>
    %cst_65 = arith.constant 0.000000e+00 : f32
    %78 = vector.broadcast %cst_65 : f32 to vector<8x16x128xf32>
    %c0_66 = arith.constant 0 : index
    %c0_67 = arith.constant 0 : index
    %c0_68 = arith.constant 0 : index
    %c0_69 = arith.constant 0 : index
    %79 = vector.load %arg15[%c0_66, %c0_67, %c0_68, %c0_69] : memref<3x18x16x128xf32, #tpu.memory_space<vmem>>, vector<1x8x16x128xf32>
    %80 = vector.shape_cast %79 : vector<1x8x16x128xf32> to vector<8x16x128xf32>
    %81 = vector.extract_strided_slice %33 {offsets = [0, 0], sizes = [1, 128], strides = [1, 1]} : vector<9x128xf32> to vector<1x128xf32>
    %82 = vector.shape_cast %81 : vector<1x128xf32> to vector<128xf32>
    %83 = vector.shape_cast %82 : vector<128xf32> to vector<1x1x128xf32>
    %84 = vector.broadcast %83 : vector<1x1x128xf32> to vector<8x16x128xf32>
    %85 = arith.mulf %80, %84 : vector<8x16x128xf32>
    %86 = arith.addf %78, %85 : vector<8x16x128xf32>
    %c1_70 = arith.constant 1 : index
    %c0_71 = arith.constant 0 : index
    %c0_72 = arith.constant 0 : index
    %c0_73 = arith.constant 0 : index
    %87 = vector.load %arg15[%c1_70, %c0_71, %c0_72, %c0_73] : memref<3x18x16x128xf32, #tpu.memory_space<vmem>>, vector<1x8x16x128xf32>
    %88 = vector.shape_cast %87 : vector<1x8x16x128xf32> to vector<8x16x128xf32>
    %89 = vector.extract_strided_slice %33 {offsets = [1, 0], sizes = [1, 128], strides = [1, 1]} : vector<9x128xf32> to vector<1x128xf32>
    %90 = vector.shape_cast %89 : vector<1x128xf32> to vector<128xf32>
    %91 = vector.shape_cast %90 : vector<128xf32> to vector<1x1x128xf32>
    %92 = vector.broadcast %91 : vector<1x1x128xf32> to vector<8x16x128xf32>
    %93 = arith.mulf %88, %92 : vector<8x16x128xf32>
    %94 = arith.addf %86, %93 : vector<8x16x128xf32>
    %c2_74 = arith.constant 2 : index
    %c0_75 = arith.constant 0 : index
    %c0_76 = arith.constant 0 : index
    %c0_77 = arith.constant 0 : index
    %95 = vector.load %arg15[%c2_74, %c0_75, %c0_76, %c0_77] : memref<3x18x16x128xf32, #tpu.memory_space<vmem>>, vector<1x8x16x128xf32>
    %96 = vector.shape_cast %95 : vector<1x8x16x128xf32> to vector<8x16x128xf32>
    %97 = vector.extract_strided_slice %33 {offsets = [2, 0], sizes = [1, 128], strides = [1, 1]} : vector<9x128xf32> to vector<1x128xf32>
    %98 = vector.shape_cast %97 : vector<1x128xf32> to vector<128xf32>
    %99 = vector.shape_cast %98 : vector<128xf32> to vector<1x1x128xf32>
    %100 = vector.broadcast %99 : vector<1x1x128xf32> to vector<8x16x128xf32>
    %101 = arith.mulf %96, %100 : vector<8x16x128xf32>
    %102 = arith.addf %94, %101 : vector<8x16x128xf32>
    %c0_78 = arith.constant 0 : index
    %c1_79 = arith.constant 1 : index
    %c0_80 = arith.constant 0 : index
    %c0_81 = arith.constant 0 : index
    %103 = vector.load %arg15[%c0_78, %c1_79, %c0_80, %c0_81] : memref<3x18x16x128xf32, #tpu.memory_space<vmem>>, vector<1x8x16x128xf32>
    %104 = vector.shape_cast %103 : vector<1x8x16x128xf32> to vector<8x16x128xf32>
    %105 = vector.extract_strided_slice %33 {offsets = [3, 0], sizes = [1, 128], strides = [1, 1]} : vector<9x128xf32> to vector<1x128xf32>
    %106 = vector.shape_cast %105 : vector<1x128xf32> to vector<128xf32>
    %107 = vector.shape_cast %106 : vector<128xf32> to vector<1x1x128xf32>
    %108 = vector.broadcast %107 : vector<1x1x128xf32> to vector<8x16x128xf32>
    %109 = arith.mulf %104, %108 : vector<8x16x128xf32>
    %110 = arith.addf %102, %109 : vector<8x16x128xf32>
    %c1_82 = arith.constant 1 : index
    %c1_83 = arith.constant 1 : index
    %c0_84 = arith.constant 0 : index
    %c0_85 = arith.constant 0 : index
    %111 = vector.load %arg15[%c1_82, %c1_83, %c0_84, %c0_85] : memref<3x18x16x128xf32, #tpu.memory_space<vmem>>, vector<1x8x16x128xf32>
    %112 = vector.shape_cast %111 : vector<1x8x16x128xf32> to vector<8x16x128xf32>
    %113 = vector.extract_strided_slice %33 {offsets = [4, 0], sizes = [1, 128], strides = [1, 1]} : vector<9x128xf32> to vector<1x128xf32>
    %114 = vector.shape_cast %113 : vector<1x128xf32> to vector<128xf32>
    %115 = vector.shape_cast %114 : vector<128xf32> to vector<1x1x128xf32>
    %116 = vector.broadcast %115 : vector<1x1x128xf32> to vector<8x16x128xf32>
    %117 = arith.mulf %112, %116 : vector<8x16x128xf32>
    %118 = arith.addf %110, %117 : vector<8x16x128xf32>
    %c2_86 = arith.constant 2 : index
    %c1_87 = arith.constant 1 : index
    %c0_88 = arith.constant 0 : index
    %c0_89 = arith.constant 0 : index
    %119 = vector.load %arg15[%c2_86, %c1_87, %c0_88, %c0_89] : memref<3x18x16x128xf32, #tpu.memory_space<vmem>>, vector<1x8x16x128xf32>
    %120 = vector.shape_cast %119 : vector<1x8x16x128xf32> to vector<8x16x128xf32>
    %121 = vector.extract_strided_slice %33 {offsets = [5, 0], sizes = [1, 128], strides = [1, 1]} : vector<9x128xf32> to vector<1x128xf32>
    %122 = vector.shape_cast %121 : vector<1x128xf32> to vector<128xf32>
    %123 = vector.shape_cast %122 : vector<128xf32> to vector<1x1x128xf32>
    %124 = vector.broadcast %123 : vector<1x1x128xf32> to vector<8x16x128xf32>
    %125 = arith.mulf %120, %124 : vector<8x16x128xf32>
    %126 = arith.addf %118, %125 : vector<8x16x128xf32>
    %c0_90 = arith.constant 0 : index
    %c2_91 = arith.constant 2 : index
    %c0_92 = arith.constant 0 : index
    %c0_93 = arith.constant 0 : index
    %127 = vector.load %arg15[%c0_90, %c2_91, %c0_92, %c0_93] : memref<3x18x16x128xf32, #tpu.memory_space<vmem>>, vector<1x8x16x128xf32>
    %128 = vector.shape_cast %127 : vector<1x8x16x128xf32> to vector<8x16x128xf32>
    %129 = vector.extract_strided_slice %33 {offsets = [6, 0], sizes = [1, 128], strides = [1, 1]} : vector<9x128xf32> to vector<1x128xf32>
    %130 = vector.shape_cast %129 : vector<1x128xf32> to vector<128xf32>
    %131 = vector.shape_cast %130 : vector<128xf32> to vector<1x1x128xf32>
    %132 = vector.broadcast %131 : vector<1x1x128xf32> to vector<8x16x128xf32>
    %133 = arith.mulf %128, %132 : vector<8x16x128xf32>
    %134 = arith.addf %126, %133 : vector<8x16x128xf32>
    %c1_94 = arith.constant 1 : index
    %c2_95 = arith.constant 2 : index
    %c0_96 = arith.constant 0 : index
    %c0_97 = arith.constant 0 : index
    %135 = vector.load %arg15[%c1_94, %c2_95, %c0_96, %c0_97] : memref<3x18x16x128xf32, #tpu.memory_space<vmem>>, vector<1x8x16x128xf32>
    %136 = vector.shape_cast %135 : vector<1x8x16x128xf32> to vector<8x16x128xf32>
    %137 = vector.extract_strided_slice %33 {offsets = [7, 0], sizes = [1, 128], strides = [1, 1]} : vector<9x128xf32> to vector<1x128xf32>
    %138 = vector.shape_cast %137 : vector<1x128xf32> to vector<128xf32>
    %139 = vector.shape_cast %138 : vector<128xf32> to vector<1x1x128xf32>
    %140 = vector.broadcast %139 : vector<1x1x128xf32> to vector<8x16x128xf32>
    %141 = arith.mulf %136, %140 : vector<8x16x128xf32>
    %142 = arith.addf %134, %141 : vector<8x16x128xf32>
    %c2_98 = arith.constant 2 : index
    %c2_99 = arith.constant 2 : index
    %c0_100 = arith.constant 0 : index
    %c0_101 = arith.constant 0 : index
    %143 = vector.load %arg15[%c2_98, %c2_99, %c0_100, %c0_101] : memref<3x18x16x128xf32, #tpu.memory_space<vmem>>, vector<1x8x16x128xf32>
    %144 = vector.shape_cast %143 : vector<1x8x16x128xf32> to vector<8x16x128xf32>
    %145 = vector.extract_strided_slice %33 {offsets = [8, 0], sizes = [1, 128], strides = [1, 1]} : vector<9x128xf32> to vector<1x128xf32>
    %146 = vector.shape_cast %145 : vector<1x128xf32> to vector<128xf32>
    %147 = vector.shape_cast %146 : vector<128xf32> to vector<1x1x128xf32>
    %148 = vector.broadcast %147 : vector<1x1x128xf32> to vector<8x16x128xf32>
    %149 = arith.mulf %144, %148 : vector<8x16x128xf32>
    %150 = arith.addf %142, %149 : vector<8x16x128xf32>
    %151 = vector.shape_cast %34 : vector<1x128xf32> to vector<1x1x128xf32>
    %152 = vector.broadcast %151 : vector<1x1x128xf32> to vector<8x16x128xf32>
    %153 = arith.mulf %150, %152 : vector<8x16x128xf32>
    %154 = vector.shape_cast %35 : vector<1x128xf32> to vector<1x1x128xf32>
    %155 = vector.broadcast %154 : vector<1x1x128xf32> to vector<8x16x128xf32>
    %156 = arith.addf %153, %155 : vector<8x16x128xf32>
    %157 = arith.negf %156 : vector<8x16x128xf32>
    %158 = math.exp %157 : vector<8x16x128xf32>
    %cst_102 = arith.constant 1.000000e+00 : f32
    %159 = vector.broadcast %cst_102 : f32 to vector<8x16x128xf32>
    %160 = arith.addf %159, %158 : vector<8x16x128xf32>
    %161 = arith.divf %159, %160 : vector<8x16x128xf32>
    %162 = arith.mulf %156, %161 : vector<8x16x128xf32>
    %c0_103 = arith.constant 0 : index
    %c0_104 = arith.constant 0 : index
    %c0_105 = arith.constant 0 : index
    %163 = vector.load %arg16[%c0_103, %c0_104, %c0_105] : memref<16x16x128xf32, #tpu.memory_space<vmem>>, vector<8x16x128xf32>
    tpu.vector_store %arg16[%c0_103, %c0_104, %c0_105], %162 {strides = array<i32>} : memref<16x16x128xf32, #tpu.memory_space<vmem>>, vector<8x16x128xf32>,
    %cst_106 = arith.constant dense<0.000000e+00> : vector<16x128xf32>
    %164 = vector.multi_reduction <add>, %162, %cst_106 [0] : vector<8x16x128xf32> to vector<16x128xf32>
    %165 = arith.addf %77, %164 : vector<16x128xf32>
    %cst_107 = arith.constant 0.000000e+00 : f32
    %166 = vector.broadcast %cst_107 : f32 to vector<8x16x128xf32>
    %c0_108 = arith.constant 0 : index
    %c8 = arith.constant 8 : index
    %c0_109 = arith.constant 0 : index
    %c0_110 = arith.constant 0 : index
    %167 = vector.load %arg15[%c0_108, %c8, %c0_109, %c0_110] : memref<3x18x16x128xf32, #tpu.memory_space<vmem>>, vector<1x8x16x128xf32>
    %168 = vector.shape_cast %167 : vector<1x8x16x128xf32> to vector<8x16x128xf32>
    %169 = vector.extract_strided_slice %33 {offsets = [0, 0], sizes = [1, 128], strides = [1, 1]} : vector<9x128xf32> to vector<1x128xf32>
    %170 = vector.shape_cast %169 : vector<1x128xf32> to vector<128xf32>
    %171 = vector.shape_cast %170 : vector<128xf32> to vector<1x1x128xf32>
    %172 = vector.broadcast %171 : vector<1x1x128xf32> to vector<8x16x128xf32>
    %173 = arith.mulf %168, %172 : vector<8x16x128xf32>
    %174 = arith.addf %166, %173 : vector<8x16x128xf32>
    %c1_111 = arith.constant 1 : index
    %c8_112 = arith.constant 8 : index
    %c0_113 = arith.constant 0 : index
    %c0_114 = arith.constant 0 : index
    %175 = vector.load %arg15[%c1_111, %c8_112, %c0_113, %c0_114] : memref<3x18x16x128xf32, #tpu.memory_space<vmem>>, vector<1x8x16x128xf32>
    %176 = vector.shape_cast %175 : vector<1x8x16x128xf32> to vector<8x16x128xf32>
    %177 = vector.extract_strided_slice %33 {offsets = [1, 0], sizes = [1, 128], strides = [1, 1]} : vector<9x128xf32> to vector<1x128xf32>
    %178 = vector.shape_cast %177 : vector<1x128xf32> to vector<128xf32>
    %179 = vector.shape_cast %178 : vector<128xf32> to vector<1x1x128xf32>
    %180 = vector.broadcast %179 : vector<1x1x128xf32> to vector<8x16x128xf32>
    %181 = arith.mulf %176, %180 : vector<8x16x128xf32>
    %182 = arith.addf %174, %181 : vector<8x16x128xf32>
    %c2_115 = arith.constant 2 : index
    %c8_116 = arith.constant 8 : index
    %c0_117 = arith.constant 0 : index
    %c0_118 = arith.constant 0 : index
    %183 = vector.load %arg15[%c2_115, %c8_116, %c0_117, %c0_118] : memref<3x18x16x128xf32, #tpu.memory_space<vmem>>, vector<1x8x16x128xf32>
    %184 = vector.shape_cast %183 : vector<1x8x16x128xf32> to vector<8x16x128xf32>
    %185 = vector.extract_strided_slice %33 {offsets = [2, 0], sizes = [1, 128], strides = [1, 1]} : vector<9x128xf32> to vector<1x128xf32>
    %186 = vector.shape_cast %185 : vector<1x128xf32> to vector<128xf32>
    %187 = vector.shape_cast %186 : vector<128xf32> to vector<1x1x128xf32>
    %188 = vector.broadcast %187 : vector<1x1x128xf32> to vector<8x16x128xf32>
    %189 = arith.mulf %184, %188 : vector<8x16x128xf32>
    %190 = arith.addf %182, %189 : vector<8x16x128xf32>
    %c0_119 = arith.constant 0 : index
    %c9 = arith.constant 9 : index
    %c0_120 = arith.constant 0 : index
    %c0_121 = arith.constant 0 : index
    %191 = vector.load %arg15[%c0_119, %c9, %c0_120, %c0_121] : memref<3x18x16x128xf32, #tpu.memory_space<vmem>>, vector<1x8x16x128xf32>
    %192 = vector.shape_cast %191 : vector<1x8x16x128xf32> to vector<8x16x128xf32>
    %193 = vector.extract_strided_slice %33 {offsets = [3, 0], sizes = [1, 128], strides = [1, 1]} : vector<9x128xf32> to vector<1x128xf32>
    %194 = vector.shape_cast %193 : vector<1x128xf32> to vector<128xf32>
    %195 = vector.shape_cast %194 : vector<128xf32> to vector<1x1x128xf32>
    %196 = vector.broadcast %195 : vector<1x1x128xf32> to vector<8x16x128xf32>
    %197 = arith.mulf %192, %196 : vector<8x16x128xf32>
    %198 = arith.addf %190, %197 : vector<8x16x128xf32>
    %c1_122 = arith.constant 1 : index
    %c9_123 = arith.constant 9 : index
    %c0_124 = arith.constant 0 : index
    %c0_125 = arith.constant 0 : index
    %199 = vector.load %arg15[%c1_122, %c9_123, %c0_124, %c0_125] : memref<3x18x16x128xf32, #tpu.memory_space<vmem>>, vector<1x8x16x128xf32>
    %200 = vector.shape_cast %199 : vector<1x8x16x128xf32> to vector<8x16x128xf32>
    %201 = vector.extract_strided_slice %33 {offsets = [4, 0], sizes = [1, 128], strides = [1, 1]} : vector<9x128xf32> to vector<1x128xf32>
    %202 = vector.shape_cast %201 : vector<1x128xf32> to vector<128xf32>
    %203 = vector.shape_cast %202 : vector<128xf32> to vector<1x1x128xf32>
    %204 = vector.broadcast %203 : vector<1x1x128xf32> to vector<8x16x128xf32>
    %205 = arith.mulf %200, %204 : vector<8x16x128xf32>
    %206 = arith.addf %198, %205 : vector<8x16x128xf32>
    %c2_126 = arith.constant 2 : index
    %c9_127 = arith.constant 9 : index
    %c0_128 = arith.constant 0 : index
    %c0_129 = arith.constant 0 : index
    %207 = vector.load %arg15[%c2_126, %c9_127, %c0_128, %c0_129] : memref<3x18x16x128xf32, #tpu.memory_space<vmem>>, vector<1x8x16x128xf32>
    %208 = vector.shape_cast %207 : vector<1x8x16x128xf32> to vector<8x16x128xf32>
    %209 = vector.extract_strided_slice %33 {offsets = [5, 0], sizes = [1, 128], strides = [1, 1]} : vector<9x128xf32> to vector<1x128xf32>
    %210 = vector.shape_cast %209 : vector<1x128xf32> to vector<128xf32>
    %211 = vector.shape_cast %210 : vector<128xf32> to vector<1x1x128xf32>
    %212 = vector.broadcast %211 : vector<1x1x128xf32> to vector<8x16x128xf32>
    %213 = arith.mulf %208, %212 : vector<8x16x128xf32>
    %214 = arith.addf %206, %213 : vector<8x16x128xf32>
    %c0_130 = arith.constant 0 : index
    %c10 = arith.constant 10 : index
    %c0_131 = arith.constant 0 : index
    %c0_132 = arith.constant 0 : index
    %215 = vector.load %arg15[%c0_130, %c10, %c0_131, %c0_132] : memref<3x18x16x128xf32, #tpu.memory_space<vmem>>, vector<1x8x16x128xf32>
    %216 = vector.shape_cast %215 : vector<1x8x16x128xf32> to vector<8x16x128xf32>
    %217 = vector.extract_strided_slice %33 {offsets = [6, 0], sizes = [1, 128], strides = [1, 1]} : vector<9x128xf32> to vector<1x128xf32>
    %218 = vector.shape_cast %217 : vector<1x128xf32> to vector<128xf32>
    %219 = vector.shape_cast %218 : vector<128xf32> to vector<1x1x128xf32>
    %220 = vector.broadcast %219 : vector<1x1x128xf32> to vector<8x16x128xf32>
    %221 = arith.mulf %216, %220 : vector<8x16x128xf32>
    %222 = arith.addf %214, %221 : vector<8x16x128xf32>
    %c1_133 = arith.constant 1 : index
    %c10_134 = arith.constant 10 : index
    %c0_135 = arith.constant 0 : index
    %c0_136 = arith.constant 0 : index
    %223 = vector.load %arg15[%c1_133, %c10_134, %c0_135, %c0_136] : memref<3x18x16x128xf32, #tpu.memory_space<vmem>>, vector<1x8x16x128xf32>
    %224 = vector.shape_cast %223 : vector<1x8x16x128xf32> to vector<8x16x128xf32>
    %225 = vector.extract_strided_slice %33 {offsets = [7, 0], sizes = [1, 128], strides = [1, 1]} : vector<9x128xf32> to vector<1x128xf32>
    %226 = vector.shape_cast %225 : vector<1x128xf32> to vector<128xf32>
    %227 = vector.shape_cast %226 : vector<128xf32> to vector<1x1x128xf32>
    %228 = vector.broadcast %227 : vector<1x1x128xf32> to vector<8x16x128xf32>
    %229 = arith.mulf %224, %228 : vector<8x16x128xf32>
    %230 = arith.addf %222, %229 : vector<8x16x128xf32>
    %c2_137 = arith.constant 2 : index
    %c10_138 = arith.constant 10 : index
    %c0_139 = arith.constant 0 : index
    %c0_140 = arith.constant 0 : index
    %231 = vector.load %arg15[%c2_137, %c10_138, %c0_139, %c0_140] : memref<3x18x16x128xf32, #tpu.memory_space<vmem>>, vector<1x8x16x128xf32>
    %232 = vector.shape_cast %231 : vector<1x8x16x128xf32> to vector<8x16x128xf32>
    %233 = vector.extract_strided_slice %33 {offsets = [8, 0], sizes = [1, 128], strides = [1, 1]} : vector<9x128xf32> to vector<1x128xf32>
    %234 = vector.shape_cast %233 : vector<1x128xf32> to vector<128xf32>
    %235 = vector.shape_cast %234 : vector<128xf32> to vector<1x1x128xf32>
    %236 = vector.broadcast %235 : vector<1x1x128xf32> to vector<8x16x128xf32>
    %237 = arith.mulf %232, %236 : vector<8x16x128xf32>
    %238 = arith.addf %230, %237 : vector<8x16x128xf32>
    %239 = vector.shape_cast %34 : vector<1x128xf32> to vector<1x1x128xf32>
    %240 = vector.broadcast %239 : vector<1x1x128xf32> to vector<8x16x128xf32>
    %241 = arith.mulf %238, %240 : vector<8x16x128xf32>
    %242 = vector.shape_cast %35 : vector<1x128xf32> to vector<1x1x128xf32>
    %243 = vector.broadcast %242 : vector<1x1x128xf32> to vector<8x16x128xf32>
    %244 = arith.addf %241, %243 : vector<8x16x128xf32>
    %245 = arith.negf %244 : vector<8x16x128xf32>
    %246 = math.exp %245 : vector<8x16x128xf32>
    %cst_141 = arith.constant 1.000000e+00 : f32
    %247 = vector.broadcast %cst_141 : f32 to vector<8x16x128xf32>
    %248 = arith.addf %247, %246 : vector<8x16x128xf32>
    %249 = arith.divf %247, %248 : vector<8x16x128xf32>
    %250 = arith.mulf %244, %249 : vector<8x16x128xf32>
    %c8_142 = arith.constant 8 : index
    %c0_143 = arith.constant 0 : index
    %c0_144 = arith.constant 0 : index
    %251 = vector.load %arg16[%c8_142, %c0_143, %c0_144] : memref<16x16x128xf32, #tpu.memory_space<vmem>>, vector<8x16x128xf32>
    tpu.vector_store %arg16[%c8_142, %c0_143, %c0_144], %250 {strides = array<i32>} : memref<16x16x128xf32, #tpu.memory_space<vmem>>, vector<8x16x128xf32>,
    %cst_145 = arith.constant dense<0.000000e+00> : vector<16x128xf32>
    %252 = vector.multi_reduction <add>, %250, %cst_145 [0] : vector<8x16x128xf32> to vector<16x128xf32>
    %253 = arith.addf %165, %252 : vector<16x128xf32>
    %cst_146 = arith.constant dense<0.000000e+00> : vector<128xf32>
    %254 = vector.multi_reduction <add>, %253, %cst_146 [0] : vector<16x128xf32> to vector<128xf32>
    %255 = vector.shape_cast %254 : vector<128xf32> to vector<1x128xf32>
    %cst_147 = arith.constant 3.906250e-03 : f32
    %256 = vector.broadcast %cst_147 : f32 to vector<1x128xf32>
    %257 = arith.mulf %255, %256 : vector<1x128xf32>
    %cst_148 = arith.constant dense<0.000000e+00> : vector<1x8xf32>
    %258 = tpu.matmul %257, %36, %cst_148 {dimension_numbers = #tpu.dot_dimension_numbers<[1], [0], [0], [1], [0, 0, 1, 1], [], []>} : vector<1x128xf32>, vector<128x8xf32>, vector<1x8xf32> -> vector<1x8xf32>
    %259 = arith.addf %258, %37 : vector<1x8xf32>
    %260 = arith.negf %259 : vector<1x8xf32>
    %261 = math.exp %260 : vector<1x8xf32>
    %cst_149 = arith.constant 1.000000e+00 : f32
    %262 = vector.broadcast %cst_149 : f32 to vector<1x8xf32>
    %263 = arith.addf %262, %261 : vector<1x8xf32>
    %264 = arith.divf %262, %263 : vector<1x8xf32>
    %265 = arith.mulf %259, %264 : vector<1x8xf32>
    %cst_150 = arith.constant dense<0.000000e+00> : vector<1x128xf32>
    %266 = tpu.matmul %265, %38, %cst_150 {dimension_numbers = #tpu.dot_dimension_numbers<[1], [0], [0], [1], [0, 0, 1, 1], [], []>} : vector<1x8xf32>, vector<8x128xf32>, vector<1x128xf32> -> vector<1x128xf32>
    %267 = arith.addf %266, %39 : vector<1x128xf32>
    %268 = arith.negf %267 : vector<1x128xf32>
    %269 = math.exp %268 : vector<1x128xf32>
    %cst_151 = arith.constant 1.000000e+00 : f32
    %270 = vector.broadcast %cst_151 : f32 to vector<1x128xf32>
    %271 = arith.addf %270, %269 : vector<1x128xf32>
    %272 = arith.divf %270, %271 : vector<1x128xf32>
    %273 = vector.broadcast %272 : vector<1x128xf32> to vector<32x128xf32>
    %274 = arith.mulf %40, %273 : vector<32x128xf32>
    %c0_152 = arith.constant 0 : index
    %c0_153 = arith.constant 0 : index
    %c0_154 = arith.constant 0 : index
    %275 = vector.load %arg16[%c0_152, %c0_153, %c0_154] : memref<16x16x128xf32, #tpu.memory_space<vmem>>, vector<16x16x128xf32>
    %276 = vector.shape_cast %275 : vector<16x16x128xf32> to vector<256x128xf32>
    %cst_155 = arith.constant dense<0.000000e+00> : vector<32x256xf32>
    %277 = tpu.matmul %274, %276, %cst_155 {dimension_numbers = #tpu.dot_dimension_numbers<[1], [1], [0], [0], [0, 0, 1, 0], [], []>} : vector<32x128xf32>, vector<256x128xf32>, vector<32x256xf32> -> vector<32x256xf32>
    %278 = vector.broadcast %41 : vector<32x1xf32> to vector<32x256xf32>
    %279 = arith.addf %277, %278 : vector<32x256xf32>
    %280 = arith.addf %279, %43 : vector<32x256xf32>
    %c0_156 = arith.constant 0 : index
    %c0_157 = arith.constant 0 : index
    %c0_158 = arith.constant 0 : index
    %281 = vector.load %arg14[%c0_156, %c0_157, %c0_158] : memref<2x32x256xf32, #tpu.memory_space<vmem>>, vector<1x32x256xf32>
    %282 = vector.shape_cast %281 : vector<1x32x256xf32> to vector<32x256xf32>
    %283 = vector.shape_cast %280 : vector<32x256xf32> to vector<1x32x256xf32>
    tpu.vector_store %arg14[%c0_156, %c0_157, %c0_158], %283 {strides = array<i32>} : memref<2x32x256xf32, #tpu.memory_space<vmem>>, vector<1x32x256xf32>,
    %c1_159 = arith.constant 1 : index
    %c0_160 = arith.constant 0 : index
    %c0_161 = arith.constant 0 : index
    %284 = vector.load %arg1[%c1_159, %c0_160, %c0_161] : memref<2x32x256xf32, #tpu.memory_space<vmem>>, vector<1x32x256xf32>
    %285 = vector.shape_cast %284 : vector<1x32x256xf32> to vector<32x256xf32>
    %cst_162 = arith.constant dense<0.000000e+00> : vector<256x128xf32>
    %286 = tpu.matmul %285, %30, %cst_162 {dimension_numbers = #tpu.dot_dimension_numbers<[0], [0], [1], [1], [0, 1, 1, 1], [], []>} : vector<32x256xf32>, vector<32x128xf32>, vector<256x128xf32> -> vector<256x128xf32>
    %287 = vector.broadcast %31 : vector<1x128xf32> to vector<256x128xf32>
    %288 = arith.mulf %286, %287 : vector<256x128xf32>
    %289 = vector.broadcast %32 : vector<1x128xf32> to vector<256x128xf32>
    %290 = arith.addf %288, %289 : vector<256x128xf32>
    %291 = arith.negf %290 : vector<256x128xf32>
    %292 = math.exp %291 : vector<256x128xf32>
    %cst_163 = arith.constant 1.000000e+00 : f32
    %293 = vector.broadcast %cst_163 : f32 to vector<256x128xf32>
    %294 = arith.addf %293, %292 : vector<256x128xf32>
    %295 = arith.divf %293, %294 : vector<256x128xf32>
    %296 = arith.mulf %290, %295 : vector<256x128xf32>
    %297 = vector.shape_cast %296 : vector<256x128xf32> to vector<16x16x128xf32>
    %c1_i32_164 = arith.constant 1 : i32
    %298 = tpu.dynamic_rotate %296 by %c1_i32_164 dim 0 : vector<256x128xf32>, i32 -> vector<256x128xf32>
    %299 = vector.shape_cast %298 : vector<256x128xf32> to vector<16x16x128xf32>
    %cst_165 = arith.constant 0.000000e+00 : f32
    %300 = vector.shape_cast %24 : vector<16x128xi1> to vector<1x16x128xi1>
    %301 = vector.broadcast %300 : vector<1x16x128xi1> to vector<16x16x128xi1>
    %302 = vector.broadcast %cst_165 : f32 to vector<16x16x128xf32>
    %303 = arith.select %301, %299, %302 : vector<16x16x128xi1>, vector<16x16x128xf32>
    %c0_166 = arith.constant 0 : index
    %c1_167 = arith.constant 1 : index
    %c0_168 = arith.constant 0 : index
    %c0_169 = arith.constant 0 : index
    %304 = vector.load %arg15[%c0_166, %c1_167, %c0_168, %c0_169] : memref<3x18x16x128xf32, #tpu.memory_space<vmem>>, vector<1x16x16x128xf32>
    %305 = vector.shape_cast %304 : vector<1x16x16x128xf32> to vector<16x16x128xf32>
    %306 = vector.shape_cast %303 : vector<16x16x128xf32> to vector<1x16x16x128xf32>
    tpu.vector_store %arg15[%c0_166, %c1_167, %c0_168, %c0_169], %306 {strides = array<i32>} : memref<3x18x16x128xf32, #tpu.memory_space<vmem>>, vector<1x16x16x128xf32>,
    %c1_170 = arith.constant 1 : index
    %c1_171 = arith.constant 1 : index
    %c0_172 = arith.constant 0 : index
    %c0_173 = arith.constant 0 : index
    %307 = vector.load %arg15[%c1_170, %c1_171, %c0_172, %c0_173] : memref<3x18x16x128xf32, #tpu.memory_space<vmem>>, vector<1x16x16x128xf32>
    %308 = vector.shape_cast %307 : vector<1x16x16x128xf32> to vector<16x16x128xf32>
    %309 = vector.shape_cast %297 : vector<16x16x128xf32> to vector<1x16x16x128xf32>
    tpu.vector_store %arg15[%c1_170, %c1_171, %c0_172, %c0_173], %309 {strides = array<i32>} : memref<3x18x16x128xf32, #tpu.memory_space<vmem>>, vector<1x16x16x128xf32>,
    %c255_i32_174 = arith.constant 255 : i32
    %310 = tpu.dynamic_rotate %296 by %c255_i32_174 dim 0 : vector<256x128xf32>, i32 -> vector<256x128xf32>
    %311 = vector.shape_cast %310 : vector<256x128xf32> to vector<16x16x128xf32>
    %cst_175 = arith.constant 0.000000e+00 : f32
    %312 = vector.shape_cast %29 : vector<16x128xi1> to vector<1x16x128xi1>
    %313 = vector.broadcast %312 : vector<1x16x128xi1> to vector<16x16x128xi1>
    %314 = vector.broadcast %cst_175 : f32 to vector<16x16x128xf32>
    %315 = arith.select %313, %311, %314 : vector<16x16x128xi1>, vector<16x16x128xf32>
    %c2_176 = arith.constant 2 : index
    %c1_177 = arith.constant 1 : index
    %c0_178 = arith.constant 0 : index
    %c0_179 = arith.constant 0 : index
    %316 = vector.load %arg15[%c2_176, %c1_177, %c0_178, %c0_179] : memref<3x18x16x128xf32, #tpu.memory_space<vmem>>, vector<1x16x16x128xf32>
    %317 = vector.shape_cast %316 : vector<1x16x16x128xf32> to vector<16x16x128xf32>
    %318 = vector.shape_cast %315 : vector<16x16x128xf32> to vector<1x16x16x128xf32>
    tpu.vector_store %arg15[%c2_176, %c1_177, %c0_178, %c0_179], %318 {strides = array<i32>} : memref<3x18x16x128xf32, #tpu.memory_space<vmem>>, vector<1x16x16x128xf32>,
    %cst_180 = arith.constant 0.000000e+00 : f32
    %319 = vector.broadcast %cst_180 : f32 to vector<16x128xf32>
    %cst_181 = arith.constant 0.000000e+00 : f32
    %320 = vector.broadcast %cst_181 : f32 to vector<8x16x128xf32>
    %c0_182 = arith.constant 0 : index
    %c0_183 = arith.constant 0 : index
    %c0_184 = arith.constant 0 : index
    %c0_185 = arith.constant 0 : index
    %321 = vector.load %arg15[%c0_182, %c0_183, %c0_184, %c0_185] : memref<3x18x16x128xf32, #tpu.memory_space<vmem>>, vector<1x8x16x128xf32>
    %322 = vector.shape_cast %321 : vector<1x8x16x128xf32> to vector<8x16x128xf32>
    %323 = vector.extract_strided_slice %33 {offsets = [0, 0], sizes = [1, 128], strides = [1, 1]} : vector<9x128xf32> to vector<1x128xf32>
    %324 = vector.shape_cast %323 : vector<1x128xf32> to vector<128xf32>
    %325 = vector.shape_cast %324 : vector<128xf32> to vector<1x1x128xf32>
    %326 = vector.broadcast %325 : vector<1x1x128xf32> to vector<8x16x128xf32>
    %327 = arith.mulf %322, %326 : vector<8x16x128xf32>
    %328 = arith.addf %320, %327 : vector<8x16x128xf32>
    %c1_186 = arith.constant 1 : index
    %c0_187 = arith.constant 0 : index
    %c0_188 = arith.constant 0 : index
    %c0_189 = arith.constant 0 : index
    %329 = vector.load %arg15[%c1_186, %c0_187, %c0_188, %c0_189] : memref<3x18x16x128xf32, #tpu.memory_space<vmem>>, vector<1x8x16x128xf32>
    %330 = vector.shape_cast %329 : vector<1x8x16x128xf32> to vector<8x16x128xf32>
    %331 = vector.extract_strided_slice %33 {offsets = [1, 0], sizes = [1, 128], strides = [1, 1]} : vector<9x128xf32> to vector<1x128xf32>
    %332 = vector.shape_cast %331 : vector<1x128xf32> to vector<128xf32>
    %333 = vector.shape_cast %332 : vector<128xf32> to vector<1x1x128xf32>
    %334 = vector.broadcast %333 : vector<1x1x128xf32> to vector<8x16x128xf32>
    %335 = arith.mulf %330, %334 : vector<8x16x128xf32>
    %336 = arith.addf %328, %335 : vector<8x16x128xf32>
    %c2_190 = arith.constant 2 : index
    %c0_191 = arith.constant 0 : index
    %c0_192 = arith.constant 0 : index
    %c0_193 = arith.constant 0 : index
    %337 = vector.load %arg15[%c2_190, %c0_191, %c0_192, %c0_193] : memref<3x18x16x128xf32, #tpu.memory_space<vmem>>, vector<1x8x16x128xf32>
    %338 = vector.shape_cast %337 : vector<1x8x16x128xf32> to vector<8x16x128xf32>
    %339 = vector.extract_strided_slice %33 {offsets = [2, 0], sizes = [1, 128], strides = [1, 1]} : vector<9x128xf32> to vector<1x128xf32>
    %340 = vector.shape_cast %339 : vector<1x128xf32> to vector<128xf32>
    %341 = vector.shape_cast %340 : vector<128xf32> to vector<1x1x128xf32>
    %342 = vector.broadcast %341 : vector<1x1x128xf32> to vector<8x16x128xf32>
    %343 = arith.mulf %338, %342 : vector<8x16x128xf32>
    %344 = arith.addf %336, %343 : vector<8x16x128xf32>
    %c0_194 = arith.constant 0 : index
    %c1_195 = arith.constant 1 : index
    %c0_196 = arith.constant 0 : index
    %c0_197 = arith.constant 0 : index
    %345 = vector.load %arg15[%c0_194, %c1_195, %c0_196, %c0_197] : memref<3x18x16x128xf32, #tpu.memory_space<vmem>>, vector<1x8x16x128xf32>
    %346 = vector.shape_cast %345 : vector<1x8x16x128xf32> to vector<8x16x128xf32>
    %347 = vector.extract_strided_slice %33 {offsets = [3, 0], sizes = [1, 128], strides = [1, 1]} : vector<9x128xf32> to vector<1x128xf32>
    %348 = vector.shape_cast %347 : vector<1x128xf32> to vector<128xf32>
    %349 = vector.shape_cast %348 : vector<128xf32> to vector<1x1x128xf32>
    %350 = vector.broadcast %349 : vector<1x1x128xf32> to vector<8x16x128xf32>
    %351 = arith.mulf %346, %350 : vector<8x16x128xf32>
    %352 = arith.addf %344, %351 : vector<8x16x128xf32>
    %c1_198 = arith.constant 1 : index
    %c1_199 = arith.constant 1 : index
    %c0_200 = arith.constant 0 : index
    %c0_201 = arith.constant 0 : index
    %353 = vector.load %arg15[%c1_198, %c1_199, %c0_200, %c0_201] : memref<3x18x16x128xf32, #tpu.memory_space<vmem>>, vector<1x8x16x128xf32>
    %354 = vector.shape_cast %353 : vector<1x8x16x128xf32> to vector<8x16x128xf32>
    %355 = vector.extract_strided_slice %33 {offsets = [4, 0], sizes = [1, 128], strides = [1, 1]} : vector<9x128xf32> to vector<1x128xf32>
    %356 = vector.shape_cast %355 : vector<1x128xf32> to vector<128xf32>
    %357 = vector.shape_cast %356 : vector<128xf32> to vector<1x1x128xf32>
    %358 = vector.broadcast %357 : vector<1x1x128xf32> to vector<8x16x128xf32>
    %359 = arith.mulf %354, %358 : vector<8x16x128xf32>
    %360 = arith.addf %352, %359 : vector<8x16x128xf32>
    %c2_202 = arith.constant 2 : index
    %c1_203 = arith.constant 1 : index
    %c0_204 = arith.constant 0 : index
    %c0_205 = arith.constant 0 : index
    %361 = vector.load %arg15[%c2_202, %c1_203, %c0_204, %c0_205] : memref<3x18x16x128xf32, #tpu.memory_space<vmem>>, vector<1x8x16x128xf32>
    %362 = vector.shape_cast %361 : vector<1x8x16x128xf32> to vector<8x16x128xf32>
    %363 = vector.extract_strided_slice %33 {offsets = [5, 0], sizes = [1, 128], strides = [1, 1]} : vector<9x128xf32> to vector<1x128xf32>
    %364 = vector.shape_cast %363 : vector<1x128xf32> to vector<128xf32>
    %365 = vector.shape_cast %364 : vector<128xf32> to vector<1x1x128xf32>
    %366 = vector.broadcast %365 : vector<1x1x128xf32> to vector<8x16x128xf32>
    %367 = arith.mulf %362, %366 : vector<8x16x128xf32>
    %368 = arith.addf %360, %367 : vector<8x16x128xf32>
    %c0_206 = arith.constant 0 : index
    %c2_207 = arith.constant 2 : index
    %c0_208 = arith.constant 0 : index
    %c0_209 = arith.constant 0 : index
    %369 = vector.load %arg15[%c0_206, %c2_207, %c0_208, %c0_209] : memref<3x18x16x128xf32, #tpu.memory_space<vmem>>, vector<1x8x16x128xf32>
    %370 = vector.shape_cast %369 : vector<1x8x16x128xf32> to vector<8x16x128xf32>
    %371 = vector.extract_strided_slice %33 {offsets = [6, 0], sizes = [1, 128], strides = [1, 1]} : vector<9x128xf32> to vector<1x128xf32>
    %372 = vector.shape_cast %371 : vector<1x128xf32> to vector<128xf32>
    %373 = vector.shape_cast %372 : vector<128xf32> to vector<1x1x128xf32>
    %374 = vector.broadcast %373 : vector<1x1x128xf32> to vector<8x16x128xf32>
    %375 = arith.mulf %370, %374 : vector<8x16x128xf32>
    %376 = arith.addf %368, %375 : vector<8x16x128xf32>
    %c1_210 = arith.constant 1 : index
    %c2_211 = arith.constant 2 : index
    %c0_212 = arith.constant 0 : index
    %c0_213 = arith.constant 0 : index
    %377 = vector.load %arg15[%c1_210, %c2_211, %c0_212, %c0_213] : memref<3x18x16x128xf32, #tpu.memory_space<vmem>>, vector<1x8x16x128xf32>
    %378 = vector.shape_cast %377 : vector<1x8x16x128xf32> to vector<8x16x128xf32>
    %379 = vector.extract_strided_slice %33 {offsets = [7, 0], sizes = [1, 128], strides = [1, 1]} : vector<9x128xf32> to vector<1x128xf32>
    %380 = vector.shape_cast %379 : vector<1x128xf32> to vector<128xf32>
    %381 = vector.shape_cast %380 : vector<128xf32> to vector<1x1x128xf32>
    %382 = vector.broadcast %381 : vector<1x1x128xf32> to vector<8x16x128xf32>
    %383 = arith.mulf %378, %382 : vector<8x16x128xf32>
    %384 = arith.addf %376, %383 : vector<8x16x128xf32>
    %c2_214 = arith.constant 2 : index
    %c2_215 = arith.constant 2 : index
    %c0_216 = arith.constant 0 : index
    %c0_217 = arith.constant 0 : index
    %385 = vector.load %arg15[%c2_214, %c2_215, %c0_216, %c0_217] : memref<3x18x16x128xf32, #tpu.memory_space<vmem>>, vector<1x8x16x128xf32>
    %386 = vector.shape_cast %385 : vector<1x8x16x128xf32> to vector<8x16x128xf32>
    %387 = vector.extract_strided_slice %33 {offsets = [8, 0], sizes = [1, 128], strides = [1, 1]} : vector<9x128xf32> to vector<1x128xf32>
    %388 = vector.shape_cast %387 : vector<1x128xf32> to vector<128xf32>
    %389 = vector.shape_cast %388 : vector<128xf32> to vector<1x1x128xf32>
    %390 = vector.broadcast %389 : vector<1x1x128xf32> to vector<8x16x128xf32>
    %391 = arith.mulf %386, %390 : vector<8x16x128xf32>
    %392 = arith.addf %384, %391 : vector<8x16x128xf32>
    %393 = vector.shape_cast %34 : vector<1x128xf32> to vector<1x1x128xf32>
    %394 = vector.broadcast %393 : vector<1x1x128xf32> to vector<8x16x128xf32>
    %395 = arith.mulf %392, %394 : vector<8x16x128xf32>
    %396 = vector.shape_cast %35 : vector<1x128xf32> to vector<1x1x128xf32>
    %397 = vector.broadcast %396 : vector<1x1x128xf32> to vector<8x16x128xf32>
    %398 = arith.addf %395, %397 : vector<8x16x128xf32>
    %399 = arith.negf %398 : vector<8x16x128xf32>
    %400 = math.exp %399 : vector<8x16x128xf32>
    %cst_218 = arith.constant 1.000000e+00 : f32
    %401 = vector.broadcast %cst_218 : f32 to vector<8x16x128xf32>
    %402 = arith.addf %401, %400 : vector<8x16x128xf32>
    %403 = arith.divf %401, %402 : vector<8x16x128xf32>
    %404 = arith.mulf %398, %403 : vector<8x16x128xf32>
    %c0_219 = arith.constant 0 : index
    %c0_220 = arith.constant 0 : index
    %c0_221 = arith.constant 0 : index
    %405 = vector.load %arg16[%c0_219, %c0_220, %c0_221] : memref<16x16x128xf32, #tpu.memory_space<vmem>>, vector<8x16x128xf32>
    tpu.vector_store %arg16[%c0_219, %c0_220, %c0_221], %404 {strides = array<i32>} : memref<16x16x128xf32, #tpu.memory_space<vmem>>, vector<8x16x128xf32>,
    %cst_222 = arith.constant dense<0.000000e+00> : vector<16x128xf32>
    %406 = vector.multi_reduction <add>, %404, %cst_222 [0] : vector<8x16x128xf32> to vector<16x128xf32>
    %407 = arith.addf %319, %406 : vector<16x128xf32>
    %cst_223 = arith.constant 0.000000e+00 : f32
    %408 = vector.broadcast %cst_223 : f32 to vector<8x16x128xf32>
    %c0_224 = arith.constant 0 : index
    %c8_225 = arith.constant 8 : index
    %c0_226 = arith.constant 0 : index
    %c0_227 = arith.constant 0 : index
    %409 = vector.load %arg15[%c0_224, %c8_225, %c0_226, %c0_227] : memref<3x18x16x128xf32, #tpu.memory_space<vmem>>, vector<1x8x16x128xf32>
    %410 = vector.shape_cast %409 : vector<1x8x16x128xf32> to vector<8x16x128xf32>
    %411 = vector.extract_strided_slice %33 {offsets = [0, 0], sizes = [1, 128], strides = [1, 1]} : vector<9x128xf32> to vector<1x128xf32>
    %412 = vector.shape_cast %411 : vector<1x128xf32> to vector<128xf32>
    %413 = vector.shape_cast %412 : vector<128xf32> to vector<1x1x128xf32>
    %414 = vector.broadcast %413 : vector<1x1x128xf32> to vector<8x16x128xf32>
    %415 = arith.mulf %410, %414 : vector<8x16x128xf32>
    %416 = arith.addf %408, %415 : vector<8x16x128xf32>
    %c1_228 = arith.constant 1 : index
    %c8_229 = arith.constant 8 : index
    %c0_230 = arith.constant 0 : index
    %c0_231 = arith.constant 0 : index
    %417 = vector.load %arg15[%c1_228, %c8_229, %c0_230, %c0_231] : memref<3x18x16x128xf32, #tpu.memory_space<vmem>>, vector<1x8x16x128xf32>
    %418 = vector.shape_cast %417 : vector<1x8x16x128xf32> to vector<8x16x128xf32>
    %419 = vector.extract_strided_slice %33 {offsets = [1, 0], sizes = [1, 128], strides = [1, 1]} : vector<9x128xf32> to vector<1x128xf32>
    %420 = vector.shape_cast %419 : vector<1x128xf32> to vector<128xf32>
    %421 = vector.shape_cast %420 : vector<128xf32> to vector<1x1x128xf32>
    %422 = vector.broadcast %421 : vector<1x1x128xf32> to vector<8x16x128xf32>
    %423 = arith.mulf %418, %422 : vector<8x16x128xf32>
    %424 = arith.addf %416, %423 : vector<8x16x128xf32>
    %c2_232 = arith.constant 2 : index
    %c8_233 = arith.constant 8 : index
    %c0_234 = arith.constant 0 : index
    %c0_235 = arith.constant 0 : index
    %425 = vector.load %arg15[%c2_232, %c8_233, %c0_234, %c0_235] : memref<3x18x16x128xf32, #tpu.memory_space<vmem>>, vector<1x8x16x128xf32>
    %426 = vector.shape_cast %425 : vector<1x8x16x128xf32> to vector<8x16x128xf32>
    %427 = vector.extract_strided_slice %33 {offsets = [2, 0], sizes = [1, 128], strides = [1, 1]} : vector<9x128xf32> to vector<1x128xf32>
    %428 = vector.shape_cast %427 : vector<1x128xf32> to vector<128xf32>
    %429 = vector.shape_cast %428 : vector<128xf32> to vector<1x1x128xf32>
    %430 = vector.broadcast %429 : vector<1x1x128xf32> to vector<8x16x128xf32>
    %431 = arith.mulf %426, %430 : vector<8x16x128xf32>
    %432 = arith.addf %424, %431 : vector<8x16x128xf32>
    %c0_236 = arith.constant 0 : index
    %c9_237 = arith.constant 9 : index
    %c0_238 = arith.constant 0 : index
    %c0_239 = arith.constant 0 : index
    %433 = vector.load %arg15[%c0_236, %c9_237, %c0_238, %c0_239] : memref<3x18x16x128xf32, #tpu.memory_space<vmem>>, vector<1x8x16x128xf32>
    %434 = vector.shape_cast %433 : vector<1x8x16x128xf32> to vector<8x16x128xf32>
    %435 = vector.extract_strided_slice %33 {offsets = [3, 0], sizes = [1, 128], strides = [1, 1]} : vector<9x128xf32> to vector<1x128xf32>
    %436 = vector.shape_cast %435 : vector<1x128xf32> to vector<128xf32>
    %437 = vector.shape_cast %436 : vector<128xf32> to vector<1x1x128xf32>
    %438 = vector.broadcast %437 : vector<1x1x128xf32> to vector<8x16x128xf32>
    %439 = arith.mulf %434, %438 : vector<8x16x128xf32>
    %440 = arith.addf %432, %439 : vector<8x16x128xf32>
    %c1_240 = arith.constant 1 : index
    %c9_241 = arith.constant 9 : index
    %c0_242 = arith.constant 0 : index
    %c0_243 = arith.constant 0 : index
    %441 = vector.load %arg15[%c1_240, %c9_241, %c0_242, %c0_243] : memref<3x18x16x128xf32, #tpu.memory_space<vmem>>, vector<1x8x16x128xf32>
    %442 = vector.shape_cast %441 : vector<1x8x16x128xf32> to vector<8x16x128xf32>
    %443 = vector.extract_strided_slice %33 {offsets = [4, 0], sizes = [1, 128], strides = [1, 1]} : vector<9x128xf32> to vector<1x128xf32>
    %444 = vector.shape_cast %443 : vector<1x128xf32> to vector<128xf32>
    %445 = vector.shape_cast %444 : vector<128xf32> to vector<1x1x128xf32>
    %446 = vector.broadcast %445 : vector<1x1x128xf32> to vector<8x16x128xf32>
    %447 = arith.mulf %442, %446 : vector<8x16x128xf32>
    %448 = arith.addf %440, %447 : vector<8x16x128xf32>
    %c2_244 = arith.constant 2 : index
    %c9_245 = arith.constant 9 : index
    %c0_246 = arith.constant 0 : index
    %c0_247 = arith.constant 0 : index
    %449 = vector.load %arg15[%c2_244, %c9_245, %c0_246, %c0_247] : memref<3x18x16x128xf32, #tpu.memory_space<vmem>>, vector<1x8x16x128xf32>
    %450 = vector.shape_cast %449 : vector<1x8x16x128xf32> to vector<8x16x128xf32>
    %451 = vector.extract_strided_slice %33 {offsets = [5, 0], sizes = [1, 128], strides = [1, 1]} : vector<9x128xf32> to vector<1x128xf32>
    %452 = vector.shape_cast %451 : vector<1x128xf32> to vector<128xf32>
    %453 = vector.shape_cast %452 : vector<128xf32> to vector<1x1x128xf32>
    %454 = vector.broadcast %453 : vector<1x1x128xf32> to vector<8x16x128xf32>
    %455 = arith.mulf %450, %454 : vector<8x16x128xf32>
    %456 = arith.addf %448, %455 : vector<8x16x128xf32>
    %c0_248 = arith.constant 0 : index
    %c10_249 = arith.constant 10 : index
    %c0_250 = arith.constant 0 : index
    %c0_251 = arith.constant 0 : index
    %457 = vector.load %arg15[%c0_248, %c10_249, %c0_250, %c0_251] : memref<3x18x16x128xf32, #tpu.memory_space<vmem>>, vector<1x8x16x128xf32>
    %458 = vector.shape_cast %457 : vector<1x8x16x128xf32> to vector<8x16x128xf32>
    %459 = vector.extract_strided_slice %33 {offsets = [6, 0], sizes = [1, 128], strides = [1, 1]} : vector<9x128xf32> to vector<1x128xf32>
    %460 = vector.shape_cast %459 : vector<1x128xf32> to vector<128xf32>
    %461 = vector.shape_cast %460 : vector<128xf32> to vector<1x1x128xf32>
    %462 = vector.broadcast %461 : vector<1x1x128xf32> to vector<8x16x128xf32>
    %463 = arith.mulf %458, %462 : vector<8x16x128xf32>
    %464 = arith.addf %456, %463 : vector<8x16x128xf32>
    %c1_252 = arith.constant 1 : index
    %c10_253 = arith.constant 10 : index
    %c0_254 = arith.constant 0 : index
    %c0_255 = arith.constant 0 : index
    %465 = vector.load %arg15[%c1_252, %c10_253, %c0_254, %c0_255] : memref<3x18x16x128xf32, #tpu.memory_space<vmem>>, vector<1x8x16x128xf32>
    %466 = vector.shape_cast %465 : vector<1x8x16x128xf32> to vector<8x16x128xf32>
    %467 = vector.extract_strided_slice %33 {offsets = [7, 0], sizes = [1, 128], strides = [1, 1]} : vector<9x128xf32> to vector<1x128xf32>
    %468 = vector.shape_cast %467 : vector<1x128xf32> to vector<128xf32>
    %469 = vector.shape_cast %468 : vector<128xf32> to vector<1x1x128xf32>
    %470 = vector.broadcast %469 : vector<1x1x128xf32> to vector<8x16x128xf32>
    %471 = arith.mulf %466, %470 : vector<8x16x128xf32>
    %472 = arith.addf %464, %471 : vector<8x16x128xf32>
    %c2_256 = arith.constant 2 : index
    %c10_257 = arith.constant 10 : index
    %c0_258 = arith.constant 0 : index
    %c0_259 = arith.constant 0 : index
    %473 = vector.load %arg15[%c2_256, %c10_257, %c0_258, %c0_259] : memref<3x18x16x128xf32, #tpu.memory_space<vmem>>, vector<1x8x16x128xf32>
    %474 = vector.shape_cast %473 : vector<1x8x16x128xf32> to vector<8x16x128xf32>
    %475 = vector.extract_strided_slice %33 {offsets = [8, 0], sizes = [1, 128], strides = [1, 1]} : vector<9x128xf32> to vector<1x128xf32>
    %476 = vector.shape_cast %475 : vector<1x128xf32> to vector<128xf32>
    %477 = vector.shape_cast %476 : vector<128xf32> to vector<1x1x128xf32>
    %478 = vector.broadcast %477 : vector<1x1x128xf32> to vector<8x16x128xf32>
    %479 = arith.mulf %474, %478 : vector<8x16x128xf32>
    %480 = arith.addf %472, %479 : vector<8x16x128xf32>
    %481 = vector.shape_cast %34 : vector<1x128xf32> to vector<1x1x128xf32>
    %482 = vector.broadcast %481 : vector<1x1x128xf32> to vector<8x16x128xf32>
    %483 = arith.mulf %480, %482 : vector<8x16x128xf32>
    %484 = vector.shape_cast %35 : vector<1x128xf32> to vector<1x1x128xf32>
    %485 = vector.broadcast %484 : vector<1x1x128xf32> to vector<8x16x128xf32>
    %486 = arith.addf %483, %485 : vector<8x16x128xf32>
    %487 = arith.negf %486 : vector<8x16x128xf32>
    %488 = math.exp %487 : vector<8x16x128xf32>
    %cst_260 = arith.constant 1.000000e+00 : f32
    %489 = vector.broadcast %cst_260 : f32 to vector<8x16x128xf32>
    %490 = arith.addf %489, %488 : vector<8x16x128xf32>
    %491 = arith.divf %489, %490 : vector<8x16x128xf32>
    %492 = arith.mulf %486, %491 : vector<8x16x128xf32>
    %c8_261 = arith.constant 8 : index
    %c0_262 = arith.constant 0 : index
    %c0_263 = arith.constant 0 : index
    %493 = vector.load %arg16[%c8_261, %c0_262, %c0_263] : memref<16x16x128xf32, #tpu.memory_space<vmem>>, vector<8x16x128xf32>
    tpu.vector_store %arg16[%c8_261, %c0_262, %c0_263], %492 {strides = array<i32>} : memref<16x16x128xf32, #tpu.memory_space<vmem>>, vector<8x16x128xf32>,
    %cst_264 = arith.constant dense<0.000000e+00> : vector<16x128xf32>
    %494 = vector.multi_reduction <add>, %492, %cst_264 [0] : vector<8x16x128xf32> to vector<16x128xf32>
    %495 = arith.addf %407, %494 : vector<16x128xf32>
    %cst_265 = arith.constant dense<0.000000e+00> : vector<128xf32>
    %496 = vector.multi_reduction <add>, %495, %cst_265 [0] : vector<16x128xf32> to vector<128xf32>
    %497 = vector.shape_cast %496 : vector<128xf32> to vector<1x128xf32>
    %cst_266 = arith.constant 3.906250e-03 : f32
    %498 = vector.broadcast %cst_266 : f32 to vector<1x128xf32>
    %499 = arith.mulf %497, %498 : vector<1x128xf32>
    %cst_267 = arith.constant dense<0.000000e+00> : vector<1x8xf32>
    %500 = tpu.matmul %499, %36, %cst_267 {dimension_numbers = #tpu.dot_dimension_numbers<[1], [0], [0], [1], [0, 0, 1, 1], [], []>} : vector<1x128xf32>, vector<128x8xf32>, vector<1x8xf32> -> vector<1x8xf32>
    %501 = arith.addf %500, %37 : vector<1x8xf32>
    %502 = arith.negf %501 : vector<1x8xf32>
    %503 = math.exp %502 : vector<1x8xf32>
    %cst_268 = arith.constant 1.000000e+00 : f32
    %504 = vector.broadcast %cst_268 : f32 to vector<1x8xf32>
    %505 = arith.addf %504, %503 : vector<1x8xf32>
    %506 = arith.divf %504, %505 : vector<1x8xf32>
    %507 = arith.mulf %501, %506 : vector<1x8xf32>
    %cst_269 = arith.constant dense<0.000000e+00> : vector<1x128xf32>
    %508 = tpu.matmul %507, %38, %cst_269 {dimension_numbers = #tpu.dot_dimension_numbers<[1], [0], [0], [1], [0, 0, 1, 1], [], []>} : vector<1x8xf32>, vector<8x128xf32>, vector<1x128xf32> -> vector<1x128xf32>
    %509 = arith.addf %508, %39 : vector<1x128xf32>
    %510 = arith.negf %509 : vector<1x128xf32>
    %511 = math.exp %510 : vector<1x128xf32>
    %cst_270 = arith.constant 1.000000e+00 : f32
    %512 = vector.broadcast %cst_270 : f32 to vector<1x128xf32>
    %513 = arith.addf %512, %511 : vector<1x128xf32>
    %514 = arith.divf %512, %513 : vector<1x128xf32>
    %515 = vector.broadcast %514 : vector<1x128xf32> to vector<32x128xf32>
    %516 = arith.mulf %40, %515 : vector<32x128xf32>
    %c0_271 = arith.constant 0 : index
    %c0_272 = arith.constant 0 : index
    %c0_273 = arith.constant 0 : index
    %517 = vector.load %arg16[%c0_271, %c0_272, %c0_273] : memref<16x16x128xf32, #tpu.memory_space<vmem>>, vector<16x16x128xf32>
    %518 = vector.shape_cast %517 : vector<16x16x128xf32> to vector<256x128xf32>
    %cst_274 = arith.constant dense<0.000000e+00> : vector<32x256xf32>
    %519 = tpu.matmul %516, %518, %cst_274 {dimension_numbers = #tpu.dot_dimension_numbers<[1], [1], [0], [0], [0, 0, 1, 0], [], []>} : vector<32x128xf32>, vector<256x128xf32>, vector<32x256xf32> -> vector<32x256xf32>
    %520 = vector.broadcast %41 : vector<32x1xf32> to vector<32x256xf32>
    %521 = arith.addf %519, %520 : vector<32x256xf32>
    %522 = arith.addf %521, %285 : vector<32x256xf32>
    %c1_275 = arith.constant 1 : index
    %c0_276 = arith.constant 0 : index
    %c0_277 = arith.constant 0 : index
    %523 = vector.load %arg14[%c1_275, %c0_276, %c0_277] : memref<2x32x256xf32, #tpu.memory_space<vmem>>, vector<1x32x256xf32>
    %524 = vector.shape_cast %523 : vector<1x32x256xf32> to vector<32x256xf32>
    %525 = vector.shape_cast %522 : vector<32x256xf32> to vector<1x32x256xf32>
    tpu.vector_store %arg14[%c1_275, %c0_276, %c0_277], %525 {strides = array<i32>} : memref<2x32x256xf32, #tpu.memory_space<vmem>>, vector<1x32x256xf32>,
    return
  }
  func.func @transform_0(%arg0: i32) -> (i32, i32, i32) {
    %c0_i32 = arith.constant 0 : i32
    %c0_i32_0 = arith.constant 0 : i32
    %c0_i32_1 = arith.constant 0 : i32
    return %arg0, %c0_i32, %c0_i32_0 : i32, i32, i32
  }
  func.func @transform_1(%arg0: i32) -> (i32, i32) {
    %c0_i32 = arith.constant 0 : i32
    %c0_i32_0 = arith.constant 0 : i32
    %c0_i32_1 = arith.constant 0 : i32
    return %c0_i32, %c0_i32_0 : i32, i32
  }
  func.func @transform_2(%arg0: i32) -> (i32, i32) {
    %c0_i32 = arith.constant 0 : i32
    %c0_i32_0 = arith.constant 0 : i32
    %c0_i32_1 = arith.constant 0 : i32
    return %c0_i32, %c0_i32_0 : i32, i32
  }
  func.func @transform_3(%arg0: i32) -> (i32, i32) {
    %c0_i32 = arith.constant 0 : i32
    %c0_i32_0 = arith.constant 0 : i32
    %c0_i32_1 = arith.constant 0 : i32
    return %c0_i32, %c0_i32_0 : i32, i32
  }
  func.func @transform_4(%arg0: i32) -> (i32, i32) {
    %c0_i32 = arith.constant 0 : i32
    %c0_i32_0 = arith.constant 0 : i32
    %c0_i32_1 = arith.constant 0 : i32
    return %c0_i32, %c0_i32_0 : i32, i32
  }
  func.func @transform_5(%arg0: i32) -> (i32, i32) {
    %c0_i32 = arith.constant 0 : i32
    %c0_i32_0 = arith.constant 0 : i32
    %c0_i32_1 = arith.constant 0 : i32
    return %c0_i32, %c0_i32_0 : i32, i32
  }
  func.func @transform_6(%arg0: i32) -> (i32, i32) {
    %c0_i32 = arith.constant 0 : i32
    %c0_i32_0 = arith.constant 0 : i32
    %c0_i32_1 = arith.constant 0 : i32
    return %c0_i32, %c0_i32_0 : i32, i32
  }
  func.func @transform_7(%arg0: i32) -> (i32, i32) {
    %c0_i32 = arith.constant 0 : i32
    %c0_i32_0 = arith.constant 0 : i32
    %c0_i32_1 = arith.constant 0 : i32
    return %c0_i32, %c0_i32_0 : i32, i32
  }
  func.func @transform_8(%arg0: i32) -> (i32, i32) {
    %c0_i32 = arith.constant 0 : i32
    %c0_i32_0 = arith.constant 0 : i32
    %c0_i32_1 = arith.constant 0 : i32
    return %c0_i32, %c0_i32_0 : i32, i32
  }
  func.func @transform_9(%arg0: i32) -> (i32, i32) {
    %c0_i32 = arith.constant 0 : i32
    %c0_i32_0 = arith.constant 0 : i32
    %c0_i32_1 = arith.constant 0 : i32
    return %c0_i32, %c0_i32_0 : i32, i32
  }
  func.func @transform_10(%arg0: i32) -> (i32, i32) {
    %c0_i32 = arith.constant 0 : i32
    %c0_i32_0 = arith.constant 0 : i32
    %c0_i32_1 = arith.constant 0 : i32
    return %c0_i32, %c0_i32_0 : i32, i32
  }
  func.func @transform_11(%arg0: i32) -> (i32, i32) {
    %c0_i32 = arith.constant 0 : i32
    %c0_i32_0 = arith.constant 0 : i32
    %c0_i32_1 = arith.constant 0 : i32
    return %c0_i32, %c0_i32_0 : i32, i32
  }
  func.func @transform_12(%arg0: i32) -> (i32, i32) {
    %c0_i32 = arith.constant 0 : i32
    %c0_i32_0 = arith.constant 0 : i32
    %c0_i32_1 = arith.constant 0 : i32
    return %c0_i32, %c0_i32_0 : i32, i32
  }
  func.func @transform_13(%arg0: i32) -> (i32, i32, i32) {
    %c0_i32 = arith.constant 0 : i32
    %c0_i32_0 = arith.constant 0 : i32
    %c0_i32_1 = arith.constant 0 : i32
    return %arg0, %c0_i32, %c0_i32_0 : i32, i32, i32
  }
}

</mosaic_0001>

<bundles_post_ra>
// kernel: tpu_custom_call.1
= control target key start
LH: loop header
LB: loop body
LE: loop exit
PB: predicated region body
PF: predicated region fallthrough
CT: control target
= control target key end

     0   :  { %18 = vsyncpa [#allocation5], 0  ;;  %s11713_s0 = inlined_call_operand.hbm [shape: f32[4,32,256], index: 0, kind: input, shape index: {}]   ;;  %s11714_s1 = inlined_call_operand.vmem [shape: f32[32,128], index: 1, kind: input, shape index: {}]   ;;  %s11715_s2 = inlined_call_operand.vmem [shape: f32[1,128], index: 2, kind: input, shape index: {}]   ;;  %s11716_s3 = inlined_call_operand.vmem [shape: f32[1,128], index: 3, kind: input, shape index: {}]   ;;  %s11717_s4 = inlined_call_operand.vmem [shape: f32[9,128], index: 4, kind: input, shape index: {}]   ;;  %s11718_s5 = inlined_call_operand.vmem [shape: f32[1,128], index: 5, kind: input, shape index: {}]   ;;  %s11719_s6 = inlined_call_operand.vmem [shape: f32[1,128], index: 6, kind: input, shape index: {}]   ;;  %s11720_s7 = inlined_call_operand.vmem [shape: f32[128,8], index: 7, kind: input, shape index: {}]   ;;  %s11721_s8 = inlined_call_operand.vmem [shape: f32[1,8], index: 8, kind: input, shape index: {}]   ;;  %s11722_s9 = inlined_call_operand.vmem [shape: f32[8,128], index: 9, kind: input, shape index: {}]   ;;  %s11723_s10 = inlined_call_operand.vmem [shape: f32[1,128], index: 10, kind: input, shape index: {}]   ;;  %s11724_s11 = inlined_call_operand.vmem [shape: f32[32,128], index: 11, kind: input, shape index: {}]   ;;  %s11725_s12 = inlined_call_operand.vmem [shape: f32[32,1], index: 12, kind: input, shape index: {}]   ;;  %s11726_s13 = inlined_call_operand.hbm [shape: f32[4,32,256], index: 13, kind: output, shape index: {}]  }
   0x1   :  { %20 = vsyncpa [#allocation5 + $0x1], 0 }
   0x2   :  { %21 = vsyncpa [#allocation6], 0 }
   0x3   :  { %23 = vsyncpa [#allocation6 + $0x1], 0  ;;  %s7265_s25 = smov 0   ;;  %s7267_s26 = smov 0  }
   0x4   :  { %s7269_s27 = smov 0   ;;  %s7271_s28 = smov 0  }
   0x5 LB: > { %11905 = sst [smem:[#allocation10_spill]] %s7171_s25  ;;  %s7286_s29 = sadd.s32 4294967295, %s7183_s28   ;;  %s7183_s28 = sphi %s7271_s28, %s12560_s28   ;;  %s7179_s27 = sphi %s7269_s27, %s12562_s27   ;;  %s7175_s26 = sphi %s7267_s26, %s12564_s26   ;;  %s7171_s25 = sphi %s7265_s25, %s12563_s25  }
   0x6   : > { %11906 = sst [smem:[#allocation11_spill]] %s7179_s27  ;;  %s5717_s30 = sadd.s32 4294967294, %s7183_s28  }
   0x7   : > { %s7290_s14 = sadd.s32 1, %s7183_s28   ;;  %s36_s15 = sadd.s32 1, %s7179_s27 }
   0x8   : > { %11907 = sst [smem:[#allocation12_spill]] %s7290_s14  ;;  %s33_s16 = ssub.s32 %s7183_s28, %s7290_s14 }
   0x9   : > { %p43_p0 = scmp.ne.s32.totalorder %s7179_s27, %s7175_s26  ;;  %p34_p1 = scmp.eq.s32.totalorder %s33_s16, 0 }
   0xa   : > { %p44_p2 = scmp.eq.s32.totalorder %s7183_s28, 0  ;;  %p49_p3 = scmp.ne.s32.totalorder %s7175_s26, %s7171_s25 }
   0xb   : > { %p50_p4 = scmp.eq.s32.totalorder %s7286_s29, 0  ;;  %p325_p7 = scmp.eq.s32.totalorder %s7286_s29, 1 }
   0xc   : > { %s7302_s17 = scalar_select %p34_p1, %s7179_s27, %s36_s15  }
   0xd   : > { %p7304_p5 = por %p44_p2, %p43_p0  ;;  %p7308_p6 = por %p50_p4, %p49_p3 }
   0xe   : > { %11908 = sst [smem:[#allocation13_spill]] %s7302_s17  ;;  %p331_p8 = scmp.eq.s32.totalorder %s5717_s30, 1 }
   0xf   : > { %p6478_p10 = scmp.lt.s32.totalorder %s7183_s28, 2  ;;  %p7315_p11 = por %p325_p7, %p43_p0 }
  0x10   : > { %p7319_p12 = por %p331_p8, %p49_p3  ;;  %s387_s22 = sand.u32 1, %s7179_s27  }
  0x11   : > { %s11911_s20 = scalar_select %p7315_p11, 1, 0 }
  0x12   : > { %s11912_s21 = scalar_select %p7319_p12, 1, 0 }
  0x13   : > { %s5953_s23 = sshll.u32 %s7183_s28, 11  ;;  %s5720_s24 = sshll.u32 %s387_s22, 7 }
  0x14   : > { %s7328_s17 = scalar_lea.hbm %s11713_s0, %s5953_s23  ;;  %s391_s30 = scalar_lea.vmem [#allocation4], %s5720_s24 }
  0x15   : > { %s399_s14 = sshll.u32 %s391_s30, 4  ;;  %p7332_p13 = pnand %p6478_p10, %p7304_p5  ;;  %s7336_s14 = int_to_ptr.vmem [resolvable:$true] %s399_s14 }
  0x16   : > { %s7338_s27 = scalar_lea.sflag [#allocation5], %s387_s22  ;;  %s7087_s15 = scalar_lea.hbm %s7328_s17, 2048 }
  0x17   : > { %p7088_p0 = scmp.ne.s32.totalorder %s7328_s17, %s7087_s15  ;;  %p7089_p1 = pneg %p7332_p13 }
  0x18   : > { %s7092_s24 = scalar_lea.hbm %s11713_s0, 4096  ;;  %p7093_p4 = scmp.lt.u32.totalorder %s7328_s17, %s11713_s0 }
  0x19   : > { %p7090_p2 = pnand %p7089_p1, %p7088_p0  ;;  %p7094_p5 = scmp.lt.u32.totalorder %s7092_s24, %s7087_s15 }
  0x1a   : > { %p7096_p8 = scmp.lt.u32.totalorder %s7087_s15, %s7328_s17 }
  0x1b   : > { %p7091_p3 = pneg %p7090_p2  ;;  %p7095_p7 = por %p7094_p5, %p7093_p4 }
  0x1d   : > { %p7097_p10 = por %p7096_p8, %p7095_p7 }
  0x1f   : > { %p7098_p9 = pnand %p7097_p10, %p7091_p3 }
  0x21   : > { %7101 = shalt.err (!%p7098_p9)
}
  0x22   : > { %s7102_s22 = scalar_lea.vmem %s7336_s14, 2048  ;;  %s7185_s23 = smov [#allocation4]  }
  0x23   : > { %p7103_p0 = scmp.ne.s32.totalorder %s7336_s14, %s7102_s22  ;;  %s7107_s18 = sshll.u32 %s7185_s23, 4  ;;  %s7108_s18 = int_to_ptr.vmem [resolvable:$false] %s7107_s18 }
  0x24   : > { %s7109_s16 = scalar_lea.vmem %s7108_s18, 4096  ;;  %p7110_p11 = scmp.lt.s32.totalorder %s7336_s14, %s7108_s18 }
  0x25   : > { %p7105_p2 = pnand %p7103_p0, %p7089_p1  ;;  %p7111_p4 = scmp.lt.s32.totalorder %s7109_s16, %s7102_s22 }
  0x27   : > { %p7106_p12 = pneg %p7105_p2  ;;  %p7112_p5 = por %p7111_p4, %p7110_p11 }
  0x29   : > { %p7113_p7 = pnand %p7112_p5, %p7106_p12 }
  0x2b   : > { %7116 = shalt.err (!%p7113_p7)
}
  0x2c   : > { %s7186_s15 = smov 256   ;;  %s7187_s24 = smov 16  }
  0x2d   : > { %6473 = dma.hbm_to_vmem [thread:$0]  (!%p7332_p13), %s7328_s17, 2048, %s7336_s14, %s7338_s27, %s7186_s15, %s7186_s15, %s7187_s24  }
  0x2e   : > { %p5724_p9 = scmp.ge.s32.totalorder %s7183_s28, 1  ;;  %p407_p1 = scmp.lt.s32.totalorder %s7183_s28, 3 }
  0x30   : > { %p408_p3 = pnand %p5724_p9, %p407_p1 }
  0x32   : > { %411 = sbr.rel (%p408_p3) target bundleno = 2340 (0x924), region = 72 }
  0x39   : > { %s7369_s30 = sand.u32 1, %s7175_s26  }
  0x3a   : > { %s5725_s22 = sshll.u32 %s7369_s30, 7  ;;  %s414_s23 = scalar_lea.sflag [#allocation5], %s7369_s30 }
  0x3b   : > { %s7375_s18 = scalar_lea.vmem [#allocation4], %s5725_s22 }
  0x3c   : > { %7162 = dma.done.wait (%p7308_p6), %s414_s23, 2048  }
  0x3d   : > { %7164 = vsyncadd (%p7308_p6), %s414_s23, 4294965248  ;;  %v531_v0 = vld [vmem:[%s7375_s18] sm:$0xff]  ;;  %v532_v1 = vld [vmem:[%s7375_s18 + $0x8] sm:$0xff]  ;;  %vm603_vm0 = vcmask 261120   ;;  %v479_v56 = vlaneseq  ;;  %vm7190_vm5 = vmmov 0   ;;  %vm2888_vm6 = vcmask 64512  }
  0x3e   : > { %539 = vxpose.xlu0.b32.start [1/4] (short) %v531_v0, 128  ;;  %v533_v2 = vld [vmem:[%s7375_s18 + $0x10] sm:$0xff]  ;;  %571 = vxpose.xlu1.b32.start [1/4] (short) %v532_v1, 128  ;;  %v534_v3 = vld [vmem:[%s7375_s18 + $0x18] sm:$0xff]  ;;  %v494_v4 = vld [vmem:[%s11714_s1] sm:$0xff]  ;;  %s11575_s17 = scalar_lea.vmem [#allocation7], %s5725_s22  ;;  %s5955_s23 = sshll.u32 %s7286_s29, 11 }
  0x3f   : > { %v495_v5 = vld [vmem:[%s11714_s1 + $0x8] sm:$0xff]  ;;  %v496_v6 = vld [vmem:[%s11714_s1 + $0x10] sm:$0xff]  ;;  %v497_v7 = vld [vmem:[%s11714_s1 + $0x18] sm:$0xff]  ;;  %v7466_v62 = vshrl.u32 %v479_v56, 7  ;;  %s5644_s25 = sshll.u32 %s11575_s17, 4  ;;  %s11664_s22 = scalar_lea.hbm %s11726_s13, %s5955_s23  ;;  %s11666_s25 = int_to_ptr.vmem [resolvable:$true] %s5644_s25 }
  0x40   : > { %v7397_v8 = vpack.c.bf16 %v495_v5, %v494_v4  ;;  %v7399_v9 = vpack.c.bf16 %v497_v7, %v496_v6  ;;  %v535_v10 = vld [vmem:[%s7375_s18 + $0x20] sm:$0xff]  ;;  %v536_v11 = vld [vmem:[%s7375_s18 + $0x28] sm:$0xff]  ;;  %v537_v12 = vld [vmem:[%s7375_s18 + $0x30] sm:$0xff]  ;;  %s5630_s29 = scalar_lea.sflag [#allocation6], %s7369_s30  ;;  %s7117_s19 = scalar_lea.vmem %s11666_s25, 2048 }
  0x41   : > { %v538_v13 = vld [vmem:[%s7375_s18 + $0x38] sm:$0xff]  ;;  %v7444_v46 = vld [vmem:[%s11715_s2] ss:$0 sm:$0xff]  ;;  %vm1257_vm1 = vcmp.lt.s32.totalorder %v7466_v62, 1  ;;  %vm1424_vm2 = vcmp.lt.s32.totalorder %v7466_v62, 7  ;;  %vm482_vm3 = vcmp.ge.s32.totalorder %v7466_v62, 1  ;;  %p7118_p6 = scmp.ne.s32.totalorder %s11666_s25, %s7117_s19 }
  0x42   : > { %11914 = vst [vmem:[#allocation14_spill] sm:$0xff] %v7397_v8  ;;  %11915 = vst [vmem:[#allocation15_spill] sm:$0xff] %v7399_v9  ;;  %540 = vxpose.xlu0.b32.cont [2/4] (short) %v533_v2, 128  ;;  %572 = vxpose.xlu1.b32.cont [2/4] (short) %v534_v3, 128  ;;  %v7449_v47 = vld [vmem:[%s11716_s3] ss:$0 sm:$0xff]  ;;  %v1596_v2 = vsub.s32 1, %v7466_v62  ;;  %v7475_v3 = vsub.s32 0, %v7466_v62 }
  0x43   : > { %6339 = vmatprep.subr.bf16.mxu0 %v7397_v8  ;;  %v7480_v6 = vld [vmem:[%s11717_s4] sm:$0xff]  ;;  %p12556_p11 = scmp.ne.s32.totalorder %s11911_s20, 0  ;;  %s7192_s16 = smov [#allocation7]  }
  0x44   : > { %6341 = vmatpush3.bf16.msra.mxu0 %v7397_v8  ;;  %11916 = vst [vmem:[#allocation16_spill] sm:$0xff] %v7475_v3  ;;  %s7121_s15 = sshll.u32 %s7192_s16, 4  ;;  %s7122_s15 = int_to_ptr.vmem [resolvable:$false] %s7121_s15 }
  0x45   : > { %6343 = vmatprep.subr.bf16.mxu0 %v7399_v9  ;;  %p7119_p12 = pnand %p7118_p6, %p12556_p11  ;;  %s7123_s24 = scalar_lea.vmem %s7122_s15, 4096 }
  0x46   : > { %541 = vxpose.xlu0.b32.cont [3/4] (short) %v535_v10, 128  ;;  %573 = vxpose.xlu1.b32.cont [3/4] (short) %v536_v11, 128  ;;  %p7124_p8 = scmp.lt.s32.totalorder %s11666_s25, %s7122_s15  ;;  %p7125_p10 = scmp.lt.s32.totalorder %s7123_s24, %s7117_s19 }
  0x47   : > { %p7120_p13 = pneg %p7119_p12 }
  0x48   : > { %6345 = vmatpush3.bf16.msra.mxu0 %v7399_v9  ;;  %p7126_p0 = por %p7125_p10, %p7124_p8 }
  0x4a   : > { %542 = vxpose.xlu0.b32.end [4/4] (short) %v537_v12, 128  ;;  %574 = vxpose.xlu1.b32.end [4/4] (short) %v538_v13, 128  ;;  %p7127_p2 = pnand %p7126_p0, %p7120_p13 }
  0xbe   : > { %v555_v14 = vpop.trf.xlu0  ;;  %v587_v15 = vpop.trf.xlu1 }
  0xbf   : > { %6154 = vmatprep.mubr.msk.f32.mxu0 %vm603_vm0, %v555_v14 }
  0xc2   : > { %v556_v16 = vpop.trf.xlu0  ;;  %v588_v17 = vpop.trf.xlu1 }
  0xc3   : > { %6155 = vmatmul.mubr.msk.f32.vlgmr.msra.gmra.mrb[0].mxu0 %vm603_vm0, %v556_v16  ;;  %v7488_v16 = vrot.slane %v7480_v6, %v1596_v2 }
  0xc5   : > { %11917 = vst [vmem:[#allocation17_spill] sm:$0xff] %v7488_v16 }
  0xc6   : > { %v557_v18 = vpop.trf.xlu0  ;;  %v589_v20 = vpop.trf.xlu1 }
  0xc7   : > { %6157 = vmatprep.mubr.msk.f32.mxu0 %vm603_vm0, %v557_v18 }
  0xca   : > { %v558_v19 = vpop.trf.xlu0  ;;  %v590_v22 = vpop.trf.xlu1 }
  0xcb   : > { %6158 = vmatmul.mubr.msk.f32.gmra.mrb[2].mxu0 %vm603_vm0, %v558_v19  ;;  %v1648_v19 = vsub.s32 2, %v7466_v62 }
  0xce   : > { %v559_v21 = vpop.trf.xlu0  ;;  %v591_v25 = vpop.trf.xlu1 }
  0xcf   : > { %6160 = vmatprep.mubr.msk.f32.mxu0 %vm603_vm0, %v559_v21 }
  0xd2   : > { %v560_v23 = vpop.trf.xlu0  ;;  %v592_v27 = vpop.trf.xlu1 }
  0xd3   : > { %6161 = vmatmul.mubr.msk.f32.gmra.mrb[4].mxu0 %vm603_vm0, %v560_v23  ;;  %v1598_v23 = vmul.f32 0.0, %v7488_v16 }
  0xd6   : > { %v561_v24 = vpop.trf.xlu0  ;;  %v593_v30 = vpop.trf.xlu1 }
  0xd7   : > { %6163 = vmatprep.mubr.msk.f32.mxu0 %vm603_vm0, %v561_v24 }
  0xda   : > { %v562_v26 = vpop.trf.xlu0  ;;  %v594_v32 = vpop.trf.xlu1 }
  0xdb   : > { %6164 = vmatmul.mubr.msk.f32.gmra.mrb[6].mxu0 %vm603_vm0, %v562_v26  ;;  %v7503_v26 = vrot.slane %v7480_v6, %v1648_v19 }
  0xde   : > { %v563_v28 = vpop.trf.xlu0  ;;  %v595_v35 = vpop.trf.xlu1 }
  0xdf   : > { %6166 = vmatprep.mubr.msk.f32.mxu0 %vm603_vm0, %v563_v28 }
  0xe2   : > { %v564_v29 = vpop.trf.xlu0  ;;  %v596_v37 = vpop.trf.xlu1 }
  0xe3   : > { %6167 = vmatmul.mubr.msk.f32.gmra.mrb[8].mxu0 %vm603_vm0, %v564_v29 }
  0xe6   : > { %v565_v31 = vpop.trf.xlu0  ;;  %v597_v40 = vpop.trf.xlu1 }
  0xe7   : > { %6169 = vmatprep.mubr.msk.f32.mxu0 %vm603_vm0, %v565_v31 }
  0xea   : > { %v566_v33 = vpop.trf.xlu0  ;;  %v598_v41 = vpop.trf.xlu1 }
  0xeb   : > { %6170 = vmatmul.mubr.msk.f32.gmra.mrb[10].mxu0 %vm603_vm0, %v566_v33  ;;  %v1700_v33 = vsub.s32 3, %v7466_v62 }
  0xee   : > { %v567_v34 = vpop.trf.xlu0  ;;  %v599_v42 = vpop.trf.xlu1 }
  0xef   : > { %6172 = vmatprep.mubr.msk.f32.mxu0 %vm603_vm0, %v567_v34 }
  0xf2   : > { %v568_v36 = vpop.trf.xlu0  ;;  %v600_v43 = vpop.trf.xlu1 }
  0xf3   : > { %6173 = vmatmul.mubr.msk.f32.gmra.mrb[12].mxu0 %vm603_vm0, %v568_v36 }
  0xf6   : > { %v569_v38 = vpop.trf.xlu0  ;;  %v601_v44 = vpop.trf.xlu1 }
  0xf7   : > { %6175 = vmatprep.mubr.msk.f32.mxu0 %vm603_vm0, %v569_v38 }
  0xfa   : > { %v570_v39 = vpop.trf.xlu0  ;;  %v602_v45 = vpop.trf.xlu1 }
  0xfb   : > { %6176 = vmatmul.mubr.msk.f32.gmra.mrb[14].mxu0 %vm603_vm0, %v570_v39  ;;  %v1650_v39 = vmul.f32 0.0, %v7503_v26 }
  0xfc   : > { %6178 = vmatprep.mubr.msk.f32.mxu0 %vm603_vm0, %v587_v15 }
  0xff   : > { %6179 = vmatmul.mubr.msk.f32.gmra.mrb[16].mxu0 %vm603_vm0, %v588_v17  ;;  %v7492_v17 = vrot.slane %v7480_v6, %v7475_v3 }
 0x100   : > { %6181 = vmatprep.mubr.msk.f32.mxu0 %vm603_vm0, %v589_v20 }
 0x103   : > { %6182 = vmatmul.mubr.msk.f32.gmra.mrb[18].mxu0 %vm603_vm0, %v590_v22  ;;  %v1546_v22 = vmul.f32 0.0, %v7492_v17 }
 0x104   : > { %6184 = vmatprep.mubr.msk.f32.mxu0 %vm603_vm0, %v591_v25 }
 0x105   : > { %v1614_v36 = vadd.f32 %v1598_v23, %v1546_v22 }
 0x107   : > { %6185 = vmatmul.mubr.msk.f32.gmra.mrb[20].mxu0 %vm603_vm0, %v592_v27 }
 0x108   : > { %6187 = vmatprep.mubr.msk.f32.mxu0 %vm603_vm0, %v593_v30 }
 0x10b   : > { %6188 = vmatmul.mubr.msk.f32.gmra.mrb[22].mxu0 %vm603_vm0, %v594_v32  ;;  %v1752_v32 = vsub.s32 4, %v7466_v62 }
 0x10c   : > { %6190 = vmatprep.mubr.msk.f32.mxu0 %vm603_vm0, %v595_v35 }
 0x10f   : > { %6191 = vmatmul.mubr.msk.f32.gmra.mrb[24].mxu0 %vm603_vm0, %v596_v37  ;;  %v1804_v37 = vsub.s32 5, %v7466_v62 }
 0x110   : > { %6193 = vmatprep.mubr.msk.f32.mxu0 %vm603_vm0, %v597_v40  ;;  %v1910_v40 = vsub.s32 7, %v7466_v62 }
 0x113   : > { %6194 = vmatmul.mubr.msk.f32.gmra.mrb[26].mxu0 %vm603_vm0, %v598_v41 }
 0x114   : > { %6196 = vmatprep.mubr.msk.f32.mxu0 %vm603_vm0, %v599_v42 }
 0x117   : > { %6197 = vmatmul.mubr.msk.f32.gmra.mrb[28].mxu0 %vm603_vm0, %v600_v43  ;;  %v7520_v43 = vadd.s32 8, %v7466_v62 }
 0x118   : > { %6199 = vmatprep.mubr.msk.f32.mxu0 %vm603_vm0, %v601_v44 }
 0x119   : > { %vm491_vm4 = vcmp.lt.s32.totalorder %v7520_v43, 15 }
 0x11b   : > { %6200 = vmatmul.mubr.msk.f32.gmra.mrb[30].mxu0 %vm603_vm0, %v602_v45  ;;  %v1857_v45 = vsub.s32 6, %v7466_v62 }
 0x196   : > { %v6156_v48 = vpop.f32.mrb[0].mxu0 }
 0x197   : > { %v932_v49 = vmul.f32 %v6156_v48, %v7444_v46  ;;  %v766_v50 = vpop.f32.mrb[1].mxu0 }
 0x198   : > { %v931_v51 = vmul.f32 %v7444_v46, %v766_v50  ;;  %v7528_v50 = vrot.slane %v7480_v6, %v1752_v32 }
 0x199   : > { %v7454_v52 = vadd.f32 %v7449_v47, %v932_v49 }
 0x19a   : > { %v7457_v53 = vadd.f32 %v7449_v47, %v931_v51  ;;  %11918 = vst [vmem:[#allocation18_spill] sm:$0xff] %v7528_v50 }
 0x19b   : > { %v5762_v54 = vmul.f32 -1.442695, %v7454_v52 }
 0x19c   : > { %v5761_v55 = vmul.f32 -1.442695, %v7457_v53 }
 0x19d   : > { %6522 = vpow2.f32 %v5762_v54  ;;  %v7536_v54 = vrot.slane %v7480_v6, %v1700_v33 }
 0x19e   : > { %6524 = vpow2.f32 %v5761_v55  ;;  %v6159_v57 = vpop.f32.mrb[2].mxu0  ;;  %v7539_v55 = vrot.slane %v7480_v6, %v1804_v37 }
 0x19f   : > { %v934_v58 = vmul.f32 %v6159_v57, %v7444_v46  ;;  %v776_v59 = vpop.f32.mrb[3].mxu0 }
 0x1a0   : > { %v933_v60 = vmul.f32 %v7444_v46, %v776_v59  ;;  %v7543_v59 = vadd.f32 %v1650_v39, %v1614_v36 }
 0x1a1   : > { %v7464_v61 = vadd.f32 %v7449_v47, %v934_v58 }
 0x1a2   : > { %v7469_v63 = vadd.f32 %v7449_v47, %v933_v60  ;;  %11920 = vst [vmem:[#allocation20_spill] sm:$0xff] %v7543_v59  ;;  %v7546_v60 = vrot.slane %v7480_v6, %v1910_v40 }
 0x1a3   : > { %v5764_v0 = vmul.f32 -1.442695, %v7464_v61 }
 0x1a4   : > { %v5763_v1 = vmul.f32 -1.442695, %v7469_v63 }
 0x1a5   : > { %6526 = vpow2.f32 %v5764_v0 }
 0x1a6   : > { %6528 = vpow2.f32 %v5763_v1  ;;  %v6162_v4 = vpop.f32.mrb[4].mxu0 }
 0x1a7   : > { %v6523_v5 = vpop.eup %6522  ;;  %v936_v7 = vmul.f32 %v6162_v4, %v7444_v46  ;;  %v786_v10 = vpop.f32.mrb[5].mxu0  ;;  %v7553_v4 = vrot.slane %v7480_v6, %v1857_v45 }
 0x1a8   : > { %v6525_v11 = vpop.eup %6524  ;;  %v1098_v12 = vadd.f32 1.0, %v6523_v5  ;;  %v935_v13 = vmul.f32 %v7444_v46, %v786_v10 }
 0x1a9   : > { %v1097_v14 = vadd.f32 1.0, %v6525_v11  ;;  %v7485_v15 = vadd.f32 %v7449_v47, %v936_v7 }
 0x1aa   : > { %6530 = vrcp.f32 %v1098_v12  ;;  %v7495_v18 = vadd.f32 %v7449_v47, %v935_v13 }
 0x1ab   : > { %6532 = vrcp.f32 %v1097_v14  ;;  %v5766_v20 = vmul.f32 -1.442695, %v7485_v15 }
 0x1ac   : > { %v5765_v21 = vmul.f32 -1.442695, %v7495_v18 }
 0x1ad   : > { %6534 = vpow2.f32 %v5766_v20 }
 0x1ae   : > { %6536 = vpow2.f32 %v5765_v21  ;;  %v6165_v24 = vpop.f32.mrb[6].mxu0 }
 0x1af   : > { %v6527_v25 = vpop.eup %6526  ;;  %v938_v27 = vmul.f32 %v6165_v24, %v7444_v46  ;;  %v796_v28 = vpop.f32.mrb[7].mxu0 }
 0x1b0   : > { %v6529_v29 = vpop.eup %6528  ;;  %v1100_v30 = vadd.f32 1.0, %v6527_v25  ;;  %v937_v31 = vmul.f32 %v7444_v46, %v796_v28 }
 0x1b1   : > { %v1099_v34 = vadd.f32 1.0, %v6529_v29  ;;  %v7510_v35 = vadd.f32 %v7449_v47, %v938_v27 }
 0x1b2   : > { %6538 = vrcp.f32 %v1100_v30  ;;  %v7514_v38 = vadd.f32 %v7449_v47, %v937_v31 }
 0x1b3   : > { %6540 = vrcp.f32 %v1099_v34  ;;  %v5768_v41 = vmul.f32 -1.442695, %v7510_v35 }
 0x1b4   : > { %v6531_v42 = vpop.eup %6530  ;;  %v5767_v44 = vmul.f32 -1.442695, %v7514_v38 }
 0x1b5   : > { %v6533_v48 = vpop.eup %6532  ;;  %v7525_v49 = vmul.f32 %v6531_v42, %v7454_v52  ;;  %6542 = vpow2.f32 %v5768_v41 }
 0x1b6   : > { %v7532_v51 = vmul.f32 %v6533_v48, %v7457_v53  ;;  %v6168_v56 = vpop.f32.mrb[8].mxu0  ;;  %6544 = vpow2.f32 %v5767_v44 }
 0x1b7   : > { %v6535_v52 = vpop.eup %6534  ;;  %v1226_v57 = vrot.slane %v7525_v49, 7  ;;  %v1393_v58 = vrot.slane %v7525_v49, 1  ;;  %v806_v53 = vpop.f32.mrb[9].mxu0  ;;  %v940_v10 = vmul.f32 %v6168_v56, %v7444_v46  ;;  %v1601_v12 = vmul.f32 %v7488_v16, %v7525_v49 }
 0x1b8   : > { %11919 = vst [vmem:[#allocation19_spill] sm:$0xff] %v7532_v51  ;;  %v6537_v0 = vpop.eup %6536  ;;  %v11733_v1 = vrot.slane %v7532_v51, 7  ;;  %v11732_v2 = vrot.slane %v7532_v51, 1  ;;  %v1102_v5 = vadd.f32 1.0, %v6535_v52  ;;  %v939_v11 = vmul.f32 %v7444_v46, %v806_v53 }
 0x1b9   : > { %v1101_v7 = vadd.f32 1.0, %v6537_v0  ;;  %v1755_v13 = vmul.f32 %v7528_v50, %v7525_v49  ;;  %v7572_v20 = vmul.f32 %v7488_v16, %v7532_v51  ;;  %v7577_v22 = vmul.f32 %v7528_v50, %v7532_v51 }
 0x1ba   : > { %v1288_v14 = vsel %vm1257_vm1, %v11733_v1, %v1226_v57  ;;  %v1455_v6 = vsel %vm1424_vm2, %v11732_v2, %v1393_v58  ;;  %6546 = vrcp.f32 %v1102_v5  ;;  %v7583_v25 = vadd.f32 %v7449_v47, %v940_v10 }
 0x1bb   : > { %v1549_v19 = vmul.f32 %v7492_v17, %v1288_v14  ;;  %11921 = vst [vmem:[#allocation21_spill] sm:$0xff] %v7572_v20  ;;  %v1703_v21 = vmul.f32 %v7536_v54, %v1288_v14  ;;  %11922 = vst [vmem:[#allocation22_spill] sm:$0xff] %v7577_v22  ;;  %v7580_v24 = vmul.f32 %v7503_v26, %v1455_v6  ;;  %6548 = vrcp.f32 %v1101_v7 }
 0x1bc   : > { %v6539_v23 = vpop.eup %6538  ;;  %v7586_v27 = vadd.f32 %v7449_v47, %v939_v11  ;;  %v7593_v32 = vmul.f32 %v7539_v55, %v1455_v6  ;;  %v5770_v34 = vmul.f32 -1.442695, %v7583_v25 }
 0x1bd   : > { %11923 = vst [vmem:[#allocation23_spill] sm:$0xff] %v7580_v24  ;;  %v6541_v28 = vpop.eup %6540  ;;  %v1617_v29 = vadd.f32 %v1601_v12, %v1549_v19  ;;  %v1719_v30 = vadd.f32 %v1703_v21, %v7543_v59  ;;  %v7590_v31 = vmul.f32 %v6539_v23, %v7464_v61 }
 0x1be   : > { %11924 = vst [vmem:[#allocation24_spill] sm:$0xff] %v7593_v32  ;;  %v1195_v33 = vmul.f32 %v6541_v28, %v7469_v63  ;;  %v5769_v36 = vmul.f32 -1.442695, %v7586_v27  ;;  %v6171_v37 = vpop.f32.mrb[10].mxu0 }
 0x1bf   : > { %v6543_v39 = vpop.eup %6542  ;;  %v7598_v40 = vadd.f32 %v1755_v13, %v1719_v30  ;;  %v1228_v41 = vrot.slane %v7590_v31, 7  ;;  %v11734_v42 = vrot.slane %v7590_v31, 1  ;;  %v1603_v61 = vmul.f32 %v7488_v16, %v7590_v31  ;;  %v816_v44 = vpop.f32.mrb[11].mxu0 }
 0x1c0   : > { %v7606_v45 = vmul.f32 %v7528_v50, %v7590_v31  ;;  %v7610_v63 = vmul.f32 %v7546_v60, %v7590_v31  ;;  %v1227_v48 = vrot.slane %v1195_v33, 7  ;;  %v1394_v49 = vrot.slane %v1195_v33, 1  ;;  %v6545_v5 = vpop.eup %6544 }
 0x1c1   : > { %11925 = vst [vmem:[#allocation25_spill] sm:$0xff] %v7598_v40  ;;  %v1602_v56 = vmul.f32 %v7488_v16, %v1195_v33  ;;  %v7614_v52 = vmul.f32 %v7528_v50, %v1195_v33  ;;  %v7617_v53 = vmul.f32 %v7546_v60, %v1195_v33  ;;  %v1104_v0 = vadd.f32 1.0, %v6543_v39 }
 0x1c2   : > { %11926 = vst [vmem:[#allocation26_spill] sm:$0xff] %v7606_v45  ;;  %11927 = vst [vmem:[#allocation27_spill] sm:$0xff] %v7610_v63  ;;  %v7621_v7 = vsel %vm1257_vm1, %v1227_v48, %v1228_v41  ;;  %v1287_v10 = vsel %vm1257_vm1, %v1226_v57, %v1227_v48  ;;  %v7629_v11 = vsel %vm1424_vm2, %v1394_v49, %v11734_v42  ;;  %v1103_v30 = vadd.f32 1.0, %v6545_v5 }
 0x1c3   : > { %11928 = vst [vmem:[#allocation28_spill] sm:$0xff] %v7614_v52  ;;  %11929 = vst [vmem:[#allocation29_spill] sm:$0xff] %v7617_v53  ;;  %v1454_v12 = vsel %vm1424_vm2, %v1393_v58, %v1394_v49  ;;  %v7635_v13 = vsel %vm482_vm3, %v1287_v10, 0.0  ;;  %v1551_v57 = vmul.f32 %v7492_v17, %v7621_v7  ;;  %v1654_v6 = vmul.f32 %v7503_v26, %v7629_v11 }
 0x1c4   : > { %11930 = vst [vmem:[#allocation30_spill] sm:$0xff] %v7621_v7  ;;  %11931 = vst [vmem:[#allocation31_spill] sm:$0xff] %v7629_v11  ;;  %v7639_v14 = vsel %vm491_vm4, %v1454_v12, 0.0  ;;  %v1550_v19 = vmul.f32 %v7492_v17, %v7635_v13  ;;  %v7651_v21 = vmul.f32 %v7536_v54, %v7635_v13  ;;  %v7655_v23 = vmul.f32 %v7536_v54, %v7621_v7  ;;  %v6547_v39 = vpop.eup %6546 }
 0x1c5   : > { %11932 = vst [vmem:[#allocation32_spill] sm:$0xff] %v7635_v13  ;;  %11933 = vst [vmem:[#allocation33_spill] sm:$0xff] %v7639_v14  ;;  %v1653_v58 = vmul.f32 %v7503_v26, %v7639_v14  ;;  %v7657_v28 = vadd.f32 %v1603_v61, %v1551_v57  ;;  %6550 = vrcp.f32 %v1104_v0  ;;  %v942_v33 = vmul.f32 %v6171_v37, %v7444_v46  ;;  %v6549_v2 = vpop.eup %6548 }
 0x1c6   : > { %11934 = vst [vmem:[#allocation34_spill] sm:$0xff] %v7651_v21  ;;  %11935 = vst [vmem:[#allocation35_spill] sm:$0xff] %v7655_v23  ;;  %v1618_v48 = vadd.f32 %v1602_v56, %v1550_v19  ;;  %6552 = vpow2.f32 %v5770_v34  ;;  %v941_v10 = vmul.f32 %v7444_v46, %v816_v44  ;;  %v6174_v12 = vpop.f32.mrb[12].mxu0  ;;  %v7664_v1 = vmul.f32 %v6547_v39, %v7485_v15 }
 0x1c7   : > { %11936 = vst [vmem:[#allocation36_spill] sm:$0xff] %v7657_v28  ;;  %v7660_v49 = vadd.f32 %v1653_v58, %v1617_v29  ;;  %6554 = vrcp.f32 %v1103_v30  ;;  %v7667_v61 = vadd.f32 %v7449_v47, %v942_v33  ;;  %v944_v0 = vmul.f32 %v6174_v12, %v7444_v46  ;;  %v826_v5 = vpop.f32.mrb[13].mxu0 }
 0x1c8   : > { %11938 = vst [vmem:[#allocation38_spill] sm:$0xff] %v7664_v1  ;;  %v1670_v37 = vadd.f32 %v1654_v6, %v1618_v48  ;;  %v7671_v56 = vmul.f32 %v6549_v2, %v7495_v18  ;;  %6556 = vpow2.f32 %v5769_v36  ;;  %v7674_v29 = vadd.f32 %v7449_v47, %v941_v10 }
 0x1c9   : > { %11937 = vst [vmem:[#allocation37_spill] sm:$0xff] %v7660_v49  ;;  %v11735_v34 = vrot.slane %v7664_v1, 7  ;;  %v11736_v15 = vrot.slane %v7664_v1, 1  ;;  %v1605_v44 = vmul.f32 %v7488_v16, %v7664_v1  ;;  %v7682_v57 = vmul.f32 %v7528_v50, %v7664_v1 }
 0x1ca   : > { %v7686_v6 = vmul.f32 %v7546_v60, %v7664_v1  ;;  %v1229_v18 = vrot.slane %v7671_v56, 7  ;;  %v11737_v2 = vrot.slane %v7671_v56, 1  ;;  %v1604_v36 = vmul.f32 %v7488_v16, %v7671_v56 }
 0x1cb   : > { %11939 = vst [vmem:[#allocation39_spill] sm:$0xff] %v7682_v57  ;;  %v1758_v19 = vmul.f32 %v7528_v50, %v7671_v56  ;;  %v7696_v58 = vmul.f32 %v7546_v60, %v7671_v56  ;;  %v5772_v30 = vmul.f32 -1.442695, %v7667_v61  ;;  %v5771_v33 = vmul.f32 -1.442695, %v7674_v29 }
 0x1cc   : > { %11940 = vst [vmem:[#allocation40_spill] sm:$0xff] %v7686_v6  ;;  %v7704_v39 = vsel %vm1257_vm1, %v1229_v18, %v11735_v34  ;;  %v1285_v48 = vsel %vm1257_vm1, %v1228_v41, %v1229_v18  ;;  %v7714_v10 = vsel %vm1424_vm2, %v11737_v2, %v11736_v15  ;;  %v7717_v12 = vadd.f32 %v7449_v47, %v944_v0 }
 0x1cd   : > { %11941 = vst [vmem:[#allocation41_spill] sm:$0xff] %v7696_v58  ;;  %11942 = vst [vmem:[#allocation42_spill] sm:$0xff] %v7704_v39  ;;  %v7721_v42 = vsel %vm482_vm3, %v1285_v48, 0.0  ;;  %v1553_v34 = vmul.f32 %v7492_v17, %v7704_v39  ;;  %v1656_v41 = vmul.f32 %v7503_v26, %v7714_v10  ;;  %v7729_v18 = vmul.f32 %v7536_v54, %v7704_v39 }
 0x1ce   : > { %11943 = vst [vmem:[#allocation43_spill] sm:$0xff] %v7714_v10  ;;  %11944 = vst [vmem:[#allocation44_spill] sm:$0xff] %v7721_v42  ;;  %v1552_v15 = vmul.f32 %v7492_v17, %v7721_v42  ;;  %v1706_v0 = vmul.f32 %v7536_v54, %v7721_v42  ;;  %v1810_v48 = vmul.f32 %v7539_v55, %v7714_v10  ;;  %6558 = vpow2.f32 %v5772_v30  ;;  %v6177_v2 = vpop.f32.mrb[14].mxu0 }
 0x1cf   : > { %11945 = vst [vmem:[#allocation45_spill] sm:$0xff] %v7729_v18  ;;  %v6551_v3 = vpop.eup %6550  ;;  %v7737_v9 = vadd.f32 %v1605_v44, %v1553_v34  ;;  %6560 = vpow2.f32 %v5771_v33  ;;  %v5774_v8 = vmul.f32 -1.442695, %v7717_v12  ;;  %v943_v57 = vmul.f32 %v7444_v46, %v826_v5  ;;  %v836_v18 = vpop.f32.mrb[15].mxu0 }
 0x1d0   : > { %v6553_v6 = vpop.eup %6552  ;;  %v1620_v58 = vadd.f32 %v1604_v36, %v1552_v15  ;;  %v1722_v39 = vadd.f32 %v1706_v0, %v1670_v37  ;;  %v7742_v45 = vmul.f32 %v6551_v3, %v7510_v35  ;;  %v946_v42 = vmul.f32 %v6177_v2, %v7444_v46 }
 0x1d1   : > { %11946 = vst [vmem:[#allocation46_spill] sm:$0xff] %v7737_v9  ;;  %v6555_v10 = vpop.eup %6554  ;;  %v1106_v30 = vadd.f32 1.0, %v6553_v6  ;;  %6562 = vpow2.f32 %v5774_v8  ;;  %v7746_v34 = vadd.f32 %v7449_v47, %v943_v57  ;;  %v945_v44 = vmul.f32 %v7444_v46, %v836_v18 }
 0x1d2   : > { %11947 = vst [vmem:[#allocation47_spill] sm:$0xff] %v7742_v45  ;;  %v6557_v33 = vpop.eup %6556  ;;  %v1672_v9 = vadd.f32 %v1656_v41, %v1620_v58  ;;  %v1774_v5 = vadd.f32 %v1758_v19, %v1722_v39  ;;  %v11747_v52 = vrot.slane %v7742_v45, 7  ;;  %v11748_v37 = vrot.slane %v7742_v45, 1  ;;  %v6180_v15 = vpop.f32.mrb[16].mxu0 }
 0x1d3   : > { %v1607_v3 = vmul.f32 %v7488_v16, %v7742_v45  ;;  %v7755_v35 = vmul.f32 %v7528_v50, %v7742_v45  ;;  %v7759_v8 = vmul.f32 %v7546_v60, %v7742_v45  ;;  %v7762_v57 = vmul.f32 %v6555_v10, %v7514_v38  ;;  %v846_v6 = vpop.f32.mrb[17].mxu0 }
 0x1d4   : > { %v7764_v2 = vadd.f32 %v1810_v48, %v1774_v5  ;;  %6564 = vrcp.f32 %v1106_v30  ;;  %v1105_v36 = vadd.f32 1.0, %v6557_v33  ;;  %v5773_v19 = vmul.f32 -1.442695, %v7746_v34 }
 0x1d5   : > { %11948 = vst [vmem:[#allocation48_spill] sm:$0xff] %v7755_v35  ;;  %11949 = vst [vmem:[#allocation49_spill] sm:$0xff] %v7759_v8  ;;  %v1231_v58 = vrot.slane %v7762_v57, 7  ;;  %v11749_v39 = vrot.slane %v7762_v57, 1  ;;  %v1606_v41 = vmul.f32 %v7488_v16, %v7762_v57  ;;  %v1760_v18 = vmul.f32 %v7528_v50, %v7762_v57 }
 0x1d6   : > { %11950 = vst [vmem:[#allocation50_spill] sm:$0xff] %v7762_v57  ;;  %11951 = vst [vmem:[#allocation51_spill] sm:$0xff] %v7764_v2  ;;  %v7775_v38 = vmul.f32 %v7546_v60, %v7762_v57  ;;  %6566 = vrcp.f32 %v1105_v36  ;;  %v7778_v10 = vadd.f32 %v7449_v47, %v946_v42  ;;  %v7781_v0 = vadd.f32 %v7449_v47, %v945_v44  ;;  %v6183_v48 = vpop.f32.mrb[18].mxu0 }
 0x1d7   : > { %v7787_v30 = vsel %vm1257_vm1, %v1231_v58, %v11747_v52  ;;  %v11954_v33 = vrot.slane %v7664_v1, 7  ;;  %v7799_v42 = vsel %vm1424_vm2, %v11749_v39, %v11748_v37  ;;  %6568 = vpow2.f32 %v5773_v19  ;;  %v856_v44 = vpop.f32.mrb[19].mxu0 }
 0x1d8   : > { %11952 = vst [vmem:[#allocation52_spill] sm:$0xff] %v7775_v38  ;;  %11953 = vst [vmem:[#allocation53_spill] sm:$0xff] %v7787_v30  ;;  %v6559_v36 = vpop.eup %6558  ;;  %v1555_v35 = vmul.f32 %v7492_v17, %v7787_v30  ;;  %v5776_v23 = vmul.f32 -1.442695, %v7778_v10  ;;  %v5775_v49 = vmul.f32 -1.442695, %v7781_v0  ;;  %v948_v63 = vmul.f32 %v6180_v15, %v7444_v46 }
 0x1d9   : > { %v1283_v5 = vsel %vm1257_vm1, %v11954_v33, %v1231_v58  ;;  %11955 = vst [vmem:[#allocation54_spill] sm:$0xff] %v7799_v42  ;;  %v1658_v58 = vmul.f32 %v7503_v26, %v7799_v42  ;;  %v7811_v33 = vmul.f32 %v7536_v54, %v7787_v30  ;;  %v6561_v8 = vpop.eup %6560  ;;  %v1108_v39 = vadd.f32 1.0, %v6559_v36 }
 0x1da   : > { %v7803_v52 = vsel %vm482_vm3, %v1283_v5, 0.0  ;;  %v1812_v5 = vmul.f32 %v7539_v55, %v7799_v42  ;;  %v7819_v38 = vadd.f32 %v1607_v3, %v1555_v35  ;;  %v1107_v2 = vadd.f32 1.0, %v6561_v8  ;;  %v6186_v30 = vpop.f32.mrb[20].mxu0 }
 0x1db   : > { %11956 = vst [vmem:[#allocation55_spill] sm:$0xff] %v7803_v52  ;;  %11957 = vst [vmem:[#allocation56_spill] sm:$0xff] %v7811_v33  ;;  %v1554_v19 = vmul.f32 %v7492_v17, %v7803_v52  ;;  %v1708_v37 = vmul.f32 %v7536_v54, %v7803_v52  ;;  %v6563_v33 = vpop.eup %6562  ;;  %6570 = vrcp.f32 %v1108_v39  ;;  %v866_v53 = vpop.f32.mrb[21].mxu0  ;;  %v947_v42 = vmul.f32 %v7444_v46, %v846_v6 }
 0x1dc   : > { %11958 = vst [vmem:[#allocation57_spill] sm:$0xff] %v7819_v38  ;;  %6572 = vrcp.f32 %v1107_v2  ;;  %v1110_v52 = vadd.f32 1.0, %v6563_v33  ;;  %v950_v3 = vmul.f32 %v6183_v48, %v7444_v46  ;;  %v7829_v36 = vadd.f32 %v7449_v47, %v948_v63 }
 0x1dd   : > { %v1622_v1 = vadd.f32 %v1606_v41, %v1554_v19  ;;  %v1724_v57 = vadd.f32 %v1708_v37, %v1672_v9  ;;  %6574 = vpow2.f32 %v5776_v23  ;;  %v7832_v9 = vadd.f32 %v7449_v47, %v947_v42 }
 0x1de   : > { %v6565_v38 = vpop.eup %6564  ;;  %6576 = vrcp.f32 %v1110_v52  ;;  %v7835_v37 = vadd.f32 %v7449_v47, %v950_v3  ;;  %v949_v15 = vmul.f32 %v7444_v46, %v856_v44  ;;  %v7838_v6 = vpop.f32.mrb[22].mxu0  ;;  %v5778_v63 = vmul.f32 -1.442695, %v7829_v36 }
 0x1df   : > { %v7826_v35 = vadd.f32 %v1658_v58, %v1622_v1  ;;  %v1776_v8 = vadd.f32 %v1760_v18, %v1724_v57  ;;  %v7843_v1 = vmul.f32 %v6565_v38, %v7583_v25  ;;  %6578 = vpow2.f32 %v5775_v49  ;;  %v7846_v23 = vpop.f32.mrb[23].mxu0 }
 0x1e0   : > { %v6567_v52 = vpop.eup %6566  ;;  %v5777_v57 = vmul.f32 -1.442695, %v7832_v9  ;;  %v5780_v39 = vmul.f32 -1.442695, %v7835_v37  ;;  %v7851_v41 = vadd.f32 %v7449_v47, %v949_v15  ;;  %v952_v18 = vmul.f32 %v6186_v30, %v7444_v46 }
 0x1e1   : > { %v7840_v2 = vadd.f32 %v1812_v5, %v1776_v8  ;;  %11960 = vst [vmem:[#allocation59_spill] sm:$0xff] %v7843_v1  ;;  %v6569_v48 = vpop.eup %6568  ;;  %v11757_v42 = vrot.slane %v7843_v1, 7  ;;  %v1609_v49 = vmul.f32 %v7488_v16, %v7843_v1  ;;  %v7860_v38 = vmul.f32 %v7528_v50, %v7843_v1 }
 0x1e2   : > { %v7864_v44 = vmul.f32 %v7546_v60, %v7843_v1  ;;  %v7867_v58 = vmul.f32 %v6567_v52, %v7586_v27  ;;  %v1109_v30 = vadd.f32 1.0, %v6569_v48  ;;  %6580 = vpow2.f32 %v5778_v63  ;;  %v7869_v33 = vpop.f32.mrb[24].mxu0 }
 0x1e3   : > { %11959 = vst [vmem:[#allocation58_spill] sm:$0xff] %v7840_v2  ;;  %11961 = vst [vmem:[#allocation60_spill] sm:$0xff] %v7860_v38  ;;  %6582 = vpow2.f32 %v5777_v57  ;;  %v7872_v19 = vmul.f32 -1.442695, %v7851_v41  ;;  %v7875_v5 = vadd.f32 %v7449_v47, %v952_v18  ;;  %v951_v3 = vmul.f32 %v7444_v46, %v866_v53  ;;  %v7878_v8 = vpop.f32.mrb[25].mxu0 }
 0x1e4   : > { %11962 = vst [vmem:[#allocation61_spill] sm:$0xff] %v7864_v44  ;;  %11963 = vst [vmem:[#allocation62_spill] sm:$0xff] %v7867_v58  ;;  %v1233_v15 = vrot.slane %v7867_v58, 7  ;;  %v1608_v63 = vmul.f32 %v7488_v16, %v7867_v58  ;;  %v1762_v52 = vmul.f32 %v7528_v50, %v7867_v58  ;;  %v7888_v48 = vmul.f32 %v7546_v60, %v7867_v58 }
 0x1e5   : > { %v6571_v57 = vpop.eup %6570  ;;  %6584 = vrcp.f32 %v1109_v30  ;;  %v7891_v53 = vmul.f32 -1.442695, %v7875_v5  ;;  %v7894_v18 = vadd.f32 %v7449_v47, %v951_v3  ;;  %v11966_v38 = vrot.slane %v7742_v45, 7 }
 0x1e6   : > { %11964 = vst [vmem:[#allocation63_spill] sm:$0xff] %v7888_v48  ;;  %v6573_v25 = vpop.eup %6572  ;;  %v7900_v27 = vsel %vm1257_vm1, %v1233_v15, %v11757_v42  ;;  %v11967_v30 = vrot.slane %v7843_v1, 1  ;;  %v11968_v48 = vrot.slane %v7867_v58, 1  ;;  %v7915_v2 = vmul.f32 %v6571_v57, %v7667_v61  ;;  %v7917_v11 = vpop.f32.mrb[26].mxu0 }
 0x1e7   : > { %11965 = vst [vmem:[#allocation64_spill] sm:$0xff] %v7900_v27  ;;  %v1281_v44 = vsel %vm1257_vm1, %v11966_v38, %v1233_v15  ;;  %v6575_v42 = vpop.eup %6574  ;;  %v1557_v38 = vmul.f32 %v7492_v17, %v7900_v27  ;;  %v7955_v7 = vmul.f32 %v6573_v25, %v7674_v29  ;;  %6586 = vpow2.f32 %v5780_v39 }
 0x1e8   : > { %v7912_v3 = vsel %vm1424_vm2, %v11968_v48, %v11967_v30  ;;  %11970 = vst [vmem:[#allocation66_spill] sm:$0xff] %v7915_v2  ;;  %v7921_v45 = vsel %vm482_vm3, %v1281_v44, 0.0  ;;  %v7929_v48 = vmul.f32 %v7536_v54, %v7900_v27  ;;  %v7931_v30 = vpop.f32.mrb[27].mxu0  ;;  %v6577_v61 = vpop.eup %6576  ;;  %v7947_v32 = vmul.f32 %v7528_v50, %v7915_v2 }
 0x1e9   : > { %11969 = vst [vmem:[#allocation65_spill] sm:$0xff] %v7912_v3  ;;  %11971 = vst [vmem:[#allocation67_spill] sm:$0xff] %v7921_v45  ;;  %v1660_v15 = vmul.f32 %v7503_v26, %v7912_v3  ;;  %v1556_v57 = vmul.f32 %v7492_v17, %v7921_v45  ;;  %v1710_v44 = vmul.f32 %v7536_v54, %v7921_v45  ;;  %v6579_v40 = vpop.eup %6578  ;;  %v1112_v27 = vadd.f32 1.0, %v6575_v42 }
 0x1ea   : > { %11972 = vst [vmem:[#allocation68_spill] sm:$0xff] %v7929_v48  ;;  %v1814_v58 = vmul.f32 %v7539_v55, %v7912_v3  ;;  %v7940_v13 = vadd.f32 %v1609_v49, %v1557_v38  ;;  %v1611_v48 = vmul.f32 %v7488_v16, %v7915_v2  ;;  %11974 = vst [vmem:[#allocation70_spill] sm:$0xff] %v7947_v32  ;;  %v7957_v49 = vpop.f32.mrb[28].mxu0  ;;  %v11981_v25 = vrot.slane %v7843_v1, 7 }
 0x1eb   : > { %v1624_v14 = vadd.f32 %v1608_v63, %v1556_v57  ;;  %v1726_v45 = vadd.f32 %v1710_v44, %v7826_v35  ;;  %v7952_v3 = vmul.f32 %v7546_v60, %v7915_v2  ;;  %11976 = vst [vmem:[#allocation72_spill] sm:$0xff] %v7955_v7  ;;  %v7960_v38 = vmul.f32 %v6577_v61, %v7717_v12  ;;  %v7962_v21 = vpop.f32.mrb[29].mxu0 }
 0x1ec   : > { %11973 = vst [vmem:[#allocation69_spill] sm:$0xff] %v7940_v13  ;;  %v1111_v13 = vadd.f32 1.0, %v6579_v40  ;;  %v6581_v63 = vpop.eup %6580  ;;  %v1235_v44 = vrot.slane %v7955_v7, 7  ;;  %v1610_v29 = vmul.f32 %v7488_v16, %v7955_v7  ;;  %v1764_v12 = vmul.f32 %v7528_v50, %v7955_v7 }
 0x1ed   : > { %11975 = vst [vmem:[#allocation71_spill] sm:$0xff] %v7952_v3  ;;  %v1676_v57 = vadd.f32 %v1660_v15, %v1624_v14  ;;  %v1778_v35 = vadd.f32 %v1762_v52, %v1726_v45  ;;  %v11766_v3 = vrot.slane %v7955_v7, 1  ;;  %v6583_v32 = vpop.eup %6582  ;;  %v7972_v40 = vmul.f32 %v7546_v60, %v7955_v7 }
 0x1ee   : > { %v11979_v45 = vrot.slane %v7915_v2, 7  ;;  %v1279_v52 = vsel %vm1257_vm1, %v11981_v25, %v1235_v44  ;;  %v11982_v15 = vrot.slane %v7915_v2, 1  ;;  %v1613_v7 = vmul.f32 %v7488_v16, %v7960_v38 }
 0x1ef   : > { %11977 = vst [vmem:[#allocation73_spill] sm:$0xff] %v7972_v40  ;;  %v7975_v42 = vadd.f32 %v1814_v58, %v1778_v35  ;;  %v7995_v58 = vpop.f32.mrb[30].mxu0  ;;  %v6585_v35 = vpop.eup %6584  ;;  %6588 = vrcp.f32 %v1112_v27  ;;  %v11990_v27 = vrot.slane %v7960_v38, 7  ;;  %v953_v51 = vmul.f32 %v7444_v46, %v7846_v23 }
 0x1f0   : > { %v7981_v14 = vsel %vm1257_vm1, %v1235_v44, %v11979_v45  ;;  %v7993_v61 = vsel %vm1424_vm2, %v11766_v3, %v11982_v15  ;;  %v7999_v45 = vsel %vm482_vm3, %v1279_v52, 0.0  ;;  %v8009_v40 = vpop.f32.mrb[31].mxu0  ;;  %v8031_v24 = vmul.f32 %v6585_v35, %v7746_v34 }
 0x1f1   : > { %11978 = vst [vmem:[#allocation74_spill] sm:$0xff] %v7975_v42  ;;  %11980 = vst [vmem:[#allocation75_spill] sm:$0xff] %v7981_v14  ;;  %v1559_v39 = vmul.f32 %v7492_v17, %v7981_v14  ;;  %v1662_v44 = vmul.f32 %v7503_v26, %v7993_v61  ;;  %v8007_v25 = vmul.f32 %v7536_v54, %v7981_v14  ;;  %6590 = vrcp.f32 %v1111_v13  ;;  %v6587_v20 = vpop.eup %6586 }
 0x1f2   : > { %11983 = vst [vmem:[#allocation76_spill] sm:$0xff] %v7993_v61  ;;  %11984 = vst [vmem:[#allocation77_spill] sm:$0xff] %v7999_v45  ;;  %v1558_v15 = vmul.f32 %v7492_v17, %v7999_v45  ;;  %v1712_v3 = vmul.f32 %v7536_v54, %v7999_v45  ;;  %v1816_v52 = vmul.f32 %v7539_v55, %v7993_v61  ;;  %v5781_v42 = vmul.f32 -1.442695, %v7894_v18 }
 0x1f3   : > { %11985 = vst [vmem:[#allocation78_spill] sm:$0xff] %v8007_v25  ;;  %v8018_v1 = vadd.f32 %v1611_v48, %v1559_v39  ;;  %v8024_v14 = vmul.f32 %v7528_v50, %v7960_v38  ;;  %v8028_v25 = vmul.f32 %v7546_v60, %v7960_v38  ;;  %11989 = vst [vmem:[#allocation82_spill] sm:$0xff] %v8031_v24  ;;  %v1114_v48 = vadd.f32 1.0, %v6581_v63 }
 0x1f4   : > { %v1626_v22 = vadd.f32 %v1610_v29, %v1558_v15  ;;  %v1728_v45 = vadd.f32 %v1712_v3, %v1676_v57  ;;  %v1113_v39 = vadd.f32 1.0, %v6583_v32  ;;  %v1237_v59 = vrot.slane %v8031_v24, 7 }
 0x1f5   : > { %11986 = vst [vmem:[#allocation79_spill] sm:$0xff] %v8018_v1  ;;  %11987 = vst [vmem:[#allocation80_spill] sm:$0xff] %v8024_v14  ;;  %v11774_v14 = vrot.slane %v8031_v24, 1  ;;  %v1612_v29 = vmul.f32 %v7488_v16, %v8031_v24  ;;  %v1766_v34 = vmul.f32 %v7528_v50, %v8031_v24  ;;  %v1922_v13 = vmul.f32 %v7546_v60, %v8031_v24 }
 0x1f6   : > { %11988 = vst [vmem:[#allocation81_spill] sm:$0xff] %v8028_v25  ;;  %v1678_v61 = vadd.f32 %v1662_v44, %v1626_v22  ;;  %v1780_v1 = vadd.f32 %v1764_v12, %v1728_v45  ;;  %6592 = vrcp.f32 %v1114_v48  ;;  %v1276_v22 = vsel %vm1257_vm1, %v1237_v59, %v11990_v27 }
 0x1f7   : > { %v11991_v3 = vrot.slane %v7915_v2, 7  ;;  %v11992_v57 = vrot.slane %v7960_v38, 1  ;;  %v1561_v35 = vmul.f32 %v7492_v17, %v1276_v22  ;;  %v8061_v44 = vmul.f32 %v7536_v54, %v1276_v22 }
 0x1f8   : > { %v1832_v32 = vadd.f32 %v1816_v52, %v1780_v1  ;;  %6594 = vrcp.f32 %v1113_v39  ;;  %v1116_v2 = vadd.f32 1.0, %v6587_v20  ;;  %v954_v24 = vmul.f32 %v7838_v6, %v7444_v46 }
 0x1f9   : > { %v1277_v63 = vsel %vm1257_vm1, %v11991_v3, %v1237_v59  ;;  %v1443_v12 = vsel %vm1424_vm2, %v11774_v14, %v11992_v57  ;;  %11993 = vst [vmem:[#allocation83_spill] sm:$0xff] %v8061_v44  ;;  %v8066_v59 = vld [vmem:[%s11717_s4 + $0x8] ss:$0 sm:$0xff]  ;;  %v1629_v3 = vadd.f32 %v1613_v7, %v1561_v35  ;;  %6596 = vpow2.f32 %v7872_v19 }
 0x1fa   : > { %v1306_v1 = vsel %vm482_vm3, %v1277_v63, 0.0  ;;  %v1664_v45 = vmul.f32 %v7503_v26, %v1443_v12  ;;  %11994 = vst [vmem:[#allocation84_spill] sm:$0xff] %v8066_v59  ;;  %v1818_v48 = vmul.f32 %v7539_v55, %v1443_v12  ;;  %v8073_v63 = vmul.f32 %v7553_v4, %v1276_v22  ;;  %v6589_v22 = vpop.eup %6588 }
 0x1fb   : > { %v1560_v15 = vmul.f32 %v7492_v17, %v1306_v1  ;;  %v1714_v52 = vmul.f32 %v7536_v54, %v1306_v1  ;;  %v1869_v27 = vmul.f32 %v7553_v4, %v1306_v1  ;;  %v1975_v57 = vmul.f32 %v8066_v59, %v1443_v12 }
 0x1fc   : > { %11995 = vst [vmem:[#allocation85_spill] sm:$0xff] %v8073_v63  ;;  %v8083_v7 = vmul.f32 %v7869_v33, %v7444_v46  ;;  %6598 = vrcp.f32 %v1116_v2  ;;  %v8086_v20 = vmul.f32 %v6589_v22, %v7778_v10  ;;  %v8090_v6 = vadd.f32 %v7449_v47, %v954_v24 }
 0x1fd   : > { %v1628_v14 = vadd.f32 %v1612_v29, %v1560_v15  ;;  %v1730_v25 = vadd.f32 %v1714_v52, %v1678_v61  ;;  %v1885_v44 = vadd.f32 %v1869_v27, %v1832_v32  ;;  %v6591_v61 = vpop.eup %6590  ;;  %6600 = vpow2.f32 %v7891_v53 }
 0x1fe   : > { %11996 = vst [vmem:[#allocation86_spill] sm:$0xff] %v8090_v6  ;;  %v8093_v23 = vadd.f32 %v7449_v47, %v953_v51  ;;  %v1207_v33 = vmul.f32 %v6591_v61, %v7781_v0  ;;  %6602 = vpow2.f32 %v5781_v42  ;;  %v11780_v2 = vrot.slane %v8086_v20, 7 }
 0x1ff   : > { %v1680_v1 = vadd.f32 %v1664_v45, %v1628_v14  ;;  %v1782_v12 = vadd.f32 %v1766_v34, %v1730_v25  ;;  %v1938_v39 = vadd.f32 %v1922_v13, %v1885_v44  ;;  %v11779_v10 = vrot.slane %v8086_v20, 1 }
 0x200   : > { %v6593_v14 = vpop.eup %6592  ;;  %v1769_v53 = vmul.f32 %v7528_v50, %v8086_v20  ;;  %v8104_v24 = vmul.f32 %v7546_v60, %v8086_v20  ;;  %v2252_v47 = vmul.f32 %v7488_v16, %v8086_v20  ;;  %v1239_v51 = vrot.slane %v1207_v33, 7 }
 0x201   : > { %v1834_v19 = vadd.f32 %v1818_v48, %v1782_v12  ;;  %v8095_v46 = vadd.f32 %v1975_v57, %v1938_v39  ;;  %v1406_v25 = vrot.slane %v1207_v33, 1  ;;  %v1768_v0 = vmul.f32 %v7528_v50, %v1207_v33 }
 0x202   : > { %11998 = vst [vmem:[#allocation88_spill] sm:$0xff] %v8104_v24  ;;  %v1924_v42 = vmul.f32 %v7546_v60, %v1207_v33  ;;  %v2251_v29 = vmul.f32 %v7488_v16, %v1207_v33  ;;  %v8112_v34 = vmul.f32 %v6593_v14, %v7829_v36  ;;  %v8115_v13 = vmul.f32 -1.442695, %v8090_v6  ;;  %v6595_v52 = vpop.eup %6594 }
 0x203   : > { %11997 = vst [vmem:[#allocation87_spill] sm:$0xff] %v8095_v46  ;;  %v1274_v32 = vsel %vm1257_vm1, %v1239_v51, %v11780_v2  ;;  %v11999_v35 = vrot.slane %v7960_v38, 7  ;;  %v1441_v44 = vsel %vm1424_vm2, %v1406_v25, %v11779_v10  ;;  %v12000_v36 = vrot.slane %v7960_v38, 1  ;;  %v6597_v33 = vpop.eup %6596 }
 0x204   : > { %v1717_v57 = vmul.f32 %v7536_v54, %v1274_v32  ;;  %v1820_v22 = vmul.f32 %v7539_v55, %v1441_v44  ;;  %v8150_v14 = vmul.f32 %v7553_v4, %v1274_v32  ;;  %v2300_v2 = vmul.f32 %v7503_v26, %v1441_v44 }
 0x205   : > { %v1275_v45 = vsel %vm1257_vm1, %v11999_v35, %v1239_v51  ;;  %v1442_v15 = vsel %vm1424_vm2, %v12000_v36, %v1406_v25  ;;  %v1977_v51 = vmul.f32 %v8066_v59, %v1441_v44  ;;  %v2203_v35 = vmul.f32 %v7492_v17, %v1274_v32 }
 0x206   : > { %v1308_v48 = vsel %vm482_vm3, %v1275_v45, 0.0  ;;  %v8137_v27 = vsel %vm491_vm4, %v1442_v15, 0.0  ;;  %12003 = vst [vmem:[#allocation91_spill] sm:$0xff] %v8150_v14  ;;  %v6599_v45 = vpop.eup %6598  ;;  %v11783_v14 = vrot.slane %v8112_v34, 1  ;;  %v8162_v32 = vmul.f32 %v7546_v60, %v8112_v34 }
 0x207   : > { %12001 = vst [vmem:[#allocation89_spill] sm:$0xff] %v8137_v27  ;;  %v1665_v12 = vmul.f32 %v7503_v26, %v8137_v27  ;;  %v1716_v38 = vmul.f32 %v7536_v54, %v1308_v48  ;;  %v8146_v39 = vmul.f32 %v7539_v55, %v8137_v27  ;;  %v1871_v61 = vmul.f32 %v7553_v4, %v1308_v48  ;;  %v6601_v24 = vpop.eup %6600 }
 0x208   : > { %v2202_v25 = vmul.f32 %v7492_v17, %v1308_v48  ;;  %v11784_v27 = vrot.slane %v8112_v34, 7  ;;  %v6603_v63 = vpop.eup %6602  ;;  %12004 = vst [vmem:[#allocation92_spill] sm:$0xff] %v8162_v32  ;;  %v1115_v32 = vadd.f32 1.0, %v6597_v33 }
 0x209   : > { %12002 = vst [vmem:[#allocation90_spill] sm:$0xff] %v8146_v39  ;;  %v1681_v36 = vadd.f32 %v1665_v12, %v1629_v3  ;;  %v1732_v15 = vadd.f32 %v1716_v38, %v1680_v1  ;;  %v1887_v10 = vadd.f32 %v1871_v61, %v1834_v19  ;;  %v8156_v39 = vadd.f32 %v2252_v47, %v2203_v35 }
 0x20a   : > { %v2267_v46 = vadd.f32 %v2251_v29, %v2202_v25  ;;  %v2254_v1 = vmul.f32 %v7488_v16, %v8112_v34  ;;  %v8168_v19 = vmul.f32 %v7528_v50, %v8112_v34  ;;  %v1209_v47 = vmul.f32 %v6595_v52, %v7832_v9 }
 0x20b   : > { %v1733_v28 = vadd.f32 %v1717_v57, %v1681_v36  ;;  %v1784_v6 = vadd.f32 %v1768_v0, %v1732_v15  ;;  %v1940_v48 = vadd.f32 %v1924_v42, %v1887_v10  ;;  %v8174_v10 = vmul.f32 %v6599_v45, %v7835_v37 }
 0x20c   : > { %v2316_v3 = vadd.f32 %v2300_v2, %v2267_v46  ;;  %v1241_v0 = vrot.slane %v1209_v47, 7  ;;  %v1408_v42 = vrot.slane %v1209_v47, 1  ;;  %v1926_v46 = vmul.f32 %v7546_v60, %v1209_v47 }
 0x20d   : > { %v1785_v29 = vadd.f32 %v1769_v53, %v1733_v28  ;;  %v1836_v44 = vadd.f32 %v1820_v22, %v1784_v6  ;;  %v8171_v12 = vadd.f32 %v1977_v51, %v1940_v48  ;;  %v2253_v2 = vmul.f32 %v7488_v16, %v1209_v47 }
 0x20e   : > { %v2398_v57 = vmul.f32 %v7528_v50, %v1209_v47  ;;  %v8183_v28 = vmul.f32 %v7488_v16, %v8174_v10  ;;  %v1272_v9 = vsel %vm1257_vm1, %v1241_v0, %v11784_v27  ;;  %v12006_v37 = vrot.slane %v8086_v20, 7 }
 0x20f   : > { %12005 = vst [vmem:[#allocation93_spill] sm:$0xff] %v8171_v12  ;;  %v8197_v53 = vsel %vm1424_vm2, %v1408_v42, %v11783_v14  ;;  %v12007_v52 = vrot.slane %v8086_v20, 1  ;;  %v1874_v35 = vmul.f32 %v7553_v4, %v1272_v9  ;;  %v2205_v47 = vmul.f32 %v7492_v17, %v1272_v9 }
 0x210   : > { %v1273_v6 = vsel %vm1257_vm1, %v12006_v37, %v1241_v0  ;;  %v1979_v45 = vmul.f32 %v8066_v59, %v8197_v53  ;;  %v2350_v61 = vmul.f32 %v7536_v54, %v1272_v9  ;;  %v8226_v27 = vmul.f32 %v7528_v50, %v8174_v10 }
 0x211   : > { %v1440_v22 = vsel %vm1424_vm2, %v12007_v52, %v1408_v42  ;;  %v1310_v51 = vsel %vm482_vm3, %v1273_v6, 0.0  ;;  %v2302_v42 = vmul.f32 %v7503_v26, %v8197_v53  ;;  %v8222_v38 = vadd.f32 %v2254_v1, %v2205_v47  ;;  %v7051_v1 = vld [vmem:[%s11715_s2] ss:$0 sm:$0xff] }
 0x212   : > { %v1476_v25 = vsel %vm491_vm4, %v1440_v22, 0.0  ;;  %v1873_v15 = vmul.f32 %v7553_v4, %v1310_v51  ;;  %v2204_v48 = vmul.f32 %v7492_v17, %v1310_v51  ;;  %v2349_v37 = vmul.f32 %v7536_v54, %v1310_v51 }
 0x213   : > { %v1821_v36 = vmul.f32 %v7539_v55, %v1476_v25  ;;  %v8213_v20 = vmul.f32 %v8066_v59, %v1476_v25  ;;  %v2301_v0 = vmul.f32 %v7503_v26, %v1476_v25  ;;  %v1118_v59 = vadd.f32 1.0, %v6601_v24 }
 0x214   : > { %v1889_v52 = vadd.f32 %v1873_v15, %v1836_v44  ;;  %v2269_v22 = vadd.f32 %v2253_v2, %v2204_v48  ;;  %v2365_v14 = vadd.f32 %v2349_v37, %v2316_v3  ;;  %6604 = vrcp.f32 %v1115_v32  ;;  %v7050_v3 = vld [vmem:[%s11716_s3] ss:$0 sm:$0xff] }
 0x215   : > { %12008 = vst [vmem:[#allocation94_spill] sm:$0xff] %v8213_v20  ;;  %v1837_v6 = vadd.f32 %v1821_v36, %v1785_v29  ;;  %v1117_v29 = vadd.f32 1.0, %v6603_v63  ;;  %v5783_v44 = vmul.f32 -1.442695, %v8093_v23  ;;  %6606 = vrcp.f32 %v1118_v59 }
 0x216   : > { %v1942_v25 = vadd.f32 %v1926_v46, %v1889_v52  ;;  %v8230_v12 = vadd.f32 %v2302_v42, %v2269_v22  ;;  %v2414_v51 = vadd.f32 %v2398_v57, %v2365_v14  ;;  %v8239_v33 = vadd.f32 %v7050_v3, %v8083_v7 }
 0x217   : > { %v8228_v20 = vadd.f32 %v1874_v35, %v1837_v6  ;;  %v955_v24 = vmul.f32 %v7051_v1, %v7878_v8  ;;  %6608 = vrcp.f32 %v1117_v29  ;;  %v958_v63 = vmul.f32 %v7051_v1, %v7917_v11 }
 0x218   : > { %v8233_v2 = vadd.f32 %v1979_v45, %v1942_v25  ;;  %v957_v14 = vmul.f32 %v7051_v1, %v7931_v30  ;;  %v960_v59 = vmul.f32 %v7051_v1, %v7957_v49  ;;  %6610 = vpow2.f32 %v8115_v13 }
 0x219   : > { %12009 = vst [vmem:[#allocation95_spill] sm:$0xff] %v8228_v20  ;;  %v5786_v32 = vmul.f32 -1.442695, %v8239_v33  ;;  %v8250_v46 = vadd.f32 %v7050_v3, %v955_v24  ;;  %v959_v7 = vmul.f32 %v7051_v1, %v7962_v21  ;;  %6612 = vpow2.f32 %v5783_v44 }
 0x21a   : > { %12010 = vst [vmem:[#allocation96_spill] sm:$0xff] %v8233_v2  ;;  %v8253_v57 = vadd.f32 %v7050_v3, %v958_v63  ;;  %v8255_v9 = vadd.f32 %v7050_v3, %v957_v14  ;;  %v8257_v8 = vadd.f32 %v7050_v3, %v960_v59  ;;  %v962_v49 = vmul.f32 %v7051_v1, %v7995_v58 }
 0x21b   : > { %6614 = vpow2.f32 %v5786_v32  ;;  %v5785_v11 = vmul.f32 -1.442695, %v8250_v46  ;;  %v8260_v30 = vadd.f32 %v7050_v3, %v959_v7  ;;  %v961_v45 = vmul.f32 %v7051_v1, %v8009_v40 }
 0x21c   : > { %v5788_v13 = vmul.f32 -1.442695, %v8253_v57  ;;  %v5787_v35 = vmul.f32 -1.442695, %v8255_v9  ;;  %v5790_v21 = vmul.f32 -1.442695, %v8257_v8  ;;  %v8268_v15 = vadd.f32 %v7050_v3, %v962_v49 }
 0x21d   : > { %6616 = vpow2.f32 %v5785_v11  ;;  %v5789_v36 = vmul.f32 -1.442695, %v8260_v30  ;;  %v8271_v48 = vmul.f32 0.0, %v7553_v4  ;;  %v8273_v47 = vadd.f32 %v7050_v3, %v961_v45 }
 0x21e   : > { %6618 = vpow2.f32 %v5788_v13  ;;  %v8276_v58 = vmul.f32 0.0, %v7546_v60  ;;  %v2317_v42 = vadd.f32 %v2301_v0, %v8156_v39  ;;  %v5792_v37 = vmul.f32 -1.442695, %v8268_v15  ;;  %v6605_v52 = vpop.eup %6604 }
 0x21f   : > { %12011 = vst [vmem:[#allocation97_spill] sm:$0xff] %v8271_v48  ;;  %6620 = vpow2.f32 %v5787_v35  ;;  %v2447_v40 = vmul.f32 %v7539_v55, %v8197_v53  ;;  %v8284_v6 = vmul.f32 %v7546_v60, %v8174_v10  ;;  %v5791_v22 = vmul.f32 -1.442695, %v8273_v47  ;;  %v6607_v0 = vpop.eup %6606 }
 0x220   : > { %12012 = vst [vmem:[#allocation98_spill] sm:$0xff] %v8276_v58  ;;  %6622 = vpow2.f32 %v5790_v21  ;;  %v2366_v25 = vadd.f32 %v2350_v61, %v2317_v42  ;;  %v12013_v29 = vrot.slane %v7671_v56, 1  ;;  %v12014_v44 = vrot.slane %v7590_v31, 1 }
 0x221   : > { %v8294_v3 = vmul.f32 %v6605_v52, %v7851_v41  ;;  %6624 = vpow2.f32 %v5789_v36  ;;  %v8296_v53 = vadd.f32 %v2447_v40, %v2414_v51  ;;  %v6609_v24 = vpop.eup %6608  ;;  %v8303_v61 = vmul.f32 %v6607_v0, %v7875_v5 }
 0x222   : > { %v1452_v39 = vsel %vm1424_vm2, %v12014_v44, %v12013_v29  ;;  %6626 = vpow2.f32 %v5792_v37  ;;  %v8306_v31 = vadd.f32 %v8168_v19, %v2366_v25  ;;  %v6611_v41 = vpop.eup %6610  ;;  %v12016_v13 = vrot.slane %v8112_v34, 7 }
 0x223   : > { %v8300_v1 = vsel %vm491_vm4, %v1452_v39, 0.0  ;;  %v1243_v51 = vrot.slane %v8294_v3, 7  ;;  %v1410_v63 = vrot.slane %v8294_v3, 1  ;;  %v2255_v14 = vmul.f32 %v7488_v16, %v8294_v3  ;;  %v6613_v59 = vpop.eup %6612 }
 0x224   : > { %v8310_v56 = vmul.f32 %v7503_v26, %v8300_v1  ;;  %v2400_v5 = vmul.f32 %v7528_v50, %v8294_v3  ;;  %v8322_v7 = vmul.f32 %v7488_v16, %v8303_v61  ;;  %v8326_v11 = vmul.f32 %v7528_v50, %v8303_v61 }
 0x225   : > { %v6615_v49 = vpop.eup %6614  ;;  %v1271_v35 = vsel %vm1257_vm1, %v12016_v13, %v1243_v51  ;;  %v12017_v21 = vrot.slane %v8112_v34, 1  ;;  %v8337_v36 = vmul.f32 %v6609_v24, %v7894_v18  ;;  %v1120_v42 = vadd.f32 1.0, %v6611_v41 }
 0x226   : > { %12015 = vst [vmem:[#allocation99_spill] sm:$0xff] %v8326_v11  ;;  %v1312_v37 = vsel %vm482_vm3, %v1271_v35, 0.0  ;;  %v1119_v40 = vadd.f32 1.0, %v6613_v59  ;;  %v1122_v52 = vadd.f32 1.0, %v6615_v49  ;;  %6628 = vpow2.f32 %v5791_v22 }
 0x227   : > { %v1438_v45 = vsel %vm1424_vm2, %v12017_v21, %v1410_v63  ;;  %v6617_v25 = vpop.eup %6616  ;;  %v2206_v29 = vmul.f32 %v7492_v17, %v1312_v37  ;;  %v2351_v44 = vmul.f32 %v7536_v54, %v1312_v37  ;;  %v11788_v34 = vrot.slane %v8337_v36, 7 }
 0x228   : > { %v11787_v39 = vrot.slane %v8337_v36, 1  ;;  %v6619_v0 = vpop.eup %6618  ;;  %v2257_v18 = vmul.f32 %v7488_v16, %v8337_v36  ;;  %v8349_v24 = vmul.f32 %v7528_v50, %v8337_v36  ;;  %6630 = vrcp.f32 %v1120_v42 }
 0x229   : > { %v1121_v41 = vadd.f32 1.0, %v6617_v25  ;;  %v6621_v22 = vpop.eup %6620  ;;  %v2271_v59 = vadd.f32 %v2255_v14, %v2206_v29  ;;  %v2367_v49 = vadd.f32 %v2351_v44, %v8230_v12  ;;  %v12018_v13 = vrot.slane %v8174_v10, 7 }
 0x22a   : > { %6632 = vrcp.f32 %v1119_v40  ;;  %v6623_v21 = vpop.eup %6622  ;;  %v1124_v42 = vadd.f32 1.0, %v6619_v0  ;;  %v1123_v25 = vadd.f32 1.0, %v6621_v22  ;;  %v12019_v40 = vrot.slane %v8174_v10, 7 }
 0x22b   : > { %v1269_v35 = vsel %vm1257_vm1, %v12018_v13, %v11788_v34  ;;  %6634 = vrcp.f32 %v1122_v52  ;;  %v6625_v32 = vpop.eup %6624  ;;  %v8362_v14 = vadd.f32 %v2400_v5, %v2367_v49  ;;  %v1126_v29 = vadd.f32 1.0, %v6623_v21 }
 0x22c   : > { %v8360_v19 = vsel %vm482_vm3, %v1269_v35, 0.0  ;;  %6636 = vrcp.f32 %v1121_v41  ;;  %v6627_v44 = vpop.eup %6626  ;;  %v1125_v13 = vadd.f32 1.0, %v6625_v32  ;;  %v1270_v35 = vsel %vm1257_vm1, %v1243_v51, %v12019_v40 }
 0x22d   : > { %v2208_v12 = vmul.f32 %v7492_v17, %v8360_v19  ;;  %6638 = vrcp.f32 %v1124_v42  ;;  %v12020_v52 = vrot.slane %v8174_v10, 1  ;;  %v1128_v41 = vadd.f32 1.0, %v6627_v44 }
 0x22e   : > { %6640 = vrcp.f32 %v1123_v25  ;;  %v8384_v51 = vsel %vm491_vm4, %v1438_v45, 0.0  ;;  %v2207_v21 = vmul.f32 %v7492_v17, %v1270_v35  ;;  %v8397_v45 = vmul.f32 %v7536_v54, %v1270_v35 }
 0x22f   : > { %v1436_v5 = vsel %vm1424_vm2, %v12020_v52, %v11787_v39  ;;  %v8376_v0 = vadd.f32 %v2257_v18, %v2208_v12  ;;  %v12021_v22 = vmov %v12020_v52  ;;  %6642 = vrcp.f32 %v1126_v29  ;;  %12022 = vst [vmem:[#allocation100_spill] sm:$0xff] %v8384_v51  ;;  %v12023_v39 = vld [vmem:[#allocation86_spill] sm:$0xff] }
 0x230   : > { %v1437_v32 = vsel %vm1424_vm2, %v1410_v63, %v12021_v22  ;;  %v1480_v49 = vsel %vm491_vm4, %v1436_v5, 0.0  ;;  %6644 = vrcp.f32 %v1125_v13  ;;  %v8391_v18 = vmul.f32 %v7503_v26, %v8384_v51  ;;  %v6629_v63 = vpop.eup %6628 }
 0x231   : > { %v2304_v10 = vmul.f32 %v7503_v26, %v1437_v32  ;;  %v2305_v42 = vmul.f32 %v7503_v26, %v1480_v49  ;;  %6646 = vrcp.f32 %v1128_v41  ;;  %v2272_v25 = vadd.f32 %v8183_v28, %v2207_v21 }
 0x232   : > { %v2448_v12 = vmul.f32 %v7539_v55, %v8384_v51  ;;  %v1127_v29 = vadd.f32 1.0, %v6629_v63  ;;  %v8404_v13 = vmul.f32 %v7539_v55, %v1437_v32  ;;  %v8407_v40 = vmul.f32 %v7539_v55, %v1480_v49  ;;  %v6631_v52 = vpop.eup %6630 }
 0x233   : > { %v8401_v44 = vadd.f32 %v2304_v10, %v2271_v59  ;;  %v8409_v5 = vadd.f32 %v2305_v42, %v2272_v25  ;;  %v2496_v41 = vmul.f32 %v7553_v4, %v1312_v37  ;;  %v2497_v22 = vmul.f32 %v7553_v4, %v1270_v35  ;;  %v12024_v10 = vld [vmem:[#allocation84_spill] sm:$0xff] }
 0x234   : > { %v2464_v28 = vadd.f32 %v2448_v12, %v8306_v31  ;;  %v6633_v21 = vpop.eup %6632  ;;  %v8415_v63 = vmul.f32 %v6631_v52, %v12023_v39  ;;  %6648 = vrcp.f32 %v1127_v29  ;;  %v2545_v59 = vmul.f32 %v7546_v60, %v8294_v3 }
 0x235   : > { %v8420_v34 = vmul.f32 %v12024_v10, %v1437_v32  ;;  %v6635_v2 = vpop.eup %6634  ;;  %v8423_v42 = vmul.f32 %v6633_v21, %v8093_v23  ;;  %v2512_v31 = vadd.f32 %v2496_v41, %v8296_v53  ;;  %v8427_v35 = vmul.f32 %v12024_v10, %v1480_v49 }
 0x236   : > { %v2513_v37 = vadd.f32 %v2497_v22, %v2464_v28  ;;  %v6637_v25 = vpop.eup %6636  ;;  %v8433_v3 = vmul.f32 %v7488_v16, %v8415_v63  ;;  %v8437_v32 = vmul.f32 %v7528_v50, %v8415_v63  ;;  %v8448_v41 = vmul.f32 %v6635_v2, %v8239_v33  ;;  %v12031_v33 = vld [vmem:[#allocation36_spill] sm:$0xff] }
 0x237   : > { %v6639_v23 = vpop.eup %6638  ;;  %v11790_v53 = vrot.slane %v8423_v42, 7  ;;  %v2259_v49 = vmul.f32 %v7488_v16, %v8423_v42  ;;  %v8445_v52 = vmul.f32 %v7528_v50, %v8423_v42  ;;  %v8451_v22 = vmul.f32 %v6637_v25, %v8250_v46 }
 0x238   : > { %12025 = vst [vmem:[#allocation86_spill] sm:$0xff] %v8437_v32  ;;  %v6641_v28 = vpop.eup %6640  ;;  %12027 = vst [vmem:[#allocation101_spill] sm:$0xff] %v8448_v41  ;;  %v8454_v21 = vmul.f32 %v6639_v23, %v8253_v57  ;;  %v8456_v12 = vadd.f32 %v2545_v59, %v2512_v31  ;;  %v12029_v39 = vrot.slane %v8303_v61, 7  ;;  %v8468_v2 = vadd.f32 %v8284_v6, %v2513_v37 }
 0x239   : > { %12026 = vst [vmem:[#allocation84_spill] sm:$0xff] %v8445_v52  ;;  %v6643_v29 = vpop.eup %6642  ;;  %v8465_v20 = vmul.f32 %v6641_v28, %v8255_v9  ;;  %v8472_v46 = vadd.f32 %v8310_v56, %v12031_v33  ;;  %v8482_v9 = vmul.f32 %v7488_v16, %v8448_v41  ;;  %v8488_v56 = vmul.f32 %v7528_v50, %v8448_v41 }
 0x23a   : > { %12028 = vst [vmem:[#allocation102_spill] sm:$0xff] %v8454_v21  ;;  %v1267_v51 = vsel %vm1257_vm1, %v12029_v39, %v11790_v53  ;;  %v6645_v57 = vpop.eup %6644  ;;  %v11791_v37 = vrot.slane %v8451_v22, 7  ;;  %v2261_v23 = vmul.f32 %v7488_v16, %v8451_v22  ;;  %v8496_v28 = vmul.f32 %v7528_v50, %v8451_v22 }
 0x23b   : > { %12030 = vst [vmem:[#allocation103_spill] sm:$0xff] %v8465_v20  ;;  %12032 = vst [vmem:[#allocation36_spill] sm:$0xff] %v8472_v46  ;;  %v8476_v59 = vsel %vm482_vm3, %v1267_v51, 0.0  ;;  %v6647_v39 = vpop.eup %6646  ;;  %v12037_v31 = vrot.slane %v8415_v63, 7  ;;  %v12043_v25 = vrot.slane %v8448_v41, 7  ;;  %v12044_v52 = vrot.slane %v8454_v21, 1 }
 0x23c   : > { %12033 = vst [vmem:[#allocation104_spill] sm:$0xff] %v8476_v59  ;;  %12034 = vst [vmem:[#allocation105_spill] sm:$0xff] %v8482_v9  ;;  %v2210_v6 = vmul.f32 %v7492_v17, %v8476_v59  ;;  %v12062_v41 = vld [vmem:[#allocation21_spill] sm:$0xff]  ;;  %v12063_v59 = vld [vmem:[#allocation20_spill] sm:$0xff] }
 0x23d   : > { %12035 = vst [vmem:[#allocation106_spill] sm:$0xff] %v8488_v56  ;;  %12036 = vst [vmem:[#allocation107_spill] sm:$0xff] %v8496_v28  ;;  %v1265_v51 = vsel %vm1257_vm1, %v12037_v31, %v11791_v37  ;;  %v8510_v56 = vmul.f32 %v7488_v16, %v8454_v21  ;;  %v8514_v28 = vmul.f32 %v7528_v50, %v8454_v21 }
 0x23e   : > { %v8500_v53 = vadd.f32 %v2259_v49, %v2210_v6  ;;  %v6649_v33 = vpop.eup %6648  ;;  %v8518_v49 = vsel %vm482_vm3, %v1265_v51, 0.0  ;;  %v11794_v6 = vrot.slane %v8465_v20, 7  ;;  %v2263_v31 = vmul.f32 %v7488_v16, %v8465_v20 }
 0x23f   : > { %12038 = vst [vmem:[#allocation108_spill] sm:$0xff] %v8510_v56  ;;  %12039 = vst [vmem:[#allocation109_spill] sm:$0xff] %v8514_v28  ;;  %v2212_v37 = vmul.f32 %v7492_v17, %v8518_v49  ;;  %v8528_v56 = vmul.f32 %v7528_v50, %v8465_v20  ;;  %v8531_v28 = vmul.f32 %v6643_v29, %v8257_v8 }
 0x240   : > { %12040 = vst [vmem:[#allocation110_spill] sm:$0xff] %v8518_v49  ;;  %v8534_v51 = vmul.f32 %v6645_v57, %v8260_v30  ;;  %v1263_v32 = vsel %vm1257_vm1, %v12043_v25, %v11794_v6  ;;  %v12045_v49 = vrot.slane %v8465_v20, 1  ;;  %v1224_v8 = vmul.f32 %v6647_v39, %v8268_v15 }
 0x241   : > { %12041 = vst [vmem:[#allocation111_spill] sm:$0xff] %v8528_v56  ;;  %v1223_v30 = vmul.f32 %v6649_v33, %v8273_v47  ;;  %v8552_v29 = vadd.f32 %v2261_v23, %v2212_v37  ;;  %v8556_v57 = vsel %vm482_vm3, %v1263_v32, 0.0  ;;  %v8566_v15 = vmul.f32 %v7488_v16, %v8531_v28 }
 0x242   : > { %12042 = vst [vmem:[#allocation112_spill] sm:$0xff] %v8534_v51  ;;  %v8548_v56 = vsel %vm1424_vm2, %v12045_v49, %v12044_v52  ;;  %12048 = vst [vmem:[#allocation115_spill] sm:$0xff] %v8556_v57  ;;  %v2214_v9 = vmul.f32 %v7492_v17, %v8556_v57  ;;  %v1421_v52 = vrot.slane %v8531_v28, 1  ;;  %v8570_v47 = vmul.f32 %v7528_v50, %v8531_v28 }
 0x243   : > { %12046 = vst [vmem:[#allocation113_spill] sm:$0xff] %v8548_v56  ;;  %12047 = vst [vmem:[#allocation114_spill] sm:$0xff] %v8552_v29  ;;  %v2312_v25 = vmul.f32 %v7503_v26, %v8548_v56  ;;  %v11803_v32 = vrot.slane %v8534_v51, 7  ;;  %v11804_v39 = vrot.slane %v8534_v51, 1  ;;  %v2265_v37 = vmul.f32 %v7488_v16, %v8534_v51  ;;  %v12056_v29 = vld [vmem:[#allocation19_spill] sm:$0xff] }
 0x244   : > { %12049 = vst [vmem:[#allocation116_spill] sm:$0xff] %v8566_v15  ;;  %12050 = vst [vmem:[#allocation117_spill] sm:$0xff] %v8570_v47  ;;  %v2410_v23 = vmul.f32 %v7528_v50, %v8534_v51  ;;  %v2279_v33 = vadd.f32 %v2263_v31, %v2214_v9  ;;  %v1256_v49 = vrot.slane %v1224_v8, 7  ;;  %v1423_v6 = vrot.slane %v1224_v8, 1 }
 0x245   : > { %v8579_v56 = vmul.f32 %v7528_v50, %v1224_v8  ;;  %v12052_v47 = vrot.slane %v8454_v21, 7  ;;  %v8591_v16 = vsel %vm1424_vm2, %v11804_v39, %v1421_v52  ;;  %v8594_v9 = vmul.f32 %v7546_v60, %v1224_v8 }
 0x246   : > { %12053 = vst [vmem:[#allocation119_spill] sm:$0xff] %v8591_v16  ;;  %v1255_v31 = vrot.slane %v1223_v30, 7  ;;  %v2328_v57 = vadd.f32 %v2312_v25, %v2279_v33  ;;  %v12057_v21 = vrot.slane %v12056_v29, 7  ;;  %v1422_v11 = vrot.slane %v1223_v30, 1 }
 0x247   : > { %12051 = vst [vmem:[#allocation118_spill] sm:$0xff] %v8579_v56  ;;  %v1261_v15 = vsel %vm1257_vm1, %v12052_v47, %v11803_v32  ;;  %12054 = vst [vmem:[#allocation120_spill] sm:$0xff] %v8594_v9  ;;  %v12058_v32 = vrot.slane %v12056_v29, 1 }
 0x248   : > { %v8598_v56 = vsel %vm482_vm3, %v1261_v15, 0.0  ;;  %v1289_v47 = vsel %vm1257_vm1, %v1256_v49, %v12057_v21 }
 0x249   : > { %12055 = vst [vmem:[#allocation121_spill] sm:$0xff] %v8598_v56  ;;  %v1456_v39 = vsel %vm1424_vm2, %v1423_v6, %v12058_v32  ;;  %v2216_v8 = vmul.f32 %v7492_v17, %v8598_v56  ;;  %v2361_v25 = vmul.f32 %v7536_v54, %v8598_v56  ;;  %v1294_v15 = vsel %vm482_vm3, %v1289_v47, 0.0 }
 0x24a   : > { %v1492_v33 = vsel %vm491_vm4, %v1456_v39, 0.0  ;;  %v1548_v9 = vmul.f32 %v7492_v17, %v1294_v15  ;;  %v1702_v21 = vmul.f32 %v7536_v54, %v1294_v15  ;;  %v1258_v56 = vsel %vm1257_vm1, %v1255_v31, %v1256_v49 }
 0x24b   : > { %v8619_v29 = vmul.f32 %v7539_v55, %v1492_v33  ;;  %v8622_v32 = vmul.f32 %v12024_v10, %v1492_v33  ;;  %v2281_v51 = vadd.f32 %v2265_v37, %v2216_v8  ;;  %v2377_v20 = vadd.f32 %v2361_v25, %v2328_v57  ;;  %v12065_v8 = vld [vmem:[#allocation23_spill] sm:$0xff] }
 0x24c   : > { %v12061_v47 = vrot.slane %v8531_v28, 7  ;;  %v1616_v46 = vadd.f32 %v12062_v41, %v1548_v9  ;;  %v1718_v15 = vadd.f32 %v1702_v21, %v12063_v59  ;;  %v2314_v57 = vmul.f32 %v7503_v26, %v8591_v16  ;;  %v12067_v59 = vld [vmem:[#allocation34_spill] sm:$0xff] }
 0x24d   : > { %12059 = vst [vmem:[#allocation19_spill] sm:$0xff] %v8619_v29  ;;  %12060 = vst [vmem:[#allocation122_spill] sm:$0xff] %v8622_v32  ;;  %v2426_v33 = vadd.f32 %v2410_v23, %v2377_v20  ;;  %v8638_v49 = vmul.f32 %v7536_v54, %v1258_v56  ;;  %v1425_v41 = vsel %vm1424_vm2, %v1422_v11, %v1423_v6 }
 0x24e   : > { %v1259_v39 = vsel %vm1257_vm1, %v12061_v47, %v1255_v31  ;;  %v1668_v25 = vadd.f32 %v12065_v8, %v1616_v46  ;;  %v12066_v31 = vld [vmem:[#allocation22_spill] sm:$0xff]  ;;  %v8646_v9 = vsel %vm1424_vm2, %v1421_v52, %v1422_v11  ;;  %v2330_v20 = vadd.f32 %v2314_v57, %v2281_v51 }
 0x24f   : > { %v1324_v29 = vsel %vm482_vm3, %v1259_v39, 0.0  ;;  %12064 = vst [vmem:[#allocation21_spill] sm:$0xff] %v8638_v49  ;;  %v1770_v47 = vadd.f32 %v12066_v31, %v1718_v15  ;;  %v2412_v23 = vmul.f32 %v7528_v50, %v1223_v30  ;;  %v2459_v21 = vmul.f32 %v7539_v55, %v8591_v16  ;;  %v8666_v8 = vld [vmem:[%s11718_s5] ss:$0 sm:$0xff] }
 0x250   : > { %v2363_v37 = vmul.f32 %v7536_v54, %v1324_v29  ;;  %v2461_v39 = vmul.f32 %v7539_v55, %v1425_v41  ;;  %v8653_v32 = vadd.f32 %v12067_v59, %v1668_v25  ;;  %v2508_v46 = vmul.f32 %v7553_v4, %v1324_v29  ;;  %v12069_v29 = vld [vmem:[#allocation33_spill] sm:$0xff] }
 0x251   : > { %v8657_v15 = vmul.f32 %v7553_v4, %v1258_v56  ;;  %v2557_v6 = vmul.f32 %v7546_v60, %v1223_v30  ;;  %v2475_v52 = vadd.f32 %v2459_v21, %v2426_v33  ;;  %v2606_v51 = vmul.f32 %v12024_v10, %v1425_v41  ;;  %v12070_v33 = vld [vmem:[#allocation24_spill] sm:$0xff] }
 0x252   : > { %v2379_v11 = vadd.f32 %v2363_v37, %v2330_v20  ;;  %v2610_v57 = vadd.f32 %v8420_v34, %v8456_v12  ;;  %v2611_v59 = vadd.f32 %v8427_v35, %v8468_v2  ;;  %v1807_v56 = vmul.f32 %v7539_v55, %v12069_v29  ;;  %v12071_v12 = vld [vmem:[#allocation32_spill] sm:$0xff]  ;;  %v8683_v35 = vld [vmem:[%s11719_s6] ss:$0 sm:$0xff]  ;;  %v12072_v20 = vld [vmem:[#allocation25_spill] sm:$0xff] }
 0x253   : > { %12068 = vst [vmem:[#allocation23_spill] sm:$0xff] %v8657_v15  ;;  %v8674_v30 = vmul.f32 %v7539_v55, %v8300_v1  ;;  %v1822_v37 = vadd.f32 %v12070_v33, %v1770_v47  ;;  %v2524_v31 = vadd.f32 %v2508_v46, %v2475_v52  ;;  %v1859_v41 = vmul.f32 %v7553_v4, %v12071_v12  ;;  %v12073_v29 = vld [vmem:[#allocation30_spill] sm:$0xff]  ;;  %v12074_v47 = vld [vmem:[#allocation31_spill] sm:$0xff]  ;;  %v5834_v15 = vld [vmem:[%s7375_s18 + $0x58] sm:$0xff] }
 0x254   : > { %v2428_v25 = vadd.f32 %v2412_v23, %v2379_v11  ;;  %v2626_v34 = vmul.f32 %v8666_v8, %v2610_v57  ;;  %v2627_v2 = vmul.f32 %v8666_v8, %v2611_v59  ;;  %v1823_v21 = vadd.f32 %v1807_v56, %v12072_v20 }
 0x255   : > { %v1860_v50 = vmul.f32 %v7553_v4, %v12073_v29  ;;  %v1965_v23 = vmul.f32 %v12024_v10, %v12074_v47  ;;  %v2573_v11 = vadd.f32 %v2557_v6, %v2524_v31  ;;  %v1875_v57 = vadd.f32 %v1859_v41, %v1822_v37 }
 0x256   : > { %v2477_v46 = vadd.f32 %v2461_v39, %v2428_v25  ;;  %v8692_v52 = vadd.f32 %v8683_v35, %v2626_v34  ;;  %v8695_v33 = vadd.f32 %v8683_v35, %v2627_v2  ;;  %v1966_v59 = vmul.f32 %v12024_v10, %v8300_v1  ;;  %v12078_v25 = vld [vmem:[#allocation29_spill] sm:$0xff]  ;;  %v12079_v34 = vld [vmem:[#allocation27_spill] sm:$0xff] }
 0x257   : > { %v1876_v12 = vadd.f32 %v1860_v50, %v1823_v21  ;;  %v12075_v56 = vrot.slane %v8303_v61, 7  ;;  %v12076_v20 = vrot.slane %v8337_v36, 7  ;;  %v8706_v6 = vadd.f32 %v2606_v51, %v2573_v11 }
 0x258   : > { %v2526_v39 = vadd.f32 %v8271_v48, %v2477_v46  ;;  %v5812_v37 = vmul.f32 -1.442695, %v8692_v52  ;;  %v1928_v31 = vadd.f32 %v12078_v25, %v1875_v57  ;;  %v5813_v50 = vmul.f32 -1.442695, %v8695_v33 }
 0x259   : > { %v1268_v29 = vsel %vm1257_vm1, %v12076_v20, %v12075_v56  ;;  %12077 = vst [vmem:[#allocation22_spill] sm:$0xff] %v8706_v6  ;;  %v1929_v41 = vadd.f32 %v12079_v34, %v1876_v12  ;;  %v12080_v1 = vrot.slane %v8423_v42, 1  ;;  %v12081_v2 = vrot.slane %v8303_v61, 1 }
 0x25a   : > { %v12083_v51 = vrot.slane %v8337_v36, 1  ;;  %v8725_v11 = vadd.f32 %v8276_v58, %v2526_v39  ;;  %6650 = vpow2.f32 %v5812_v37  ;;  %v1981_v57 = vadd.f32 %v1965_v23, %v1928_v31  ;;  %v12089_v58 = vld [vmem:[#allocation38_spill] sm:$0xff] }
 0x25b   : > { %v1434_v21 = vsel %vm1424_vm2, %v12081_v2, %v12080_v1  ;;  %v12082_v56 = vmov %v12081_v2  ;;  %6652 = vpow2.f32 %v5813_v50  ;;  %v1982_v20 = vadd.f32 %v1966_v59, %v1929_v41 }
 0x25c   : > { %v1435_v46 = vsel %vm1424_vm2, %v12083_v51, %v12082_v56  ;;  %12084 = vst [vmem:[#allocation34_spill] sm:$0xff] %v8725_v11  ;;  %v1482_v12 = vsel %vm491_vm4, %v1434_v21, 0.0  ;;  %v2209_v25 = vmul.f32 %v7492_v17, %v1268_v29  ;;  %v2003_v1 = vmul.f32 %v8666_v8, %v1981_v57  ;;  %v505_v57 = vld [vmem:[%s11720_s7 + $0x8] sm:$0xff]  ;;  %v12087_v11 = vld [vmem:[#allocation50_spill] sm:$0xff] }
 0x25d   : > { %v2306_v34 = vmul.f32 %v7503_v26, %v1435_v46  ;;  %v2307_v2 = vmul.f32 %v7503_v26, %v1482_v12  ;;  %v2319_v56 = vadd.f32 %v8391_v18, %v8222_v38  ;;  %v8736_v39 = vmul.f32 %v7536_v54, %v1268_v29 }
 0x25e   : > { %v2004_v23 = vmul.f32 %v8666_v8, %v1982_v20  ;;  %v2274_v37 = vadd.f32 %v8322_v7, %v2209_v25  ;;  %v8744_v31 = vmul.f32 %v7539_v55, %v1435_v46  ;;  %v8747_v50 = vadd.f32 %v8683_v35, %v2003_v1 }
 0x25f   : > { %v8741_v59 = vadd.f32 %v2306_v34, %v8376_v0  ;;  %v2368_v41 = vadd.f32 %v8397_v45, %v2319_v56  ;;  %v8751_v38 = vmul.f32 %v7539_v55, %v1482_v12  ;;  %v2465_v18 = vadd.f32 %v8404_v13, %v8362_v14  ;;  %v504_v45 = vld [vmem:[%s11720_s7] sm:$0xff]  ;;  %v507_v34 = vld [vmem:[%s11720_s7 + $0x18] sm:$0xff] }
 0x260   : > { %v8756_v21 = vadd.f32 %v8683_v35, %v2004_v23  ;;  %v8758_v7 = vadd.f32 %v2307_v2, %v2274_v37  ;;  %v2498_v0 = vmul.f32 %v7553_v4, %v8360_v19  ;;  %v2499_v51 = vmul.f32 %v7553_v4, %v1268_v29  ;;  %v506_v29 = vld [vmem:[%s11720_s7 + $0x10] sm:$0xff] }
 0x261   : > { %v5796_v14 = vmul.f32 -1.442695, %v8747_v50  ;;  %v2417_v13 = vadd.f32 %v8226_v27, %v2368_v41  ;;  %v2547_v20 = vmul.f32 %v7546_v60, %v8337_v36  ;;  %v2548_v25 = vmul.f32 %v7546_v60, %v8303_v61 }
 0x262   : > { %v5797_v1 = vmul.f32 -1.442695, %v8756_v21  ;;  %v2514_v2 = vadd.f32 %v2498_v0, %v2465_v18  ;;  %v2596_v56 = vmul.f32 %v12024_v10, %v1435_v46  ;;  %v2597_v27 = vmul.f32 %v12024_v10, %v1482_v12 }
 0x263   : > { %6654 = vpow2.f32 %v5796_v14  ;;  %v2466_v36 = vadd.f32 %v8407_v40, %v2417_v13  ;;  %v8785_v23 = vpack.c.bf16 %v505_v57, %v504_v45  ;;  %v11818_v37 = vmov 0.0|0.0   ;;  %v12091_v45 = vld [vmem:[#allocation37_spill] sm:$0xff]  ;;  %v12092_v57 = vld [vmem:[#allocation35_spill] sm:$0xff]  ;;  %v12093_v13 = vld [vmem:[#allocation28_spill] sm:$0xff] }
 0x264   : > { %6656 = vpow2.f32 %v5797_v1  ;;  %v2563_v61 = vadd.f32 %v2547_v20, %v2514_v2  ;;  %6346 = vmatprep.subr.bf16.mxu1 %v11818_v37  ;;  %v8788_v41 = vpack.c.bf16 %v507_v34, %v506_v29  ;;  %v12088_v6 = vrot.slane %v12087_v11, 1  ;;  %v6651_v12 = vpop.eup %6650  ;;  %v12094_v2 = vld [vmem:[#allocation26_spill] sm:$0xff] }
 0x265   : > { %12085 = vst [vmem:[#allocation33_spill] sm:$0xff] %v8785_v23  ;;  %v12090_v18 = vrot.slane %v12089_v58, 1  ;;  %v2515_v0 = vadd.f32 %v2499_v51, %v2466_v36  ;;  %6348 = vmatpush3.bf16.msra.mxu1 %v8785_v23  ;;  %v1721_v14 = vadd.f32 %v12092_v57, %v12091_v45  ;;  %v1772_v20 = vadd.f32 %v12093_v13, %v8653_v32  ;;  %v6653_v29 = vpop.eup %6652  ;;  %v12096_v45 = vld [vmem:[#allocation44_spill] sm:$0xff]  ;;  %v12097_v57 = vld [vmem:[#allocation42_spill] sm:$0xff]  ;;  %v12098_v13 = vld [vmem:[#allocation43_spill] sm:$0xff] }
 0x266   : > { %12086 = vst [vmem:[#allocation24_spill] sm:$0xff] %v8788_v41  ;;  %v2706_v11 = vadd.f32 1.0, %v6651_v12  ;;  %v2612_v34 = vadd.f32 %v2596_v56, %v2563_v61  ;;  %6349 = vmatprep.subr.bf16.mxu1 %v11818_v37  ;;  %v2707_v51 = vadd.f32 1.0, %v6653_v29  ;;  %v1967_v29 = vmul.f32 %v12024_v10, %v12098_v13  ;;  %v12116_v23 = vld [vmem:[#allocation45_spill] sm:$0xff] }
 0x267   : > { %v1450_v46 = vsel %vm1424_vm2, %v12090_v18, %v12088_v6  ;;  %v1808_v6 = vmul.f32 %v7539_v55, %v12074_v47  ;;  %v2564_v1 = vadd.f32 %v2548_v25, %v2515_v0  ;;  %v1773_v36 = vadd.f32 %v12094_v2, %v1721_v14 }
 0x268   : > { %v1466_v40 = vsel %vm491_vm4, %v1450_v46, 0.0  ;;  %6658 = vrcp.f32 %v2706_v11  ;;  %v2628_v32 = vmul.f32 %v8666_v8, %v2612_v34  ;;  %v12095_v46 = vld [vmem:[#allocation46_spill] sm:$0xff]  ;;  %v1861_v25 = vmul.f32 %v7553_v4, %v12096_v45  ;;  %v12105_v45 = vld [vmem:[#allocation41_spill] sm:$0xff] }
 0x269   : > { %v1657_v58 = vmul.f32 %v7503_v26, %v1466_v40  ;;  %v8809_v18 = vmul.f32 %v7539_v55, %v1466_v40  ;;  %v1824_v56 = vadd.f32 %v1808_v6, %v1772_v20  ;;  %6660 = vrcp.f32 %v2707_v51  ;;  %6351 = vmatpush3.bf16.msra.mxu1 %v8788_v41 }
 0x26a   : > { %v2613_v61 = vadd.f32 %v2597_v27, %v2564_v1  ;;  %v1825_v47 = vadd.f32 %v8674_v30, %v1773_v36  ;;  %v8820_v0 = vadd.f32 %v8683_v35, %v2628_v32  ;;  %v1862_v14 = vmul.f32 %v7553_v4, %v12097_v57  ;;  %6352 = vmatprep.subr.bf16.mxu1 %v11818_v37 }
 0x26b   : > { %v8813_v12 = vadd.f32 %v1657_v58, %v12095_v46  ;;  %v1968_v20 = vmul.f32 %v12024_v10, %v1466_v40  ;;  %v1877_v11 = vadd.f32 %v1861_v25, %v1824_v56  ;;  %v12099_v30 = vrot.slane %v8415_v63, 7 }
 0x26c   : > { %v2629_v27 = vmul.f32 %v8666_v8, %v2613_v61  ;;  %v12100_v34 = vrot.slane %v8423_v42, 7  ;;  %v12101_v6 = vrot.slane %v8451_v22, 1  ;;  %v12102_v51 = vrot.slane %v8415_v63, 1 }
 0x26d   : > { %v5814_v10 = vmul.f32 -1.442695, %v8820_v0  ;;  %v1878_v40 = vadd.f32 %v1862_v14, %v1825_v47  ;;  %v12104_v36 = vrot.slane %v8423_v42, 1  ;;  %v6655_v56 = vpop.eup %6654  ;;  %v1930_v25 = vadd.f32 %v12105_v45, %v1877_v11 }
 0x26e   : > { %v1266_v58 = vsel %vm1257_vm1, %v12100_v34, %v12099_v30  ;;  %v1432_v1 = vsel %vm1424_vm2, %v12102_v51, %v12101_v6  ;;  %v12103_v2 = vmov %v12102_v51  ;;  %v8851_v61 = vadd.f32 %v8683_v35, %v2629_v27  ;;  %v6657_v14 = vpop.eup %6656  ;;  %v12106_v30 = vld [vmem:[#allocation40_spill] sm:$0xff] }
 0x26f   : > { %v1433_v32 = vsel %vm1424_vm2, %v12104_v36, %v12103_v2  ;;  %v1484_v46 = vsel %vm491_vm4, %v1432_v1, 0.0  ;;  %v2211_v57 = vmul.f32 %v7492_v17, %v1266_v58  ;;  %v2089_v13 = vadd.f32 1.0, %v6655_v56 }
 0x270   : > { %v2308_v47 = vmul.f32 %v7503_v26, %v1433_v32  ;;  %6662 = vpow2.f32 %v5814_v10  ;;  %v1931_v34 = vadd.f32 %v12106_v30, %v1878_v40  ;;  %v2309_v6 = vmul.f32 %v7503_v26, %v1484_v46 }
 0x271   : > { %v2090_v51 = vadd.f32 1.0, %v6657_v14  ;;  %v5815_v1 = vmul.f32 -1.442695, %v8851_v61  ;;  %v1983_v2 = vadd.f32 %v1967_v29, %v1930_v25  ;;  %v2276_v27 = vadd.f32 %v8433_v3, %v2211_v57 }
 0x272   : > { %6664 = vrcp.f32 %v2089_v13  ;;  %v1984_v36 = vadd.f32 %v1968_v20, %v1931_v34  ;;  %v8861_v11 = vadd.f32 %v2308_v47, %v8500_v53  ;;  %v2353_v45 = vmul.f32 %v7536_v54, %v8360_v19  ;;  %v6659_v14 = vpop.eup %6658  ;;  %v12108_v34 = vld [vmem:[#allocation104_spill] sm:$0xff] }
 0x273   : > { %6666 = vrcp.f32 %v2090_v51  ;;  %v2005_v10 = vmul.f32 %v8666_v8, %v1983_v2  ;;  %v8866_v40 = vadd.f32 %v2309_v6, %v2276_v27  ;;  %v8869_v56 = vmul.f32 %v7536_v54, %v1266_v58  ;;  %v6661_v20 = vpop.eup %6660 }
 0x274   : > { %6668 = vpow2.f32 %v5815_v1  ;;  %v2006_v3 = vmul.f32 %v8666_v8, %v1984_v36  ;;  %v2369_v29 = vadd.f32 %v2353_v45, %v8401_v44  ;;  %v2370_v53 = vadd.f32 %v8736_v39, %v8409_v5  ;;  %v12107_v39 = vld [vmem:[#allocation99_spill] sm:$0xff]  ;;  %v511_v45 = vld [vmem:[%s11720_s7 + $0x38] sm:$0xff] }
 0x275   : > { %v8876_v19 = vmul.f32 %v6659_v14, %v8692_v52  ;;  %v8879_v25 = vadd.f32 %v8683_v35, %v2005_v10  ;;  %v8882_v57 = vmul.f32 %v7539_v55, %v1433_v32  ;;  %v8885_v47 = vmul.f32 %v7539_v55, %v1484_v46  ;;  %v8923_v14 = vld [vmem:[%s11717_s4 + $0x8] ss:$0 sm:$0xff] }
 0x276   : > { %v8888_v13 = vmul.f32 %v6661_v20, %v8695_v33  ;;  %v8891_v44 = vadd.f32 %v8683_v35, %v2006_v3  ;;  %v2418_v5 = vadd.f32 %v8349_v24, %v2369_v29  ;;  %v2419_v52 = vadd.f32 %v12107_v39, %v2370_v53  ;;  %v508_v33 = vld [vmem:[%s11720_s7 + $0x20] sm:$0xff]  ;;  %v509_v24 = vld [vmem:[%s11720_s7 + $0x28] sm:$0xff] }
 0x277   : > { %v5798_v30 = vmul.f32 -1.442695, %v8879_v25  ;;  %v2500_v6 = vmul.f32 %v7553_v4, %v12108_v34  ;;  %v2501_v51 = vmul.f32 %v7553_v4, %v1266_v58  ;;  %v2549_v1 = vmul.f32 %v7546_v60, %v8423_v42  ;;  %v510_v42 = vld [vmem:[%s11720_s7 + $0x30] sm:$0xff] }
 0x278   : > { %v6370_v2 = vpack.c.bf16 %v8888_v13, %v8876_v19  ;;  %v5799_v27 = vmul.f32 -1.442695, %v8891_v44  ;;  %v2467_v36 = vadd.f32 %v8744_v31, %v2418_v5  ;;  %v2468_v58 = vadd.f32 %v8751_v38, %v2419_v52 }
 0x279   : > { %6670 = vpow2.f32 %v5798_v30  ;;  %v2550_v10 = vmul.f32 %v7546_v60, %v8415_v63  ;;  %v2598_v31 = vmul.f32 %v8923_v14, %v1433_v32  ;;  %v2599_v38 = vmul.f32 %v8923_v14, %v1484_v46  ;;  %v12111_v63 = vld [vmem:[#allocation62_spill] sm:$0xff]  ;;  %v12113_v30 = vld [vmem:[#allocation47_spill] sm:$0xff]  ;;  %v12115_v32 = vld [vmem:[#allocation36_spill] sm:$0xff] }
 0x27a   : > { %v6663_v3 = vpop.eup %6662  ;;  %6371 = vmatprep.subr.bf16.mxu0 %v6370_v2  ;;  %6672 = vpow2.f32 %v5799_v27  ;;  %v2516_v29 = vadd.f32 %v2500_v6, %v2467_v36  ;;  %v2517_v53 = vadd.f32 %v2501_v51, %v2468_v58  ;;  %v8927_v20 = vpack.c.bf16 %v509_v24, %v508_v33  ;;  %v12117_v51 = vld [vmem:[#allocation55_spill] sm:$0xff] }
 0x27b   : > { %v2708_v5 = vadd.f32 1.0, %v6663_v3  ;;  %v8929_v39 = vpack.c.bf16 %v511_v45, %v510_v42  ;;  %v12112_v52 = vrot.slane %v12111_v63, 1  ;;  %v12114_v37 = vrot.slane %v12113_v30, 1  ;;  %v12119_v58 = vld [vmem:[#allocation39_spill] sm:$0xff] }
 0x27c   : > { %12109 = vst [vmem:[#allocation32_spill] sm:$0xff] %v8927_v20  ;;  %v1723_v46 = vadd.f32 %v12116_v23, %v12115_v32  ;;  %v6665_v48 = vpop.eup %6664  ;;  %v2565_v2 = vadd.f32 %v2549_v1, %v2516_v29  ;;  %v2566_v27 = vadd.f32 %v2550_v10, %v2517_v53  ;;  %6354 = vmatpush3.bf16.msra.mxu1 %v8927_v20  ;;  %v12120_v53 = vld [vmem:[#allocation57_spill] sm:$0xff] }
 0x27d   : > { %12110 = vst [vmem:[#allocation25_spill] sm:$0xff] %v8929_v39  ;;  %v1448_v41 = vsel %vm1424_vm2, %v12114_v37, %v12112_v52  ;;  %v1863_v33 = vmul.f32 %v7553_v4, %v12117_v51  ;;  %v6667_v24 = vpop.eup %6666  ;;  %v8945_v36 = vmul.f32 %v6665_v48, %v8747_v50  ;;  %6674 = vrcp.f32 %v2708_v5  ;;  %v12121_v5 = vld [vmem:[#allocation53_spill] sm:$0xff] }
 0x27e   : > { %v1468_v6 = vsel %vm491_vm4, %v1448_v41, 0.0  ;;  %v12118_v37 = vmov 0.0|0.0   ;;  %v1775_v1 = vadd.f32 %v12119_v58, %v1723_v46  ;;  %v6669_v42 = vpop.eup %6668  ;;  %v8951_v45 = vmul.f32 %v6667_v24, %v8756_v21  ;;  %v12123_v46 = vld [vmem:[#allocation54_spill] sm:$0xff]  ;;  %v12124_v24 = vld [vmem:[#allocation52_spill] sm:$0xff]  ;;  %v12125_v58 = vld [vmem:[#allocation101_spill] sm:$0xff] }
 0x27f   : > { %6355 = vmatprep.subr.bf16.mxu1 %v12118_v37  ;;  %v1659_v23 = vmul.f32 %v7503_v26, %v1468_v6  ;;  %v2614_v10 = vadd.f32 %v2598_v31, %v2565_v2  ;;  %v2615_v41 = vadd.f32 %v2599_v38, %v2566_v27  ;;  %v8954_v3 = vmul.f32 %v7539_v55, %v1468_v6  ;;  %v12122_v38 = vld [vmem:[#allocation51_spill] sm:$0xff] }
 0x280   : > { %v2709_v29 = vadd.f32 1.0, %v6669_v42  ;;  %v1827_v50 = vadd.f32 %v8809_v18, %v1775_v1  ;;  %v1864_v63 = vmul.f32 %v7553_v4, %v12121_v5  ;;  %v6372_v52 = vpack.c.bf16 %v8951_v45, %v8945_v36  ;;  %6357 = vmatpush3.bf16.msra.mxu1 %v8929_v39 }
 0x281   : > { %v8957_v48 = vadd.f32 %v1659_v23, %v12120_v53  ;;  %v2630_v21 = vmul.f32 %v8666_v8, %v2614_v10  ;;  %v2631_v31 = vmul.f32 %v8666_v8, %v2615_v41  ;;  %v1879_v30 = vadd.f32 %v1863_v33, %v12122_v38  ;;  %6358 = vmatprep.subr.bf16.mxu1 %v12118_v37 }
 0x282   : > { %6676 = vrcp.f32 %v2709_v29  ;;  %v1880_v32 = vadd.f32 %v1864_v63, %v1827_v50  ;;  %v1969_v2 = vmul.f32 %v8923_v14, %v12123_v46  ;;  %v1970_v18 = vmul.f32 %v8923_v14, %v1468_v6  ;;  %6373 = vmatpush3.bf16.xpose.msra.mxu0 %v6372_v52  ;;  %v12128_v6 = vld [vmem:[#allocation49_spill] sm:$0xff]  ;;  %v12129_v29 = vld [vmem:[#allocation103_spill] sm:$0xff] }
 0x283   : > { %v8973_v27 = vadd.f32 %v8683_v35, %v2630_v21  ;;  %v8976_v51 = vadd.f32 %v8683_v35, %v2631_v31  ;;  %v1932_v23 = vadd.f32 %v12124_v24, %v1879_v30  ;;  %v12126_v33 = vrot.slane %v12125_v58, 7  ;;  %v6671_v10 = vpop.eup %6670 }
 0x284   : > { %v12127_v1 = vrot.slane %v8451_v22, 7  ;;  %v1933_v41 = vadd.f32 %v12128_v6, %v1880_v32  ;;  %v12130_v53 = vrot.slane %v12129_v29, 1  ;;  %v12131_v50 = vrot.slane %v12125_v58, 1  ;;  %v6673_v38 = vpop.eup %6672 }
 0x285   : > { %v12133_v52 = vrot.slane %v8451_v22, 1  ;;  %v2091_v30 = vadd.f32 1.0, %v6671_v10  ;;  %v5816_v32 = vmul.f32 -1.442695, %v8973_v27  ;;  %v5817_v46 = vmul.f32 -1.442695, %v8976_v51 }
 0x286   : > { %v1264_v42 = vsel %vm1257_vm1, %v12127_v1, %v12126_v33  ;;  %v1430_v5 = vsel %vm1424_vm2, %v12131_v50, %v12130_v53  ;;  %v12132_v63 = vmov %v12131_v50  ;;  %v1985_v24 = vadd.f32 %v1969_v2, %v1932_v23  ;;  %v12134_v53 = vld [vmem:[#allocation105_spill] sm:$0xff] }
 0x287   : > { %v1431_v21 = vsel %vm1424_vm2, %v12133_v52, %v12132_v63  ;;  %v2213_v31 = vmul.f32 %v7492_v17, %v1264_v42  ;;  %v2092_v33 = vadd.f32 1.0, %v6673_v38  ;;  %v1986_v1 = vadd.f32 %v1970_v18, %v1933_v41  ;;  %v6675_v52 = vpop.eup %6674 }
 0x288   : > { %v1486_v6 = vsel %vm491_vm4, %v1430_v5, 0.0  ;;  %6678 = vrcp.f32 %v2091_v30  ;;  %v2007_v39 = vmul.f32 %v8666_v8, %v1985_v24  ;;  %v2310_v63 = vmul.f32 %v7503_v26, %v1431_v21  ;;  %v12135_v5 = vld [vmem:[#allocation114_spill] sm:$0xff] }
 0x289   : > { %v2278_v50 = vadd.f32 %v12134_v53, %v2213_v31  ;;  %v2311_v10 = vmul.f32 %v7503_v26, %v1486_v6  ;;  %6680 = vrcp.f32 %v2092_v33  ;;  %v2008_v20 = vmul.f32 %v8666_v8, %v1986_v1  ;;  %v5831_v24 = vld [vmem:[%s7375_s18 + $0x40] sm:$0xff]  ;;  %v12136_v53 = vld [vmem:[#allocation84_spill] sm:$0xff] }
 0x28a   : > { %v2355_v2 = vmul.f32 %v7536_v54, %v12108_v34  ;;  %v9011_v18 = vmul.f32 %v7536_v54, %v1264_v42  ;;  %v2756_v23 = vmul.f32 %v6675_v52, %v8820_v0  ;;  %6682 = vpow2.f32 %v5816_v32  ;;  %3142 = vxpose.xlu0.b32.start [1/4] (short) %v5831_v24, 128  ;;  %v514_v24 = vld [vmem:[%s11720_s7 + $0x50] sm:$0xff] }
 0x28b   : > { %v9015_v41 = vadd.f32 %v8683_v35, %v2007_v39  ;;  %v9018_v31 = vadd.f32 %v2310_v63, %v12135_v5  ;;  %6684 = vpow2.f32 %v5817_v46  ;;  %v9021_v38 = vadd.f32 %v8683_v35, %v2008_v20  ;;  %v5832_v20 = vld [vmem:[%s7375_s18 + $0x48] sm:$0xff] }
 0x28c   : > { %v9023_v30 = vadd.f32 %v2311_v10, %v2278_v50  ;;  %v2371_v34 = vadd.f32 %v2355_v2, %v8741_v59  ;;  %v9028_v33 = vadd.f32 %v2756_v23, %v8876_v19  ;;  %v2372_v39 = vadd.f32 %v8869_v56, %v8758_v7  ;;  %v6677_v46 = vpop.eup %6676  ;;  %v12137_v19 = vld [vmem:[#allocation110_spill] sm:$0xff]  ;;  %v513_v56 = vld [vmem:[%s11720_s7 + $0x48] sm:$0xff]  ;;  %v5833_v10 = vld [vmem:[%s7375_s18 + $0x50] sm:$0xff]  ;;  %3174 = vxpose.xlu1.b32.start [1/4] (short) %v5832_v20, 128 }
 0x28d   : > { %v5800_v0 = vmul.f32 -1.442695, %v9015_v41  ;;  %v9034_v32 = vmul.f32 %v7539_v55, %v1431_v21  ;;  %v5801_v1 = vmul.f32 -1.442695, %v9021_v38  ;;  %v9040_v50 = vmul.f32 %v7539_v55, %v1486_v6  ;;  %v512_v7 = vld [vmem:[%s11720_s7 + $0x40] sm:$0xff] }
 0x28e   : > { %v2420_v59 = vadd.f32 %v12136_v53, %v2371_v34  ;;  %v2502_v63 = vmul.f32 %v7553_v4, %v12137_v19  ;;  %v2757_v52 = vmul.f32 %v6677_v46, %v8851_v61  ;;  %v12138_v2 = vld [vmem:[#allocation86_spill] sm:$0xff]  ;;  %v2503_v34 = vmul.f32 %v7553_v4, %v1264_v42  ;;  %v515_v53 = vld [vmem:[%s11720_s7 + $0x58] sm:$0xff]  ;;  %3143 = vxpose.xlu0.b32.cont [2/4] (short) %v5833_v10, 128 }
 0x28f   : > { %6686 = vpow2.f32 %v5800_v0  ;;  %v2421_v5 = vadd.f32 %v12138_v2, %v2372_v39  ;;  %v2551_v61 = vmul.f32 %v7546_v60, %v8451_v22  ;;  %v2552_v0 = vmul.f32 %v7546_v60, %v12125_v58  ;;  %v12141_v2 = vld [vmem:[#allocation72_spill] sm:$0xff] }
 0x290   : > { %6688 = vpow2.f32 %v5801_v1  ;;  %v2469_v16 = vadd.f32 %v8882_v57, %v2420_v59  ;;  %v9067_v42 = vadd.f32 %v2757_v52, %v8888_v13  ;;  %v6374_v39 = vpack.c.bf16 %v2757_v52, %v2756_v23  ;;  %3175 = vxpose.xlu1.b32.cont [2/4] (short) %v5834_v15, 128  ;;  %v12143_v23 = vld [vmem:[#allocation59_spill] sm:$0xff] }
 0x291   : > { %v2470_v20 = vadd.f32 %v8885_v47, %v2421_v5  ;;  %v2600_v46 = vmul.f32 %v8923_v14, %v1431_v21  ;;  %v2601_v57 = vmul.f32 %v8923_v14, %v1486_v6  ;;  %v9072_v59 = vpack.c.bf16 %v513_v56, %v512_v7  ;;  %v12145_v21 = vld [vmem:[#allocation56_spill] sm:$0xff]  ;;  %v5835_v7 = vld [vmem:[%s7375_s18 + $0x60] sm:$0xff]  ;;  %v5836_v56 = vld [vmem:[%s7375_s18 + $0x68] sm:$0xff] }
 0x292   : > { %v2518_v1 = vadd.f32 %v2502_v63, %v2469_v16  ;;  %v9074_v22 = vpack.c.bf16 %v515_v53, %v514_v24  ;;  %v6679_v58 = vpop.eup %6678  ;;  %6375 = vmatprep.subr.bf16.mxu0 %v6374_v39  ;;  %v12142_v49 = vrot.slane %v12141_v2, 1  ;;  %v12144_v52 = vrot.slane %v12143_v23, 1  ;;  %v12146_v63 = vld [vmem:[#allocation67_spill] sm:$0xff]  ;;  %v12147_v24 = vld [vmem:[#allocation64_spill] sm:$0xff]  ;;  %3144 = vxpose.xlu0.b32.cont [3/4] (short) %v5835_v7, 128  ;;  %v12150_v7 = vld [vmem:[#allocation58_spill] sm:$0xff] }
 0x293   : > { %12139 = vst [vmem:[#allocation30_spill] sm:$0xff] %v9072_v59  ;;  %v2519_v13 = vadd.f32 %v2503_v34, %v2470_v20  ;;  %v1725_v16 = vadd.f32 %v12145_v21, %v8813_v12  ;;  %v1865_v6 = vmul.f32 %v7553_v4, %v12146_v63  ;;  %v6681_v10 = vpop.eup %6680  ;;  %v2139_v15 = vmul.f32 %v6679_v58, %v8879_v25  ;;  %v12148_v25 = vld [vmem:[#allocation48_spill] sm:$0xff]  ;;  %v5838_v63 = vld [vmem:[%s7375_s18 + $0x78] sm:$0xff] }
 0x294   : > { %12140 = vst [vmem:[#allocation31_spill] sm:$0xff] %v9074_v22  ;;  %v1446_v47 = vsel %vm1424_vm2, %v12144_v52, %v12142_v49  ;;  %v2567_v5 = vadd.f32 %v2551_v61, %v2518_v1  ;;  %6360 = vmatpush3.bf16.msra.mxu1 %v9072_v59  ;;  %v1866_v49 = vmul.f32 %v7553_v4, %v12147_v24  ;;  %v6683_v53 = vpop.eup %6682  ;;  %v5837_v21 = vld [vmem:[%s7375_s18 + $0x70] sm:$0xff] }
 0x295   : > { %v1470_v34 = vsel %vm491_vm4, %v1446_v47, 0.0  ;;  %v2140_v12 = vmul.f32 %v6681_v10, %v8891_v44  ;;  %v2568_v39 = vadd.f32 %v2552_v0, %v2519_v13  ;;  %6361 = vmatprep.subr.bf16.mxu1 %v12118_v37  ;;  %v1777_v61 = vadd.f32 %v12148_v25, %v1725_v16  ;;  %v6685_v1 = vpop.eup %6684  ;;  %3176 = vxpose.xlu1.b32.cont [3/4] (short) %v5836_v56, 128 }
 0x296   : > { %v1661_v20 = vmul.f32 %v7503_v26, %v1470_v34  ;;  %v9099_v58 = vadd.f32 %v2139_v15, %v8945_v36  ;;  %v2710_v2 = vadd.f32 1.0, %v6683_v53  ;;  %v2616_v23 = vadd.f32 %v2600_v46, %v2567_v5  ;;  %v12149_v36 = vld [vmem:[#allocation69_spill] sm:$0xff]  ;;  %3145 = vxpose.xlu0.b32.end [4/4] (short) %v5837_v21, 128 }
 0x297   : > { %v9102_v52 = vmul.f32 %v7539_v55, %v1470_v34  ;;  %v9105_v44 = vadd.f32 %v2140_v12, %v8951_v45  ;;  %v6376_v0 = vpack.c.bf16 %v2140_v12, %v2139_v15  ;;  %v2711_v13 = vadd.f32 1.0, %v6685_v1  ;;  %v12151_v15 = vld [vmem:[#allocation65_spill] sm:$0xff] }
 0x298   : > { %v2617_v47 = vadd.f32 %v2601_v57, %v2568_v39  ;;  %6690 = vrcp.f32 %v2710_v2  ;;  %v2632_v16 = vmul.f32 %v8666_v8, %v2616_v23  ;;  %6363 = vmatpush3.bf16.msra.mxu1 %v9074_v22  ;;  %v1677_v46 = vadd.f32 %v1661_v20, %v12149_v36  ;;  %v12152_v39 = vld [vmem:[#allocation78_spill] sm:$0xff] }
 0x299   : > { %v1829_v10 = vadd.f32 %v8954_v3, %v1777_v61  ;;  %v6687_v5 = vpop.eup %6686  ;;  %6377 = vmatpush3.bf16.xpose.msra.mxu0 %v6376_v0  ;;  %6692 = vrcp.f32 %v2711_v13  ;;  %v1881_v56 = vadd.f32 %v1865_v6, %v12150_v7  ;;  %v1971_v57 = vmul.f32 %v8923_v14, %v12151_v15  ;;  %6364 = vmatprep.subr.bf16.mxu1 %v12118_v37  ;;  %v12153_v6 = vld [vmem:[#allocation63_spill] sm:$0xff]  ;;  %v12154_v0 = vld [vmem:[#allocation61_spill] sm:$0xff] }
 0x29a   : > { %v2633_v45 = vmul.f32 %v8666_v8, %v2617_v47  ;;  %v6689_v24 = vpop.eup %6688  ;;  %v2093_v53 = vadd.f32 1.0, %v6687_v5  ;;  %v9119_v12 = vadd.f32 %v8683_v35, %v2632_v16  ;;  %v9122_v20 = vadd.f32 %v12152_v39, %v1677_v46  ;;  %3177 = vxpose.xlu1.b32.end [4/4] (short) %v5838_v63, 128  ;;  %v12155_v47 = vld [vmem:[#allocation102_spill] sm:$0xff]  ;;  %v12158_v46 = vld [vmem:[#allocation112_spill] sm:$0xff] }
 0x29b   : > { %v1882_v3 = vadd.f32 %v1866_v49, %v1829_v10  ;;  %v2094_v25 = vadd.f32 1.0, %v6689_v24  ;;  %v1934_v1 = vadd.f32 %v12153_v6, %v1881_v56  ;;  %v1972_v2 = vmul.f32 %v8923_v14, %v1470_v34  ;;  %v12161_v39 = vld [vmem:[#allocation108_spill] sm:$0xff] }
 0x29c   : > { %v9125_v61 = vadd.f32 %v8683_v35, %v2633_v45  ;;  %6694 = vrcp.f32 %v2093_v53  ;;  %v5818_v23 = vmul.f32 -1.442695, %v9119_v12  ;;  %v12156_v16 = vrot.slane %v12155_v47, 7 }
 0x29d   : > { %v1935_v13 = vadd.f32 %v12154_v0, %v1882_v3  ;;  %v12157_v36 = vrot.slane %v12129_v29, 7  ;;  %6696 = vrcp.f32 %v2094_v25  ;;  %v1987_v63 = vadd.f32 %v1971_v57, %v1934_v1  ;;  %v12162_v0 = vld [vmem:[#allocation115_spill] sm:$0xff] }
 0x29e   : > { %v5819_v21 = vmul.f32 -1.442695, %v9125_v61  ;;  %v12159_v10 = vrot.slane %v12158_v46, 1  ;;  %v12160_v34 = vrot.slane %v12155_v47, 1  ;;  %6698 = vpow2.f32 %v5818_v23 }
 0x29f   : > { %v1262_v49 = vsel %vm1257_vm1, %v12157_v36, %v12156_v16  ;;  %v1988_v45 = vadd.f32 %v1972_v2, %v1935_v13  ;;  %v2009_v15 = vmul.f32 %v8666_v8, %v1987_v63  ;;  %v2357_v57 = vmul.f32 %v7536_v54, %v12137_v19 }
 0x2a0   : > { %v1428_v5 = vsel %vm1424_vm2, %v12160_v34, %v12159_v10  ;;  %v2215_v56 = vmul.f32 %v7492_v17, %v1262_v49  ;;  %6700 = vpow2.f32 %v5819_v21  ;;  %v9154_v25 = vmul.f32 %v7536_v54, %v1262_v49  ;;  %v12163_v21 = vld [vmem:[#allocation106_spill] sm:$0xff]  ;;  %v12164_v34 = vld [vmem:[#allocation107_spill] sm:$0xff] }
 0x2a1   : > { %v1488_v7 = vsel %vm491_vm4, %v1428_v5, 0.0  ;;  %v2010_v53 = vmul.f32 %v8666_v8, %v1988_v45  ;;  %v2374_v6 = vadd.f32 %v9011_v18, %v8866_v40  ;;  %v9159_v1 = vadd.f32 %v8683_v35, %v2009_v15 }
 0x2a2   : > { %v2313_v24 = vmul.f32 %v7503_v26, %v1488_v7  ;;  %v2280_v3 = vadd.f32 %v12161_v39, %v2215_v56  ;;  %v2373_v2 = vadd.f32 %v2357_v57, %v8861_v11  ;;  %v9163_v23 = vmul.f32 %v7539_v55, %v1488_v7  ;;  %v6691_v13 = vpop.eup %6690  ;;  %v519_v39 = vld [vmem:[%s11720_s7 + $0x78] sm:$0xff] }
 0x2a3   : > { %v2504_v19 = vmul.f32 %v7553_v4, %v12162_v0  ;;  %v9168_v16 = vadd.f32 %v8683_v35, %v2010_v53  ;;  %v2423_v63 = vadd.f32 %v12163_v21, %v2374_v6  ;;  %v2505_v40 = vmul.f32 %v7553_v4, %v1262_v49  ;;  %v6693_v18 = vpop.eup %6692  ;;  %v517_v49 = vld [vmem:[%s11720_s7 + $0x68] sm:$0xff] }
 0x2a4   : > { %v9170_v36 = vadd.f32 %v2313_v24, %v2280_v3  ;;  %v2758_v10 = vmul.f32 %v6691_v13, %v8973_v27  ;;  %v5802_v11 = vmul.f32 -1.442695, %v9159_v1  ;;  %v2422_v5 = vadd.f32 %v12164_v34, %v2373_v2  ;;  %v516_v27 = vld [vmem:[%s11720_s7 + $0x60] sm:$0xff] }
 0x2a5   : > { %v2553_v45 = vmul.f32 %v7546_v60, %v12129_v29  ;;  %v2759_v56 = vmul.f32 %v6693_v18, %v8976_v51  ;;  %v5803_v15 = vmul.f32 -1.442695, %v9168_v16  ;;  %v2472_v24 = vadd.f32 %v9040_v50, %v2423_v63  ;;  %v12165_v29 = vld [vmem:[#allocation113_spill] sm:$0xff] }
 0x2a6   : > { %v2554_v57 = vmul.f32 %v7546_v60, %v12155_v47  ;;  %v9191_v53 = vadd.f32 %v9028_v33, %v2758_v10  ;;  %6702 = vpow2.f32 %v5802_v11  ;;  %v2471_v51 = vadd.f32 %v9034_v32, %v2422_v5  ;;  %v518_v47 = vld [vmem:[%s11720_s7 + $0x70] sm:$0xff]  ;;  %v6695_v3 = vpop.eup %6694 }
 0x2a7   : > { %v2602_v50 = vmul.f32 %v8923_v14, %v12165_v29  ;;  %v9203_v6 = vadd.f32 %v9067_v42, %v2759_v56  ;;  %v6378_v33 = vpack.c.bf16 %v2759_v56, %v2758_v10  ;;  %6704 = vpow2.f32 %v5803_v15  ;;  %v6697_v13 = vpop.eup %6696  ;;  %v12166_v42 = vld [vmem:[#allocation82_spill] sm:$0xff] }
 0x2a8   : > { %v2521_v2 = vadd.f32 %v2505_v40, %v2472_v24  ;;  %v2141_v32 = vmul.f32 %v6695_v3, %v9015_v41  ;;  %v2520_v21 = vadd.f32 %v2504_v19, %v2471_v51  ;;  %v2603_v63 = vmul.f32 %v8923_v14, %v1488_v7  ;;  %v6699_v11 = vpop.eup %6698  ;;  %v12168_v10 = vld [vmem:[#allocation66_spill] sm:$0xff]  ;;  %v12170_v51 = vld [vmem:[#allocation68_spill] sm:$0xff] }
 0x2a9   : > { %v9207_v18 = vpack.c.bf16 %v517_v49, %v516_v27  ;;  %6379 = vmatprep.subr.bf16.mxu0 %v6378_v33  ;;  %v2142_v34 = vmul.f32 %v6697_v13, %v9021_v38  ;;  %v9210_v22 = vpack.c.bf16 %v519_v39, %v518_v47  ;;  %v12167_v59 = vrot.slane %v12166_v42, 1  ;;  %v12171_v39 = vld [vmem:[#allocation70_spill] sm:$0xff]  ;;  %v12173_v13 = vld [vmem:[#allocation60_spill] sm:$0xff] }
 0x2aa   : > { %v2570_v5 = vadd.f32 %v2554_v57, %v2521_v2  ;;  %v12169_v56 = vrot.slane %v12168_v10, 1  ;;  %v6701_v41 = vpop.eup %6700  ;;  %v9219_v19 = vadd.f32 %v9099_v58, %v2141_v32  ;;  %v2712_v7 = vadd.f32 1.0, %v6699_v11  ;;  %v12172_v2 = vld [vmem:[#allocation79_spill] sm:$0xff] }
 0x2ab   : > { %v2569_v15 = vadd.f32 %v2553_v45, %v2520_v21  ;;  %6366 = vmatpush3.bf16.msra.mxu1 %v9207_v18  ;;  %v9225_v24 = vadd.f32 %v9105_v44, %v2142_v34  ;;  %v6380_v57 = vpack.c.bf16 %v2142_v34, %v2141_v32  ;;  %v2713_v27 = vadd.f32 1.0, %v6701_v41  ;;  %v12174_v21 = vld [vmem:[#allocation77_spill] sm:$0xff]  ;;  %v12175_v34 = vld [vmem:[#allocation75_spill] sm:$0xff] }
 0x2ac   : > { %v1444_v40 = vsel %vm1424_vm2, %v12169_v56, %v12167_v59  ;;  %v2619_v49 = vadd.f32 %v2603_v63, %v2570_v5  ;;  %6367 = vmatprep.subr.bf16.mxu1 %v12118_v37  ;;  %6706 = vrcp.f32 %v2712_v7  ;;  %v1727_v45 = vadd.f32 %v12170_v51, %v8957_v48  ;;  %v12176_v5 = vld [vmem:[#allocation76_spill] sm:$0xff] }
 0x2ad   : > { %v1472_v38 = vsel %vm491_vm4, %v1444_v40, 0.0  ;;  %v2618_v59 = vadd.f32 %v2602_v50, %v2569_v15  ;;  %6381 = vmatpush3.bf16.xpose.msra.mxu0 %v6380_v57  ;;  %6708 = vrcp.f32 %v2713_v27  ;;  %v1781_v44 = vadd.f32 %v12171_v39, %v9122_v20  ;;  %v12177_v40 = vld [vmem:[#allocation83_spill] sm:$0xff]  ;;  %v12178_v15 = vld [vmem:[#allocation74_spill] sm:$0xff] }
 0x2ae   : > { %v1663_v58 = vmul.f32 %v7503_v26, %v1472_v38  ;;  %v2635_v47 = vmul.f32 %v8666_v8, %v2619_v49  ;;  %v1817_v3 = vmul.f32 %v7539_v55, %v1472_v38  ;;  %v1779_v32 = vadd.f32 %v12173_v13, %v1727_v45 }
 0x2af   : > { %v2634_v33 = vmul.f32 %v8666_v8, %v2618_v59  ;;  %6369 = vmatpush3.bf16.msra.mxu1 %v9210_v22  ;;  %v1867_v48 = vmul.f32 %v7553_v4, %v12174_v21  ;;  %v1868_v20 = vmul.f32 %v7553_v4, %v12175_v34  ;;  %v1973_v42 = vmul.f32 %v8923_v14, %v12176_v5 }
 0x2b0   : > { %v1679_v50 = vadd.f32 %v1663_v58, %v12172_v2  ;;  %v9242_v63 = vadd.f32 %v8683_v35, %v2635_v47  ;;  %v1833_v11 = vadd.f32 %v1817_v3, %v1781_v44  ;;  %v6703_v10 = vpop.eup %6702  ;;  %v1831_v7 = vadd.f32 %v9102_v52, %v1779_v32  ;;  %v12179_v58 = vld [vmem:[#allocation85_spill] sm:$0xff]  ;;  %v12180_v44 = vld [vmem:[#allocation80_spill] sm:$0xff] }
 0x2b1   : > { %v9249_v56 = vadd.f32 %v8683_v35, %v2634_v33  ;;  %v1883_v57 = vadd.f32 %v1867_v48, %v12178_v15  ;;  %v6705_v27 = vpop.eup %6704  ;;  %v2095_v49 = vadd.f32 1.0, %v6703_v10  ;;  %v1974_v45 = vmul.f32 %v8923_v14, %v1472_v38  ;;  %v12181_v2 = vld [vmem:[#allocation73_spill] sm:$0xff]  ;;  %v12184_v48 = vld [vmem:[#allocation90_spill] sm:$0xff]  ;;  %v12186_v38 = vld [vmem:[#allocation87_spill] sm:$0xff] }
 0x2b2   : > { %v1731_v41 = vadd.f32 %v12177_v40, %v1679_v50  ;;  %v5821_v59 = vmul.f32 -1.442695, %v9242_v63  ;;  %v1886_v51 = vadd.f32 %v12179_v58, %v1833_v11  ;;  %v2096_v47 = vadd.f32 1.0, %v6705_v27  ;;  %v12182_v52 = vld [vmem:[#allocation81_spill] sm:$0xff]  ;;  %v12185_v11 = vld [vmem:[#allocation71_spill] sm:$0xff] }
 0x2b3   : > { %v5820_v39 = vmul.f32 -1.442695, %v9249_v56  ;;  %v1884_v33 = vadd.f32 %v1868_v20, %v1831_v7  ;;  %6710 = vrcp.f32 %v2095_v49  ;;  %v1936_v50 = vadd.f32 %v12181_v2, %v1883_v57  ;;  %v12183_v32 = vld [vmem:[#allocation89_spill] sm:$0xff]  ;;  %v12188_v57 = vld [vmem:[#allocation91_spill] sm:$0xff] }
 0x2b4   : > { %v1783_v3 = vadd.f32 %v12180_v44, %v1731_v41  ;;  %v1939_v13 = vadd.f32 %v12182_v52, %v1886_v51  ;;  %v1976_v21 = vmul.f32 %v8923_v14, %v12183_v32  ;;  %6712 = vrcp.f32 %v2096_v47  ;;  %v12187_v20 = vld [vmem:[#allocation93_spill] sm:$0xff] }
 0x2b5   : > { %v1937_v5 = vadd.f32 %v12185_v11, %v1884_v33  ;;  %v2013_v10 = vmul.f32 %v8666_v8, %v12186_v38  ;;  %6714 = vpow2.f32 %v5820_v39  ;;  %v1989_v40 = vadd.f32 %v1973_v42, %v1936_v50  ;;  %v12189_v33 = vld [vmem:[#allocation88_spill] sm:$0xff] }
 0x2b6   : > { %v1835_v34 = vadd.f32 %v12184_v48, %v1783_v3  ;;  %v1992_v41 = vadd.f32 %v1976_v21, %v1939_v13  ;;  %v2015_v7 = vmul.f32 %v8666_v8, %v12187_v20  ;;  %v6707_v15 = vpop.eup %6706  ;;  %6716 = vpow2.f32 %v5821_v59  ;;  %v12190_v21 = vld [vmem:[#allocation94_spill] sm:$0xff] }
 0x2b7   : > { %v1990_v49 = vadd.f32 %v1974_v45, %v1937_v5  ;;  %v9271_v58 = vadd.f32 %v8683_v35, %v2013_v10  ;;  %v6709_v51 = vpop.eup %6708  ;;  %v2760_v47 = vmul.f32 %v6707_v15, %v9119_v12  ;;  %v2011_v44 = vmul.f32 %v8666_v8, %v1989_v40 }
 0x2b8   : > { %v1888_v27 = vadd.f32 %v12188_v57, %v1835_v34  ;;  %v2014_v39 = vmul.f32 %v8666_v8, %v1992_v41  ;;  %v9277_v42 = vadd.f32 %v8683_v35, %v2015_v7  ;;  %v2761_v3 = vmul.f32 %v6709_v51, %v9125_v61 }
 0x2b9   : > { %v2012_v2 = vmul.f32 %v8666_v8, %v1990_v49  ;;  %v5806_v45 = vmul.f32 -1.442695, %v9271_v58  ;;  %v9284_v50 = vadd.f32 %v9191_v53, %v2760_v47  ;;  %v9287_v12 = vadd.f32 %v8683_v35, %v2011_v44 }
 0x2ba   : > { %v1941_v59 = vadd.f32 %v12189_v33, %v1888_v27  ;;  %v9290_v52 = vadd.f32 %v8683_v35, %v2014_v39  ;;  %v5808_v13 = vmul.f32 -1.442695, %v9277_v42  ;;  %v9294_v32 = vadd.f32 %v9203_v6, %v2761_v3 }
 0x2bb   : > { %v6382_v61 = vpack.c.bf16 %v2761_v3, %v2760_v47  ;;  %v9298_v34 = vadd.f32 %v8683_v35, %v2012_v2  ;;  %v5804_v53 = vmul.f32 -1.442695, %v9287_v12  ;;  %6718 = vpow2.f32 %v5806_v45  ;;  %v12193_v3 = vld [vmem:[#allocation116_spill] sm:$0xff] }
 0x2bc   : > { %v1994_v48 = vadd.f32 %v12190_v21, %v1941_v59  ;;  %v5807_v11 = vmul.f32 -1.442695, %v9290_v52  ;;  %6720 = vpow2.f32 %v5808_v13  ;;  %v11831_v10 = vmov 0.0   ;;  %v12194_v21 = vld [vmem:[#allocation111_spill] sm:$0xff] }
 0x2bd   : > { %6383 = vmatprep.subr.bf16.mxu0 %v6382_v61  ;;  %v5805_v38 = vmul.f32 -1.442695, %v9298_v34  ;;  %6237 = vmatprep.subr.mxu1 %v11831_v10  ;;  %v6711_v6 = vpop.eup %6710  ;;  %6722 = vpow2.f32 %v5804_v53  ;;  %v12191_v40 = vrot.slane %v8531_v28, 7  ;;  %v12192_v41 = vrot.slane %v12158_v46, 7 }
 0x2be   : > { %v2016_v5 = vmul.f32 %v8666_v8, %v1994_v48  ;;  %6234 = vmatprep.mubr.msk.f32.mxu1 %vm7190_vm5, %v11831_v10  ;;  %v9316_v8 = vsel %vm491_vm4, %v8646_v9, 0.0  ;;  %v2359_v7 = vmul.f32 %v7536_v54, %v12162_v0  ;;  %v6713_v15 = vpop.eup %6712  ;;  %v2143_v57 = vmul.f32 %v6711_v6, %v9159_v1  ;;  %v12197_v6 = vld [vmem:[#allocation117_spill] sm:$0xff] }
 0x2bf   : > { %v1260_v20 = vsel %vm1257_vm1, %v12192_v41, %v12191_v40  ;;  %6724 = vpow2.f32 %v5805_v38  ;;  %v6715_v51 = vpop.eup %6714  ;;  %v2144_v47 = vmul.f32 %v6713_v15, %v9168_v16  ;;  %v2315_v9 = vmul.f32 %v7503_v26, %v9316_v8 }
 0x2c0   : > { %v9322_v27 = vadd.f32 %v8683_v35, %v2016_v5  ;;  %v2217_v49 = vmul.f32 %v7492_v17, %v1260_v20  ;;  %6726 = vpow2.f32 %v5807_v11  ;;  %v2362_v44 = vmul.f32 %v7536_v54, %v1260_v20  ;;  %v6717_v39 = vpop.eup %6716  ;;  %v12195_v11 = vld [vmem:[#allocation21_spill] sm:$0xff] }
 0x2c1   : > { %v9330_v0 = vadd.f32 %v9219_v19, %v2143_v57  ;;  %v2714_v1 = vadd.f32 1.0, %v6715_v51  ;;  %v9335_v59 = vadd.f32 %v9225_v24, %v2144_v47  ;;  %v6384_v2 = vpack.c.bf16 %v2144_v47, %v2143_v57  ;;  %v12196_v5 = vld [vmem:[#allocation109_spill] sm:$0xff] }
 0x2c2   : > { %v5809_v35 = vmul.f32 -1.442695, %v9322_v27  ;;  %v2282_v33 = vadd.f32 %v12193_v3, %v2217_v49  ;;  %v2715_v16 = vadd.f32 1.0, %v6717_v39  ;;  %v2375_v45 = vadd.f32 %v2359_v7, %v9018_v31  ;;  %v12199_v49 = vld [vmem:[#allocation118_spill] sm:$0xff]  ;;  %v12200_v3 = vld [vmem:[#allocation119_spill] sm:$0xff] }
 0x2c3   : > { %6728 = vrcp.f32 %v2714_v1  ;;  %v2376_v61 = vadd.f32 %v9154_v25, %v9023_v30  ;;  %v2378_v19 = vadd.f32 %v2362_v44, %v9170_v36  ;;  %6385 = vmatpush3.bf16.xpose.msra.mxu0 %v6384_v2  ;;  %v2457_v53 = vmul.f32 %v7539_v55, %v12165_v29  ;;  %v12198_v36 = vld [vmem:[#allocation121_spill] sm:$0xff] }
 0x2c4   : > { %v2331_v13 = vadd.f32 %v2315_v9, %v2282_v33  ;;  %6730 = vrcp.f32 %v2715_v16  ;;  %v2424_v48 = vadd.f32 %v12194_v21, %v2375_v45  ;;  %v2460_v24 = vmul.f32 %v7539_v55, %v9316_v8 }
 0x2c5   : > { %6732 = vpow2.f32 %v5809_v35  ;;  %v2425_v38 = vadd.f32 %v12196_v5, %v2376_v61  ;;  %v2427_v40 = vadd.f32 %v12197_v6, %v2378_v19  ;;  %v6719_v30 = vpop.eup %6718  ;;  %v2506_v41 = vmul.f32 %v7553_v4, %v12198_v36  ;;  %v7053_v36 = vld [vmem:[%s11718_s5] ss:$0 sm:$0xff] }
 0x2c6   : > { %v2380_v31 = vadd.f32 %v12195_v11, %v2331_v13  ;;  %v2473_v25 = vadd.f32 %v2457_v53, %v2424_v48  ;;  %v2507_v7 = vmul.f32 %v7553_v4, %v1260_v20  ;;  %v2555_v29 = vmul.f32 %v7546_v60, %v12158_v46  ;;  %v6721_v15 = vpop.eup %6720  ;;  %v12201_v46 = vld [vmem:[#allocation19_spill] sm:$0xff]  ;;  %v12203_v53 = vld [vmem:[#allocation97_spill] sm:$0xff]  ;;  %v12204_v11 = vld [vmem:[#allocation120_spill] sm:$0xff] }
 0x2c7   : > { %v2099_v57 = vadd.f32 1.0, %v6719_v30  ;;  %v2474_v47 = vadd.f32 %v9163_v23, %v2425_v38  ;;  %v2476_v9 = vadd.f32 %v2460_v24, %v2427_v40  ;;  %v6723_v44 = vpop.eup %6722  ;;  %v2101_v39 = vadd.f32 1.0, %v6721_v15  ;;  %v12202_v23 = vld [vmem:[#allocation23_spill] sm:$0xff]  ;;  %v12206_v40 = vld [vmem:[#allocation98_spill] sm:$0xff] }
 0x2c8   : > { %v2429_v51 = vadd.f32 %v12199_v49, %v2380_v31  ;;  %v2522_v1 = vadd.f32 %v2506_v41, %v2473_v25  ;;  %v2556_v35 = vmul.f32 %v7546_v60, %v8531_v28  ;;  %v2604_v33 = vmul.f32 %v8923_v14, %v12200_v3  ;;  %v12207_v41 = vld [vmem:[#allocation22_spill] sm:$0xff] }
 0x2c9   : > { %v6725_v20 = vpop.eup %6724  ;;  %v2097_v2 = vadd.f32 1.0, %v6723_v44  ;;  %6734 = vrcp.f32 %v2099_v57  ;;  %v2523_v45 = vadd.f32 %v2507_v7, %v2474_v47  ;;  %v2525_v19 = vadd.f32 %v12202_v23, %v2476_v9  ;;  %v12208_v49 = vld [vmem:[#allocation122_spill] sm:$0xff] }
 0x2ca   : > { %v2478_v16 = vadd.f32 %v12201_v46, %v2429_v51  ;;  %v6727_v13 = vpop.eup %6726  ;;  %v2098_v61 = vadd.f32 1.0, %v6725_v20  ;;  %6736 = vrcp.f32 %v2101_v39  ;;  %v2571_v21 = vadd.f32 %v2555_v29, %v2522_v1  ;;  %v12209_v51 = vld [vmem:[#allocation34_spill] sm:$0xff] }
 0x2cb   : > { %v2100_v48 = vadd.f32 1.0, %v6727_v13  ;;  %6738 = vrcp.f32 %v2097_v2  ;;  %v2572_v28 = vadd.f32 %v2556_v35, %v2523_v45  ;;  %v2574_v31 = vadd.f32 %v12204_v11, %v2525_v19  ;;  %v7054_v35 = vld [vmem:[%s11719_s6] ss:$0 sm:$0xff] }
 0x2cc   : > { %v2527_v24 = vadd.f32 %v12203_v53, %v2478_v16  ;;  %6740 = vrcp.f32 %v2098_v61  ;;  %v2605_v5 = vmul.f32 %v8923_v14, %v9316_v8  ;;  %v9367_v38 = vmul.f32 0.0, %v8923_v14 }
 0x2cd   : > { %v6729_v6 = vpop.eup %6728  ;;  %6742 = vrcp.f32 %v2100_v48  ;;  %v2620_v25 = vadd.f32 %v2604_v33, %v2571_v21  ;;  %v2638_v7 = vmul.f32 %v7053_v36, %v12207_v41  ;;  %v2623_v8 = vadd.f32 %v12208_v49, %v2574_v31  ;;  %v12213_v49 = vld [vmem:[#allocation96_spill] sm:$0xff] }
 0x2ce   : > { %12205 = vst [vmem:[#allocation29_spill] sm:$0xff] %v9367_v38  ;;  %v2576_v30 = vadd.f32 %v12206_v40, %v2527_v24  ;;  %v6731_v29 = vpop.eup %6730  ;;  %v2762_v15 = vmul.f32 %v6729_v6, %v9249_v56  ;;  %v2621_v57 = vadd.f32 %v2605_v5, %v2572_v28  ;;  %v2624_v47 = vadd.f32 %v9367_v38, %v12209_v51  ;;  %v12211_v24 = vld [vmem:[#allocation92_spill] sm:$0xff] }
 0x2cf   : > { %v6733_v9 = vpop.eup %6732  ;;  %v2763_v44 = vmul.f32 %v6731_v29, %v9242_v63  ;;  %v2636_v1 = vmul.f32 %v7053_v36, %v2620_v25  ;;  %v9383_v3 = vadd.f32 %v7054_v35, %v2638_v7  ;;  %v2639_v2 = vmul.f32 %v7053_v36, %v2623_v8 }
 0x2d0   : > { %v2625_v39 = vadd.f32 %v9367_v38, %v2576_v30  ;;  %v9386_v56 = vadd.f32 %v9284_v50, %v2762_v15  ;;  %v2102_v33 = vadd.f32 1.0, %v6733_v9  ;;  %v2637_v20 = vmul.f32 %v7053_v36, %v2621_v57 }
 0x2d1   : > { %v9389_v46 = vadd.f32 %v9294_v32, %v2763_v44  ;;  %v6386_v16 = vpack.c.bf16 %v2763_v44, %v2762_v15  ;;  %v2640_v63 = vmul.f32 %v7053_v36, %v2624_v47  ;;  %v9391_v13 = vadd.f32 %v7054_v35, %v2636_v1  ;;  %v12210_v32 = vld [vmem:[#allocation95_spill] sm:$0xff]  ;;  %v12212_v15 = vld [vmem:[#allocation100_spill] sm:$0xff] }
 0x2d2   : > { %v2641_v45 = vmul.f32 %v7053_v36, %v2625_v39  ;;  %6744 = vrcp.f32 %v2102_v33  ;;  %v9393_v61 = vadd.f32 %v7054_v35, %v2637_v20  ;;  %v9395_v23 = vadd.f32 %v7054_v35, %v2639_v2 }
 0x2d3   : > { %v6735_v19 = vpop.eup %6734  ;;  %6387 = vmatprep.subr.bf16.mxu0 %v6386_v16  ;;  %v9397_v50 = vadd.f32 %v7054_v35, %v2640_v63  ;;  %v5824_v48 = vmul.f32 -1.442695, %v9383_v3  ;;  %v1943_v28 = vadd.f32 %v12211_v24, %v12210_v32  ;;  %v5822_v31 = vmul.f32 -1.442695, %v9391_v13 }
 0x2d4   : > { %v9399_v21 = vadd.f32 %v7054_v35, %v2641_v45  ;;  %v6737_v11 = vpop.eup %6736  ;;  %v5823_v5 = vmul.f32 -1.442695, %v9393_v61  ;;  %v5825_v6 = vmul.f32 -1.442695, %v9395_v23  ;;  %v1980_v57 = vmul.f32 %v8923_v14, %v12212_v15 }
 0x2d5   : > { %v6739_v30 = vpop.eup %6738  ;;  %6746 = vpow2.f32 %v5824_v48  ;;  %v5826_v25 = vmul.f32 -1.442695, %v9397_v50  ;;  %v2017_v8 = vmul.f32 %v7053_v36, %v12213_v49  ;;  %v9415_v9 = vmul.f32 %v6735_v19, %v9271_v58 }
 0x2d6   : > { %v5827_v41 = vmul.f32 -1.442695, %v9399_v21  ;;  %v6741_v7 = vpop.eup %6740  ;;  %v2145_v29 = vmul.f32 %v6739_v30, %v9287_v12  ;;  %6748 = vpow2.f32 %v5822_v31  ;;  %v9418_v44 = vmul.f32 %v6737_v11, %v9277_v42 }
 0x2d7   : > { %v6743_v51 = vpop.eup %6742  ;;  %v2146_v47 = vmul.f32 %v6741_v7, %v9298_v34  ;;  %6750 = vpow2.f32 %v5823_v5  ;;  %v1996_v1 = vadd.f32 %v1980_v57, %v1943_v28  ;;  %v9425_v20 = vadd.f32 %v7054_v35, %v2017_v8 }
 0x2d8   : > { %v9421_v39 = vmul.f32 %v6743_v51, %v9290_v52  ;;  %v2172_v12 = vadd.f32 %v9330_v0, %v2145_v29  ;;  %6752 = vpow2.f32 %v5825_v6 }
 0x2d9   : > { %v2179_v14 = vadd.f32 %v9335_v59, %v2146_v47  ;;  %v6388_v33 = vpack.c.bf16 %v2146_v47, %v2145_v29  ;;  %6754 = vpow2.f32 %v5826_v25  ;;  %v2018_v34 = vmul.f32 %v7053_v36, %v1996_v1 }
 0x2da   : > { %v2173_v58 = vadd.f32 %v2172_v12, %v9415_v9  ;;  %6756 = vpow2.f32 %v5827_v41  ;;  %v6392_v42 = vpack.c.bf16 %v9421_v39, %v9415_v9  ;;  %v5810_v0 = vmul.f32 -1.442695, %v9425_v20 }
 0x2db   : > { %v2180_v52 = vadd.f32 %v2179_v14, %v9421_v39  ;;  %6389 = vmatpush3.bf16.xpose.msra.mxu0 %v6388_v33  ;;  %v2040_v59 = vadd.f32 %v7054_v35, %v2018_v34 }
 0x2dc   : > { %v6745_v2 = vpop.eup %6744  ;;  %v2174_v16 = vadd.f32 %v2173_v58, %v9418_v44  ;;  %6758 = vpow2.f32 %v5810_v0 }
 0x2dd   : > { %v9434_v63 = vmul.f32 %v6745_v2, %v9322_v27  ;;  %v5811_v45 = vmul.f32 -1.442695, %v2040_v59 }
 0x2df   : > { %v6747_v19 = vpop.eup %6746  ;;  %v2181_v36 = vadd.f32 %v2180_v52, %v9434_v63  ;;  %v6396_v48 = vpack.c.bf16 %v9434_v63, %v9418_v44  ;;  %6760 = vpow2.f32 %v5811_v45 }
 0x2e0   : > { %v6749_v32 = vpop.eup %6748  ;;  %v2718_v24 = vadd.f32 1.0, %v6747_v19 }
 0x2e1   : > { %v6751_v28 = vpop.eup %6750  ;;  %v2716_v11 = vadd.f32 1.0, %v6749_v32 }
 0x2e2   : > { %v6753_v31 = vpop.eup %6752  ;;  %v2717_v5 = vadd.f32 1.0, %v6751_v28  ;;  %6762 = vrcp.f32 %v2718_v24 }
 0x2e3   : > { %v6755_v35 = vpop.eup %6754  ;;  %v2719_v6 = vadd.f32 1.0, %v6753_v31  ;;  %6764 = vrcp.f32 %v2716_v11 }
 0x2e4   : > { %v6757_v27 = vpop.eup %6756  ;;  %v2720_v30 = vadd.f32 1.0, %v6755_v35  ;;  %6766 = vrcp.f32 %v2717_v5 }
 0x2e5   : > { %v2721_v25 = vadd.f32 1.0, %v6757_v27  ;;  %6768 = vrcp.f32 %v2719_v6 }
 0x2e6   : > { %6770 = vrcp.f32 %v2720_v30  ;;  %v6759_v41 = vpop.eup %6758 }
 0x2e7   : > { %6772 = vrcp.f32 %v2721_v25  ;;  %v2103_v7 = vadd.f32 1.0, %v6759_v41  ;;  %v520_v25 = vld [vmem:[%s11721_s8] sm:$0x1] }
 0x2e9   : > { %v6761_v29 = vpop.eup %6760  ;;  %6774 = vrcp.f32 %v2103_v7 }
 0x2ea   : > { %v2104_v15 = vadd.f32 1.0, %v6761_v29 }
 0x2ec   : > { %v6763_v57 = vpop.eup %6762  ;;  %6776 = vrcp.f32 %v2104_v15 }
 0x2ed   : > { %v6765_v49 = vpop.eup %6764  ;;  %v2766_v47 = vmul.f32 %v6763_v57, %v9383_v3 }
 0x2ee   : > { %v6767_v8 = vpop.eup %6766  ;;  %v2764_v51 = vmul.f32 %v6765_v49, %v9391_v13 }
 0x2ef   : > { %v6769_v9 = vpop.eup %6768  ;;  %v2765_v44 = vmul.f32 %v6767_v8, %v9393_v61 }
 0x2f0   : > { %v6771_v39 = vpop.eup %6770  ;;  %v2767_v12 = vmul.f32 %v6769_v9, %v9395_v23  ;;  %v2791_v1 = vadd.f32 %v9386_v56, %v2764_v51 }
 0x2f1   : > { %v6773_v14 = vpop.eup %6772  ;;  %v2768_v33 = vmul.f32 %v6771_v39, %v9397_v50  ;;  %v2798_v58 = vadd.f32 %v9389_v46, %v2765_v44  ;;  %v6390_v34 = vpack.c.bf16 %v2765_v44, %v2764_v51 }
 0x2f2   : > { %v2769_v52 = vmul.f32 %v6773_v14, %v9399_v21  ;;  %v2792_v0 = vadd.f32 %v2791_v1, %v2766_v47  ;;  %v6394_v13 = vpack.c.bf16 %v2767_v12, %v2766_v47 }
 0x2f3   : > { %v2799_v2 = vadd.f32 %v2798_v58, %v2767_v12  ;;  %6391 = vmatprep.subr.bf16.mxu0 %v6390_v34  ;;  %v6775_v3 = vpop.eup %6774 }
 0x2f4   : > { %v2793_v63 = vadd.f32 %v2792_v0, %v2768_v33  ;;  %6393 = vmatpush3.bf16.xpose.msra.mxu0 %v6392_v42  ;;  %v6398_v61 = vpack.c.bf16 %v2769_v52, %v2768_v33  ;;  %v2151_v23 = vmul.f32 %v6775_v3, %v9425_v20  ;;  %v12215_v0 = vld [vmem:[#allocation15_spill] sm:$0xff] }
 0x2f5   : > { %v2800_v45 = vadd.f32 %v2799_v2, %v2769_v52  ;;  %6395 = vmatprep.subr.bf16.mxu0 %v6394_v13 }
 0x2f6   : > { %v6777_v56 = vpop.eup %6776  ;;  %v2175_v19 = vadd.f32 %v2174_v16, %v2151_v23  ;;  %v521_v16 = vld [vmem:[%s11722_s9] sm:$0xff] }
 0x2f7   : > { %v2152_v50 = vmul.f32 %v6777_v56, %v2040_v59  ;;  %v12214_v59 = vld [vmem:[#allocation14_spill] sm:$0xff] }
 0x2f8   : > { %v2801_v32 = vadd.f32 %v2793_v63, %v2175_v19 }
 0x2f9   : > { %v2182_v46 = vadd.f32 %v2181_v36, %v2152_v50  ;;  %v6400_v24 = vpack.c.bf16 %v2152_v50, %v2151_v23 }
 0x2fb   : > { %v2802_v28 = vadd.f32 %v2800_v45, %v2182_v46 }
 0x2fc   : > { %6397 = vmatpush3.bf16.xpose.msra.mxu0 %v6396_v48 }
 0x2fd   : > { %6399 = vmatprep.subr.bf16.mxu0 %v6398_v61  ;;  %v2803_v21 = vadd.f32 %v2802_v28, %v2801_v32 }
 0x2ff   : > { %v2804_v11 = vrot.slane %v2803_v21, 4 }
 0x301   : > { %v2805_v31 = vadd.f32 %v2804_v11, %v2803_v21 }
 0x303   : > { %v2806_v5 = vrot.slane %v2805_v31, 2 }
 0x304   : > { %6401 = vmatpush3.bf16.xpose.msra.mxu0 %v6400_v24 }
 0x305   : > { %6410 = vmatprep.subr.bf16.mxu0 %v12118_v37  ;;  %v2807_v42 = vadd.f32 %v2806_v5, %v2805_v31  ;;  %v522_v5 = vld [vmem:[%s11723_s10] sm:$0x1] }
 0x307   : > { %v2808_v35 = vrot.slane %v2807_v42, 1 }
 0x309   : > { %v2809_v20 = vadd.f32 %v2808_v35, %v2807_v42 }
 0x30a   : > { %v3158_v36 = vpop.trf.xlu0 }
 0x30b   : > { %v2810_v6 = vmul.f32 0.00390625, %v2809_v20 }
 0x30d   : > { %6235 = vmatmul.mubr.f32.vlgmr.msra.gmra.mrb[0].mxu1 %v2810_v6 }
 0x30e   : > { %6239 = vmatprep.mubr.msk.f32.mxu1 %vm7190_vm5, %v11831_v10  ;;  %6238 = vmatpush3.msra.mxu1 %v521_v16  ;;  %v3159_v48 = vpop.trf.xlu0  ;;  %v3190_v8 = vpop.trf.xlu1 }
 0x30f   : > { %6403 = vmatprep.subr.bf16.mxu1 %v12214_v59 }
 0x312   : > { %v3160_v27 = vpop.trf.xlu0  ;;  %v3191_v47 = vpop.trf.xlu1 }
 0x316   : > { %v3161_v30 = vpop.trf.xlu0  ;;  %v3192_v12 = vpop.trf.xlu1 }
 0x31a   : > { %v3162_v41 = vpop.trf.xlu0  ;;  %v3193_v14 = vpop.trf.xlu1 }
 0x31e   : > { %v3163_v49 = vpop.trf.xlu0  ;;  %v3194_v52 = vpop.trf.xlu1 }
 0x322   : > { %v3164_v51 = vpop.trf.xlu0  ;;  %v3195_v2 = vpop.trf.xlu1 }
 0x326   : > { %v3165_v39 = vpop.trf.xlu0  ;;  %v3196_v63 = vpop.trf.xlu1 }
 0x32a   : > { %v3166_v1 = vpop.trf.xlu0  ;;  %v3197_v45 = vpop.trf.xlu1 }
 0x32e   : > { %v3167_v58 = vpop.trf.xlu0  ;;  %v3198_v56 = vpop.trf.xlu1 }
 0x332   : > { %v3168_v13 = vpop.trf.xlu0  ;;  %v3199_v50 = vpop.trf.xlu1 }
 0x336   : > { %v3169_v3 = vpop.trf.xlu0  ;;  %v3200_v46 = vpop.trf.xlu1 }
 0x33a   : > { %v3170_v61 = vpop.trf.xlu0  ;;  %v3201_v24 = vpop.trf.xlu1 }
 0x33e   : > { %v3171_v23 = vpop.trf.xlu0  ;;  %v3202_v28 = vpop.trf.xlu1 }
 0x342   : > { %v3172_v19 = vpop.trf.xlu0  ;;  %v3203_v21 = vpop.trf.xlu1 }
 0x346   : > { %v3173_v32 = vpop.trf.xlu0  ;;  %v3204_v11 = vpop.trf.xlu1 }
 0x34a   : > { %v3205_v31 = vpop.trf.xlu1 }
 0x3e0   : > { %v2877_v7 = vpop.f32.mrb[0].mxu1 }
 0x3e1   : > { %v2878_v29 = vadd.f32 %v2877_v7, %v520_v25  ;;  %v6236_v15 = vpop.f32.mrb[1].mxu1 }
 0x3e3   : > { %v5828_v57 = vmul.f32 -1.442695, %v2878_v29 }
 0x3e5   : > { %6778 = vpow2.f32 %v5828_v57 }
 0x3ef   : > { %v6779_v9 = vpop.eup %6778 }
 0x3f0   : > { %v2884_v44 = vadd.f32 1.0, %v6779_v9 }
 0x3f2   : > { %6780 = vrcp.f32 %v2884_v44 }
 0x3fc   : > { %v6781_v33 = vpop.eup %6780 }
 0x3fd   : > { %v2887_v34 = vmul.f32 %v6781_v33, %v2878_v29 }
 0x3ff   : > { %6240 = vmatmul.mubr.msk.f32.vlgmr.msra.gmra.mrb[2].mxu1 %vm2888_vm6, %v2887_v34 }
 0x400   : > { %6405 = vmatpush3.bf16.msra.mxu1 %v12214_v59  ;;  %6250 = vmatprep.mubr.msk.f32.mxu1 %vm603_vm0, %v3158_v36  ;;  %v9500_v59 = vld [vmem:[%s11715_s2] ss:$0 sm:$0xff] }
 0x401   : > { %6407 = vmatprep.subr.bf16.mxu1 %v12215_v0 }
 0x404   : > { %6409 = vmatpush3.bf16.msra.mxu1 %v12215_v0 }
 0x407   : > { %6251 = vmatmul.mubr.msk.f32.vlgmr.msra.gmra.mrb[4].mxu1 %vm603_vm0, %v3159_v48 }
 0x408   : > { %6253 = vmatprep.mubr.msk.f32.mxu1 %vm603_vm0, %v3160_v27 }
 0x40b   : > { %6254 = vmatmul.mubr.msk.f32.gmra.mrb[6].mxu1 %vm603_vm0, %v3161_v30  ;;  %v9507_v30 = vld [vmem:[%s11716_s3] ss:$0 sm:$0xff] }
 0x40c   : > { %6256 = vmatprep.mubr.msk.f32.mxu1 %vm603_vm0, %v3162_v41 }
 0x40f   : > { %6257 = vmatmul.mubr.msk.f32.gmra.mrb[8].mxu1 %vm603_vm0, %v3163_v49 }
 0x410   : > { %6259 = vmatprep.mubr.msk.f32.mxu1 %vm603_vm0, %v3164_v51 }
 0x413   : > { %6260 = vmatmul.mubr.msk.f32.gmra.mrb[10].mxu1 %vm603_vm0, %v3165_v39 }
 0x414   : > { %6262 = vmatprep.mubr.msk.f32.mxu1 %vm603_vm0, %v3166_v1 }
 0x417   : > { %6263 = vmatmul.mubr.msk.f32.gmra.mrb[12].mxu1 %vm603_vm0, %v3167_v58 }
 0x418   : > { %6265 = vmatprep.mubr.msk.f32.mxu1 %vm603_vm0, %v3168_v13 }
 0x41b   : > { %6266 = vmatmul.mubr.msk.f32.gmra.mrb[14].mxu1 %vm603_vm0, %v3169_v3 }
 0x41c   : > { %6268 = vmatprep.mubr.msk.f32.mxu1 %vm603_vm0, %v3170_v61 }
 0x41f   : > { %6269 = vmatmul.mubr.msk.f32.gmra.mrb[16].mxu1 %vm603_vm0, %v3171_v23 }
 0x420   : > { %6271 = vmatprep.mubr.msk.f32.mxu1 %vm603_vm0, %v3172_v19 }
 0x423   : > { %6272 = vmatmul.mubr.msk.f32.gmra.mrb[18].mxu1 %vm603_vm0, %v3173_v32 }
 0x424   : > { %6274 = vmatprep.mubr.msk.f32.mxu1 %vm603_vm0, %v3190_v8 }
 0x427   : > { %6275 = vmatmul.mubr.msk.f32.gmra.mrb[20].mxu1 %vm603_vm0, %v3191_v47 }
 0x428   : > { %6277 = vmatprep.mubr.msk.f32.mxu1 %vm603_vm0, %v3192_v12 }
 0x42b   : > { %6278 = vmatmul.mubr.msk.f32.gmra.mrb[22].mxu1 %vm603_vm0, %v3193_v14 }
 0x42c   : > { %6280 = vmatprep.mubr.msk.f32.mxu1 %vm603_vm0, %v3194_v52 }
 0x42f   : > { %6281 = vmatmul.mubr.msk.f32.gmra.mrb[24].mxu1 %vm603_vm0, %v3195_v2 }
 0x430   : > { %6283 = vmatprep.mubr.msk.f32.mxu1 %vm603_vm0, %v3196_v63 }
 0x433   : > { %6284 = vmatmul.mubr.msk.f32.gmra.mrb[26].mxu1 %vm603_vm0, %v3197_v45 }
 0x434   : > { %6286 = vmatprep.mubr.msk.f32.mxu1 %vm603_vm0, %v3198_v56 }
 0x437   : > { %6287 = vmatmul.mubr.msk.f32.gmra.mrb[28].mxu1 %vm603_vm0, %v3199_v50 }
 0x438   : > { %6289 = vmatprep.mubr.msk.f32.mxu1 %vm603_vm0, %v3200_v46 }
 0x43b   : > { %6290 = vmatmul.mubr.msk.f32.gmra.mrb[30].mxu1 %vm603_vm0, %v3201_v24 }
 0x43c   : > { %6292 = vmatprep.mubr.msk.f32.mxu1 %vm603_vm0, %v3202_v28 }
 0x43f   : > { %6293 = vmatmul.mubr.msk.f32.gmra.mrb[32].mxu1 %vm603_vm0, %v3203_v21 }
 0x440   : > { %6295 = vmatprep.mubr.msk.f32.mxu1 %vm603_vm0, %v3204_v11 }
 0x443   : > { %6296 = vmatmul.mubr.msk.f32.gmra.mrb[34].mxu1 %vm603_vm0, %v3205_v31 }
 0x4d2   : > { %v2958_v42 = vpop.f32.mrb[2].mxu1 }
 0x4d3   : > { %v2959_v35 = vadd.f32 %v2958_v42, %v522_v5  ;;  %v6241_v20 = vpop.f32.mrb[3].mxu1 }
 0x4d5   : > { %v5830_v6 = vmul.f32 -1.442695, %v2959_v35 }
 0x4d7   : > { %6782 = vpow2.f32 %v5830_v6  ;;  %v523_v6 = vld [vmem:[%s11724_s11] sm:$0xff] }
 0x4da   : > { %v6252_v16 = vpop.f32.mrb[4].mxu1 }
 0x4db   : > { %v3528_v36 = vmul.f32 %v9500_v59, %v6252_v16  ;;  %v3368_v48 = vpop.f32.mrb[5].mxu1 }
 0x4dc   : > { %v3527_v27 = vmul.f32 %v9500_v59, %v3368_v48 }
 0x4dd   : > { %v9510_v25 = vadd.f32 %v9507_v30, %v3528_v36 }
 0x4de   : > { %v9513_v41 = vadd.f32 %v9507_v30, %v3527_v27  ;;  %v6255_v7 = vpop.f32.mrb[6].mxu1 }
 0x4df   : > { %v5872_v29 = vmul.f32 -1.442695, %v9510_v25  ;;  %v3530_v15 = vmul.f32 %v9500_v59, %v6255_v7  ;;  %v3378_v57 = vpop.f32.mrb[7].mxu1  ;;  %v12216_v7 = vld [vmem:[#allocation16_spill] sm:$0xff] }
 0x4e0   : > { %v5871_v49 = vmul.f32 -1.442695, %v9513_v41  ;;  %v3529_v8 = vmul.f32 %v9500_v59, %v3378_v57 }
 0x4e1   : > { %v6783_v51 = vpop.eup %6782  ;;  %6784 = vpow2.f32 %v5872_v29  ;;  %v9520_v47 = vadd.f32 %v9507_v30, %v3530_v15 }
 0x4e2   : > { %v2965_v9 = vadd.f32 1.0, %v6783_v51  ;;  %6786 = vpow2.f32 %v5871_v49  ;;  %v9523_v44 = vadd.f32 %v9507_v30, %v3529_v8  ;;  %v6258_v39 = vpop.f32.mrb[8].mxu1  ;;  %v524_v51 = vld [vmem:[%s11724_s11 + $0x8] sm:$0xff] }
 0x4e3   : > { %v5874_v12 = vmul.f32 -1.442695, %v9520_v47  ;;  %v3532_v1 = vmul.f32 %v9500_v59, %v6258_v39  ;;  %v3388_v14 = vpop.f32.mrb[9].mxu1 }
 0x4e4   : > { %6788 = vrcp.f32 %v2965_v9  ;;  %v5873_v33 = vmul.f32 -1.442695, %v9523_v44  ;;  %v3531_v58 = vmul.f32 %v9500_v59, %v3388_v14 }
 0x4e5   : > { %6790 = vpow2.f32 %v5874_v12  ;;  %v9530_v34 = vadd.f32 %v9507_v30, %v3532_v1 }
 0x4e6   : > { %6792 = vpow2.f32 %v5873_v33  ;;  %v9533_v52 = vadd.f32 %v9507_v30, %v3531_v58  ;;  %v6261_v0 = vpop.f32.mrb[10].mxu1 }
 0x4e7   : > { %v5876_v13 = vmul.f32 -1.442695, %v9530_v34  ;;  %v3534_v2 = vmul.f32 %v9500_v59, %v6261_v0  ;;  %v3398_v3 = vpop.f32.mrb[11].mxu1 }
 0x4e8   : > { %v5875_v63 = vmul.f32 -1.442695, %v9533_v52  ;;  %v3533_v61 = vmul.f32 %v9500_v59, %v3398_v3 }
 0x4e9   : > { %6794 = vpow2.f32 %v5876_v13  ;;  %v9540_v45 = vadd.f32 %v9507_v30, %v3534_v2 }
 0x4ea   : > { %6796 = vpow2.f32 %v5875_v63  ;;  %v9543_v23 = vadd.f32 %v9507_v30, %v3533_v61  ;;  %v6264_v56 = vpop.f32.mrb[12].mxu1 }
 0x4eb   : > { %v6785_v19 = vpop.eup %6784  ;;  %v5878_v50 = vmul.f32 -1.442695, %v9540_v45  ;;  %v3536_v32 = vmul.f32 %v9500_v59, %v6264_v56  ;;  %v3408_v46 = vpop.f32.mrb[13].mxu1 }
 0x4ec   : > { %v6787_v24 = vpop.eup %6786  ;;  %v3688_v28 = vadd.f32 1.0, %v6785_v19  ;;  %v5877_v21 = vmul.f32 -1.442695, %v9543_v23  ;;  %v3535_v11 = vmul.f32 %v9500_v59, %v3408_v46  ;;  %v525_v19 = vld [vmem:[%s11724_s11 + $0x10] sm:$0xff]  ;;  %v12217_v46 = vld [vmem:[#allocation33_spill] sm:$0xff] }
 0x4ed   : > { %v3687_v31 = vadd.f32 1.0, %v6787_v24  ;;  %6798 = vpow2.f32 %v5878_v50  ;;  %v9550_v5 = vadd.f32 %v9507_v30, %v3536_v32 }
 0x4ee   : > { %v6789_v42 = vpop.eup %6788  ;;  %6800 = vrcp.f32 %v3688_v28  ;;  %v9553_v35 = vadd.f32 %v9507_v30, %v3535_v11  ;;  %v6267_v20 = vpop.f32.mrb[14].mxu1 }
 0x4ef   : > { %v6791_v16 = vpop.eup %6790  ;;  %6802 = vrcp.f32 %v3687_v31  ;;  %v5880_v36 = vmul.f32 -1.442695, %v9550_v5  ;;  %v3538_v48 = vmul.f32 %v9500_v59, %v6267_v20  ;;  %v3418_v27 = vpop.f32.mrb[15].mxu1  ;;  %v2971_v29 = vrot.slane %v6789_v42, %v12216_v7 }
 0x4f0   : > { %v6793_v15 = vpop.eup %6792  ;;  %v3690_v57 = vadd.f32 1.0, %v6791_v16  ;;  %6804 = vpow2.f32 %v5877_v21  ;;  %v5879_v49 = vmul.f32 -1.442695, %v9553_v35  ;;  %v3537_v8 = vmul.f32 %v9500_v59, %v3418_v27  ;;  %v526_v21 = vld [vmem:[%s11724_s11 + $0x18] sm:$0xff] }
 0x4f1   : > { %v3689_v9 = vadd.f32 1.0, %v6793_v15  ;;  %6806 = vpow2.f32 %v5880_v36  ;;  %v9567_v39 = vadd.f32 %v9507_v30, %v3538_v48  ;;  %v2972_v12 = vmul.f32 %v2971_v29, %v523_v6 }
 0x4f2   : > { %6808 = vrcp.f32 %v3690_v57  ;;  %v9570_v1 = vadd.f32 %v9507_v30, %v3537_v8  ;;  %v6270_v14 = vpop.f32.mrb[16].mxu1  ;;  %v2973_v2 = vmul.f32 %v2971_v29, %v524_v51  ;;  %v2974_v6 = vmul.f32 %v2971_v29, %v525_v19  ;;  %v12218_v8 = vld [vmem:[#allocation24_spill] sm:$0xff] }
 0x4f3   : > { %v6795_v33 = vpop.eup %6794  ;;  %6810 = vrcp.f32 %v3689_v9  ;;  %v5882_v58 = vmul.f32 -1.442695, %v9567_v39  ;;  %v3540_v0 = vmul.f32 %v9500_v59, %v6270_v14  ;;  %v3428_v13 = vpop.f32.mrb[17].mxu1  ;;  %6043 = vmatprep.mubr.f32.mxu0 %v2972_v12 }
 0x4f4   : > { %v6797_v3 = vpop.eup %6796  ;;  %v3692_v63 = vadd.f32 1.0, %v6795_v33  ;;  %6812 = vpow2.f32 %v5879_v49  ;;  %v5881_v61 = vmul.f32 -1.442695, %v9570_v1  ;;  %v3539_v56 = vmul.f32 %v9500_v59, %v3428_v13  ;;  %6044 = vmatmul.mubr.f32.vlgmr.msra.gmra.mrb[32].mxu0 %v2972_v12  ;;  %v12221_v13 = vld [vmem:[#allocation18_spill] sm:$0xff] }
 0x4f5   : > { %v3691_v50 = vadd.f32 1.0, %v6797_v3  ;;  %6814 = vpow2.f32 %v5882_v58  ;;  %v9580_v32 = vadd.f32 %v9507_v30, %v3540_v0  ;;  %6045 = vmatprep.mubr.f32.mxu0 %v2973_v2  ;;  %6412 = vmatpush3.bf16.msra.mxu0 %v12217_v46  ;;  %v2975_v49 = vmul.f32 %v2971_v29, %v526_v21  ;;  %v12220_v0 = vld [vmem:[#allocation17_spill] sm:$0xff] }
 0x4f6   : > { %6816 = vrcp.f32 %v3692_v63  ;;  %v9584_v24 = vadd.f32 %v9507_v30, %v3539_v56  ;;  %v6273_v28 = vpop.f32.mrb[18].mxu1  ;;  %6413 = vmatprep.subr.bf16.mxu0 %v12118_v37 }
 0x4f7   : > { %v6799_v11 = vpop.eup %6798  ;;  %6818 = vrcp.f32 %v3691_v50  ;;  %v5884_v31 = vmul.f32 -1.442695, %v9580_v32  ;;  %v3542_v42 = vmul.f32 %v9500_v59, %v6273_v28  ;;  %v3438_v20 = vpop.f32.mrb[19].mxu1 }
 0x4f8   : > { %v6801_v16 = vpop.eup %6800  ;;  %v3694_v36 = vadd.f32 1.0, %v6799_v11  ;;  %6820 = vpow2.f32 %v5881_v61  ;;  %v3541_v48 = vmul.f32 %v9500_v59, %v3438_v20  ;;  %6046 = vmatmul.mubr.f32.gmra.mrb[34].mxu0 %v2973_v2  ;;  %v5883_v57 = vmul.f32 -1.442695, %v9584_v24 }
 0x4f9   : > { %v6803_v27 = vpop.eup %6802  ;;  %v9594_v15 = vmul.f32 %v6801_v16, %v9510_v25  ;;  %6822 = vpow2.f32 %v5884_v31  ;;  %6047 = vmatprep.mubr.f32.mxu0 %v2974_v6  ;;  %6415 = vmatpush3.bf16.msra.mxu0 %v12218_v8  ;;  %v9602_v12 = vadd.f32 %v9507_v30, %v3542_v42  ;;  %v12224_v31 = vld [vmem:[#allocation32_spill] sm:$0xff] }
 0x4fa   : > { %v6805_v51 = vpop.eup %6804  ;;  %v9599_v9 = vmul.f32 %v6803_v27, %v9513_v41  ;;  %6824 = vrcp.f32 %v3694_v36  ;;  %v9605_v14 = vadd.f32 %v9507_v30, %v3541_v48  ;;  %v9607_v25 = vpop.f32.mrb[20].mxu1  ;;  %6416 = vmatprep.subr.bf16.mxu0 %v12118_v37 }
 0x4fb   : > { %v6807_v33 = vpop.eup %6806  ;;  %v3816_v29 = vrot.slane %v9594_v15, 7  ;;  %v3976_v58 = vrot.slane %v9594_v15, 1  ;;  %v4170_v41 = vmul.f32 %v9594_v15, %v12220_v0  ;;  %v4312_v2 = vmul.f32 %v9594_v15, %v12221_v13  ;;  %v9616_v3 = vpop.f32.mrb[21].mxu1 }
 0x4fc   : > { %12219 = vst [vmem:[#allocation27_spill] sm:$0xff] %v9599_v9  ;;  %v6809_v63 = vpop.eup %6808  ;;  %v11830_v61 = vrot.slane %v9599_v9, 7  ;;  %v11829_v56 = vrot.slane %v9599_v9, 1  ;;  %v9622_v19 = vmul.f32 %v9599_v9, %v12220_v0  ;;  %v9626_v50 = vmul.f32 %v9599_v9, %v12221_v13  ;;  %6048 = vmatmul.mubr.f32.gmra.mrb[36].mxu0 %v2974_v6 }
 0x4fd   : > { %v6811_v46 = vpop.eup %6810  ;;  %v9629_v28 = vmul.f32 %v6809_v63, %v9520_v47  ;;  %v9631_v21 = vadd.f32 1.0, %v6805_v51  ;;  %v9633_v11 = vadd.f32 1.0, %v6807_v33  ;;  %6826 = vpow2.f32 %v5883_v57  ;;  %6049 = vmatprep.mubr.f32.mxu0 %v2975_v49  ;;  %6418 = vmatpush3.bf16.msra.mxu0 %v12224_v31  ;;  %v12230_v33 = vld [vmem:[#allocation25_spill] sm:$0xff] }
 0x4fe   : > { %12222 = vst [vmem:[#allocation50_spill] sm:$0xff] %v9622_v19  ;;  %12223 = vst [vmem:[#allocation38_spill] sm:$0xff] %v9626_v50  ;;  %v9636_v42 = vpop.eup %6812  ;;  %v3877_v20 = vsel %vm1257_vm1, %v11830_v61, %v3816_v29  ;;  %v4037_v47 = vsel %vm1424_vm2, %v11829_v56, %v3976_v58  ;;  %v3785_v6 = vmul.f32 %v6811_v46, %v9523_v44  ;;  %v9648_v16 = vmul.f32 -1.442695, %v9602_v12  ;;  %v9650_v36 = vpop.f32.mrb[22].mxu1  ;;  %v12228_v61 = vld [vmem:[#allocation20_spill] sm:$0xff] }
 0x4ff   : > { %6419 = vmatprep.subr.bf16.mxu0 %v12118_v37  ;;  %v6815_v48 = vpop.eup %6814  ;;  %v4122_v27 = vmul.f32 %v3877_v20, %v7492_v17  ;;  %v9655_v15 = vmul.f32 %v4037_v47, %v7503_v26  ;;  %v4264_v57 = vmul.f32 %v3877_v20, %v7536_v54  ;;  %v9659_v8 = vmul.f32 %v4037_v47, %v7539_v55  ;;  %v9661_v51 = vpop.f32.mrb[23].mxu1 }
 0x500   : > { %v6817_v44 = vpop.eup %6816  ;;  %v4172_v46 = vmul.f32 %v9629_v28, %v12220_v0  ;;  %v9669_v31 = vmul.f32 %v9629_v28, %v12221_v13  ;;  %6050 = vmatmul.mubr.f32.gmra.mrb[38].mxu0 %v2975_v49  ;;  %v9674_v10 = vmul.f32 %v9629_v28, %v7546_v60  ;;  %v3817_v7 = vrot.slane %v3785_v6, 7 }
 0x501   : > { %12225 = vst [vmem:[#allocation37_spill] sm:$0xff] %v9655_v15  ;;  %12226 = vst [vmem:[#allocation35_spill] sm:$0xff] %v9659_v8  ;;  %v6819_v56 = vpop.eup %6818  ;;  %v4186_v20 = vadd.f32 %v4170_v41, %v4122_v27  ;;  %v4280_v47 = vadd.f32 %v4264_v57, %v12228_v61  ;;  %6421 = vmatpush3.bf16.msra.mxu0 %v12230_v33  ;;  %v12231_v63 = vmov 0.0   ;;  %v3977_v40 = vrot.slane %v3785_v6, 1 }
 0x502   : > { %12227 = vst [vmem:[#allocation28_spill] sm:$0xff] %v9669_v31  ;;  %12229 = vst [vmem:[#allocation26_spill] sm:$0xff] %v9674_v10  ;;  %6330 = vmatprep.mubr.msk.f32.mxu0 %vm7190_vm5, %v12231_v63  ;;  %v9679_v38 = vpop.eup %6820  ;;  %v4171_v53 = vmul.f32 %v3785_v6, %v12220_v0  ;;  %v9683_v49 = vmul.f32 %v3785_v6, %v12221_v13  ;;  %v9686_v41 = vmul.f32 %v3785_v6, %v7546_v60  ;;  %v9688_v27 = vpop.f32.mrb[24].mxu1 }
 0x503   : > { %6422 = vmatprep.subr.bf16.mxu0 %v12118_v37  ;;  %v9691_v57 = vpop.eup %6822  ;;  %v9693_v33 = vadd.f32 %v4312_v2, %v4280_v47  ;;  %v12235_v8 = vrot.slane %v9629_v28, 7  ;;  %v9704_v6 = vmul.f32 %v6817_v44, %v9530_v34  ;;  %v12238_v2 = vrot.slane %v9629_v28, 1 }
 0x504   : > { %12232 = vst [vmem:[#allocation46_spill] sm:$0xff] %v9683_v49  ;;  %12233 = vst [vmem:[#allocation44_spill] sm:$0xff] %v9686_v41  ;;  %v3876_v49 = vsel %vm1257_vm1, %v3816_v29, %v3817_v7  ;;  %v9706_v41 = vpop.f32.mrb[25].mxu1  ;;  %v6825_v15 = vpop.eup %6824  ;;  %6828 = vrcp.f32 %v9631_v21 }
 0x505   : > { %12234 = vst [vmem:[#allocation42_spill] sm:$0xff] %v9693_v33  ;;  %v9699_v50 = vsel %vm1257_vm1, %v3817_v7, %v12235_v8  ;;  %v9710_v61 = vsel %vm482_vm3, %v3876_v49, 0.0  ;;  %v9716_v47 = vsel %vm1424_vm2, %v3977_v40, %v12238_v2  ;;  %v4036_v8 = vsel %vm1424_vm2, %v3976_v58, %v3977_v40  ;;  %v12242_v2 = vld [vmem:[#allocation30_spill] sm:$0xff] }
 0x506   : > { %12236 = vst [vmem:[#allocation43_spill] sm:$0xff] %v9699_v50  ;;  %12237 = vst [vmem:[#allocation41_spill] sm:$0xff] %v9710_v61  ;;  %v4124_v34 = vmul.f32 %v9699_v50, %v7492_v17  ;;  %v9724_v7 = vsel %vm491_vm4, %v4036_v8, 0.0  ;;  %v4123_v29 = vmul.f32 %v9710_v61, %v7492_v17  ;;  %v4219_v44 = vmul.f32 %v9716_v47, %v7503_v26  ;;  %v9744_v9 = vpop.f32.mrb[26].mxu1 }
 0x507   : > { %12239 = vst [vmem:[#allocation40_spill] sm:$0xff] %v9716_v47  ;;  %12240 = vst [vmem:[#allocation99_spill] sm:$0xff] %v9724_v7  ;;  %v9732_v49 = vmul.f32 %v9710_v61, %v7536_v54  ;;  %6424 = vmatpush3.bf16.msra.mxu0 %v12242_v2  ;;  %v4218_v58 = vmul.f32 %v9724_v7, %v7503_v26  ;;  %v9741_v8 = vmul.f32 %v9699_v50, %v7536_v54  ;;  %v6827_v31 = vpop.eup %6826  ;;  %v9754_v2 = vpop.f32.mrb[27].mxu1 }
 0x508   : > { %v9735_v40 = vadd.f32 %v4172_v46, %v4124_v34  ;;  %6425 = vmatprep.subr.bf16.mxu0 %v12118_v37  ;;  %v4187_v10 = vadd.f32 %v4171_v53, %v4123_v29  ;;  %v4174_v46 = vmul.f32 %v9704_v6, %v12220_v0  ;;  %v9752_v34 = vmul.f32 %v9704_v6, %v12221_v13 }
 0x509   : > { %12241 = vst [vmem:[#allocation104_spill] sm:$0xff] %v9732_v49  ;;  %12244 = vst [vmem:[#allocation47_spill] sm:$0xff] %v9741_v8  ;;  %v9756_v8 = vadd.f32 %v4218_v58, %v4186_v20  ;;  %v9760_v19 = vmul.f32 %v9704_v6, %v7546_v60  ;;  %v9763_v47 = vmul.f32 %v6819_v56, %v9533_v52  ;;  %v3695_v49 = vadd.f32 1.0, %v9636_v42 }
 0x50a   : > { %12243 = vst [vmem:[#allocation62_spill] sm:$0xff] %v9735_v40  ;;  %12245 = vst [vmem:[#allocation36_spill] sm:$0xff] %v9752_v34  ;;  %v9766_v53 = vmul.f32 %v6825_v15, %v9540_v45  ;;  %v4235_v29 = vadd.f32 %v4219_v44, %v4187_v10  ;;  %v3698_v34 = vadd.f32 1.0, %v6815_v48  ;;  %v12249_v40 = vld [vmem:[#allocation31_spill] sm:$0xff]  ;;  %v9777_v45 = vpop.f32.mrb[28].mxu1  ;;  %v12251_v15 = vrot.slane %v9704_v6, 7 }
 0x50b   : > { %12246 = vst [vmem:[#allocation45_spill] sm:$0xff] %v9756_v8  ;;  %12247 = vst [vmem:[#allocation55_spill] sm:$0xff] %v9760_v19  ;;  %6427 = vmatpush3.bf16.msra.mxu0 %v12249_v40  ;;  %v3819_v20 = vrot.slane %v9763_v47, 7  ;;  %v4173_v19 = vmul.f32 %v9763_v47, %v12220_v0  ;;  %v4315_v52 = vmul.f32 %v9763_v47, %v12221_v13  ;;  %v9790_v48 = vpop.f32.mrb[29].mxu1  ;;  %v12253_v40 = vrot.slane %v9629_v28, 7 }
 0x50c   : > { %12248 = vst [vmem:[#allocation39_spill] sm:$0xff] %v9766_v53  ;;  %6428 = vmatprep.subr.bf16.mxu0 %v12118_v37  ;;  %v9782_v10 = vmul.f32 %v9763_v47, %v7546_v60  ;;  %v9788_v42 = vmul.f32 %v9766_v53, %v12220_v0  ;;  %v12254_v56 = vrot.slane %v9704_v6, 1  ;;  %v12255_v21 = vrot.slane %v9763_v47, 1 }
 0x50d   : > { %v9796_v44 = vsel %vm1257_vm1, %v3819_v20, %v12251_v15  ;;  %v3874_v58 = vsel %vm1257_vm1, %v12253_v40, %v3819_v20  ;;  %v9812_v8 = vmul.f32 %v9766_v53, %v12221_v13  ;;  %6830 = vrcp.f32 %v9633_v11 }
 0x50e   : > { %12250 = vst [vmem:[#allocation57_spill] sm:$0xff] %v9782_v10  ;;  %12252 = vst [vmem:[#allocation53_spill] sm:$0xff] %v9796_v44  ;;  %v9808_v10 = vsel %vm1424_vm2, %v12255_v21, %v12254_v56  ;;  %v9816_v15 = vsel %vm482_vm3, %v3874_v58, 0.0  ;;  %v4126_v50 = vmul.f32 %v9796_v44, %v7492_v17  ;;  %v9824_v40 = vmul.f32 %v9796_v44, %v7536_v54  ;;  %v9837_v61 = vpop.f32.mrb[30].mxu1 }
 0x50f   : > { %12256 = vst [vmem:[#allocation51_spill] sm:$0xff] %v9808_v10  ;;  %12257 = vst [vmem:[#allocation54_spill] sm:$0xff] %v9812_v8  ;;  %v4221_v20 = vmul.f32 %v9808_v10, %v7503_v26  ;;  %6430 = vmatpush3.bf16.msra.mxu0 %v9207_v18  ;;  %v4125_v56 = vmul.f32 %v9816_v15, %v7492_v17  ;;  %v4267_v21 = vmul.f32 %v9816_v15, %v7536_v54 }
 0x510   : > { %12258 = vst [vmem:[#allocation52_spill] sm:$0xff] %v9816_v15  ;;  %12259 = vst [vmem:[#allocation101_spill] sm:$0xff] %v9824_v40  ;;  %v4363_v58 = vmul.f32 %v9808_v10, %v7539_v55  ;;  %v9835_v8 = vmul.f32 %v9766_v53, %v7546_v60  ;;  %6431 = vmatprep.subr.bf16.mxu0 %v12118_v37  ;;  %v9840_v40 = vadd.f32 %v4174_v46, %v4126_v50  ;;  %v9845_v15 = vpop.f32.mrb[31].mxu1 }
 0x511   : > { %v3697_v18 = vadd.f32 1.0, %v9679_v38  ;;  %v3700_v44 = vadd.f32 1.0, %v9691_v57  ;;  %v4189_v33 = vadd.f32 %v4173_v19, %v4125_v56  ;;  %v4283_v10 = vadd.f32 %v4267_v21, %v4235_v29 }
 0x512   : > { %12260 = vst [vmem:[#allocation49_spill] sm:$0xff] %v9835_v8  ;;  %12261 = vst [vmem:[#allocation103_spill] sm:$0xff] %v9840_v40  ;;  %6832 = vrcp.f32 %v3695_v49  ;;  %v3699_v7 = vadd.f32 1.0, %v6827_v31  ;;  %v5885_v8 = vmul.f32 -1.442695, %v9605_v14  ;;  %v3544_v37 = vmul.f32 %v9500_v59, %v9607_v25  ;;  %v9855_v57 = vpop.f32.mrb[32].mxu1  ;;  %v6829_v31 = vpop.eup %6828 }
 0x513   : > { %6834 = vrcp.f32 %v3698_v34  ;;  %v3543_v50 = vmul.f32 %v9500_v59, %v9616_v3  ;;  %6433 = vmatpush3.bf16.msra.mxu0 %v9210_v22  ;;  %v4237_v38 = vadd.f32 %v4221_v20, %v4189_v33  ;;  %v4331_v11 = vadd.f32 %v4315_v52, %v4283_v10  ;;  %v9866_v3 = vpop.f32.mrb[33].mxu1 }
 0x514   : > { %6836 = vrcp.f32 %v3697_v18  ;;  %v3546_v19 = vmul.f32 %v9500_v59, %v9650_v36  ;;  %6333 = vmatprep.subr.mxu0 %v12231_v63  ;;  %v9859_v49 = vadd.f32 %v9507_v30, %v3544_v37  ;;  %v3545_v22 = vmul.f32 %v9500_v59, %v9661_v51 }
 0x515   : > { %6838 = vrcp.f32 %v3700_v44  ;;  %v9862_v25 = vadd.f32 %v9507_v30, %v3543_v50  ;;  %v9868_v33 = vadd.f32 %v4363_v58, %v4331_v11  ;;  %v9871_v36 = vmul.f32 %v6829_v31, %v9543_v23 }
 0x516   : > { %6840 = vrcp.f32 %v3699_v7  ;;  %v9874_v46 = vadd.f32 %v9507_v30, %v3546_v19  ;;  %v5888_v34 = vmul.f32 -1.442695, %v9859_v49  ;;  %v9880_v52 = vadd.f32 %v9507_v30, %v3545_v22  ;;  %v9888_v44 = vpop.f32.mrb[34].mxu1 }
 0x517   : > { %12262 = vst [vmem:[#allocation105_spill] sm:$0xff] %v9868_v33  ;;  %6842 = vpow2.f32 %v9648_v16  ;;  %v5887_v29 = vmul.f32 -1.442695, %v9862_v25  ;;  %v3821_v51 = vrot.slane %v9871_v36, 7  ;;  %v11845_v10 = vrot.slane %v9871_v36, 1  ;;  %v9900_v21 = vpop.f32.mrb[35].mxu1  ;;  %v6831_v19 = vpop.eup %6830 }
 0x518   : > { %12263 = vst [vmem:[#allocation114_spill] sm:$0xff] %v9874_v46  ;;  %12264 = vst [vmem:[#allocation84_spill] sm:$0xff] %v9880_v52  ;;  %v4175_v23 = vmul.f32 %v9871_v36, %v12220_v0  ;;  %v4317_v7 = vmul.f32 %v9871_v36, %v12221_v13  ;;  %v9892_v16 = vmul.f32 %v9871_v36, %v7546_v60  ;;  %6844 = vpow2.f32 %v5885_v8 }
 0x519   : > { %v9895_v20 = vmul.f32 -1.442695, %v9874_v46  ;;  %v9898_v56 = vmul.f32 -1.442695, %v9880_v52  ;;  %v12266_v58 = vrot.slane %v9766_v53, 7  ;;  %v12268_v37 = vrot.slane %v9704_v6, 7 }
 0x51a   : > { %12265 = vst [vmem:[#allocation110_spill] sm:$0xff] %v9892_v16  ;;  %v12269_v8 = vrot.slane %v9766_v53, 1  ;;  %6846 = vpow2.f32 %v5888_v34 }
 0x51b   : > { %v9906_v18 = vsel %vm1257_vm1, %v3821_v51, %v12266_v58  ;;  %v3872_v50 = vsel %vm1257_vm1, %v12268_v37, %v3821_v51  ;;  %6848 = vpow2.f32 %v5887_v29 }
 0x51c   : > { %12267 = vst [vmem:[#allocation86_spill] sm:$0xff] %v9906_v18  ;;  %v9918_v11 = vsel %vm1424_vm2, %v11845_v10, %v12269_v8  ;;  %v9922_v31 = vsel %vm482_vm3, %v3872_v50, 0.0  ;;  %v4128_v22 = vmul.f32 %v9906_v18, %v7492_v17  ;;  %v9930_v58 = vmul.f32 %v9906_v18, %v7536_v54  ;;  %v6833_v37 = vpop.eup %6832 }
 0x51d   : > { %12270 = vst [vmem:[#allocation72_spill] sm:$0xff] %v9918_v11  ;;  %12271 = vst [vmem:[#allocation59_spill] sm:$0xff] %v9922_v31  ;;  %v4223_v51 = vmul.f32 %v9918_v11, %v7503_v26  ;;  %v4127_v8 = vmul.f32 %v9922_v31, %v7492_v17  ;;  %v4269_v34 = vmul.f32 %v9922_v31, %v7536_v54  ;;  %v6835_v63 = vpop.eup %6834 }
 0x51e   : > { %12272 = vst [vmem:[#allocation56_spill] sm:$0xff] %v9930_v58  ;;  %v4365_v50 = vmul.f32 %v9918_v11, %v7539_v55  ;;  %v9939_v10 = vmul.f32 %v6831_v19, %v9550_v5  ;;  %v9942_v16 = vadd.f32 %v9788_v42, %v4128_v22  ;;  %v9945_v33 = vmul.f32 %v6833_v37, %v9553_v35  ;;  %v6837_v18 = vpop.eup %6836 }
 0x51f   : > { %v9949_v58 = vmul.f32 %v9500_v59, %v9688_v27  ;;  %v4191_v31 = vadd.f32 %v4175_v23, %v4127_v8  ;;  %v4285_v40 = vadd.f32 %v4269_v34, %v4237_v38  ;;  %v6839_v19 = vpop.eup %6838 }
 0x520   : > { %12273 = vst [vmem:[#allocation67_spill] sm:$0xff] %v9939_v10  ;;  %12274 = vst [vmem:[#allocation64_spill] sm:$0xff] %v9942_v16  ;;  %v3824_v11 = vrot.slane %v9939_v10, 7  ;;  %v4178_v42 = vmul.f32 %v9939_v10, %v12220_v0  ;;  %v9957_v35 = vmul.f32 %v9939_v10, %v12221_v13  ;;  %v9961_v29 = vmul.f32 %v9939_v10, %v7546_v60  ;;  %v6841_v23 = vpop.eup %6840 }
 0x521   : > { %12275 = vst [vmem:[#allocation48_spill] sm:$0xff] %v9945_v33  ;;  %v3823_v27 = vrot.slane %v9945_v33, 7  ;;  %v4239_v38 = vadd.f32 %v4223_v51, %v4191_v31  ;;  %v4333_v22 = vadd.f32 %v4317_v7, %v4285_v40  ;;  %v4177_v8 = vmul.f32 %v9945_v33, %v12220_v0  ;;  %v9967_v34 = vpop.eup %6842 }
 0x522   : > { %12276 = vst [vmem:[#allocation69_spill] sm:$0xff] %v9957_v35  ;;  %12277 = vst [vmem:[#allocation58_spill] sm:$0xff] %v9961_v29  ;;  %v12279_v35 = vrot.slane %v9766_v53, 7  ;;  %v4319_v31 = vmul.f32 %v9945_v33, %v12221_v13  ;;  %v9981_v40 = vmul.f32 %v9945_v33, %v7546_v60  ;;  %v12283_v37 = vrot.slane %v9939_v10, 1  ;;  %v9999_v53 = vpop.eup %6844 }
 0x523   : > { %v9971_v5 = vsel %vm1257_vm1, %v3823_v27, %v3824_v11  ;;  %v9983_v7 = vadd.f32 %v4365_v50, %v4333_v22  ;;  %v12284_v16 = vrot.slane %v9945_v33, 1  ;;  %v10018_v10 = vmul.f32 %v6835_v63, %v9567_v39 }
 0x524   : > { %12278 = vst [vmem:[#allocation65_spill] sm:$0xff] %v9971_v5  ;;  %v3870_v29 = vsel %vm1257_vm1, %v12279_v35, %v3823_v27  ;;  %12280 = vst [vmem:[#allocation78_spill] sm:$0xff] %v9981_v40  ;;  %v4130_v27 = vmul.f32 %v9971_v5, %v7492_v17  ;;  %v10009_v40 = vmul.f32 %v9971_v5, %v7536_v54 }
 0x525   : > { %12281 = vst [vmem:[#allocation63_spill] sm:$0xff] %v9983_v7  ;;  %v9987_v51 = vsel %vm482_vm3, %v3870_v29, 0.0  ;;  %v9995_v35 = vsel %vm1424_vm2, %v12284_v16, %v12283_v37  ;;  %v10011_v16 = vpop.eup %6846  ;;  %12288 = vst [vmem:[#allocation115_spill] sm:$0xff] %v10018_v10  ;;  %v10021_v33 = vmul.f32 %v6837_v18, %v9570_v1  ;;  %v10035_v39 = vmul.f32 %v10018_v10, %v12221_v13 }
 0x526   : > { %12282 = vst [vmem:[#allocation61_spill] sm:$0xff] %v9987_v51  ;;  %12285 = vst [vmem:[#allocation102_spill] sm:$0xff] %v9995_v35  ;;  %v4129_v50 = vmul.f32 %v9987_v51, %v7492_v17  ;;  %v4225_v29 = vmul.f32 %v9995_v35, %v7503_v26  ;;  %v4271_v22 = vmul.f32 %v9987_v51, %v7536_v54  ;;  %v6849_v1 = vpop.eup %6848 }
 0x527   : > { %12286 = vst [vmem:[#allocation112_spill] sm:$0xff] %v10009_v40  ;;  %v10013_v37 = vadd.f32 %v4178_v42, %v4130_v27  ;;  %v4367_v7 = vmul.f32 %v9995_v35, %v7539_v55  ;;  %12289 = vst [vmem:[#allocation106_spill] sm:$0xff] %v10021_v33  ;;  %v10024_v51 = vmul.f32 %v6839_v19, %v9580_v32  ;;  %v3826_v42 = vrot.slane %v10018_v10, 7 }
 0x528   : > { %v4193_v52 = vadd.f32 %v4177_v8, %v4129_v50  ;;  %v4287_v46 = vadd.f32 %v4271_v22, %v4239_v38  ;;  %v10027_v40 = vmul.f32 %v6841_v23, %v9584_v24  ;;  %v11857_v27 = vrot.slane %v10018_v10, 1  ;;  %12291 = vst [vmem:[#allocation113_spill] sm:$0xff] %v10035_v39 }
 0x529   : > { %12287 = vst [vmem:[#allocation108_spill] sm:$0xff] %v10013_v37  ;;  %v4180_v35 = vmul.f32 %v10018_v10, %v12220_v0  ;;  %v10039_v32 = vmul.f32 %v10018_v10, %v7546_v60  ;;  %v3825_v24 = vrot.slane %v10021_v33, 7  ;;  %v11858_v19 = vrot.slane %v10021_v33, 1 }
 0x52a   : > { %12290 = vst [vmem:[#allocation107_spill] sm:$0xff] %v10027_v40  ;;  %v4241_v63 = vadd.f32 %v4225_v29, %v4193_v52  ;;  %v4335_v18 = vadd.f32 %v4319_v31, %v4287_v46  ;;  %v4179_v23 = vmul.f32 %v10021_v33, %v12220_v0  ;;  %v4321_v38 = vmul.f32 %v10021_v33, %v12221_v13 }
 0x52b   : > { %12292 = vst [vmem:[#allocation82_spill] sm:$0xff] %v10039_v32  ;;  %v10049_v8 = vmul.f32 %v10021_v33, %v7546_v60  ;;  %v10055_v46 = vsel %vm1257_vm1, %v3825_v24, %v3826_v42  ;;  %v3868_v31 = vsel %vm1257_vm1, %v3824_v11, %v3825_v24  ;;  %v4182_v32 = vmul.f32 %v10024_v51, %v12220_v0 }
 0x52c   : > { %v10051_v52 = vadd.f32 %v4367_v7, %v4335_v18  ;;  %12295 = vst [vmem:[#allocation70_spill] sm:$0xff] %v10055_v46  ;;  %v10062_v29 = vsel %vm482_vm3, %v3868_v31, 0.0  ;;  %v10070_v7 = vsel %vm1424_vm2, %v11858_v19, %v11857_v27  ;;  %v4132_v22 = vmul.f32 %v10055_v46, %v7492_v17 }
 0x52d   : > { %12293 = vst [vmem:[#allocation66_spill] sm:$0xff] %v10049_v8  ;;  %12296 = vst [vmem:[#allocation79_spill] sm:$0xff] %v10062_v29  ;;  %v10076_v11 = vmul.f32 %v10055_v46, %v7536_v54  ;;  %v4131_v18 = vmul.f32 %v10062_v29, %v7492_v17  ;;  %v4227_v24 = vmul.f32 %v10070_v7, %v7503_v26 }
 0x52e   : > { %12294 = vst [vmem:[#allocation68_spill] sm:$0xff] %v10051_v52  ;;  %12297 = vst [vmem:[#allocation60_spill] sm:$0xff] %v10070_v7  ;;  %v4273_v31 = vmul.f32 %v10062_v29, %v7536_v54  ;;  %v4369_v27 = vmul.f32 %v10070_v7, %v7539_v55  ;;  %v10086_v19 = vadd.f32 %v4180_v35, %v4132_v22  ;;  %v3827_v29 = vrot.slane %v10027_v40, 7 }
 0x52f   : > { %12298 = vst [vmem:[#allocation77_spill] sm:$0xff] %v10076_v11  ;;  %v10093_v8 = vmul.f32 %v10024_v51, %v12221_v13  ;;  %v4195_v52 = vadd.f32 %v4179_v23, %v4131_v18  ;;  %v10097_v39 = vmul.f32 %v10024_v51, %v7546_v60  ;;  %v4181_v22 = vmul.f32 %v10027_v40, %v12220_v0 }
 0x530   : > { %12299 = vst [vmem:[#allocation75_spill] sm:$0xff] %v10086_v19  ;;  %v4289_v46 = vadd.f32 %v4273_v31, %v4241_v63  ;;  %v4323_v50 = vmul.f32 %v10027_v40, %v12221_v13  ;;  %v4465_v7 = vmul.f32 %v10027_v40, %v7546_v60  ;;  %v12302_v63 = vrot.slane %v10024_v51, 7 }
 0x531   : > { %12300 = vst [vmem:[#allocation76_spill] sm:$0xff] %v10093_v8  ;;  %12301 = vst [vmem:[#allocation83_spill] sm:$0xff] %v10097_v39  ;;  %v4243_v8 = vadd.f32 %v4227_v24, %v4195_v52  ;;  %v3866_v31 = vsel %vm1257_vm1, %v3826_v42, %v3827_v29  ;;  %v12303_v39 = vrot.slane %v10024_v51, 1  ;;  %v12304_v19 = vrot.slane %v10027_v40, 1 }
 0x532   : > { %v4337_v23 = vadd.f32 %v4321_v38, %v4289_v46  ;;  %v3865_v18 = vsel %vm1257_vm1, %v3827_v29, %v12302_v63  ;;  %v3891_v35 = vsel %vm482_vm3, %v3866_v31, 0.0  ;;  %v3704_v11 = vadd.f32 1.0, %v10011_v16 }
 0x533   : > { %v4025_v10 = vsel %vm1424_vm2, %v12304_v19, %v12303_v39  ;;  %v4134_v38 = vmul.f32 %v3865_v18, %v7492_v17  ;;  %v10123_v52 = vmul.f32 %v3865_v18, %v7536_v54  ;;  %v4133_v24 = vmul.f32 %v3891_v35, %v7492_v17 }
 0x534   : > { %v4385_v46 = vadd.f32 %v4369_v27, %v4337_v23  ;;  %v4229_v42 = vmul.f32 %v4025_v10, %v7503_v26  ;;  %v4275_v29 = vmul.f32 %v3891_v35, %v7536_v54  ;;  %v4371_v31 = vmul.f32 %v4025_v10, %v7539_v55  ;;  %v10138_v27 = vld [vmem:[%s11717_s4 + $0x8] ss:$0 sm:$0xff] }
 0x535   : > { %12305 = vst [vmem:[#allocation74_spill] sm:$0xff] %v10123_v52  ;;  %v10128_v63 = vadd.f32 %v4182_v32, %v4134_v38  ;;  %v4417_v40 = vmul.f32 %v3891_v35, %v7553_v4  ;;  %v10133_v39 = vmul.f32 %v3865_v18, %v7553_v4  ;;  %v4197_v19 = vadd.f32 %v4181_v22, %v4133_v24 }
 0x536   : > { %v4291_v5 = vadd.f32 %v4275_v29, %v4243_v8  ;;  %v4513_v23 = vmul.f32 %v10138_v27, %v4025_v10  ;;  %v3702_v52 = vadd.f32 1.0, %v9967_v34  ;;  %v3701_v38 = vadd.f32 1.0, %v9999_v53 }
 0x537   : > { %12306 = vst [vmem:[#allocation85_spill] sm:$0xff] %v10133_v39  ;;  %v4433_v32 = vadd.f32 %v4417_v40, %v4385_v46  ;;  %v3703_v35 = vadd.f32 1.0, %v6849_v1  ;;  %v10144_v37 = vadd.f32 %v4229_v42, %v4197_v19  ;;  %v10148_v8 = vadd.f32 %v9507_v30, %v9949_v58 }
 0x538   : > { %v4339_v18 = vadd.f32 %v4323_v50, %v4291_v5  ;;  %6850 = vrcp.f32 %v3702_v52  ;;  %v3547_v10 = vmul.f32 %v9500_v59, %v9706_v41  ;;  %v3550_v34 = vmul.f32 %v9500_v59, %v9744_v9 }
 0x539   : > { %v4481_v22 = vadd.f32 %v4465_v7, %v4433_v32  ;;  %6852 = vrcp.f32 %v3701_v38  ;;  %v5892_v40 = vmul.f32 -1.442695, %v10148_v8  ;;  %v3549_v5 = vmul.f32 %v9500_v59, %v9754_v2 }
 0x53a   : > { %v10154_v53 = vadd.f32 %v4371_v31, %v4339_v18  ;;  %6854 = vrcp.f32 %v3704_v11  ;;  %v10162_v58 = vadd.f32 %v9507_v30, %v3547_v10  ;;  %v10165_v1 = vadd.f32 %v9507_v30, %v3550_v34 }
 0x53b   : > { %v10159_v16 = vadd.f32 %v4513_v23, %v4481_v22  ;;  %6856 = vrcp.f32 %v3703_v35  ;;  %v10169_v9 = vadd.f32 %v9507_v30, %v3549_v5  ;;  %v3552_v41 = vmul.f32 %v9500_v59, %v9777_v45 }
 0x53c   : > { %6858 = vpow2.f32 %v9895_v20  ;;  %v3551_v2 = vmul.f32 %v9500_v59, %v9790_v48  ;;  %v5891_v50 = vmul.f32 -1.442695, %v10162_v58  ;;  %v5894_v7 = vmul.f32 -1.442695, %v10165_v1 }
 0x53d   : > { %12307 = vst [vmem:[#allocation80_spill] sm:$0xff] %v10159_v16  ;;  %12308 = vst [vmem:[#allocation73_spill] sm:$0xff] %v10169_v9  ;;  %6860 = vpow2.f32 %v9898_v56  ;;  %v3554_v11 = vmul.f32 %v9500_v59, %v9837_v61  ;;  %v5893_v20 = vmul.f32 -1.442695, %v10169_v9  ;;  %v10182_v52 = vadd.f32 %v9507_v30, %v3552_v41 }
 0x53e   : > { %6862 = vpow2.f32 %v5892_v40  ;;  %v10185_v45 = vadd.f32 %v9507_v30, %v3551_v2  ;;  %v3553_v56 = vmul.f32 %v9500_v59, %v9845_v15  ;;  %v3556_v46 = vmul.f32 %v9500_v59, %v9855_v57 }
 0x53f   : > { %12309 = vst [vmem:[#allocation81_spill] sm:$0xff] %v10182_v52  ;;  %6864 = vpow2.f32 %v5891_v50  ;;  %v10188_v48 = vadd.f32 %v9507_v30, %v3554_v11  ;;  %v5896_v61 = vmul.f32 -1.442695, %v10182_v52  ;;  %v3555_v42 = vmul.f32 %v9500_v59, %v9866_v3 }
 0x540   : > { %12310 = vst [vmem:[#allocation89_spill] sm:$0xff] %v10185_v45  ;;  %6866 = vpow2.f32 %v5894_v7  ;;  %v5895_v24 = vmul.f32 -1.442695, %v10185_v45  ;;  %v10200_v31 = vadd.f32 %v9507_v30, %v3553_v56  ;;  %v10203_v19 = vadd.f32 %v9507_v30, %v3556_v46 }
 0x541   : > { %12311 = vst [vmem:[#allocation90_spill] sm:$0xff] %v10188_v48  ;;  %6868 = vpow2.f32 %v5893_v20  ;;  %v5898_v29 = vmul.f32 -1.442695, %v10188_v48  ;;  %v10206_v57 = vadd.f32 %v9507_v30, %v3555_v42  ;;  %v3558_v23 = vmul.f32 %v9500_v59, %v9888_v44 }
 0x542   : > { %12312 = vst [vmem:[#allocation71_spill] sm:$0xff] %v10200_v31  ;;  %12313 = vst [vmem:[#allocation87_spill] sm:$0xff] %v10203_v19  ;;  %v6851_v15 = vpop.eup %6850  ;;  %6870 = vpow2.f32 %v5896_v61  ;;  %v10212_v3 = vmul.f32 %v9500_v59, %v9900_v21  ;;  %v10218_v35 = vmul.f32 -1.442695, %v10200_v31  ;;  %v10221_v18 = vmul.f32 -1.442695, %v10203_v19 }
 0x543   : > { %12314 = vst [vmem:[#allocation93_spill] sm:$0xff] %v10206_v57  ;;  %v6853_v32 = vpop.eup %6852  ;;  %v10215_v38 = vmul.f32 %v6851_v15, %v9602_v12  ;;  %6872 = vpow2.f32 %v5895_v24  ;;  %v10225_v44 = vmul.f32 -1.442695, %v10206_v57  ;;  %v10228_v59 = vadd.f32 %v9507_v30, %v3558_v23 }
 0x544   : > { %v6855_v22 = vpop.eup %6854  ;;  %v3797_v10 = vmul.f32 %v6853_v32, %v9605_v14  ;;  %6874 = vpow2.f32 %v5898_v29  ;;  %v12316_v42 = vrot.slane %v10024_v51, 7 }
 0x545   : > { %v6857_v21 = vpop.eup %6856  ;;  %v3830_v12 = vrot.slane %v10215_v38, 7  ;;  %v11865_v34 = vrot.slane %v10215_v38, 1  ;;  %v4326_v40 = vmul.f32 %v10215_v38, %v12221_v13  ;;  %v10236_v5 = vmul.f32 %v10215_v38, %v7546_v60 }
 0x546   : > { %v10238_v14 = vpop.eup %6858  ;;  %v4776_v41 = vmul.f32 %v10215_v38, %v12220_v0  ;;  %v3829_v2 = vrot.slane %v3797_v10, 7  ;;  %v3989_v30 = vrot.slane %v3797_v10, 1  ;;  %v4325_v50 = vmul.f32 %v3797_v10, %v12221_v13 }
 0x547   : > { %12315 = vst [vmem:[#allocation91_spill] sm:$0xff] %v10236_v5  ;;  %v10243_v7 = vpop.eup %6860  ;;  %v4467_v11 = vmul.f32 %v3797_v10, %v7546_v60  ;;  %v4775_v20 = vmul.f32 %v3797_v10, %v12220_v0  ;;  %v10248_v56 = vmul.f32 %v6855_v22, %v9859_v49  ;;  %v10251_v46 = vmul.f32 %v6857_v21, %v9862_v25 }
 0x548   : > { %v10253_v61 = vpop.eup %6862  ;;  %v3863_v24 = vsel %vm1257_vm1, %v3829_v2, %v3830_v12  ;;  %v3864_v29 = vsel %vm1257_vm1, %v12316_v42, %v3829_v2  ;;  %v4023_v15 = vsel %vm1424_vm2, %v3989_v30, %v11865_v34  ;;  %v12317_v49 = vrot.slane %v10024_v51, 1 }
 0x549   : > { %v10269_v23 = vpop.eup %6864  ;;  %v3893_v32 = vsel %vm482_vm3, %v3864_v29, 0.0  ;;  %v4278_v10 = vmul.f32 %v3863_v24, %v7536_v54  ;;  %v4373_v21 = vmul.f32 %v4023_v15, %v7539_v55  ;;  %v4515_v34 = vmul.f32 %v10138_v27, %v4023_v15 }
 0x54a   : > { %v4024_v25 = vsel %vm1424_vm2, %v12317_v49, %v3989_v30  ;;  %v10279_v2 = vpop.eup %6866  ;;  %v4277_v30 = vmul.f32 %v3893_v32, %v7536_v54  ;;  %v4419_v29 = vmul.f32 %v3893_v32, %v7553_v4  ;;  %v4727_v5 = vmul.f32 %v3893_v32, %v7492_v17 }
 0x54b   : > { %v10275_v22 = vsel %vm491_vm4, %v4024_v25, 0.0  ;;  %v10289_v49 = vpop.eup %6868  ;;  %v10292_v25 = vmul.f32 %v3863_v24, %v7553_v4  ;;  %v4728_v16 = vmul.f32 %v3863_v24, %v7492_v17  ;;  %v11875_v45 = vrot.slane %v10248_v56, 1 }
 0x54c   : > { %12318 = vst [vmem:[#allocation88_spill] sm:$0xff] %v10275_v22  ;;  %v4230_v51 = vmul.f32 %v10275_v22, %v7503_v26  ;;  %v10286_v42 = vmul.f32 %v10275_v22, %v7539_v55  ;;  %v6871_v39 = vpop.eup %6870  ;;  %v4293_v57 = vadd.f32 %v4277_v30, %v10144_v37  ;;  %v4823_v22 = vmul.f32 %v4023_v15, %v7503_v26 }
 0x54d   : > { %12320 = vst [vmem:[#allocation116_spill] sm:$0xff] %v10292_v25  ;;  %v6873_v19 = vpop.eup %6872  ;;  %v4791_v31 = vadd.f32 %v4775_v20, %v4727_v5  ;;  %v10301_v48 = vadd.f32 %v4776_v41, %v4728_v16  ;;  %v11876_v25 = vrot.slane %v10248_v56, 7  ;;  %v10313_v16 = vmul.f32 %v10248_v56, %v12221_v13 }
 0x54e   : > { %12319 = vst [vmem:[#allocation94_spill] sm:$0xff] %v10286_v42  ;;  %v4246_v33 = vadd.f32 %v4230_v51, %v10128_v63  ;;  %v4435_v42 = vadd.f32 %v4419_v29, %v10154_v53  ;;  %v6875_v32 = vpop.eup %6874  ;;  %v4341_v24 = vadd.f32 %v4325_v50, %v4293_v57  ;;  %v10307_v63 = vmul.f32 %v10248_v56, %v7546_v60 }
 0x54f   : > { %v4839_v37 = vadd.f32 %v4823_v22, %v4791_v31  ;;  %v4778_v53 = vmul.f32 %v10248_v56, %v12220_v0  ;;  %v3831_v5 = vrot.slane %v10251_v46, 7  ;;  %v4469_v50 = vmul.f32 %v10251_v46, %v7546_v60 }
 0x550   : > { %v4294_v52 = vadd.f32 %v4278_v10, %v4246_v33  ;;  %v4483_v9 = vadd.f32 %v4467_v11, %v4435_v42  ;;  %12321 = vst [vmem:[#allocation111_spill] sm:$0xff] %v10307_v63  ;;  %v4389_v20 = vadd.f32 %v4373_v21, %v4341_v24  ;;  %v3991_v33 = vrot.slane %v10251_v46, 1 }
 0x551   : > { %v3861_v31 = vsel %vm1257_vm1, %v3831_v5, %v11876_v25  ;;  %v3862_v57 = vsel %vm1257_vm1, %v3830_v12, %v3831_v5  ;;  %v4777_v11 = vmul.f32 %v10251_v46, %v12220_v0  ;;  %v4919_v25 = vmul.f32 %v10251_v46, %v12221_v13 }
 0x552   : > { %v4342_v41 = vadd.f32 %v4326_v40, %v4294_v52  ;;  %v10316_v15 = vadd.f32 %v4515_v34, %v4483_v9  ;;  %v3895_v9 = vsel %vm482_vm3, %v3862_v57, 0.0  ;;  %v4021_v52 = vsel %vm1424_vm2, %v3991_v33, %v11875_v45 }
 0x553   : > { %v12323_v34 = vrot.slane %v10215_v38, 1  ;;  %v4422_v12 = vmul.f32 %v3861_v31, %v7553_v4  ;;  %v4421_v10 = vmul.f32 %v3895_v9, %v7553_v4  ;;  %v4517_v21 = vmul.f32 %v10138_v27, %v4021_v52 }
 0x554   : > { %12322 = vst [vmem:[#allocation21_spill] sm:$0xff] %v10316_v15  ;;  %v4729_v51 = vmul.f32 %v3895_v9, %v7492_v17  ;;  %v4730_v38 = vmul.f32 %v3861_v31, %v7492_v17  ;;  %v4871_v57 = vmul.f32 %v3895_v9, %v7536_v54  ;;  %v4872_v45 = vmul.f32 %v3861_v31, %v7536_v54 }
 0x555   : > { %v4022_v40 = vsel %vm1424_vm2, %v12323_v34, %v3991_v33  ;;  %v4437_v24 = vadd.f32 %v4421_v10, %v4389_v20  ;;  %v4825_v33 = vmul.f32 %v4021_v52, %v7503_v26  ;;  %v3708_v9 = vadd.f32 1.0, %v10253_v61 }
 0x556   : > { %v4054_v22 = vsel %vm491_vm4, %v4022_v40, 0.0  ;;  %v4793_v5 = vadd.f32 %v4777_v11, %v4729_v51  ;;  %v10353_v40 = vadd.f32 %v4778_v53, %v4730_v38  ;;  %v4887_v15 = vadd.f32 %v4871_v57, %v4839_v37  ;;  %v12330_v38 = vld [vmem:[#allocation42_spill] sm:$0xff] }
 0x557   : > { %v4374_v30 = vmul.f32 %v4054_v22, %v7539_v55  ;;  %v10347_v42 = vmul.f32 %v10138_v27, %v4054_v22  ;;  %v4824_v29 = vmul.f32 %v4054_v22, %v7503_v26  ;;  %v4485_v63 = vadd.f32 %v4469_v50, %v4437_v24  ;;  %v12331_v24 = vld [vmem:[#allocation41_spill] sm:$0xff] }
 0x558   : > { %v3706_v22 = vadd.f32 1.0, %v10238_v14  ;;  %v3705_v11 = vadd.f32 1.0, %v10243_v7  ;;  %v3707_v53 = vadd.f32 1.0, %v10269_v23  ;;  %v4935_v31 = vadd.f32 %v4919_v25, %v4887_v15  ;;  %v7058_v7 = vld [vmem:[%s11716_s3] ss:$0 sm:$0xff]  ;;  %v12329_v15 = vld [vmem:[#allocation99_spill] sm:$0xff] }
 0x559   : > { %12324 = vst [vmem:[#allocation109_spill] sm:$0xff] %v10347_v42  ;;  %v4390_v34 = vadd.f32 %v4374_v30, %v4342_v41  ;;  %v10358_v42 = vadd.f32 %v4825_v33, %v4793_v5  ;;  %v10366_v41 = vadd.f32 %v4517_v21, %v4485_v63  ;;  %v3710_v46 = vadd.f32 1.0, %v10279_v2  ;;  %v527_v23 = vld [vmem:[%s11725_s12] sm:$0xff]  ;;  %v12332_v33 = vld [vmem:[#allocation43_spill] sm:$0xff] }
 0x55a   : > { %6876 = vrcp.f32 %v3706_v22  ;;  %v3709_v50 = vadd.f32 1.0, %v10289_v49  ;;  %v3712_v37 = vadd.f32 1.0, %v6871_v39  ;;  %v3711_v10 = vadd.f32 1.0, %v6873_v19  ;;  %v528_v39 = vld [vmem:[%s11725_s12 + $0x8] sm:$0xff] }
 0x55b   : > { %v10361_v20 = vadd.f32 %v4422_v12, %v4390_v34  ;;  %12326 = vst [vmem:[#allocation121_spill] sm:$0xff] %v10366_v41  ;;  %6878 = vrcp.f32 %v3705_v11  ;;  %v3714_v14 = vadd.f32 1.0, %v6875_v32  ;;  %v5902_v12 = vmul.f32 -1.442695, %v10228_v59  ;;  %v12333_v34 = vld [vmem:[#allocation62_spill] sm:$0xff]  ;;  %v12335_v11 = vld [vmem:[#allocation40_spill] sm:$0xff] }
 0x55c   : > { %6880 = vrcp.f32 %v3708_v9  ;;  %v10375_v61 = vadd.f32 %v7058_v7, %v10212_v3  ;;  %v4840_v19 = vadd.f32 %v4824_v29, %v10301_v48  ;;  %v4967_v2 = vmul.f32 %v4021_v52, %v7539_v55 }
 0x55d   : > { %12325 = vst [vmem:[#allocation117_spill] sm:$0xff] %v10361_v20  ;;  %6882 = vrcp.f32 %v3707_v53  ;;  %v7191_v25 = vmov 0   ;;  %v12327_v3 = vrot.slane %v9763_v47, 1  ;;  %v12328_v32 = vrot.slane %v9629_v28, 1  ;;  %v529_v28 = vld [vmem:[%s11725_s12 + $0x10] sm:$0xff] }
 0x55e   : > { %6884 = vrcp.f32 %v3710_v46  ;;  %v5901_v49 = vmul.f32 -1.442695, %v10375_v61  ;;  %6520 = vset.pattern.permute.xlu0 %v7191_v25  ;;  %6521 = vset.pattern.permute.xlu1 %v7191_v25  ;;  %v4360_v21 = vmul.f32 %v12329_v15, %v7539_v55  ;;  %v4888_v48 = vadd.f32 %v4872_v45, %v4840_v19  ;;  %v12344_v15 = vld [vmem:[#allocation84_spill] sm:$0xff] }
 0x55f   : > { %v4034_v63 = vsel %vm1424_vm2, %v12328_v32, %v12327_v3  ;;  %6886 = vrcp.f32 %v3709_v50  ;;  %3010 = vperm.xlu0 %6520, %v527_v23   ;;  %3015 = vperm.xlu1 %6521, %v528_v39   ;;  %v10394_v52 = vadd.f32 %v4967_v2, %v4935_v31  ;;  %v10411_v5 = vmul.f32 %v12331_v24, %v7553_v4  ;;  %v530_v23 = vld [vmem:[%s11725_s12 + $0x18] sm:$0xff]  ;;  %v12342_v2 = vld [vmem:[#allocation114_spill] sm:$0xff] }
 0x560   : > { %v4042_v51 = vsel %vm491_vm4, %v4034_v63, 0.0  ;;  %6888 = vrcp.f32 %v3712_v37  ;;  %v4376_v29 = vadd.f32 %v4360_v21, %v12330_v38  ;;  %v10407_v45 = vadd.f32 %v10313_v16, %v4888_v48  ;;  %v12338_v37 = vld [vmem:[#allocation45_spill] sm:$0xff]  ;;  %v12345_v48 = vld [vmem:[#allocation28_spill] sm:$0xff] }
 0x561   : > { %v4220_v47 = vmul.f32 %v4042_v51, %v7503_v26  ;;  %v10403_v30 = vmul.f32 %v4042_v51, %v7539_v55  ;;  %6890 = vrcp.f32 %v3711_v10  ;;  %v4408_v57 = vmul.f32 %v12332_v33, %v7553_v4  ;;  %v12339_v10 = vld [vmem:[#allocation47_spill] sm:$0xff] }
 0x562   : > { %6892 = vrcp.f32 %v3714_v14  ;;  %v10420_v9 = vmul.f32 %v10138_v27, %v12335_v11  ;;  %v10423_v53 = vmul.f32 %v10138_v27, %v4042_v51  ;;  %v12336_v31 = vrot.slane %v9871_v36, 1  ;;  %v12340_v36 = vld [vmem:[#allocation52_spill] sm:$0xff] }
 0x563   : > { %v10416_v22 = vadd.f32 %v4220_v47, %v12333_v34  ;;  %6894 = vpow2.f32 %v10218_v35  ;;  %3020 = vperm.xlu1 %6521, %v529_v28   ;;  %v4424_v16 = vadd.f32 %v4408_v57, %v4376_v29  ;;  %v12337_v46 = vrot.slane %v9704_v6, 1 }
 0x564   : > { %v4282_v14 = vadd.f32 %v12339_v10, %v12338_v37  ;;  %v6877_v7 = vpop.eup %6876  ;;  %6896 = vpow2.f32 %v10221_v18  ;;  %v10444_v6 = vmul.f32 %v12335_v11, %v7539_v55  ;;  %v10448_v39 = vmul.f32 %v12340_v36, %v7553_v4  ;;  %v12343_v18 = vld [vmem:[#allocation26_spill] sm:$0xff] }
 0x565   : > { %12334 = vst [vmem:[#allocation118_spill] sm:$0xff] %v10416_v22  ;;  %v4032_v50 = vsel %vm1424_vm2, %v12337_v46, %v12336_v31  ;;  %v6879_v19 = vpop.eup %6878  ;;  %v10451_v25 = vmul.f32 %v6877_v7, %v12342_v2  ;;  %6898 = vpow2.f32 %v10225_v44  ;;  %v10455_v3 = vadd.f32 %v12343_v18, %v4424_v16 }
 0x566   : > { %v10440_v35 = vsel %vm491_vm4, %v4032_v50, 0.0  ;;  %12341 = vst [vmem:[#allocation119_spill] sm:$0xff] %v10448_v39  ;;  %v6881_v63 = vpop.eup %6880  ;;  %v10462_v21 = vmul.f32 %v6879_v19, %v12344_v15  ;;  %6900 = vpow2.f32 %v5902_v12  ;;  %v10465_v51 = vadd.f32 %v12345_v48, %v4282_v14 }
 0x567   : > { %v10459_v32 = vmul.f32 %v10440_v35, %v7503_v26  ;;  %v10469_v28 = vmul.f32 %v10440_v35, %v7539_v55  ;;  %v6883_v44 = vpop.eup %6882  ;;  %v3834_v47 = vrot.slane %v10451_v25, 7  ;;  %v10475_v29 = vmul.f32 %v10451_v25, %v12220_v0  ;;  %3025 = vperm.xlu1 %6521, %v530_v23  }
 0x568   : > { %v10479_v24 = vmul.f32 %v10451_v25, %v12221_v13  ;;  %v6885_v12 = vpop.eup %6884  ;;  %v3833_v33 = vrot.slane %v10462_v21, 7  ;;  %v11877_v57 = vrot.slane %v10462_v21, 1  ;;  %v4779_v34 = vmul.f32 %v10462_v21, %v12220_v0 }
 0x569   : > { %12346 = vst [vmem:[#allocation19_spill] sm:$0xff] %v10469_v28  ;;  %v4921_v11 = vmul.f32 %v10462_v21, %v12221_v13  ;;  %v6887_v16 = vpop.eup %6886  ;;  %v10488_v31 = vmul.f32 %v6881_v63, %v10148_v8  ;;  %v10491_v46 = vmul.f32 %v6883_v44, %v10162_v58  ;;  %v10494_v50 = vmul.f32 %v6885_v12, %v10165_v1  ;;  %v12349_v58 = vld [vmem:[#allocation73_spill] sm:$0xff] }
 0x56a   : > { %6902 = vpow2.f32 %v5901_v49  ;;  %v6889_v37 = vpop.eup %6888  ;;  %v12347_v10 = vrot.slane %v10248_v56, 7  ;;  %v12348_v7 = vrot.slane %v10248_v56, 1  ;;  %v10509_v23 = vmul.f32 %v6887_v16, %v12349_v58 }
 0x56b   : > { %v10513_v1 = vsel %vm1257_vm1, %v3833_v33, %v3834_v47  ;;  %v6891_v49 = vpop.eup %6890  ;;  %v10523_v2 = vmul.f32 %v10488_v31, %v12220_v0  ;;  %v10531_v48 = vmul.f32 %v10488_v31, %v12221_v13  ;;  %v11878_v44 = vrot.slane %v10491_v46, 7 }
 0x56c   : > { %v3860_v14 = vsel %vm1257_vm1, %v12347_v10, %v3833_v33  ;;  %v10506_v8 = vsel %vm1424_vm2, %v12348_v7, %v11877_v57  ;;  %12350 = vst [vmem:[#allocation23_spill] sm:$0xff] %v10509_v23  ;;  %v6893_v18 = vpop.eup %6892  ;;  %v4781_v16 = vmul.f32 %v10491_v46, %v12220_v0  ;;  %v10539_v10 = vmul.f32 %v10491_v46, %v12221_v13 }
 0x56d   : > { %v10517_v36 = vsel %vm482_vm3, %v3860_v14, 0.0  ;;  %12351 = vst [vmem:[#allocation120_spill] sm:$0xff] %v10531_v48  ;;  %v6895_v12 = vpop.eup %6894  ;;  %v3858_v57 = vsel %vm1257_vm1, %v3834_v47, %v11878_v44  ;;  %v10556_v14 = vmul.f32 %v10494_v50, %v12220_v0  ;;  %v12355_v44 = vrot.slane %v10488_v31, 7  ;;  %v12362_v48 = vld [vmem:[#allocation90_spill] sm:$0xff] }
 0x56e   : > { %v4731_v63 = vmul.f32 %v10517_v36, %v7492_v17  ;;  %v4873_v15 = vmul.f32 %v10517_v36, %v7536_v54  ;;  %12352 = vst [vmem:[#allocation22_spill] sm:$0xff] %v10539_v10  ;;  %v6897_v7 = vpop.eup %6896  ;;  %v10552_v19 = vsel %vm482_vm3, %v3858_v57, 0.0  ;;  %v4783_v57 = vmul.f32 %v10509_v23, %v12220_v0 }
 0x56f   : > { %v6899_v33 = vpop.eup %6898  ;;  %12353 = vst [vmem:[#allocation122_spill] sm:$0xff] %v10556_v14  ;;  %v4733_v47 = vmul.f32 %v10552_v19, %v7492_v17  ;;  %v10578_v20 = vmul.f32 %v10509_v23, %v12221_v13  ;;  %v10593_v10 = vmul.f32 %v6893_v18, %v12362_v48 }
 0x570   : > { %v10542_v58 = vadd.f32 %v4779_v34, %v4731_v63  ;;  %v4889_v56 = vadd.f32 %v4873_v15, %v10358_v42  ;;  %v10560_v34 = vmul.f32 %v10494_v50, %v12221_v13  ;;  %v11879_v42 = vrot.slane %v10509_v23, 7  ;;  %v6901_v63 = vpop.eup %6900 }
 0x571   : > { %12356 = vst [vmem:[#allocation95_spill] sm:$0xff] %v10578_v20  ;;  %v10586_v38 = vadd.f32 %v4781_v16, %v4733_v47  ;;  %12363 = vst [vmem:[#allocation14_spill] sm:$0xff] %v10593_v10  ;;  %v3716_v47 = vadd.f32 1.0, %v6897_v7 }
 0x572   : > { %12354 = vst [vmem:[#allocation34_spill] sm:$0xff] %v10560_v34  ;;  %v10563_v15 = vadd.f32 %v4921_v11, %v4889_v56  ;;  %v3856_v41 = vsel %vm1257_vm1, %v12355_v44, %v11879_v42  ;;  %v12357_v11 = vld [vmem:[#allocation81_spill] sm:$0xff]  ;;  %v3713_v44 = vadd.f32 1.0, %v6895_v12 }
 0x573   : > { %v10581_v56 = vmul.f32 %v6889_v37, %v12357_v11  ;;  %v12359_v34 = vld [vmem:[#allocation89_spill] sm:$0xff]  ;;  %v10590_v22 = vsel %vm482_vm3, %v3856_v41, 0.0  ;;  %v12368_v37 = vrot.slane %v10494_v50, 7  ;;  %v3715_v11 = vadd.f32 1.0, %v6899_v33 }
 0x574   : > { %v10584_v28 = vmul.f32 %v6891_v49, %v12359_v34  ;;  %12361 = vst [vmem:[#allocation96_spill] sm:$0xff] %v10590_v22  ;;  %v6903_v42 = vpop.eup %6902  ;;  %v4735_v20 = vmul.f32 %v10590_v22, %v7492_v17  ;;  %6904 = vrcp.f32 %v3713_v44  ;;  %v4056_v33 = vsel %vm491_vm4, %v10506_v8, 0.0 }
 0x575   : > { %12358 = vst [vmem:[#allocation92_spill] sm:$0xff] %v10581_v56  ;;  %v10601_v49 = vmul.f32 %v10581_v56, %v12220_v0  ;;  %v10605_v41 = vmul.f32 %v10581_v56, %v12221_v13  ;;  %6906 = vrcp.f32 %v3716_v47 }
 0x576   : > { %12360 = vst [vmem:[#allocation100_spill] sm:$0xff] %v10584_v28  ;;  %v11880_v18 = vrot.slane %v10584_v28, 7  ;;  %v4785_v12 = vmul.f32 %v10584_v28, %v12220_v0  ;;  %v10611_v16 = vadd.f32 %v4783_v57, %v4735_v20  ;;  %v10615_v34 = vmul.f32 %v10584_v28, %v12221_v13 }
 0x577   : > { %12364 = vst [vmem:[#allocation15_spill] sm:$0xff] %v10601_v49  ;;  %12365 = vst [vmem:[#allocation33_spill] sm:$0xff] %v10605_v41  ;;  %v10627_v41 = vmul.f32 %v10593_v10, %v12220_v0  ;;  %v10631_v20 = vmul.f32 %v10593_v10, %v12221_v13  ;;  %6908 = vrcp.f32 %v3715_v11  ;;  %v4968_v11 = vmul.f32 %v4056_v33, %v7539_v55 }
 0x578   : > { %12366 = vst [vmem:[#allocation24_spill] sm:$0xff] %v10611_v16  ;;  %12367 = vst [vmem:[#allocation17_spill] sm:$0xff] %v10615_v34  ;;  %v3854_v48 = vsel %vm1257_vm1, %v12368_v37, %v11880_v18  ;;  %v3718_v34 = vadd.f32 1.0, %v6901_v63  ;;  %v3717_v37 = vadd.f32 1.0, %v6903_v42  ;;  %v12372_v18 = vrot.slane %v10491_v46, 1 }
 0x579   : > { %12369 = vst [vmem:[#allocation18_spill] sm:$0xff] %v10627_v41  ;;  %12370 = vst [vmem:[#allocation32_spill] sm:$0xff] %v10631_v20  ;;  %v10635_v57 = vsel %vm482_vm3, %v3854_v48, 0.0  ;;  %v12373_v41 = vrot.slane %v10451_v25, 1  ;;  %v12375_v20 = vrot.slane %v10462_v21, 1  ;;  %v4732_v63 = vmul.f32 %v10513_v1, %v7492_v17 }
 0x57a   : > { %12371 = vst [vmem:[#allocation25_spill] sm:$0xff] %v10635_v57  ;;  %v4737_v49 = vmul.f32 %v10635_v57, %v7492_v17  ;;  %6910 = vrcp.f32 %v3718_v34 }
 0x57b   : > { %v4018_v22 = vsel %vm1424_vm2, %v12373_v41, %v12372_v18  ;;  %v12374_v44 = vmov %v12373_v41  ;;  %v10661_v41 = vmul.f32 %v10138_v27, %v4056_v33  ;;  %v10664_v18 = vmul.f32 %v4056_v33, %v7503_v26 }
 0x57c   : > { %v4019_v7 = vsel %vm1424_vm2, %v12375_v20, %v12374_v44  ;;  %v4058_v42 = vsel %vm491_vm4, %v4018_v22, 0.0  ;;  %v10658_v48 = vadd.f32 %v4785_v12, %v4737_v49  ;;  %v4796_v47 = vadd.f32 %v10475_v29, %v4732_v63 }
 0x57d   : > { %12377 = vst [vmem:[#allocation31_spill] sm:$0xff] %v10661_v41  ;;  %v4827_v8 = vmul.f32 %v4019_v7, %v7503_v26  ;;  %v4828_v20 = vmul.f32 %v4058_v42, %v7503_v26  ;;  %6912 = vrcp.f32 %v3717_v37  ;;  %v10671_v22 = vmul.f32 %v10513_v1, %v7536_v54 }
 0x57e   : > { %12376 = vst [vmem:[#allocation30_spill] sm:$0xff] %v10658_v48  ;;  %v10675_v49 = vmul.f32 %v4019_v7, %v7539_v55  ;;  %v10683_v29 = vmul.f32 %v4058_v42, %v7539_v55  ;;  %v5015_v37 = vmul.f32 %v10517_v36, %v7553_v4  ;;  %v4984_v44 = vadd.f32 %v4968_v11, %v10407_v45  ;;  %v6905_v41 = vpop.eup %6904 }
 0x57f   : > { %v10678_v12 = vadd.f32 %v4827_v8, %v10542_v58  ;;  %v10680_v34 = vadd.f32 %v4828_v20, %v4796_v47  ;;  %v5016_v63 = vmul.f32 %v10513_v1, %v7553_v4  ;;  %v5063_v33 = vmul.f32 %v10462_v21, %v7546_v60 }
 0x580   : > { %v5064_v58 = vmul.f32 %v10451_v25, %v7546_v60  ;;  %v5031_v47 = vadd.f32 %v5015_v37, %v10394_v52  ;;  %v5111_v8 = vmul.f32 %v10138_v27, %v4019_v7  ;;  %v5112_v20 = vmul.f32 %v10138_v27, %v4058_v42  ;;  %v12386_v37 = vld [vmem:[#allocation71_spill] sm:$0xff] }
 0x581   : > { %12378 = vst [vmem:[#allocation99_spill] sm:$0xff] %v10678_v12  ;;  %12379 = vst [vmem:[#allocation42_spill] sm:$0xff] %v10680_v34  ;;  %v4520_v36 = vadd.f32 %v10423_v53, %v10455_v3  ;;  %v5032_v45 = vadd.f32 %v5016_v63, %v4984_v44  ;;  %v12380_v11 = vrot.slane %v10488_v31, 7  ;;  %v12381_v1 = vrot.slane %v10491_v46, 7 }
 0x582   : > { %v12382_v25 = vrot.slane %v10509_v23, 1  ;;  %v12383_v52 = vrot.slane %v10488_v31, 1  ;;  %v12385_v53 = vrot.slane %v10491_v46, 1  ;;  %v10722_v44 = vmul.f32 %v6905_v41, %v12386_v37  ;;  %v12389_v37 = vld [vmem:[#allocation87_spill] sm:$0xff] }
 0x583   : > { %v10705_v21 = vsel %vm1257_vm1, %v12381_v1, %v12380_v11  ;;  %v5079_v63 = vadd.f32 %v5063_v33, %v5031_v47  ;;  %v10727_v11 = vld [vmem:[%s11718_s5] ss:$0 sm:$0xff]  ;;  %v6907_v47 = vpop.eup %6906 }
 0x584   : > { %v4016_v7 = vsel %vm1424_vm2, %v12383_v52, %v12382_v25  ;;  %v12384_v42 = vmov %v12383_v52  ;;  %12387 = vst [vmem:[#allocation41_spill] sm:$0xff] %v10722_v44  ;;  %v4536_v1 = vmul.f32 %v10727_v11, %v4520_v36  ;;  %v5080_v52 = vadd.f32 %v5064_v58, %v5032_v45  ;;  %v6909_v45 = vpop.eup %6908  ;;  %v12536_v43 = vld [vmem:[#allocation31_spill] sm:$0xff] }
 0x585   : > { %v10719_v3 = vsel %vm1424_vm2, %v12385_v53, %v12384_v42  ;;  %v10732_v25 = vsel %vm491_vm4, %v4016_v7, 0.0  ;;  %v4734_v42 = vmul.f32 %v10705_v21, %v7492_v17  ;;  %v4787_v7 = vmul.f32 %v10722_v44, %v12220_v0  ;;  %v10760_v53 = vld [vmem:[%s11719_s6] ss:$0 sm:$0xff]  ;;  %v6911_v12 = vpop.eup %6910 }
 0x586   : > { %v10738_v41 = vmul.f32 %v10719_v3, %v7503_v26  ;;  %v10742_v33 = vmul.f32 %v10732_v25, %v7503_v26  ;;  %v10750_v58 = vmul.f32 %v10722_v44, %v12221_v13  ;;  %v10753_v57 = vmul.f32 %v6907_v47, %v12389_v37 }
 0x587   : > { %v5127_v48 = vadd.f32 %v5111_v8, %v5079_v63  ;;  %v10755_v34 = vadd.f32 %v5112_v20, %v5080_v52  ;;  %v10763_v36 = vadd.f32 %v10760_v53, %v4536_v1  ;;  %v12391_v16 = vrot.slane %v10722_v44, 7  ;;  %v12396_v52 = vld [vmem:[#allocation93_spill] sm:$0xff]  ;;  %v6913_v14 = vpop.eup %6912 }
 0x588   : > { %12388 = vst [vmem:[#allocation43_spill] sm:$0xff] %v10750_v58  ;;  %12390 = vst [vmem:[#allocation62_spill] sm:$0xff] %v10753_v57  ;;  %v12392_v58 = vrot.slane %v10581_v56, 7  ;;  %v12393_v8 = vrot.slane %v10593_v10, 1  ;;  %v12394_v20 = vrot.slane %v10722_v44, 1  ;;  %v10780_v37 = vmul.f32 %v6909_v45, %v12396_v52 }
 0x589   : > { %v10783_v1 = vadd.f32 %v10523_v2, %v4734_v42  ;;  %v4004_v44 = vrot.slane %v10753_v57, 1  ;;  %v10797_v45 = vmul.f32 %v10753_v57, %v12220_v0  ;;  %v10801_v2 = vmul.f32 %v10753_v57, %v12221_v13 }
 0x58a   : > { %v3852_v47 = vsel %vm1257_vm1, %v12392_v58, %v12391_v16  ;;  %v10777_v63 = vsel %vm1424_vm2, %v12394_v20, %v12393_v8  ;;  %12397 = vst [vmem:[#allocation45_spill] sm:$0xff] %v10780_v37  ;;  %v11893_v42 = vrot.slane %v10780_v37, 7  ;;  %v4789_v20 = vmul.f32 %v10780_v37, %v12220_v0 }
 0x58b   : > { %12395 = vst [vmem:[#allocation40_spill] sm:$0xff] %v10777_v63  ;;  %v10787_v56 = vsel %vm482_vm3, %v3852_v47, 0.0  ;;  %v4835_v16 = vmul.f32 %v10777_v63, %v7503_v26  ;;  %12399 = vst [vmem:[#allocation52_spill] sm:$0xff] %v10797_v45  ;;  %v4931_v52 = vmul.f32 %v10780_v37, %v12221_v13  ;;  %v3814_v58 = vmul.f32 %v6911_v12, %v10228_v59 }
 0x58c   : > { %12398 = vst [vmem:[#allocation47_spill] sm:$0xff] %v10787_v56  ;;  %v4739_v8 = vmul.f32 %v10787_v56, %v7492_v17  ;;  %12400 = vst [vmem:[#allocation114_spill] sm:$0xff] %v10801_v2  ;;  %v12401_v45 = vrot.slane %v10593_v10, 7  ;;  %v3813_v56 = vmul.f32 %v6913_v14, %v10375_v61  ;;  %v5143_v47 = vmul.f32 %v10727_v11, %v5127_v48  ;;  %v12405_v48 = vld [vmem:[#allocation27_spill] sm:$0xff] }
 0x58d   : > { %v12403_v39 = vrot.slane %v10780_v37, 1  ;;  %v3846_v12 = vrot.slane %v3814_v58, 7  ;;  %v10833_v14 = vmul.f32 %v3814_v58, %v12221_v13 }
 0x58e   : > { %v4803_v63 = vadd.f32 %v4787_v7, %v4739_v8  ;;  %v3850_v2 = vsel %vm1257_vm1, %v12401_v45, %v11893_v42  ;;  %v4006_v7 = vrot.slane %v3814_v58, 1 }
 0x58f   : > { %v10820_v0 = vsel %vm482_vm3, %v3850_v2, 0.0  ;;  %v10826_v59 = vsel %vm1424_vm2, %v12403_v39, %v4004_v44  ;;  %12404 = vst [vmem:[#allocation84_spill] sm:$0xff] %v10833_v14  ;;  %v12406_v2 = vrot.slane %v12405_v48, 7  ;;  %v12407_v39 = vrot.slane %v12405_v48, 1 }
 0x590   : > { %12402 = vst [vmem:[#allocation26_spill] sm:$0xff] %v10820_v0  ;;  %v4851_v8 = vadd.f32 %v4835_v16, %v4803_v63  ;;  %v4741_v45 = vmul.f32 %v10820_v0, %v7492_v17  ;;  %v4883_v61 = vmul.f32 %v10820_v0, %v7536_v54  ;;  %v10844_v63 = vmul.f32 %v3814_v58, %v7546_v60 }
 0x591   : > { %v3878_v42 = vsel %vm1257_vm1, %v3846_v12, %v12406_v2  ;;  %v4038_v37 = vsel %vm1424_vm2, %v4006_v7, %v12407_v39  ;;  %v3845_v16 = vrot.slane %v3813_v56, 7 }
 0x592   : > { %12408 = vst [vmem:[#allocation28_spill] sm:$0xff] %v10844_v63  ;;  %v4805_v10 = vadd.f32 %v4789_v20, %v4741_v45  ;;  %v4899_v28 = vadd.f32 %v4883_v61, %v4851_v8  ;;  %v3879_v0 = vsel %vm482_vm3, %v3878_v42, 0.0  ;;  %v4070_v14 = vsel %vm491_vm4, %v4038_v37, 0.0  ;;  %v12412_v45 = vld [vmem:[#allocation50_spill] sm:$0xff]  ;;  %v12413_v63 = vld [vmem:[#allocation20_spill] sm:$0xff] }
 0x593   : > { %v4121_v23 = vmul.f32 %v3879_v0, %v7492_v17  ;;  %v4263_v2 = vmul.f32 %v3879_v0, %v7536_v54  ;;  %v10853_v48 = vmul.f32 %v4070_v14, %v7539_v55  ;;  %v10856_v39 = vmul.f32 %v10138_v27, %v4070_v14 }
 0x594   : > { %v4947_v58 = vadd.f32 %v4931_v52, %v4899_v28  ;;  %v3847_v20 = vsel %vm1257_vm1, %v3845_v16, %v3846_v12  ;;  %v12411_v8 = vrot.slane %v10753_v57, 7  ;;  %v4005_v37 = vrot.slane %v3813_v56, 1 }
 0x595   : > { %12409 = vst [vmem:[#allocation73_spill] sm:$0xff] %v10853_v48  ;;  %12410 = vst [vmem:[#allocation81_spill] sm:$0xff] %v10856_v39  ;;  %v4185_v61 = vadd.f32 %v12412_v45, %v4121_v23  ;;  %v4279_v0 = vadd.f32 %v4263_v2, %v12413_v63  ;;  %v4837_v14 = vmul.f32 %v10826_v59, %v7503_v26  ;;  %v12416_v23 = vld [vmem:[#allocation37_spill] sm:$0xff]  ;;  %v12417_v2 = vld [vmem:[#allocation38_spill] sm:$0xff] }
 0x596   : > { %v3848_v42 = vsel %vm1257_vm1, %v12411_v8, %v3845_v16  ;;  %v4007_v28 = vsel %vm1424_vm2, %v4005_v37, %v4006_v7  ;;  %v10874_v52 = vsel %vm1424_vm2, %v4004_v44, %v4005_v37  ;;  %v10878_v16 = vmul.f32 %v3847_v20, %v7536_v54 }
 0x597   : > { %v3909_v48 = vsel %vm482_vm3, %v3848_v42, 0.0  ;;  %12414 = vst [vmem:[#allocation89_spill] sm:$0xff] %v10874_v52  ;;  %v4233_v63 = vadd.f32 %v12416_v23, %v4185_v61  ;;  %v4327_v8 = vadd.f32 %v12417_v2, %v4279_v0  ;;  %v4853_v42 = vadd.f32 %v4837_v14, %v4805_v10  ;;  %v12418_v52 = vld [vmem:[#allocation104_spill] sm:$0xff]  ;;  %v12419_v23 = vld [vmem:[#allocation35_spill] sm:$0xff] }
 0x598   : > { %v4885_v12 = vmul.f32 %v3909_v48, %v7536_v54  ;;  %12415 = vst [vmem:[#allocation90_spill] sm:$0xff] %v10878_v16  ;;  %v4933_v45 = vmul.f32 %v3813_v56, %v12221_v13  ;;  %v4979_v39 = vmul.f32 %v10826_v59, %v7539_v55  ;;  %v4981_v7 = vmul.f32 %v4007_v28, %v7539_v55 }
 0x599   : > { %v5027_v44 = vmul.f32 %v3909_v48, %v7553_v4  ;;  %v10888_v37 = vmul.f32 %v3847_v20, %v7553_v4  ;;  %v4281_v57 = vadd.f32 %v12418_v52, %v4233_v63  ;;  %v5075_v61 = vmul.f32 %v3813_v56, %v7546_v60  ;;  %v12421_v63 = vld [vmem:[#allocation97_spill] sm:$0xff] }
 0x59a   : > { %v4901_v16 = vadd.f32 %v4885_v12, %v4853_v42  ;;  %v5123_v0 = vmul.f32 %v10138_v27, %v4007_v28  ;;  %v4995_v10 = vadd.f32 %v4979_v39, %v4947_v58  ;;  %v5144_v13 = vmul.f32 %v10727_v11, %v10755_v34 }
 0x59b   : > { %v10896_v14 = vadd.f32 %v10760_v53, %v5143_v47  ;;  %v4375_v2 = vadd.f32 %v12419_v23, %v4327_v8  ;;  %v5904_v20 = vmul.f32 -1.442695, %v10763_v36  ;;  %v4842_v52 = vadd.f32 %v10664_v18, %v10353_v40 }
 0x59c   : > { %v4949_v48 = vadd.f32 %v4933_v45, %v4901_v16  ;;  %v10904_v56 = vadd.f32 %v10738_v41, %v10586_v38  ;;  %v5043_v28 = vadd.f32 %v5027_v44, %v4995_v10  ;;  %v10907_v39 = vadd.f32 %v10760_v53, %v5144_v13  ;;  %v12420_v41 = vld [vmem:[#allocation44_spill] sm:$0xff]  ;;  %v12423_v44 = vld [vmem:[#allocation98_spill] sm:$0xff] }
 0x59d   : > { %v5919_v34 = vmul.f32 -1.442695, %v10896_v14  ;;  %v4423_v47 = vadd.f32 %v10411_v5, %v4375_v2  ;;  %6914 = vpow2.f32 %v5904_v20  ;;  %v10913_v12 = vadd.f32 %v10742_v33, %v10783_v1 }
 0x59e   : > { %v4997_v58 = vadd.f32 %v4981_v7, %v4949_v48  ;;  %v10917_v40 = vmul.f32 %v10705_v21, %v7536_v54  ;;  %v5091_v38 = vadd.f32 %v5075_v61, %v5043_v28  ;;  %v5920_v18 = vmul.f32 -1.442695, %v10907_v39  ;;  %v12424_v48 = vld [vmem:[#allocation103_spill] sm:$0xff] }
 0x59f   : > { %6916 = vpow2.f32 %v5919_v34  ;;  %v4471_v16 = vadd.f32 %v12420_v41, %v4423_v47  ;;  %v4890_v5 = vadd.f32 %v10671_v22, %v4842_v52  ;;  %v10925_v42 = vmul.f32 %v10719_v3, %v7539_v55  ;;  %v12427_v47 = vld [vmem:[#allocation51_spill] sm:$0xff] }
 0x5a0   : > { %v5045_v8 = vadd.f32 %v4997_v58, %v12421_v63  ;;  %v10929_v33 = vmul.f32 %v10732_v25, %v7539_v55  ;;  %v10931_v1 = vadd.f32 %v5123_v0, %v5091_v38  ;;  %6918 = vpow2.f32 %v5920_v18  ;;  %v12429_v41 = vld [vmem:[#allocation23_spill] sm:$0xff] }
 0x5a1   : > { %v4519_v45 = vadd.f32 %v10420_v9, %v4471_v16  ;;  %v4985_v7 = vadd.f32 %v10675_v49, %v10563_v15  ;;  %v4938_v22 = vadd.f32 %v10479_v24, %v4890_v5  ;;  %v5017_v10 = vmul.f32 %v10552_v19, %v7553_v4 }
 0x5a2   : > { %12422 = vst [vmem:[#allocation71_spill] sm:$0xff] %v10931_v1  ;;  %v10937_v61 = vadd.f32 %v5045_v8, %v12423_v44  ;;  %v5018_v13 = vmul.f32 %v10705_v21, %v7553_v4  ;;  %v5065_v23 = vmul.f32 %v10491_v46, %v7546_v60  ;;  %v5066_v9 = vmul.f32 %v10488_v31, %v7546_v60  ;;  %v12425_v46 = vld [vmem:[#allocation46_spill] sm:$0xff] }
 0x5a3   : > { %v4535_v0 = vmul.f32 %v10727_v11, %v4519_v45  ;;  %v5113_v15 = vmul.f32 %v10138_v27, %v10719_v3  ;;  %v4986_v49 = vadd.f32 %v10683_v29, %v4938_v22  ;;  %v5033_v24 = vadd.f32 %v5017_v10, %v4985_v7  ;;  %v12426_v3 = vld [vmem:[#allocation53_spill] sm:$0xff]  ;;  %v12431_v45 = vld [vmem:[#allocation100_spill] sm:$0xff] }
 0x5a4   : > { %v5114_v2 = vmul.f32 %v10138_v27, %v10732_v25  ;;  %v10956_v21 = vadd.f32 %v10459_v32, %v12424_v48  ;;  %v4329_v52 = vadd.f32 %v12425_v46, %v4281_v57  ;;  %v4378_v31 = vadd.f32 %v10403_v30, %v10465_v51 }
 0x5a5   : > { %v10959_v20 = vadd.f32 %v10760_v53, %v4535_v0  ;;  %v4410_v28 = vmul.f32 %v12426_v3, %v7553_v4  ;;  %v5034_v29 = vadd.f32 %v5018_v13, %v4986_v49  ;;  %v5081_v34 = vadd.f32 %v5065_v23, %v5033_v24  ;;  %v12436_v23 = vld [vmem:[#allocation119_spill] sm:$0xff]  ;;  %v12438_v3 = vld [vmem:[#allocation57_spill] sm:$0xff] }
 0x5a6   : > { %v4505_v25 = vmul.f32 %v10138_v27, %v12427_v47  ;;  %v4506_v32 = vmul.f32 %v10138_v27, %v10440_v35  ;;  %v4377_v38 = vadd.f32 %v10444_v6, %v4329_v52  ;;  %v12428_v57 = vrot.slane %v10494_v50, 7 }
 0x5a7   : > { %v5903_v58 = vmul.f32 -1.442695, %v10959_v20  ;;  %v4426_v18 = vadd.f32 %v4410_v28, %v4378_v31  ;;  %v12430_v30 = vrot.slane %v12429_v41, 7  ;;  %v6915_v16 = vpop.eup %6914  ;;  %v5082_v8 = vadd.f32 %v5066_v9, %v5034_v29 }
 0x5a8   : > { %v5129_v5 = vadd.f32 %v5113_v15, %v5081_v34  ;;  %v12432_v7 = vrot.slane %v12431_v45, 1  ;;  %v12433_v22 = vrot.slane %v10494_v50, 1  ;;  %v12435_v6 = vrot.slane %v12429_v41, 1  ;;  %v12437_v15 = vld [vmem:[#allocation55_spill] sm:$0xff] }
 0x5a9   : > { %v3855_v51 = vsel %vm1257_vm1, %v12430_v30, %v12428_v57  ;;  %v6917_v13 = vpop.eup %6916  ;;  %6920 = vpow2.f32 %v5903_v58  ;;  %v4616_v0 = vadd.f32 1.0, %v6915_v16  ;;  %v4425_v9 = vadd.f32 %v12436_v23, %v4377_v38  ;;  %v12439_v57 = vld [vmem:[#allocation122_spill] sm:$0xff] }
 0x5aa   : > { %v4014_v27 = vsel %vm1424_vm2, %v12433_v22, %v12432_v7  ;;  %v12434_v35 = vmov %v12433_v22  ;;  %v4474_v49 = vadd.f32 %v12437_v15, %v4426_v18  ;;  %v5223_v24 = vadd.f32 1.0, %v6917_v13  ;;  %v6919_v31 = vpop.eup %6918  ;;  %v12441_v15 = vld [vmem:[#allocation99_spill] sm:$0xff] }
 0x5ab   : > { %v4015_v10 = vsel %vm1424_vm2, %v12435_v6, %v12434_v35  ;;  %v5130_v48 = vadd.f32 %v5114_v2, %v5082_v8  ;;  %v5145_v46 = vmul.f32 %v10727_v11, %v5129_v5  ;;  %v4062_v52 = vsel %vm491_vm4, %v4014_v27, 0.0 }
 0x5ac   : > { %6922 = vrcp.f32 %v4616_v0  ;;  %v4473_v28 = vadd.f32 %v12438_v3, %v4425_v9  ;;  %v4522_v29 = vadd.f32 %v4506_v32, %v4474_v49  ;;  %v4736_v34 = vmul.f32 %v3855_v51, %v7492_v17 }
 0x5ad   : > { %v5224_v47 = vadd.f32 1.0, %v6919_v31  ;;  %6924 = vrcp.f32 %v5223_v24  ;;  %v5146_v58 = vmul.f32 %v10727_v11, %v5130_v48  ;;  %v10999_v38 = vadd.f32 %v10760_v53, %v5145_v46  ;;  %v12442_v24 = vld [vmem:[#allocation42_spill] sm:$0xff]  ;;  %v12443_v31 = vld [vmem:[#allocation96_spill] sm:$0xff] }
 0x5ae   : > { %v4521_v2 = vadd.f32 %v4505_v25, %v4473_v28  ;;  %v4538_v18 = vmul.f32 %v10727_v11, %v4522_v29  ;;  %v4800_v30 = vadd.f32 %v12439_v57, %v4736_v34  ;;  %v4831_v16 = vmul.f32 %v4015_v10, %v7503_v26  ;;  %v12440_v25 = vld [vmem:[#allocation24_spill] sm:$0xff]  ;;  %v12444_v34 = vld [vmem:[#allocation22_spill] sm:$0xff] }
 0x5af   : > { %6926 = vrcp.f32 %v5224_v47  ;;  %v11005_v8 = vadd.f32 %v10760_v53, %v5146_v58  ;;  %v5921_v32 = vmul.f32 -1.442695, %v10999_v38  ;;  %v4832_v5 = vmul.f32 %v4062_v52, %v7503_v26  ;;  %v12445_v58 = vld [vmem:[#allocation120_spill] sm:$0xff] }
 0x5b0   : > { %v4537_v7 = vmul.f32 %v10727_v11, %v4521_v2  ;;  %v11011_v22 = vadd.f32 %v10760_v53, %v4538_v18  ;;  %v11014_v27 = vadd.f32 %v4831_v16, %v12440_v25  ;;  %v4875_v35 = vmul.f32 %v10552_v19, %v7536_v54 }
 0x5b1   : > { %6928 = vpow2.f32 %v5921_v32  ;;  %v5922_v6 = vmul.f32 -1.442695, %v11005_v8  ;;  %v11019_v13 = vadd.f32 %v4832_v5, %v4800_v30  ;;  %v11022_v0 = vmul.f32 %v3855_v51, %v7536_v54 }
 0x5b2   : > { %v11025_v23 = vadd.f32 %v10760_v53, %v4537_v7  ;;  %v5906_v9 = vmul.f32 -1.442695, %v11011_v22  ;;  %v4891_v49 = vadd.f32 %v4875_v35, %v12441_v15  ;;  %v4892_v48 = vadd.f32 %v10917_v40, %v12442_v24  ;;  %v11052_v7 = vld [vmem:[%s11717_s4 + $0x8] ss:$0 sm:$0xff]  ;;  %v12446_v35 = vld [vmem:[#allocation48_spill] sm:$0xff] }
 0x5b3   : > { %6930 = vpow2.f32 %v5922_v6  ;;  %v11032_v19 = vmul.f32 %v4015_v10, %v7539_v55  ;;  %v11035_v46 = vmul.f32 %v4062_v52, %v7539_v55  ;;  %v5019_v3 = vmul.f32 %v12443_v31, %v7553_v4  ;;  %v6921_v28 = vpop.eup %6920 }
 0x5b4   : > { %v5905_v29 = vmul.f32 -1.442695, %v11025_v23  ;;  %6932 = vpow2.f32 %v5906_v9  ;;  %v4939_v47 = vadd.f32 %v12444_v34, %v4891_v49  ;;  %v4940_v2 = vadd.f32 %v12445_v58, %v4892_v48  ;;  %v12448_v9 = vld [vmem:[#allocation39_spill] sm:$0xff] }
 0x5b5   : > { %v4615_v18 = vadd.f32 1.0, %v6921_v28  ;;  %v5020_v40 = vmul.f32 %v3855_v51, %v7553_v4  ;;  %v5067_v57 = vmul.f32 %v12429_v41, %v7546_v60  ;;  %v5068_v30 = vmul.f32 %v10494_v50, %v7546_v60  ;;  %v12450_v28 = vld [vmem:[#allocation118_spill] sm:$0xff] }
 0x5b6   : > { %v6923_v16 = vpop.eup %6922  ;;  %6934 = vpow2.f32 %v5905_v29  ;;  %v4987_v32 = vadd.f32 %v10925_v42, %v4939_v47  ;;  %v4988_v5 = vadd.f32 %v10929_v33, %v4940_v2  ;;  %v5115_v25 = vmul.f32 %v11052_v7, %v4015_v10  ;;  %v12452_v47 = vld [vmem:[#allocation59_spill] sm:$0xff] }
 0x5b7   : > { %v6925_v51 = vpop.eup %6924  ;;  %6936 = vrcp.f32 %v4615_v18  ;;  %v11056_v41 = vmul.f32 %v6923_v16, %v10763_v36  ;;  %v5116_v50 = vmul.f32 %v11052_v7, %v4062_v52  ;;  %v12447_v6 = vrot.slane %v12446_v35, 1  ;;  %v12451_v52 = vld [vmem:[#allocation101_spill] sm:$0xff]  ;;  %v12453_v18 = vld [vmem:[#allocation86_spill] sm:$0xff] }
 0x5b8   : > { %v12449_v42 = vrot.slane %v12448_v9, 1  ;;  %v11066_v15 = vmul.f32 %v6925_v51, %v10896_v14  ;;  %v5035_v49 = vadd.f32 %v5019_v3, %v4987_v32  ;;  %v5036_v24 = vadd.f32 %v5020_v40, %v4988_v5  ;;  %v12454_v32 = vld [vmem:[#allocation64_spill] sm:$0xff] }
 0x5b9   : > { %v6927_v48 = vpop.eup %6926  ;;  %v4284_v29 = vadd.f32 %v12451_v52, %v12450_v28  ;;  %v4411_v58 = vmul.f32 %v12452_v47, %v7553_v4  ;;  %v4412_v40 = vmul.f32 %v12453_v18, %v7553_v4  ;;  %v12455_v51 = vld [vmem:[#allocation36_spill] sm:$0xff]  ;;  %v12459_v52 = vld [vmem:[#allocation110_spill] sm:$0xff] }
 0x5ba   : > { %v4030_v33 = vsel %vm1424_vm2, %v12449_v42, %v12447_v6  ;;  %v11079_v14 = vmul.f32 %v6927_v48, %v10907_v39  ;;  %v5083_v3 = vadd.f32 %v5067_v57, %v5035_v49  ;;  %v5084_v2 = vadd.f32 %v5068_v30, %v5036_v24  ;;  %v12456_v6 = vld [vmem:[#allocation105_spill] sm:$0xff]  ;;  %v12457_v42 = vld [vmem:[#allocation72_spill] sm:$0xff]  ;;  %v12458_v24 = vld [vmem:[#allocation19_spill] sm:$0xff] }
 0x5bb   : > { %v4046_v10 = vsel %vm491_vm4, %v4030_v33, 0.0  ;;  %v6929_v16 = vpop.eup %6928  ;;  %v4332_v35 = vadd.f32 %v12455_v51, %v4284_v29  ;;  %v4427_v9 = vadd.f32 %v4411_v58, %v12456_v6  ;;  %v4507_v33 = vmul.f32 %v11052_v7, %v12457_v42  ;;  %v12460_v18 = vld [vmem:[#allocation92_spill] sm:$0xff] }
 0x5bc   : > { %v4224_v36 = vmul.f32 %v4046_v10, %v7503_v26  ;;  %v11074_v34 = vmul.f32 %v4046_v10, %v7539_v55  ;;  %v6434_v39 = vpack.c.bf16 %v11079_v14, %v11066_v15  ;;  %v5225_v48 = vadd.f32 1.0, %v6929_v16 }
 0x5bd   : > { %v5131_v57 = vadd.f32 %v5115_v25, %v5083_v3  ;;  %v5132_v30 = vadd.f32 %v5116_v50, %v5084_v2  ;;  %v6931_v49 = vpop.eup %6930  ;;  %v4380_v28 = vadd.f32 %v12458_v24, %v4332_v35  ;;  %v4475_v47 = vadd.f32 %v12459_v52, %v4427_v9  ;;  %v12463_v35 = vld [vmem:[#allocation41_spill] sm:$0xff] }
 0x5be   : > { %v11084_v5 = vadd.f32 %v4224_v36, %v12454_v32  ;;  %v4508_v36 = vmul.f32 %v11052_v7, %v4046_v10  ;;  %v12461_v29 = vrot.slane %v12460_v18, 7  ;;  %v12462_v58 = vrot.slane %v12431_v45, 7  ;;  %v6933_v51 = vpop.eup %6932  ;;  %6435 = vmatprep.subr.bf16.mxu1 %v6434_v39 }
 0x5bf   : > { %v5226_v6 = vadd.f32 1.0, %v6931_v49  ;;  %6938 = vrcp.f32 %v5225_v48  ;;  %v5147_v25 = vmul.f32 %v10727_v11, %v5131_v57  ;;  %v5148_v50 = vmul.f32 %v10727_v11, %v5132_v30 }
 0x5c0   : > { %v3853_v32 = vsel %vm1257_vm1, %v12462_v58, %v12461_v29  ;;  %v4618_v3 = vadd.f32 1.0, %v6933_v51  ;;  %v4428_v2 = vadd.f32 %v4412_v40, %v4380_v28  ;;  %v4523_v16 = vadd.f32 %v4507_v33, %v4475_v47  ;;  %v6935_v24 = vpop.eup %6934  ;;  %v12468_v28 = vld [vmem:[#allocation49_spill] sm:$0xff] }
 0x5c1   : > { %v12464_v10 = vrot.slane %v12463_v35, 1  ;;  %v12465_v9 = vrot.slane %v12460_v18, 1  ;;  %6940 = vrcp.f32 %v5226_v6  ;;  %v11110_v39 = vadd.f32 %v10760_v53, %v5147_v25  ;;  %v6937_v30 = vpop.eup %6936 }
 0x5c2   : > { %v11113_v48 = vadd.f32 %v10760_v53, %v5148_v50  ;;  %v12467_v40 = vrot.slane %v12431_v45, 1  ;;  %v4617_v49 = vadd.f32 1.0, %v6935_v24  ;;  %6942 = vrcp.f32 %v4618_v3  ;;  %v12470_v24 = vld [vmem:[#allocation30_spill] sm:$0xff] }
 0x5c3   : > { %v4012_v42 = vsel %vm1424_vm2, %v12465_v9, %v12464_v10  ;;  %v12466_v57 = vmov %v12465_v9  ;;  %v4476_v52 = vadd.f32 %v12468_v28, %v4428_v2  ;;  %v4539_v47 = vmul.f32 %v10727_v11, %v4523_v16 }
 0x5c4   : > { %v4013_v33 = vsel %vm1424_vm2, %v12467_v40, %v12466_v57  ;;  %v11124_v29 = vmul.f32 %v6937_v30, %v10959_v20  ;;  %v5923_v58 = vmul.f32 -1.442695, %v11110_v39  ;;  %v5924_v51 = vmul.f32 -1.442695, %v11113_v48 }
 0x5c5   : > { %v4064_v6 = vsel %vm491_vm4, %v4012_v42, 0.0  ;;  %6944 = vrcp.f32 %v4617_v49  ;;  %v4524_v25 = vadd.f32 %v4508_v36, %v4476_v52  ;;  %v11131_v50 = vadd.f32 %v10760_v53, %v4539_v47  ;;  %v12469_v42 = vld [vmem:[#allocation15_spill] sm:$0xff] }
 0x5c6   : > { %v4738_v3 = vmul.f32 %v3853_v32, %v7492_v17  ;;  %v6436_v2 = vpack.c.bf16 %v11056_v41, %v11124_v29  ;;  %6946 = vpow2.f32 %v5923_v58  ;;  %v4833_v20 = vmul.f32 %v4013_v33, %v7503_v26 }
 0x5c7   : > { %v4834_v16 = vmul.f32 %v4064_v6, %v7503_v26  ;;  %6948 = vpow2.f32 %v5924_v51  ;;  %v4540_v10 = vmul.f32 %v10727_v11, %v4524_v25  ;;  %v5907_v9 = vmul.f32 -1.442695, %v11131_v50  ;;  %v12471_v25 = vld [vmem:[#allocation34_spill] sm:$0xff] }
 0x5c8   : > { %v4802_v36 = vadd.f32 %v12469_v42, %v4738_v3  ;;  %6437 = vmatpush3.bf16.xpose.msra.mxu1 %v6436_v2  ;;  %v11142_v57 = vadd.f32 %v4833_v20, %v12470_v24  ;;  %v4877_v40 = vmul.f32 %v12443_v31, %v7536_v54  ;;  %v11147_v30 = vmul.f32 %v3853_v32, %v7536_v54  ;;  %v12472_v2 = vld [vmem:[#allocation25_spill] sm:$0xff]  ;;  %v12473_v42 = vld [vmem:[#allocation95_spill] sm:$0xff] }
 0x5c9   : > { %v4894_v49 = vadd.f32 %v11022_v0, %v10913_v12  ;;  %v11152_v28 = vadd.f32 %v10760_v53, %v4540_v10  ;;  %6950 = vpow2.f32 %v5907_v9  ;;  %v11157_v47 = vmul.f32 %v4013_v33, %v7539_v55  ;;  %v6939_v58 = vpop.eup %6938 }
 0x5ca   : > { %v11154_v52 = vadd.f32 %v4834_v16, %v4802_v36  ;;  %v4893_v51 = vadd.f32 %v4877_v40, %v10904_v56  ;;  %v11162_v3 = vmul.f32 %v4064_v6, %v7539_v55  ;;  %v5021_v12 = vmul.f32 %v12472_v2, %v7553_v4 }
 0x5cb   : > { %v4942_v31 = vadd.f32 %v12471_v25, %v4894_v49  ;;  %v5273_v0 = vmul.f32 %v6939_v58, %v10999_v38  ;;  %v5908_v20 = vmul.f32 -1.442695, %v11152_v28  ;;  %v5022_v16 = vmul.f32 %v3853_v32, %v7553_v4  ;;  %v6941_v9 = vpop.eup %6940 }
 0x5cc   : > { %v5069_v10 = vmul.f32 %v12431_v45, %v7546_v60  ;;  %v4941_v56 = vadd.f32 %v12473_v42, %v4893_v51  ;;  %v5070_v24 = vmul.f32 %v12460_v18, %v7546_v60  ;;  %v5117_v40 = vmul.f32 %v11052_v7, %v4013_v33  ;;  %v6943_v49 = vpop.eup %6942  ;;  %v12476_v42 = vld [vmem:[#allocation67_spill] sm:$0xff] }
 0x5cd   : > { %v4990_v36 = vadd.f32 %v11035_v46, %v4942_v31  ;;  %v5274_v38 = vmul.f32 %v6941_v9, %v11005_v8  ;;  %v11178_v58 = vadd.f32 %v5273_v0, %v11066_v15  ;;  %6952 = vpow2.f32 %v5908_v20  ;;  %v12474_v46 = vld [vmem:[#allocation106_spill] sm:$0xff] }
 0x5ce   : > { %v5118_v32 = vmul.f32 %v11052_v7, %v4064_v6  ;;  %v4666_v45 = vmul.f32 %v6943_v49, %v11011_v22  ;;  %v4989_v51 = vadd.f32 %v11032_v19, %v4941_v56  ;;  %v12475_v31 = vrot.slane %v12474_v46, 1  ;;  %v12478_v22 = vld [vmem:[#allocation56_spill] sm:$0xff] }
 0x5cf   : > { %v5038_v25 = vadd.f32 %v5022_v16, %v4990_v36  ;;  %v12477_v18 = vrot.slane %v12476_v42, 1  ;;  %v6945_v1 = vpop.eup %6944  ;;  %v11190_v8 = vadd.f32 %v5274_v38, %v11079_v14  ;;  %v6438_v15 = vpack.c.bf16 %v5274_v38, %v5273_v0  ;;  %v12479_v0 = vld [vmem:[#allocation54_spill] sm:$0xff] }
 0x5d0   : > { %v4286_v20 = vadd.f32 %v12478_v22, %v10956_v21  ;;  %v6947_v19 = vpop.eup %6946  ;;  %v4665_v16 = vmul.f32 %v6945_v1, %v11025_v23  ;;  %v11198_v9 = vadd.f32 %v4666_v45, %v11056_v41  ;;  %v5037_v56 = vadd.f32 %v5021_v12, %v4989_v51 }
 0x5d1   : > { %v4028_v33 = vsel %vm1424_vm2, %v12477_v18, %v12475_v31  ;;  %v5086_v36 = vadd.f32 %v5070_v24, %v5038_v25  ;;  %v6949_v49 = vpop.eup %6948  ;;  %6439 = vmatprep.subr.bf16.mxu1 %v6438_v15  ;;  %v5227_v46 = vadd.f32 1.0, %v6947_v19  ;;  %v12480_v24 = vld [vmem:[#allocation108_spill] sm:$0xff]  ;;  %v12481_v15 = vld [vmem:[#allocation61_spill] sm:$0xff] }
 0x5d2   : > { %v4048_v6 = vsel %vm491_vm4, %v4028_v33, 0.0  ;;  %v4334_v38 = vadd.f32 %v12479_v0, %v4286_v20  ;;  %v11206_v21 = vadd.f32 %v4665_v16, %v11124_v29  ;;  %v6440_v42 = vpack.c.bf16 %v4666_v45, %v4665_v16  ;;  %v12482_v20 = vld [vmem:[#allocation77_spill] sm:$0xff] }
 0x5d3   : > { %v4226_v14 = vmul.f32 %v4048_v6, %v7503_v26  ;;  %v11203_v31 = vmul.f32 %v4048_v6, %v7539_v55  ;;  %v5228_v1 = vadd.f32 1.0, %v6949_v49  ;;  %v5085_v23 = vadd.f32 %v5069_v10, %v5037_v56  ;;  %v6951_v41 = vpop.eup %6950  ;;  %v12483_v10 = vld [vmem:[#allocation65_spill] sm:$0xff]  ;;  %v12485_v56 = vld [vmem:[#allocation63_spill] sm:$0xff]  ;;  %v11223_v49 = vpop.f32.mrb[32].mxu0 }
 0x5d4   : > { %6954 = vrcp.f32 %v5227_v46  ;;  %v5134_v12 = vadd.f32 %v5118_v32, %v5086_v36  ;;  %v4382_v25 = vadd.f32 %v11074_v34, %v4334_v38  ;;  %6441 = vmatpush3.bf16.xpose.msra.mxu1 %v6440_v42  ;;  %v4619_v18 = vadd.f32 1.0, %v6951_v41  ;;  %v12484_v32 = vld [vmem:[#allocation102_spill] sm:$0xff]  ;;  %v12489_v41 = vld [vmem:[#allocation45_spill] sm:$0xff] }
 0x5d5   : > { %v4242_v51 = vadd.f32 %v4226_v14, %v12480_v24  ;;  %6956 = vrcp.f32 %v5228_v1  ;;  %v5133_v33 = vadd.f32 %v5117_v40, %v5085_v23  ;;  %v4413_v22 = vmul.f32 %v12481_v15, %v7553_v4  ;;  %v12486_v38 = vld [vmem:[#allocation14_spill] sm:$0xff] }
 0x5d6   : > { %v5150_v29 = vmul.f32 %v10727_v11, %v5134_v12  ;;  %v4414_v19 = vmul.f32 %v12483_v10, %v7553_v4  ;;  %v4509_v16 = vmul.f32 %v11052_v7, %v12484_v32  ;;  %6958 = vrcp.f32 %v4619_v18 }
 0x5d7   : > { %v11214_v45 = vadd.f32 %v12482_v20, %v4242_v51  ;;  %v5149_v34 = vmul.f32 %v10727_v11, %v5133_v33  ;;  %v4429_v36 = vadd.f32 %v4413_v22, %v12485_v56  ;;  %v4510_v40 = vmul.f32 %v11052_v7, %v4048_v6  ;;  %v6953_v46 = vpop.eup %6952  ;;  %v11240_v51 = vpop.f32.mrb[33].mxu0  ;;  %v12493_v20 = vld [vmem:[#allocation58_spill] sm:$0xff] }
 0x5d8   : > { %v11226_v14 = vadd.f32 %v10760_v53, %v5150_v29  ;;  %v4430_v0 = vadd.f32 %v4414_v19, %v4382_v25  ;;  %v12487_v42 = vrot.slane %v12486_v38, 7  ;;  %v12488_v1 = vrot.slane %v12463_v35, 7  ;;  %v12492_v25 = vld [vmem:[#allocation78_spill] sm:$0xff] }
 0x5d9   : > { %v12490_v12 = vrot.slane %v12489_v41, 1  ;;  %v12491_v24 = vrot.slane %v12486_v38, 1  ;;  %v4620_v18 = vadd.f32 1.0, %v6953_v46  ;;  %v11243_v33 = vadd.f32 %v10760_v53, %v5149_v34 }
 0x5da   : > { %v3851_v23 = vsel %vm1257_vm1, %v12488_v1, %v12487_v42  ;;  %v4477_v15 = vadd.f32 %v12492_v25, %v4429_v36  ;;  %v5926_v29 = vmul.f32 -1.442695, %v11226_v14  ;;  %v4478_v10 = vadd.f32 %v12493_v20, %v4430_v0  ;;  %v11255_v42 = vpop.f32.mrb[34].mxu0  ;;  %v12494_v1 = vld [vmem:[#allocation18_spill] sm:$0xff] }
 0x5db   : > { %v4010_v6 = vsel %vm1424_vm2, %v12491_v24, %v12490_v12  ;;  %v4740_v19 = vmul.f32 %v3851_v23, %v7492_v17  ;;  %6960 = vrcp.f32 %v4620_v18  ;;  %v5925_v56 = vmul.f32 -1.442695, %v11243_v33  ;;  %v11261_v0 = vpop.f32.mrb[35].mxu0 }
 0x5dc   : > { %v4066_v22 = vsel %vm491_vm4, %v4010_v6, 0.0  ;;  %v4525_v46 = vadd.f32 %v4509_v16, %v4477_v15  ;;  %v4879_v34 = vmul.f32 %v12472_v2, %v7536_v54  ;;  %6962 = vpow2.f32 %v5926_v29  ;;  %12495 = vst [vmem:[#allocation87_spill] sm:$0xff] %v11261_v0  ;;  %v12496_v29 = vld [vmem:[#allocation47_spill] sm:$0xff] }
 0x5dd   : > { %v4836_v32 = vmul.f32 %v4066_v22, %v7503_v26  ;;  %v4526_v36 = vadd.f32 %v4510_v40, %v4478_v10  ;;  %v4804_v12 = vadd.f32 %v12494_v1, %v4740_v19  ;;  %v11259_v24 = vmul.f32 %v3851_v23, %v7536_v54 }
 0x5de   : > { %6964 = vpow2.f32 %v5925_v56  ;;  %v4541_v6 = vmul.f32 %v10727_v11, %v4525_v46  ;;  %v4895_v18 = vadd.f32 %v4879_v34, %v11014_v27  ;;  %v4896_v16 = vadd.f32 %v11147_v30, %v11019_v13  ;;  %v6955_v2 = vpop.eup %6954  ;;  %v12497_v27 = vld [vmem:[#allocation17_spill] sm:$0xff]  ;;  %v11281_v34 = vpop.f32.mrb[36].mxu0 }
 0x5df   : > { %v4542_v25 = vmul.f32 %v10727_v11, %v4526_v36  ;;  %v11268_v15 = vadd.f32 %v4836_v32, %v4804_v12  ;;  %v11271_v40 = vmul.f32 %v4066_v22, %v7539_v55  ;;  %v5023_v20 = vmul.f32 %v12496_v29, %v7553_v4  ;;  %v6957_v10 = vpop.eup %6956  ;;  %v12498_v13 = vld [vmem:[#allocation33_spill] sm:$0xff]  ;;  %12499 = vst [vmem:[#allocation93_spill] sm:$0xff] %v11281_v34  ;;  %v12523_v34 = vld [vmem:[#allocation83_spill] sm:$0xff] }
 0x5e0   : > { %v5275_v19 = vmul.f32 %v6955_v2, %v11110_v39  ;;  %v11277_v56 = vadd.f32 %v10760_v53, %v4541_v6  ;;  %v4943_v46 = vadd.f32 %v12497_v27, %v4895_v18  ;;  %v4944_v30 = vadd.f32 %v12498_v13, %v4896_v16  ;;  %v11290_v39 = vpop.f32.mrb[37].mxu0  ;;  %v6959_v6 = vpop.eup %6958 }
 0x5e1   : > { %v5276_v32 = vmul.f32 %v6957_v10, %v11113_v48  ;;  %v11285_v36 = vadd.f32 %v10760_v53, %v4542_v25  ;;  %v5024_v1 = vmul.f32 %v3851_v23, %v7553_v4  ;;  %v5071_v12 = vmul.f32 %v12463_v35, %v7546_v60  ;;  %12500 = vst [vmem:[#allocation27_spill] sm:$0xff] %v11290_v39  ;;  %v11305_v39 = vpop.f32.mrb[38].mxu0 }
 0x5e2   : > { %v11293_v2 = vadd.f32 %v11178_v58, %v5275_v19  ;;  %v5909_v18 = vmul.f32 -1.442695, %v11277_v56  ;;  %v4991_v16 = vadd.f32 %v11157_v47, %v4943_v46  ;;  %v4992_v48 = vadd.f32 %v11162_v3, %v4944_v30  ;;  %12501 = vst [vmem:[#allocation50_spill] sm:$0xff] %v11305_v39  ;;  %v12502_v3 = vld [vmem:[#allocation40_spill] sm:$0xff] }
 0x5e3   : > { %v11299_v25 = vadd.f32 %v11190_v8, %v5276_v32  ;;  %v6442_v10 = vpack.c.bf16 %v5276_v32, %v5275_v19  ;;  %v4667_v23 = vmul.f32 %v6959_v6, %v11131_v50  ;;  %v5910_v35 = vmul.f32 -1.442695, %v11285_v36  ;;  %v11313_v19 = vpop.f32.mrb[39].mxu0  ;;  %v12504_v32 = vld [vmem:[#allocation107_spill] sm:$0xff] }
 0x5e4   : > { %6966 = vpow2.f32 %v5909_v18  ;;  %v5039_v27 = vadd.f32 %v5023_v20, %v4991_v16  ;;  %v5040_v13 = vadd.f32 %v5024_v1, %v4992_v48  ;;  %v5072_v58 = vmul.f32 %v12486_v38, %v7546_v60  ;;  %12503 = vst [vmem:[#allocation20_spill] sm:$0xff] %v11313_v19  ;;  %v12506_v38 = vld [vmem:[#allocation115_spill] sm:$0xff] }
 0x5e5   : > { %6443 = vmatprep.subr.bf16.mxu1 %v6442_v10  ;;  %v11308_v47 = vadd.f32 %v11206_v21, %v4667_v23  ;;  %6968 = vpow2.f32 %v5910_v35  ;;  %v5119_v8 = vmul.f32 %v11052_v7, %v12502_v3  ;;  %v5120_v50 = vmul.f32 %v11052_v7, %v4066_v22  ;;  %v6961_v46 = vpop.eup %6960  ;;  %v12508_v21 = vld [vmem:[#allocation112_spill] sm:$0xff]  ;;  %v12509_v35 = vld [vmem:[#allocation113_spill] sm:$0xff] }
 0x5e6   : > { %v5087_v20 = vadd.f32 %v5071_v12, %v5039_v27  ;;  %v5088_v30 = vadd.f32 %v5072_v58, %v5040_v13  ;;  %v12505_v1 = vrot.slane %v12504_v32, 1  ;;  %v12507_v6 = vrot.slane %v12506_v38, 1  ;;  %v6963_v48 = vpop.eup %6962  ;;  %v12510_v27 = vld [vmem:[#allocation79_spill] sm:$0xff] }
 0x5e7   : > { %v4288_v16 = vadd.f32 %v12508_v21, %v11084_v5  ;;  %v4668_v10 = vmul.f32 %v6961_v46, %v11152_v28  ;;  %v4338_v12 = vadd.f32 %v12509_v35, %v11214_v45  ;;  %v4415_v13 = vmul.f32 %v12510_v27, %v7553_v4  ;;  %v12511_v46 = vld [vmem:[#allocation69_spill] sm:$0xff]  ;;  %v12512_v35 = vld [vmem:[#allocation75_spill] sm:$0xff] }
 0x5e8   : > { %v4026_v18 = vsel %vm1424_vm2, %v12507_v6, %v12505_v1  ;;  %v6965_v58 = vpop.eup %6964  ;;  %v5230_v32 = vadd.f32 1.0, %v6963_v48  ;;  %v5135_v38 = vadd.f32 %v5119_v8, %v5087_v20  ;;  %v5136_v19 = vadd.f32 %v5120_v50, %v5088_v30 }
 0x5e9   : > { %v4050_v22 = vsel %vm491_vm4, %v4026_v18, 0.0  ;;  %v11332_v5 = vadd.f32 %v11198_v9, %v4668_v10  ;;  %v6444_v6 = vpack.c.bf16 %v4668_v10, %v4667_v23  ;;  %v5229_v28 = vadd.f32 1.0, %v6965_v58  ;;  %v12513_v9 = vld [vmem:[#allocation70_spill] sm:$0xff] }
 0x5ea   : > { %v4228_v1 = vmul.f32 %v4050_v22, %v7503_v26  ;;  %v4336_v21 = vadd.f32 %v12511_v46, %v4288_v16  ;;  %6970 = vrcp.f32 %v5230_v32  ;;  %v5151_v18 = vmul.f32 %v10727_v11, %v5135_v38  ;;  %v12514_v16 = vld [vmem:[#allocation74_spill] sm:$0xff]  ;;  %v12516_v38 = vld [vmem:[#allocation60_spill] sm:$0xff] }
 0x5eb   : > { %v5152_v45 = vmul.f32 %v10727_v11, %v5136_v19  ;;  %6445 = vmatpush3.bf16.xpose.msra.mxu1 %v6444_v6  ;;  %6972 = vrcp.f32 %v5229_v28  ;;  %v4370_v8 = vmul.f32 %v4050_v22, %v7539_v55  ;;  %v4416_v20 = vmul.f32 %v12513_v9, %v7553_v4  ;;  %v12515_v19 = vld [vmem:[#allocation68_spill] sm:$0xff] }
 0x5ec   : > { %v4244_v27 = vadd.f32 %v4228_v1, %v12512_v35  ;;  %v4384_v50 = vadd.f32 %v11203_v31, %v4336_v21  ;;  %v11343_v23 = vadd.f32 %v10760_v53, %v5151_v18  ;;  %v4431_v10 = vadd.f32 %v4415_v13, %v12515_v19  ;;  %v12517_v21 = vld [vmem:[#allocation76_spill] sm:$0xff] }
 0x5ed   : > { %v11346_v30 = vadd.f32 %v10760_v53, %v5152_v45  ;;  %v4386_v58 = vadd.f32 %v4370_v8, %v4338_v12  ;;  %v4511_v1 = vmul.f32 %v11052_v7, %v12516_v38  ;;  %v4512_v31 = vmul.f32 %v11052_v7, %v4050_v22  ;;  %v12518_v45 = vld [vmem:[#allocation66_spill] sm:$0xff] }
 0x5ee   : > { %v4292_v48 = vadd.f32 %v12514_v16, %v4244_v27  ;;  %v4432_v32 = vadd.f32 %v4416_v20, %v4384_v50  ;;  %v6967_v6 = vpop.eup %6966  ;;  %v5927_v28 = vmul.f32 -1.442695, %v11343_v23  ;;  %v4479_v35 = vadd.f32 %v12518_v45, %v4431_v10  ;;  %v12519_v16 = vld [vmem:[#allocation85_spill] sm:$0xff]  ;;  %v12520_v12 = vld [vmem:[#allocation82_spill] sm:$0xff]  ;;  %v12521_v50 = vld [vmem:[#allocation88_spill] sm:$0xff] }
 0x5ef   : > { %v5928_v46 = vmul.f32 -1.442695, %v11346_v30  ;;  %v6969_v9 = vpop.eup %6968  ;;  %v4621_v27 = vadd.f32 1.0, %v6967_v6  ;;  %v4434_v13 = vadd.f32 %v12519_v16, %v4386_v58  ;;  %v4514_v20 = vmul.f32 %v11052_v7, %v12521_v50  ;;  %v12522_v22 = vld [vmem:[#allocation94_spill] sm:$0xff]  ;;  %v12525_v6 = vld [vmem:[#allocation116_spill] sm:$0xff]  ;;  %v12526_v45 = vld [vmem:[#allocation21_spill] sm:$0xff] }
 0x5f0   : > { %v4340_v18 = vadd.f32 %v12517_v21, %v4292_v48  ;;  %v4480_v8 = vadd.f32 %v12520_v12, %v4432_v32  ;;  %v4622_v19 = vadd.f32 1.0, %v6969_v9  ;;  %6974 = vpow2.f32 %v5927_v28  ;;  %v12524_v21 = vld [vmem:[#allocation80_spill] sm:$0xff] }
 0x5f1   : > { %v4527_v39 = vadd.f32 %v4511_v1, %v4479_v35  ;;  %6976 = vrcp.f32 %v4621_v27  ;;  %v4482_v0 = vadd.f32 %v12523_v34, %v4434_v13  ;;  %v4545_v10 = vmul.f32 %v10727_v11, %v12524_v21 }
 0x5f2   : > { %v4388_v38 = vadd.f32 %v12522_v22, %v4340_v18  ;;  %v4528_v48 = vadd.f32 %v4512_v31, %v4480_v8  ;;  %6978 = vrcp.f32 %v4622_v19  ;;  %v4547_v16 = vmul.f32 %v10727_v11, %v12526_v45  ;;  %v12527_v31 = vld [vmem:[#allocation91_spill] sm:$0xff] }
 0x5f3   : > { %v4543_v32 = vmul.f32 %v10727_v11, %v4527_v39  ;;  %6980 = vpow2.f32 %v5928_v46  ;;  %v4530_v28 = vadd.f32 %v4514_v20, %v4482_v0  ;;  %v11371_v1 = vadd.f32 %v10760_v53, %v4545_v10  ;;  %v12528_v39 = vld [vmem:[#allocation62_spill] sm:$0xff] }
 0x5f4   : > { %v4436_v58 = vadd.f32 %v12525_v6, %v4388_v38  ;;  %v4544_v18 = vmul.f32 %v10727_v11, %v4528_v48  ;;  %v6971_v34 = vpop.eup %6970  ;;  %v11378_v27 = vadd.f32 %v10760_v53, %v4547_v16  ;;  %v12529_v13 = vrot.slane %v12528_v39, 7  ;;  %v12531_v38 = vld [vmem:[#allocation109_spill] sm:$0xff] }
 0x5f5   : > { %v11375_v9 = vadd.f32 %v10760_v53, %v4543_v32  ;;  %v12530_v12 = vrot.slane %v12489_v41, 7  ;;  %v6973_v46 = vpop.eup %6972  ;;  %v5278_v8 = vmul.f32 %v6971_v34, %v11226_v14  ;;  %v4546_v50 = vmul.f32 %v10727_v11, %v4530_v28  ;;  %v12532_v16 = vld [vmem:[#allocation89_spill] sm:$0xff] }
 0x5f6   : > { %v4484_v35 = vadd.f32 %v12527_v31, %v4436_v58  ;;  %v11391_v20 = vadd.f32 %v10760_v53, %v4544_v18  ;;  %v5913_v19 = vmul.f32 -1.442695, %v11371_v1  ;;  %v5277_v22 = vmul.f32 %v6973_v46, %v11243_v33  ;;  %v12533_v28 = vld [vmem:[#allocation117_spill] sm:$0xff]  ;;  %v12534_v18 = vld [vmem:[#allocation111_spill] sm:$0xff] }
 0x5f7   : > { %v11386_v0 = vsel %vm1257_vm1, %v12530_v12, %v12529_v13  ;;  %v5911_v21 = vmul.f32 -1.442695, %v11375_v9  ;;  %v5915_v62 = vmul.f32 -1.442695, %v11378_v27  ;;  %v11399_v10 = vadd.f32 %v11299_v25, %v5278_v8 }
 0x5f8   : > { %v4532_v48 = vadd.f32 %v12531_v38, %v4484_v35  ;;  %v11402_v14 = vadd.f32 %v10760_v53, %v4546_v50  ;;  %v5912_v6 = vmul.f32 -1.442695, %v11391_v20  ;;  %6982 = vpow2.f32 %v5913_v19  ;;  %v12535_v35 = vld [vmem:[#allocation121_spill] sm:$0xff] }
 0x5f9   : > { %v11406_v58 = vadd.f32 %v11293_v2, %v5277_v22  ;;  %v6446_v32 = vpack.c.bf16 %v5278_v8, %v5277_v22  ;;  %6984 = vpow2.f32 %v5911_v21  ;;  %v11413_v25 = vsel %vm491_vm4, %v12532_v16, 0.0 }
 0x5fa   : > { %v4548_v33 = vmul.f32 %v10727_v11, %v4532_v48  ;;  %6986 = vpow2.f32 %v5912_v6  ;;  %v5914_v45 = vmul.f32 -1.442695, %v11402_v14  ;;  %v4486_v34 = vadd.f32 %v12534_v18, %v12533_v28  ;;  %v6975_v31 = vpop.eup %6974 }
 0x5fb   : > { %6447 = vmatprep.subr.bf16.mxu1 %v6446_v32  ;;  %6988 = vpow2.f32 %v5915_v62  ;;  %v4549_v13 = vmul.f32 %v10727_v11, %v12535_v35  ;;  %v4742_v12 = vmul.f32 %v11386_v0, %v7492_v17  ;;  %v6977_v46 = vpop.eup %6976  ;;  %v5231_v8 = vadd.f32 1.0, %v6975_v31  ;;  %v12537_v62 = vld [vmem:[#allocation52_spill] sm:$0xff]  ;;  %v12538_v35 = vld [vmem:[#allocation90_spill] sm:$0xff] }
 0x5fc   : > { %v11418_v2 = vadd.f32 %v10760_v53, %v4548_v33  ;;  %6990 = vpow2.f32 %v5914_v45  ;;  %v4534_v50 = vadd.f32 %v12536_v43, %v4486_v34  ;;  %v4838_v19 = vmul.f32 %v11413_v25, %v7503_v26  ;;  %v6979_v22 = vpop.eup %6978 }
 0x5fd   : > { %v4669_v38 = vmul.f32 %v6977_v46, %v11277_v56  ;;  %v11430_v21 = vadd.f32 %v10760_v53, %v4549_v13  ;;  %v4806_v6 = vadd.f32 %v12537_v62, %v4742_v12  ;;  %v6981_v32 = vpop.eup %6980  ;;  %v4670_v17 = vmul.f32 %v6979_v22, %v11285_v36 }
 0x5fe   : > { %v5916_v48 = vmul.f32 -1.442695, %v11418_v2  ;;  %6992 = vrcp.f32 %v5231_v8  ;;  %v4550_v33 = vmul.f32 %v10727_v11, %v4534_v50  ;;  %v4881_v45 = vmul.f32 %v12496_v29, %v7536_v54 }
 0x5ff   : > { %v11438_v26 = vadd.f32 %v11308_v47, %v4669_v38  ;;  %v5232_v56 = vadd.f32 1.0, %v6981_v32  ;;  %v5917_v16 = vmul.f32 -1.442695, %v11430_v21  ;;  %v11442_v28 = vadd.f32 %v11332_v5, %v4670_v17 }
 0x600   : > { %6994 = vpow2.f32 %v5916_v48  ;;  %v6448_v18 = vpack.c.bf16 %v4670_v17, %v4669_v38  ;;  %v11445_v34 = vadd.f32 %v10760_v53, %v4550_v33  ;;  %v4854_v36 = vadd.f32 %v4838_v19, %v4806_v6 }
 0x601   : > { %6996 = vrcp.f32 %v5232_v56  ;;  %v4884_v11 = vmul.f32 %v11386_v0, %v7536_v54  ;;  %v4897_v29 = vadd.f32 %v4881_v45, %v11142_v57  ;;  %v4898_v47 = vadd.f32 %v11259_v24, %v11154_v52  ;;  %v12539_v54 = vld [vmem:[#allocation43_spill] sm:$0xff]  ;;  %v12540_v57 = vld [vmem:[#allocation32_spill] sm:$0xff]  ;;  %v12543_v45 = vld [vmem:[#allocation73_spill] sm:$0xff] }
 0x602   : > { %v6983_v31 = vpop.eup %6982  ;;  %6449 = vmatpush3.bf16.xpose.msra.mxu1 %v6448_v18  ;;  %6998 = vpow2.f32 %v5917_v16  ;;  %v5918_v5 = vmul.f32 -1.442695, %v11445_v34  ;;  %v4902_v13 = vadd.f32 %v12538_v35, %v4854_v36  ;;  %v4977_v53 = vmul.f32 %v12502_v3, %v7539_v55  ;;  %v12541_v24 = vld [vmem:[#allocation84_spill] sm:$0xff]  ;;  %v12542_v3 = vld [vmem:[#allocation114_spill] sm:$0xff] }
 0x603   : > { %v6985_v12 = vpop.eup %6984  ;;  %v4625_v46 = vadd.f32 1.0, %v6983_v31  ;;  %v4900_v8 = vadd.f32 %v4884_v11, %v11268_v15  ;;  %v4945_v43 = vadd.f32 %v12539_v54, %v4897_v29  ;;  %v4946_v50 = vadd.f32 %v12540_v57, %v4898_v47  ;;  %v12544_v36 = vld [vmem:[#allocation26_spill] sm:$0xff] }
 0x604   : > { %v6987_v19 = vpop.eup %6986  ;;  %v4623_v52 = vadd.f32 1.0, %v6985_v12  ;;  %7000 = vpow2.f32 %v5918_v5  ;;  %v4950_v22 = vadd.f32 %v12541_v24, %v4902_v13  ;;  %v4980_v38 = vmul.f32 %v11413_v25, %v7539_v55  ;;  %v11489_v24 = vpop.permute.xlu1 %3015 }
 0x605   : > { %v6989_v48 = vpop.eup %6988  ;;  %v4624_v62 = vadd.f32 1.0, %v6987_v19  ;;  %7002 = vrcp.f32 %v4625_v46  ;;  %v4948_v6 = vadd.f32 %v12542_v3, %v4900_v8  ;;  %v4993_v32 = vadd.f32 %v4977_v53, %v4945_v43 }
 0x606   : > { %v6991_v17 = vpop.eup %6990  ;;  %v4627_v15 = vadd.f32 1.0, %v6989_v48  ;;  %7004 = vrcp.f32 %v4623_v52  ;;  %v4994_v33 = vadd.f32 %v11271_v40, %v4946_v50  ;;  %v4998_v56 = vadd.f32 %v12543_v45, %v4950_v22  ;;  %v12546_v50 = vld [vmem:[#allocation81_spill] sm:$0xff] }
 0x607   : > { %v4626_v16 = vadd.f32 1.0, %v6991_v17  ;;  %7006 = vrcp.f32 %v4624_v62  ;;  %v4996_v18 = vadd.f32 %v4980_v38, %v4948_v6  ;;  %v5025_v11 = vmul.f32 %v12544_v36, %v7553_v4  ;;  %v12548_v6 = vld [vmem:[#allocation71_spill] sm:$0xff] }
 0x608   : > { %v6993_v55 = vpop.eup %6992  ;;  %7008 = vrcp.f32 %v4627_v15  ;;  %v5026_v29 = vmul.f32 %v11386_v0, %v7553_v4  ;;  %v5046_v47 = vadd.f32 %v4998_v56, %v12421_v63  ;;  %v5073_v31 = vmul.f32 %v12489_v41, %v7546_v60  ;;  %v12545_v41 = vld [vmem:[#allocation28_spill] sm:$0xff] }
 0x609   : > { %v5279_v40 = vmul.f32 %v6993_v55, %v11343_v23  ;;  %7010 = vrcp.f32 %v4626_v16  ;;  %v5041_v35 = vadd.f32 %v5025_v11, %v4993_v32  ;;  %v5044_v13 = vadd.f32 %v10888_v37, %v4996_v18  ;;  %v7063_v18 = vld [vmem:[%s11719_s6] ss:$0 sm:$0xff] }
 0x60a   : > { %v6995_v5 = vpop.eup %6994  ;;  %v5042_v12 = vadd.f32 %v5026_v29, %v4994_v33  ;;  %v5074_v46 = vmul.f32 %v12528_v39, %v7546_v60  ;;  %v5094_v8 = vadd.f32 %v5046_v47, %v12423_v44  ;;  %v5121_v23 = vmul.f32 %v11052_v7, %v10826_v59 }
 0x60b   : > { %v4628_v53 = vadd.f32 1.0, %v6995_v5  ;;  %v6997_v4 = vpop.eup %6996  ;;  %v11478_v63 = vadd.f32 %v11406_v58, %v5279_v40  ;;  %v5089_v0 = vadd.f32 %v5073_v31, %v5041_v35  ;;  %v5092_v54 = vadd.f32 %v12545_v41, %v5044_v13  ;;  %v12547_v58 = vld [vmem:[#allocation29_spill] sm:$0xff]  ;;  %v11523_v13 = vpop.permute.xlu1 %3020 }
 0x60c   : > { %v6999_v43 = vpop.eup %6998  ;;  %v5280_v37 = vmul.f32 %v6997_v4, %v11346_v30  ;;  %v5090_v57 = vadd.f32 %v5074_v46, %v5042_v12  ;;  %v5122_v60 = vmul.f32 %v11052_v7, %v11413_v25  ;;  %v5141_v52 = vadd.f32 %v10937_v61, %v12547_v58  ;;  %v7062_v7 = vld [vmem:[%s11718_s5] ss:$0 sm:$0xff] }
 0x60d   : > { %7012 = vrcp.f32 %v4628_v53  ;;  %v4629_v39 = vadd.f32 1.0, %v6999_v43  ;;  %v5137_v44 = vadd.f32 %v5121_v23, %v5089_v0  ;;  %v5140_v19 = vadd.f32 %v12546_v50, %v5092_v54  ;;  %v11534_v0 = vpop.permute.xlu0 %3010 }
 0x60e   : > { %v7001_v22 = vpop.eup %7000  ;;  %v11492_v59 = vadd.f32 %v11399_v10, %v5280_v37  ;;  %v6450_v38 = vpack.c.bf16 %v5280_v37, %v5279_v40  ;;  %v5138_v30 = vadd.f32 %v5122_v60, %v5090_v57  ;;  %v5142_v48 = vadd.f32 %v5094_v8, %v12547_v58 }
 0x60f   : > { %v7003_v62 = vpop.eup %7002  ;;  %v4630_v3 = vadd.f32 1.0, %v7001_v22  ;;  %7014 = vrcp.f32 %v4629_v39  ;;  %v5153_v25 = vmul.f32 %v7062_v7, %v5137_v44  ;;  %v5155_v61 = vmul.f32 %v7062_v7, %v12548_v6  ;;  %v7065_v22 = vld [vmem:[%s7375_s18 + $0x8] sm:$0xff] }
 0x610   : > { %v7005_v32 = vpop.eup %7004  ;;  %6451 = vmatprep.subr.bf16.mxu1 %v6450_v38  ;;  %v11500_v17 = vmul.f32 %v7003_v62, %v11371_v1  ;;  %v5154_v10 = vmul.f32 %v7062_v7, %v5138_v30  ;;  %v5156_v15 = vmul.f32 %v7062_v7, %v5140_v19  ;;  %v5157_v33 = vmul.f32 %v7062_v7, %v5141_v52  ;;  %v12549_v19 = vld [vmem:[#allocation87_spill] sm:$0xff]  ;;  %v11556_v52 = vpop.permute.xlu1 %3025 }
 0x611   : > { %v7007_v45 = vpop.eup %7006  ;;  %v4671_v56 = vmul.f32 %v7005_v32, %v11375_v9  ;;  %7016 = vrcp.f32 %v4630_v3  ;;  %v5158_v16 = vmul.f32 %v7062_v7, %v5142_v48  ;;  %v11506_v36 = vadd.f32 %v7063_v18, %v5153_v25  ;;  %v7066_v48 = vld [vmem:[%s7375_s18 + $0x10] sm:$0xff]  ;;  %v7067_v3 = vld [vmem:[%s7375_s18 + $0x18] sm:$0xff]  ;;  %v12551_v32 = vld [vmem:[#allocation27_spill] sm:$0xff] }
 0x612   : > { %v7009_v11 = vpop.eup %7008  ;;  %v4672_v55 = vmul.f32 %v7007_v45, %v11391_v20  ;;  %v11509_v29 = vadd.f32 %v7063_v18, %v5154_v10  ;;  %v11511_v1 = vadd.f32 %v7063_v18, %v5155_v61  ;;  %v11513_v47 = vadd.f32 %v7063_v18, %v5156_v15  ;;  %v12550_v25 = vld [vmem:[#allocation93_spill] sm:$0xff] }
 0x613   : > { %v7011_v31 = vpop.eup %7010  ;;  %v11516_v9 = vmul.f32 %v7009_v11, %v11378_v27  ;;  %v4698_v5 = vadd.f32 %v11438_v26, %v4671_v56  ;;  %v11519_v40 = vadd.f32 %v7063_v18, %v5157_v33  ;;  %v11521_v35 = vadd.f32 %v7063_v18, %v5158_v16  ;;  %v7068_v33 = vld [vmem:[%s7375_s18 + $0x20] sm:$0xff] }
 0x614   : > { %v11526_v20 = vmul.f32 %v7011_v31, %v11402_v14  ;;  %v4705_v53 = vadd.f32 %v11442_v28, %v4672_v55  ;;  %v6452_v12 = vpack.c.bf16 %v4672_v55, %v4671_v56  ;;  %v5929_v46 = vmul.f32 -1.442695, %v11506_v36  ;;  %v12553_v56 = vld [vmem:[#allocation20_spill] sm:$0xff]  ;;  %v7069_v55 = vld [vmem:[%s7375_s18 + $0x28] sm:$0xff] }
 0x615   : > { %v4699_v8 = vadd.f32 %v4698_v5, %v11500_v17  ;;  %v5930_v27 = vmul.f32 -1.442695, %v11509_v29  ;;  %v5931_v26 = vmul.f32 -1.442695, %v11511_v1  ;;  %v5932_v4 = vmul.f32 -1.442695, %v11513_v47 }
 0x616   : > { %v4706_v54 = vadd.f32 %v4705_v53, %v11526_v20  ;;  %6453 = vmatpush3.bf16.xpose.msra.mxu1 %v6452_v12  ;;  %7018 = vpow2.f32 %v5929_v46  ;;  %v5933_v14 = vmul.f32 -1.442695, %v11519_v40  ;;  %v5934_v28 = vmul.f32 -1.442695, %v11521_v35  ;;  %v7070_v5 = vld [vmem:[%s7375_s18 + $0x30] sm:$0xff]  ;;  %v7071_v12 = vld [vmem:[%s7375_s18 + $0x38] sm:$0xff] }
 0x617   : > { %v7013_v41 = vpop.eup %7012  ;;  %v4700_v43 = vadd.f32 %v4699_v8, %v11516_v9  ;;  %7020 = vpow2.f32 %v5930_v27  ;;  %v6456_v37 = vpack.c.bf16 %v11526_v20, %v11500_v17  ;;  %v3095_v57 = vadd.f32 %v11223_v49, %v11534_v0 }
 0x618   : > { %v11540_v23 = vmul.f32 %v7013_v41, %v11418_v2  ;;  %7022 = vpow2.f32 %v5931_v26  ;;  %v3097_v60 = vadd.f32 %v11240_v51, %v11534_v0  ;;  %v3101_v2 = vadd.f32 %v11255_v42, %v11489_v24  ;;  %v7064_v51 = vld [vmem:[%s7375_s18] sm:$0xff] }
 0x619   : > { %v7015_v39 = vpop.eup %7014  ;;  %7024 = vpow2.f32 %v5932_v4  ;;  %v3103_v58 = vadd.f32 %v12549_v19, %v11489_v24  ;;  %v3117_v42 = vadd.f32 %v7064_v51, %v3095_v57  ;;  %v3107_v6 = vadd.f32 %v12550_v25, %v11523_v13 }
 0x61a   : > { %v4707_v44 = vadd.f32 %v4706_v54, %v11540_v23  ;;  %v6460_v50 = vpack.c.bf16 %v11540_v23, %v11516_v9  ;;  %v11559_v49 = vmul.f32 %v7015_v39, %v11430_v21  ;;  %7026 = vpow2.f32 %v5933_v14  ;;  %v7073_v9 = vld [vmem:[%s11721_s8] sm:$0x1] }
 0x61b   : > { %v3118_v38 = vadd.f32 %v7065_v22, %v3097_v60  ;;  %v7017_v30 = vpop.eup %7016  ;;  %7028 = vpow2.f32 %v5934_v28  ;;  %v3119_v62 = vadd.f32 %v7066_v48, %v3101_v2  ;;  %v3120_v7 = vadd.f32 %v7067_v3, %v3103_v58  ;;  %3125 = vst [vmem:[%s11575_s17] sm:$0xff] %v3117_v42 }
 0x61c   : > { %v11568_v61 = vmul.f32 %v7017_v30, %v11445_v34  ;;  %v11571_v21 = vadd.f32 %v4700_v43, %v11559_v49  ;;  %v3109_v10 = vadd.f32 %v12551_v32, %v11523_v13  ;;  %v12552_v34 = vld [vmem:[#allocation50_spill] sm:$0xff]  ;;  %v3121_v45 = vadd.f32 %v7068_v33, %v3107_v6 }
 0x61d   : > { %3126 = vst [vmem:[%s11575_s17 + $0x8] sm:$0xff] %v3118_v38  ;;  %v3113_v15 = vadd.f32 %v12552_v34, %v11556_v52  ;;  %3127 = vst [vmem:[%s11575_s17 + $0x10] sm:$0xff] %v3119_v62  ;;  %v3115_v16 = vadd.f32 %v12553_v56, %v11556_v52 }
 0x61e   : > { %3128 = vst [vmem:[%s11575_s17 + $0x18] sm:$0xff] %v3120_v7  ;;  %v4708_v18 = vadd.f32 %v4707_v44, %v11568_v61  ;;  %v6464_v11 = vpack.c.bf16 %v11568_v61, %v11559_v49  ;;  %v3122_v31 = vadd.f32 %v7069_v55, %v3109_v10  ;;  %3129 = vst [vmem:[%s11575_s17 + $0x20] sm:$0xff] %v3121_v45 }
 0x61f   : > { %v3123_v53 = vadd.f32 %v7070_v5, %v3113_v15  ;;  %v3124_v46 = vadd.f32 %v7071_v12, %v3115_v16 }
 0x620   : > { %v7019_v8 = vpop.eup %7018  ;;  %3130 = vst [vmem:[%s11575_s17 + $0x28] sm:$0xff] %v3122_v31  ;;  %v7074_v31 = vld [vmem:[%s11723_s10] sm:$0x1] }
 0x621   : > { %3131 = vst [vmem:[%s11575_s17 + $0x30] sm:$0xff] %v3123_v53  ;;  %v7021_v27 = vpop.eup %7020  ;;  %v5233_v26 = vadd.f32 1.0, %v7019_v8  ;;  %3132 = vst [vmem:[%s11575_s17 + $0x38] sm:$0xff] %v3124_v46 }
 0x622   : > { %v7023_v4 = vpop.eup %7022  ;;  %v5234_v41 = vadd.f32 1.0, %v7021_v27 }
 0x623   : > { %v7025_v54 = vpop.eup %7024  ;;  %v5235_v14 = vadd.f32 1.0, %v7023_v4  ;;  %7030 = vrcp.f32 %v5233_v26  ;;  %v12555_v26 = vld [vmem:[#allocation16_spill] sm:$0xff] }
 0x624   : > { %v7027_v28 = vpop.eup %7026  ;;  %v5236_v43 = vadd.f32 1.0, %v7025_v54  ;;  %7032 = vrcp.f32 %v5234_v41  ;;  %v7075_v41 = vld [vmem:[%s11724_s11] sm:$0xff] }
 0x625   : > { %v7029_v57 = vpop.eup %7028  ;;  %v5237_v60 = vadd.f32 1.0, %v7027_v28  ;;  %7034 = vrcp.f32 %v5235_v14  ;;  %v7076_v14 = vld [vmem:[%s11724_s11 + $0x8] sm:$0xff] }
 0x626   : > { %v5238_v2 = vadd.f32 1.0, %v7029_v57  ;;  %7036 = vrcp.f32 %v5236_v43  ;;  %v7077_v43 = vld [vmem:[%s11724_s11 + $0x10] sm:$0xff] }
 0x627   : > { %7038 = vrcp.f32 %v5237_v60  ;;  %v7078_v60 = vld [vmem:[%s11724_s11 + $0x18] sm:$0xff] }
 0x628   : > { %7040 = vrcp.f32 %v5238_v2 }
 0x62d   : > { %v7031_v39 = vpop.eup %7030 }
 0x62e   : > { %v7033_v44 = vpop.eup %7032  ;;  %v5281_v19 = vmul.f32 %v7031_v39, %v11506_v36 }
 0x62f   : > { %v7035_v58 = vpop.eup %7034  ;;  %v5282_v49 = vmul.f32 %v7033_v44, %v11509_v29 }
 0x630   : > { %v7037_v51 = vpop.eup %7036  ;;  %v5283_v42 = vmul.f32 %v7035_v58, %v11511_v1  ;;  %v5307_v22 = vadd.f32 %v11478_v63, %v5281_v19 }
 0x631   : > { %v7039_v38 = vpop.eup %7038  ;;  %v5284_v30 = vmul.f32 %v7037_v51, %v11513_v47  ;;  %v5314_v48 = vadd.f32 %v11492_v59, %v5282_v49  ;;  %v6454_v62 = vpack.c.bf16 %v5282_v49, %v5281_v19  ;;  %v7079_v49 = vld [vmem:[%s7375_s18 + $0x40] sm:$0xff] }
 0x632   : > { %v7041_v3 = vpop.eup %7040  ;;  %v5285_v7 = vmul.f32 %v7039_v38, %v11519_v40  ;;  %v5308_v25 = vadd.f32 %v5307_v22, %v5283_v42 }
 0x633   : > { %v5286_v36 = vmul.f32 %v7041_v3, %v11521_v35  ;;  %v5315_v6 = vadd.f32 %v5314_v48, %v5284_v30  ;;  %6455 = vmatprep.subr.bf16.mxu1 %v6454_v62  ;;  %v6458_v29 = vpack.c.bf16 %v5284_v30, %v5283_v42  ;;  %v7080_v42 = vld [vmem:[%s7375_s18 + $0x48] sm:$0xff]  ;;  %v7081_v3 = vld [vmem:[%s7375_s18 + $0x50] sm:$0xff] }
 0x634   : > { %v5309_v61 = vadd.f32 %v5308_v25, %v5285_v7  ;;  %6457 = vmatpush3.bf16.xpose.msra.mxu1 %v6456_v37  ;;  %v7072_v37 = vld [vmem:[%s11722_s9] sm:$0xff] }
 0x635   : > { %v5316_v63 = vadd.f32 %v5315_v6, %v5286_v36  ;;  %6459 = vmatprep.subr.bf16.mxu1 %v6458_v29  ;;  %v6462_v1 = vpack.c.bf16 %v5286_v36, %v5285_v7  ;;  %v7082_v7 = vld [vmem:[%s7375_s18 + $0x58] sm:$0xff] }
 0x636   : > { %v5317_v59 = vadd.f32 %v5309_v61, %v11571_v21  ;;  %v12554_v21 = vmov 0.0  }
 0x637   : > { %v5318_v47 = vadd.f32 %v5316_v63, %v4708_v18  ;;  %v7083_v63 = vld [vmem:[%s7375_s18 + $0x60] sm:$0xff] }
 0x639   : > { %v5319_v32 = vadd.f32 %v5318_v47, %v5317_v59 }
 0x63b   : > { %v5320_v10 = vrot.slane %v5319_v32, 4 }
 0x63c   : > { %6461 = vmatpush3.bf16.xpose.msra.mxu1 %v6460_v50 }
 0x63d   : > { %v5321_v40 = vadd.f32 %v5320_v10, %v5319_v32  ;;  %6463 = vmatprep.subr.bf16.mxu1 %v6462_v1  ;;  %v7084_v1 = vld [vmem:[%s7375_s18 + $0x68] sm:$0xff] }
 0x63f   : > { %v5322_v35 = vrot.slane %v5321_v40, 2 }
 0x641   : > { %v5323_v34 = vadd.f32 %v5322_v35, %v5321_v40 }
 0x643   : > { %v5324_v15 = vrot.slane %v5323_v34, 1 }
 0x644   : > { %6465 = vmatpush3.bf16.xpose.msra.mxu1 %v6464_v11 }
 0x645   : > { %v5325_v17 = vadd.f32 %v5324_v15, %v5323_v34  ;;  %v7086_v34 = vld [vmem:[%s7375_s18 + $0x78] sm:$0xff] }
 0x647   : > { %v5326_v20 = vmul.f32 0.00390625, %v5325_v17 }
 0x649   : > { %6331 = vmatmul.mubr.f32.vlgmr.msra.gmra.mrb[40].mxu0 %v5326_v20 }
 0x64a   : > { %6334 = vmatpush3.msra.mxu0 %v7072_v37  ;;  %6335 = vmatprep.mubr.msk.f32.mxu0 %vm7190_vm5, %v12554_v21 }
 0x71c   : > { %v5393_v33 = vpop.f32.mrb[40].mxu0 }
 0x71d   : > { %v5394_v23 = vadd.f32 %v7073_v9, %v5393_v33  ;;  %v6332_v50 = vpop.f32.mrb[41].mxu0 }
 0x71f   : > { %v5935_v45 = vmul.f32 -1.442695, %v5394_v23 }
 0x721   : > { %7042 = vpow2.f32 %v5935_v45 }
 0x72b   : > { %v7043_v56 = vpop.eup %7042 }
 0x72c   : > { %v5400_v16 = vadd.f32 1.0, %v7043_v56 }
 0x72e   : > { %7044 = vrcp.f32 %v5400_v16 }
 0x738   : > { %v7045_v18 = vpop.eup %7044 }
 0x739   : > { %v5403_v11 = vmul.f32 %v7045_v18, %v5394_v23 }
 0x73b   : > { %6336 = vmatmul.mubr.msk.f32.vlgmr.msra.gmra.mrb[42].mxu0 %vm2888_vm6, %v5403_v11 }
 0x80e   : > { %v5473_v55 = vpop.f32.mrb[42].mxu0 }
 0x80f   : > { %v5474_v5 = vadd.f32 %v7074_v31, %v5473_v55  ;;  %v6337_v53 = vpop.f32.mrb[43].mxu0 }
 0x811   : > { %v5937_v12 = vmul.f32 -1.442695, %v5474_v5 }
 0x813   : > { %7046 = vpow2.f32 %v5937_v12 }
 0x81d   : > { %v7047_v46 = vpop.eup %7046 }
 0x81e   : > { %v5480_v8 = vadd.f32 1.0, %v7047_v46 }
 0x820   : > { %7048 = vrcp.f32 %v5480_v8 }
 0x82a   : > { %v7049_v27 = vpop.eup %7048 }
 0x82b   : > { %v5486_v4 = vrot.slane %v7049_v27, %v12555_v26 }
 0x82d   : > { %v5487_v54 = vmul.f32 %v7075_v41, %v5486_v4  ;;  %v5488_v28 = vmul.f32 %v7076_v14, %v5486_v4  ;;  %v5489_v57 = vmul.f32 %v7077_v43, %v5486_v4  ;;  %v5490_v2 = vmul.f32 %v7078_v60, %v5486_v4 }
 0x82f   : > { %6138 = vmatprep.mubr.f32.mxu1 %v5487_v54 }
 0x830   : > { %6139 = vmatmul.mubr.f32.vlgmr.msra.gmra.mrb[36].mxu1 %v5487_v54 }
 0x831   : > { %6140 = vmatprep.mubr.f32.mxu1 %v5488_v28 }
 0x834   : > { %6141 = vmatmul.mubr.f32.gmra.mrb[38].mxu1 %v5488_v28 }
 0x835   : > { %6142 = vmatprep.mubr.f32.mxu1 %v5489_v57 }
 0x838   : > { %6143 = vmatmul.mubr.f32.gmra.mrb[40].mxu1 %v5489_v57 }
 0x839   : > { %6144 = vmatprep.mubr.f32.mxu1 %v5490_v2 }
 0x83c   : > { %6145 = vmatmul.mubr.f32.gmra.mrb[42].mxu1 %v5490_v2 }
 0x903   : > { %v5589_v39 = vpop.f32.mrb[36].mxu1 }
 0x904   : > { %v5590_v44 = vadd.f32 %v5589_v39, %v11534_v0  ;;  %v5591_v19 = vpop.f32.mrb[37].mxu1 }
 0x905   : > { %v5592_v58 = vadd.f32 %v5591_v19, %v11534_v0 }
 0x906   : > { %v5612_v51 = vadd.f32 %v7079_v49, %v5590_v44 }
 0x907   : > { %v5613_v22 = vadd.f32 %v7080_v42, %v5592_v58  ;;  %v5595_v38 = vpop.f32.mrb[38].mxu1 }
 0x908   : > { %5938 = vst [vmem:[%s11575_s17 + $0x40] sm:$0xff] %v5612_v51  ;;  %v5596_v30 = vadd.f32 %v5595_v38, %v11489_v24  ;;  %v5597_v48 = vpop.f32.mrb[39].mxu1 }
 0x909   : > { %5939 = vst [vmem:[%s11575_s17 + $0x48] sm:$0xff] %v5613_v22  ;;  %v5598_v62 = vadd.f32 %v5597_v48, %v11489_v24 }
 0x90a   : > { %v5614_v0 = vadd.f32 %v7081_v3, %v5596_v30 }
 0x90b   : > { %v5615_v25 = vadd.f32 %v7082_v7, %v5598_v62  ;;  %v5601_v36 = vpop.f32.mrb[40].mxu1 }
 0x90c   : > { %5940 = vst [vmem:[%s11575_s17 + $0x50] sm:$0xff] %v5614_v0  ;;  %v5602_v6 = vadd.f32 %v5601_v36, %v11523_v13  ;;  %v5603_v29 = vpop.f32.mrb[41].mxu1 }
 0x90d   : > { %5941 = vst [vmem:[%s11575_s17 + $0x58] sm:$0xff] %v5615_v25  ;;  %v5604_v61 = vadd.f32 %v5603_v29, %v11523_v13  ;;  %v7085_v13 = vld [vmem:[%s7375_s18 + $0x70] sm:$0xff] }
 0x90e   : > { %v5616_v24 = vadd.f32 %v7083_v63, %v5602_v6 }
 0x90f   : > { %v5617_v59 = vadd.f32 %v7084_v1, %v5604_v61  ;;  %v5607_v47 = vpop.f32.mrb[42].mxu1 }
 0x910   : > { %5942 = vst [vmem:[%s11575_s17 + $0x60] sm:$0xff] %v5616_v24  ;;  %v5608_v32 = vadd.f32 %v5607_v47, %v11556_v52  ;;  %v5609_v10 = vpop.f32.mrb[43].mxu1 }
 0x911   : > { %5943 = vst [vmem:[%s11575_s17 + $0x68] sm:$0xff] %v5617_v59  ;;  %v5610_v40 = vadd.f32 %v5609_v10, %v11556_v52 }
 0x912   : > { %v5618_v35 = vadd.f32 %v7085_v13, %v5608_v32 }
 0x913   : > { %v5619_v15 = vadd.f32 %v7086_v34, %v5610_v40 }
 0x914   : > { %5944 = vst [vmem:[%s11575_s17 + $0x70] sm:$0xff] %v5618_v35 }
 0x915   : > { %5945 = vst [vmem:[%s11575_s17 + $0x78] sm:$0xff] %v5619_v15 }
 0x916   : > { %7130 = shalt.err (!%p7127_p2)
}
 0x917   : > { %s7131_s18 = scalar_lea.hbm %s11664_s22, 2048  ;;  %s7135_s27 = scalar_lea.hbm %s11726_s13, 4096 }
 0x918   : > { %p7132_p4 = scmp.ne.s32.totalorder %s11664_s22, %s7131_s18  ;;  %p7136_p9 = scmp.lt.u32.totalorder %s11664_s22, %s11726_s13 }
 0x919   : > { %p7137_p1 = scmp.lt.u32.totalorder %s7135_s27, %s7131_s18  ;;  %p7139_p6 = scmp.lt.u32.totalorder %s7131_s18, %s11664_s22 }
 0x91a   : > { %p7133_p5 = pnand %p7132_p4, %p12556_p11 }
 0x91b   : > { %p7138_p3 = por %p7137_p1, %p7136_p9 }
 0x91c   : > { %p7134_p7 = pneg %p7133_p5 }
 0x91d   : > { %p7140_p12 = por %p7139_p6, %p7138_p3 }
 0x91f   : > { %p7141_p13 = pnand %p7140_p12, %p7134_p7 }
 0x921   : > { %7144 = shalt.err (!%p7141_p13)
}
 0x922   : > { %s7193_s19 = smov 256   ;;  %s7194_s15 = smov 16  }
 0x923   : > { %6468 = dma.vmem_to_hbm [thread:$0]  (%p12556_p11), %s11666_s25, 2048, %s11664_s22, %s5630_s29, %s7193_s19, %s7193_s19, %s7194_s15  }
 0x924 PF: > { %s12557_s24 = sld [smem:[#allocation10_spill]]  ;;  %p12558_p8 = scmp.ne.s32.totalorder %s11912_s21, 0 }
 0x925   : > { %p12559_p10 = scmp.ge.s32.totalorder %s7183_s28, 2 }
 0x927   : > { %p6475_p0 = pnand %p12559_p10, %p12558_p8 }
 0x92a   : > { %s5659_s17 = sand.u32 1, %s12557_s24  }
 0x92b   : > { %s5660_s18 = scalar_lea.sflag [#allocation6], %s5659_s17 }
 0x92c   : > { %7166 = dma.done.wait (!%p6475_p0), %s5660_s18, 2048  }
 0x92d   : > { %7168 = vsyncadd (!%p6475_p0), %s5660_s18, 4294965248  ;;  %s12560_s28 = sld [smem:[#allocation12_spill]]  ;;  %s12561_s23 = sld [smem:[#allocation11_spill]] }
 0x92e   : > { %s12562_s27 = sld [smem:[#allocation13_spill]]  ;;  %s12563_s25 = smov %s7175_s26 }
 0x933   : > { %p26_p2 = scmp.ge.s32.totalorder %s12560_s28, 4   ;;  %s12564_s26 = smov %s12561_s23 }
 0x935   :  { %28 = sbr.rel (!%p26_p2) target bundleno = 5 (0x5), region = 140 }
 0x93c   :  { %5665 = vsyncpa [#allocation5], 1 }
 0x93d   :  { %5667 = vsyncpa [#allocation5 + $0x1], 1 }
 0x93e   :  { %5668 = vsyncpa [#allocation6], 1 }
 0x93f   :  { %5670 = vsyncpa [#allocation6 + $0x1], 1 }

</bundles_post_ra>
